<compile_context>
chip_gen: v5e
topology: v5e:2x2
jax: 0.10.0
libtpu: 0.0.40
codegen_flags: <defaults>
</compile_context>

<pallas_src>
import functools
import numpy as np
import jax
import jax.numpy as jnp
from jax.experimental import pallas as pl
from jax.experimental.pallas import tpu as pltpu

LANE = 128  # lane-dense output width (>= manifold_dim, multiple of 128)


def _transition_kernel(x_ref,
                       wih0_ref, whh0_ref, b0_ref,
                       wih1_ref, whh1_ref, b1_ref,
                       wo1_ref, bo1_ref, wo2_ref, bo2_ref,
                       wr1p_ref, wr1x_ref, br1_ref, wr2_ref, br2_ref,
                       out_ref,
                       g0pre_ref, h1_all_ref,
                       *, T, B):
    H = whh0_ref.shape[0]          # hidden dim (static)
    f32 = jnp.float32

    def leaky(v):                  # LeakyReLU(0.2): single VPU max
        return jnp.maximum(v, 0.2 * v)

    def gates_to_hc(gates, c):
        # gate layout was permuted host-side to (i, f, o, g):
        # one contiguous [B, 3H] sigmoid slab + one [B, H] tanh slab (fewer,
        # wider EUP pushes on the serial chain).
        sig = jax.nn.sigmoid(gates[:, :3 * H])
        i = sig[:, 0 * H:1 * H]
        f = sig[:, 1 * H:2 * H]
        o = sig[:, 2 * H:3 * H]
        g = jnp.tanh(gates[:, 3 * H:4 * H])
        c_new = f * c + i * g
        h_new = o * jnp.tanh(c_new)
        return h_new, c_new

    # ---- hoisted input projection for LSTM layer 0 (one [T*B,d_in]@[d_in,4H]) ----
    g0pre_ref[...] = (jnp.dot(x_ref[...], wih0_ref[...],
                              preferred_element_type=f32) + b0_ref[...])

    whh0 = whh0_ref[...]
    wih1 = wih1_ref[...]
    whh1 = whh1_ref[...]
    b1_full = jnp.broadcast_to(b1_ref[...], (B, 4 * H))   # hoisted broadcast

    # TODO(synk): keep whh0 / wih1 / whh1 resident in the MXU across the unrolled
    # T loop with pltpu.matmul_push_rhs / matmul_acc_lhs / matmul_pop (tile split
    # is chip-specific: 4x128^2 on v5e vs 2x256^2 on v6e/v7x).

    # ---- serial recurrence: only the two LSTM cells remain on the chain ----
    def body(t, carry):
        h0, c0, h1, c1 = carry
        row = pl.multiple_of(t * B, B)

        # layer-1 recurrent half: depends only on the previous step's h1, so it
        # is issued here and overlaps the layer-0 cell below.
        g1_rec = jnp.dot(h1, whh1, preferred_element_type=f32) + b1_full

        # layer 0: input projection precomputed, only the recurrent dot here
        g0 = g0pre_ref[pl.ds(row, B), :] + jnp.dot(
            h0, whh0, preferred_element_type=f32)
        h0, c0 = gates_to_hc(g0, c0)

        # layer 1: only the fresh-h0 half waits on layer 0
        g1 = g1_rec + jnp.dot(h0, wih1, preferred_element_type=f32)
        h1, c1 = gates_to_hc(g1, c1)

        h1_all_ref[pl.ds(row, B), :] = h1
        return h0, c0, h1, c1

    z = jnp.zeros((B, H), f32)
    jax.lax.fori_loop(0, T, body, (z, z, z, z), unroll=True)

    # ---- heads, batched over all T*B rows (out of the serial chain) ----
    # Note: MXU default f32 precision is not full fp32; pass
    # precision=jax.lax.Precision.HIGHEST here if bit-level parity with the
    # PyTorch fp32 module is required.
    h1_all = h1_all_ref[...]                                          # [T*B, H]
    hid = leaky(jnp.dot(h1_all, wo1_ref[...], preferred_element_type=f32)
                + bo1_ref[...])
    path = (jnp.dot(hid, wo2_ref[...], preferred_element_type=f32)
            + bo2_ref[...])                                           # [T*B, LANE]

    # refine head on concat([path, inputs]) == split matmul (no in-kernel concat);
    # wr1p rows are zero-padded to LANE so the K dim matches the padded `path`.
    rx = (jnp.dot(x_ref[...], wr1x_ref[...], preferred_element_type=f32)
          + br1_ref[...])
    rhid = leaky(jnp.dot(path, wr1p_ref[...], preferred_element_type=f32) + rx)
    refined = (jnp.dot(rhid, wr2_ref[...], preferred_element_type=f32)
               + br2_ref[...])                                        # [T*B, LANE]

    out_ref[...] = (path + refined).astype(out_ref.dtype)             # one lane-dense store


def init_params(key, manifold_dim=8, hidden_dim=128):
    """Deterministic synthetic parameters (shapes match the PyTorch module).

    Layout matches PyTorch (gate order i,f,g,o), stored transposed for x @ W.
    The wrapper performs the (i,f,o,g) gate permutation and lane padding.
    """
    md, H = manifold_dim, hidden_dim
    d_in = 2 * md + 1
    ks = jax.random.split(key, 15)

    def u(k, shape, fan_in):
        s = 1.0 / np.sqrt(fan_in)
        return jax.random.uniform(k, shape, jnp.float32, -s, s)

    return dict(
        # LSTM layer 0 (weights stored transposed: x @ W)
        wih0=u(ks[0], (d_in, 4 * H), H), whh0=u(ks[1], (H, 4 * H), H),
        b0=u(ks[2], (1, 4 * H), H),                       # b_ih + b_hh fused
        # LSTM layer 1
        wih1=u(ks[3], (H, 4 * H), H), whh1=u(ks[4], (H, 4 * H), H),
        b1=u(ks[5], (1, 4 * H), H),
        # output head
        wo1=u(ks[6], (H, H), H), bo1=u(ks[7], (1, H), H),
        wo2=u(ks[8], (H, md), H), bo2=u(ks[9], (1, md), H),
        # refine head (first linear split: rows [:md]->path part, [md:]->input part)
        wr1p=u(ks[10], (md, H), md + d_in), wr1x=u(ks[11], (d_in, H), md + d_in),
        br1=u(ks[12], (1, H), md + d_in),
        wr2=u(ks[13], (H, md), H), br2=u(ks[14], (1, md), H),
    )


def _ifgo_to_ifog(w):
    """Permute 4H gate columns from PyTorch (i,f,g,o) to kernel (i,f,o,g)."""
    i, f, g, o = jnp.split(w, 4, axis=-1)
    return jnp.concatenate([i, f, o, g], axis=-1)


def _pad_cols(w, n):
    return jnp.pad(w, [(0, 0)] * (w.ndim - 1) + [(0, n - w.shape[-1])])


def _pad_rows(w, n):
    return jnp.pad(w, [(0, n - w.shape[0])] + [(0, 0)] * (w.ndim - 1))


def transition_sampler_forward(start_points, end_points, params, num_steps=16):
    """Equivalent of TransitionSampler.forward.

    start_points, end_points: [B, manifold_dim]
    returns: [B, num_steps, manifold_dim]
    """
    B, md = start_points.shape
    T = num_steps
    d_in = 2 * md + 1
    H = params["whh0"].shape[0]
    B_pad = max(8, -(-B // 8) * 8)                 # sublane-full f32 vregs

    # ---- glue: pad batch, build time-major flattened inputs [T*B_pad, d_in] ----
    sp = jnp.zeros((B_pad, md), jnp.float32).at[:B, :].set(start_points)
    ep = jnp.zeros((B_pad, md), jnp.float32).at[:B, :].set(end_points)

    t = jnp.linspace(0.0, 1.0, T, dtype=jnp.float32)
    start_e = jnp.broadcast_to(sp[None, :, :], (T, B_pad, md))
    end_e = jnp.broadcast_to(ep[None, :, :], (T, B_pad, md))
    t_e = jnp.broadcast_to(t[:, None, None], (T, B_pad, 1))
    inputs = jnp.concatenate([start_e, end_e, t_e], axis=-1).astype(jnp.float32)
    x_flat = inputs.reshape(T * B_pad, d_in)

    p = params
    # one-time host-side transforms (zero runtime cost inside the kernel):
    #  * gate columns permuted (i,f,g,o) -> (i,f,o,g)
    #  * md-wide head outputs zero-padded to LANE columns (lane-dense stores)
    wih0 = _ifgo_to_ifog(p["wih0"]); whh0 = _ifgo_to_ifog(p["whh0"])
    b0 = _ifgo_to_ifog(p["b0"])
    wih1 = _ifgo_to_ifog(p["wih1"]); whh1 = _ifgo_to_ifog(p["whh1"])
    b1 = _ifgo_to_ifog(p["b1"])
    wo2 = _pad_cols(p["wo2"], LANE); bo2 = _pad_cols(p["bo2"], LANE)
    wr2 = _pad_cols(p["wr2"], LANE); br2 = _pad_cols(p["br2"], LANE)
    wr1p = _pad_rows(p["wr1p"], LANE)              # K-pad matching padded `path`

    flat = (wih0, whh0, b0,
            wih1, whh1, b1,
            p["wo1"], p["bo1"], wo2, bo2,
            wr1p, p["wr1x"], p["br1"], wr2, br2)

    vmem = pl.BlockSpec(memory_space=pltpu.MemorySpace.VMEM)
    out = pl.pallas_call(
        functools.partial(_transition_kernel, T=T, B=B_pad),
        out_shape=jax.ShapeDtypeStruct((T * B_pad, LANE), jnp.float32),
        in_specs=[vmem] * (1 + len(flat)),
        out_specs=vmem,
        scratch_shapes=[pltpu.VMEM((T * B_pad, 4 * H), jnp.float32),  # g0pre
                        pltpu.VMEM((T * B_pad, H), jnp.float32)],     # h1 history
    )(x_flat, *flat)

    # back to batch-first [B, T, md], dropping batch padding and lane padding
    out = out.reshape(T, B_pad, LANE)[:, :B, :md]
    return jnp.transpose(out, (1, 0, 2))


if __name__ == "__main__":
    manifold_dim = 8
    hidden_dim = 128
    num_steps = 8
    batch = 2

    key = jax.random.PRNGKey(0)
    k_params, k_start, k_end = jax.random.split(key, 3)

    params = init_params(k_params, manifold_dim, hidden_dim)
    start_points = jax.random.normal(k_start, (batch, manifold_dim), jnp.float32)
    end_points = jax.random.normal(k_end, (batch, manifold_dim), jnp.float32)

    path = transition_sampler_forward(start_points, end_points, params,
                                      num_steps=num_steps)
    jax.block_until_ready(path)
    assert path.shape == (batch, num_steps, manifold_dim)
    # TODO(synk): for large production batches, add a batch grid axis with
    # dimension_semantics=("parallel",) (engages v7x's second TensorCore) and
    # size the batch tile against v7x's 64 MiB VMEM (~512 rows at T=16, H=128).
    print("KERNEL_OK")
</pallas_src>

<mosaic_0001>
module attributes {stable_mosaic.version = 11 : i64} {
  func.func @_transition_kernel(%arg0: memref<64x17xf32, #tpu.memory_space<vmem>>, %arg1: memref<17x512xf32, #tpu.memory_space<vmem>>, %arg2: memref<128x512xf32, #tpu.memory_space<vmem>>, %arg3: memref<1x512xf32, #tpu.memory_space<vmem>>, %arg4: memref<128x512xf32, #tpu.memory_space<vmem>>, %arg5: memref<128x512xf32, #tpu.memory_space<vmem>>, %arg6: memref<1x512xf32, #tpu.memory_space<vmem>>, %arg7: memref<128x128xf32, #tpu.memory_space<vmem>>, %arg8: memref<1x128xf32, #tpu.memory_space<vmem>>, %arg9: memref<128x128xf32, #tpu.memory_space<vmem>>, %arg10: memref<1x128xf32, #tpu.memory_space<vmem>>, %arg11: memref<128x128xf32, #tpu.memory_space<vmem>>, %arg12: memref<17x128xf32, #tpu.memory_space<vmem>>, %arg13: memref<1x128xf32, #tpu.memory_space<vmem>>, %arg14: memref<128x128xf32, #tpu.memory_space<vmem>>, %arg15: memref<1x128xf32, #tpu.memory_space<vmem>>, %arg16: memref<64x128xf32, #tpu.memory_space<vmem>>, %arg17: memref<64x512xf32, #tpu.memory_space<vmem>>, %arg18: memref<64x128xf32, #tpu.memory_space<vmem>>) attributes {dimension_semantics = [], scalar_prefetch = 0 : i64, scratch_operands = 2 : i64, tpu.core_type = #tpu.core_type<tc>} {
    %c0 = arith.constant 0 : index
    %c0_0 = arith.constant 0 : index
    %0 = vector.load %arg0[%c0, %c0_0] : memref<64x17xf32, #tpu.memory_space<vmem>>, vector<64x17xf32>
    %c0_1 = arith.constant 0 : index
    %c0_2 = arith.constant 0 : index
    %1 = vector.load %arg1[%c0_1, %c0_2] : memref<17x512xf32, #tpu.memory_space<vmem>>, vector<17x512xf32>
    %cst = arith.constant dense<0.000000e+00> : vector<64x512xf32>
    %2 = tpu.matmul %0, %1, %cst {dimension_numbers = #tpu.dot_dimension_numbers<[1], [0], [0], [1], [0, 0, 1, 1], [], []>} : vector<64x17xf32>, vector<17x512xf32>, vector<64x512xf32> -> vector<64x512xf32>
    %c0_3 = arith.constant 0 : index
    %c0_4 = arith.constant 0 : index
    %3 = vector.load %arg3[%c0_3, %c0_4] : memref<1x512xf32, #tpu.memory_space<vmem>>, vector<1x512xf32>
    %4 = vector.broadcast %3 : vector<1x512xf32> to vector<64x512xf32>
    %5 = arith.addf %2, %4 : vector<64x512xf32>
    %c0_5 = arith.constant 0 : index
    %c0_6 = arith.constant 0 : index
    %6 = vector.load %arg17[%c0_5, %c0_6] : memref<64x512xf32, #tpu.memory_space<vmem>>, vector<64x512xf32>
    tpu.vector_store %arg17[%c0_5, %c0_6], %5 {strides = array<i32>} : memref<64x512xf32, #tpu.memory_space<vmem>>, vector<64x512xf32>,
    %c0_7 = arith.constant 0 : index
    %c0_8 = arith.constant 0 : index
    %7 = vector.load %arg2[%c0_7, %c0_8] : memref<128x512xf32, #tpu.memory_space<vmem>>, vector<128x512xf32>
    %c0_9 = arith.constant 0 : index
    %c0_10 = arith.constant 0 : index
    %8 = vector.load %arg4[%c0_9, %c0_10] : memref<128x512xf32, #tpu.memory_space<vmem>>, vector<128x512xf32>
    %c0_11 = arith.constant 0 : index
    %c0_12 = arith.constant 0 : index
    %9 = vector.load %arg5[%c0_11, %c0_12] : memref<128x512xf32, #tpu.memory_space<vmem>>, vector<128x512xf32>
    %c0_13 = arith.constant 0 : index
    %c0_14 = arith.constant 0 : index
    %10 = vector.load %arg6[%c0_13, %c0_14] : memref<1x512xf32, #tpu.memory_space<vmem>>, vector<1x512xf32>
    %11 = vector.shape_cast %10 : vector<1x512xf32> to vector<1x512xf32>
    %12 = vector.broadcast %11 : vector<1x512xf32> to vector<8x512xf32>
    %cst_15 = arith.constant 0.000000e+00 : f32
    %13 = vector.broadcast %cst_15 : f32 to vector<8x128xf32>
    %c0_i32 = arith.constant 0 : i32
    %c8_i32 = arith.constant 8 : i32
    %14 = arith.muli %c0_i32, %c8_i32 : i32
    %15 = tpu.assume_multiple %14, 8 : i32
    %cst_16 = arith.constant dense<0.000000e+00> : vector<8x512xf32>
    %16 = tpu.matmul %13, %9, %cst_16 {dimension_numbers = #tpu.dot_dimension_numbers<[1], [0], [0], [1], [0, 0, 1, 1], [], []>} : vector<8x128xf32>, vector<128x512xf32>, vector<8x512xf32> -> vector<8x512xf32>
    %17 = arith.addf %16, %12 : vector<8x512xf32>
    %18 = arith.index_cast %15 : i32 to index
    %c0_17 = arith.constant 0 : index
    %19 = vector.load %arg17[%18, %c0_17] : memref<64x512xf32, #tpu.memory_space<vmem>>, vector<8x512xf32>
    %cst_18 = arith.constant dense<0.000000e+00> : vector<8x512xf32>
    %20 = tpu.matmul %13, %7, %cst_18 {dimension_numbers = #tpu.dot_dimension_numbers<[1], [0], [0], [1], [0, 0, 1, 1], [], []>} : vector<8x128xf32>, vector<128x512xf32>, vector<8x512xf32> -> vector<8x512xf32>
    %21 = arith.addf %19, %20 : vector<8x512xf32>
    %22 = vector.extract_strided_slice %21 {offsets = [0, 0], sizes = [8, 384], strides = [1, 1]} : vector<8x512xf32> to vector<8x384xf32>
    %23 = arith.negf %22 : vector<8x384xf32>
    %24 = math.exp %23 : vector<8x384xf32>
    %cst_19 = arith.constant 1.000000e+00 : f32
    %25 = vector.broadcast %cst_19 : f32 to vector<8x384xf32>
    %26 = arith.addf %25, %24 : vector<8x384xf32>
    %27 = arith.divf %25, %26 : vector<8x384xf32>
    %28 = vector.extract_strided_slice %27 {offsets = [0, 0], sizes = [8, 128], strides = [1, 1]} : vector<8x384xf32> to vector<8x128xf32>
    %29 = vector.extract_strided_slice %27 {offsets = [0, 128], sizes = [8, 128], strides = [1, 1]} : vector<8x384xf32> to vector<8x128xf32>
    %30 = vector.extract_strided_slice %27 {offsets = [0, 256], sizes = [8, 128], strides = [1, 1]} : vector<8x384xf32> to vector<8x128xf32>
    %31 = vector.extract_strided_slice %21 {offsets = [0, 384], sizes = [8, 128], strides = [1, 1]} : vector<8x512xf32> to vector<8x128xf32>
    %32 = math.tanh %31 : vector<8x128xf32>
    %33 = arith.mulf %29, %13 : vector<8x128xf32>
    %34 = arith.mulf %28, %32 : vector<8x128xf32>
    %35 = arith.addf %33, %34 : vector<8x128xf32>
    %36 = math.tanh %35 : vector<8x128xf32>
    %37 = arith.mulf %30, %36 : vector<8x128xf32>
    %cst_20 = arith.constant dense<0.000000e+00> : vector<8x512xf32>
    %38 = tpu.matmul %37, %8, %cst_20 {dimension_numbers = #tpu.dot_dimension_numbers<[1], [0], [0], [1], [0, 0, 1, 1], [], []>} : vector<8x128xf32>, vector<128x512xf32>, vector<8x512xf32> -> vector<8x512xf32>
    %39 = arith.addf %17, %38 : vector<8x512xf32>
    %40 = vector.extract_strided_slice %39 {offsets = [0, 0], sizes = [8, 384], strides = [1, 1]} : vector<8x512xf32> to vector<8x384xf32>
    %41 = arith.negf %40 : vector<8x384xf32>
    %42 = math.exp %41 : vector<8x384xf32>
    %cst_21 = arith.constant 1.000000e+00 : f32
    %43 = vector.broadcast %cst_21 : f32 to vector<8x384xf32>
    %44 = arith.addf %43, %42 : vector<8x384xf32>
    %45 = arith.divf %43, %44 : vector<8x384xf32>
    %46 = vector.extract_strided_slice %45 {offsets = [0, 0], sizes = [8, 128], strides = [1, 1]} : vector<8x384xf32> to vector<8x128xf32>
    %47 = vector.extract_strided_slice %45 {offsets = [0, 128], sizes = [8, 128], strides = [1, 1]} : vector<8x384xf32> to vector<8x128xf32>
    %48 = vector.extract_strided_slice %45 {offsets = [0, 256], sizes = [8, 128], strides = [1, 1]} : vector<8x384xf32> to vector<8x128xf32>
    %49 = vector.extract_strided_slice %39 {offsets = [0, 384], sizes = [8, 128], strides = [1, 1]} : vector<8x512xf32> to vector<8x128xf32>
    %50 = math.tanh %49 : vector<8x128xf32>
    %51 = arith.mulf %47, %13 : vector<8x128xf32>
    %52 = arith.mulf %46, %50 : vector<8x128xf32>
    %53 = arith.addf %51, %52 : vector<8x128xf32>
    %54 = math.tanh %53 : vector<8x128xf32>
    %55 = arith.mulf %48, %54 : vector<8x128xf32>
    %56 = arith.index_cast %15 : i32 to index
    %c0_22 = arith.constant 0 : index
    %57 = vector.load %arg18[%56, %c0_22] : memref<64x128xf32, #tpu.memory_space<vmem>>, vector<8x128xf32>
    tpu.vector_store %arg18[%56, %c0_22], %55 {strides = array<i32>} : memref<64x128xf32, #tpu.memory_space<vmem>>, vector<8x128xf32>,
    %c1_i32 = arith.constant 1 : i32
    %c8_i32_23 = arith.constant 8 : i32
    %58 = arith.muli %c1_i32, %c8_i32_23 : i32
    %59 = tpu.assume_multiple %58, 8 : i32
    %cst_24 = arith.constant dense<0.000000e+00> : vector<8x512xf32>
    %60 = tpu.matmul %55, %9, %cst_24 {dimension_numbers = #tpu.dot_dimension_numbers<[1], [0], [0], [1], [0, 0, 1, 1], [], []>} : vector<8x128xf32>, vector<128x512xf32>, vector<8x512xf32> -> vector<8x512xf32>
    %61 = arith.addf %60, %12 : vector<8x512xf32>
    %62 = arith.index_cast %59 : i32 to index
    %c0_25 = arith.constant 0 : index
    %63 = vector.load %arg17[%62, %c0_25] : memref<64x512xf32, #tpu.memory_space<vmem>>, vector<8x512xf32>
    %cst_26 = arith.constant dense<0.000000e+00> : vector<8x512xf32>
    %64 = tpu.matmul %37, %7, %cst_26 {dimension_numbers = #tpu.dot_dimension_numbers<[1], [0], [0], [1], [0, 0, 1, 1], [], []>} : vector<8x128xf32>, vector<128x512xf32>, vector<8x512xf32> -> vector<8x512xf32>
    %65 = arith.addf %63, %64 : vector<8x512xf32>
    %66 = vector.extract_strided_slice %65 {offsets = [0, 0], sizes = [8, 384], strides = [1, 1]} : vector<8x512xf32> to vector<8x384xf32>
    %67 = arith.negf %66 : vector<8x384xf32>
    %68 = math.exp %67 : vector<8x384xf32>
    %cst_27 = arith.constant 1.000000e+00 : f32
    %69 = vector.broadcast %cst_27 : f32 to vector<8x384xf32>
    %70 = arith.addf %69, %68 : vector<8x384xf32>
    %71 = arith.divf %69, %70 : vector<8x384xf32>
    %72 = vector.extract_strided_slice %71 {offsets = [0, 0], sizes = [8, 128], strides = [1, 1]} : vector<8x384xf32> to vector<8x128xf32>
    %73 = vector.extract_strided_slice %71 {offsets = [0, 128], sizes = [8, 128], strides = [1, 1]} : vector<8x384xf32> to vector<8x128xf32>
    %74 = vector.extract_strided_slice %71 {offsets = [0, 256], sizes = [8, 128], strides = [1, 1]} : vector<8x384xf32> to vector<8x128xf32>
    %75 = vector.extract_strided_slice %65 {offsets = [0, 384], sizes = [8, 128], strides = [1, 1]} : vector<8x512xf32> to vector<8x128xf32>
    %76 = math.tanh %75 : vector<8x128xf32>
    %77 = arith.mulf %73, %35 : vector<8x128xf32>
    %78 = arith.mulf %72, %76 : vector<8x128xf32>
    %79 = arith.addf %77, %78 : vector<8x128xf32>
    %80 = math.tanh %79 : vector<8x128xf32>
    %81 = arith.mulf %74, %80 : vector<8x128xf32>
    %cst_28 = arith.constant dense<0.000000e+00> : vector<8x512xf32>
    %82 = tpu.matmul %81, %8, %cst_28 {dimension_numbers = #tpu.dot_dimension_numbers<[1], [0], [0], [1], [0, 0, 1, 1], [], []>} : vector<8x128xf32>, vector<128x512xf32>, vector<8x512xf32> -> vector<8x512xf32>
    %83 = arith.addf %61, %82 : vector<8x512xf32>
    %84 = vector.extract_strided_slice %83 {offsets = [0, 0], sizes = [8, 384], strides = [1, 1]} : vector<8x512xf32> to vector<8x384xf32>
    %85 = arith.negf %84 : vector<8x384xf32>
    %86 = math.exp %85 : vector<8x384xf32>
    %cst_29 = arith.constant 1.000000e+00 : f32
    %87 = vector.broadcast %cst_29 : f32 to vector<8x384xf32>
    %88 = arith.addf %87, %86 : vector<8x384xf32>
    %89 = arith.divf %87, %88 : vector<8x384xf32>
    %90 = vector.extract_strided_slice %89 {offsets = [0, 0], sizes = [8, 128], strides = [1, 1]} : vector<8x384xf32> to vector<8x128xf32>
    %91 = vector.extract_strided_slice %89 {offsets = [0, 128], sizes = [8, 128], strides = [1, 1]} : vector<8x384xf32> to vector<8x128xf32>
    %92 = vector.extract_strided_slice %89 {offsets = [0, 256], sizes = [8, 128], strides = [1, 1]} : vector<8x384xf32> to vector<8x128xf32>
    %93 = vector.extract_strided_slice %83 {offsets = [0, 384], sizes = [8, 128], strides = [1, 1]} : vector<8x512xf32> to vector<8x128xf32>
    %94 = math.tanh %93 : vector<8x128xf32>
    %95 = arith.mulf %91, %53 : vector<8x128xf32>
    %96 = arith.mulf %90, %94 : vector<8x128xf32>
    %97 = arith.addf %95, %96 : vector<8x128xf32>
    %98 = math.tanh %97 : vector<8x128xf32>
    %99 = arith.mulf %92, %98 : vector<8x128xf32>
    %100 = arith.index_cast %59 : i32 to index
    %c0_30 = arith.constant 0 : index
    %101 = vector.load %arg18[%100, %c0_30] : memref<64x128xf32, #tpu.memory_space<vmem>>, vector<8x128xf32>
    tpu.vector_store %arg18[%100, %c0_30], %99 {strides = array<i32>} : memref<64x128xf32, #tpu.memory_space<vmem>>, vector<8x128xf32>,
    %c2_i32 = arith.constant 2 : i32
    %c8_i32_31 = arith.constant 8 : i32
    %102 = arith.muli %c2_i32, %c8_i32_31 : i32
    %103 = tpu.assume_multiple %102, 8 : i32
    %cst_32 = arith.constant dense<0.000000e+00> : vector<8x512xf32>
    %104 = tpu.matmul %99, %9, %cst_32 {dimension_numbers = #tpu.dot_dimension_numbers<[1], [0], [0], [1], [0, 0, 1, 1], [], []>} : vector<8x128xf32>, vector<128x512xf32>, vector<8x512xf32> -> vector<8x512xf32>
    %105 = arith.addf %104, %12 : vector<8x512xf32>
    %106 = arith.index_cast %103 : i32 to index
    %c0_33 = arith.constant 0 : index
    %107 = vector.load %arg17[%106, %c0_33] : memref<64x512xf32, #tpu.memory_space<vmem>>, vector<8x512xf32>
    %cst_34 = arith.constant dense<0.000000e+00> : vector<8x512xf32>
    %108 = tpu.matmul %81, %7, %cst_34 {dimension_numbers = #tpu.dot_dimension_numbers<[1], [0], [0], [1], [0, 0, 1, 1], [], []>} : vector<8x128xf32>, vector<128x512xf32>, vector<8x512xf32> -> vector<8x512xf32>
    %109 = arith.addf %107, %108 : vector<8x512xf32>
    %110 = vector.extract_strided_slice %109 {offsets = [0, 0], sizes = [8, 384], strides = [1, 1]} : vector<8x512xf32> to vector<8x384xf32>
    %111 = arith.negf %110 : vector<8x384xf32>
    %112 = math.exp %111 : vector<8x384xf32>
    %cst_35 = arith.constant 1.000000e+00 : f32
    %113 = vector.broadcast %cst_35 : f32 to vector<8x384xf32>
    %114 = arith.addf %113, %112 : vector<8x384xf32>
    %115 = arith.divf %113, %114 : vector<8x384xf32>
    %116 = vector.extract_strided_slice %115 {offsets = [0, 0], sizes = [8, 128], strides = [1, 1]} : vector<8x384xf32> to vector<8x128xf32>
    %117 = vector.extract_strided_slice %115 {offsets = [0, 128], sizes = [8, 128], strides = [1, 1]} : vector<8x384xf32> to vector<8x128xf32>
    %118 = vector.extract_strided_slice %115 {offsets = [0, 256], sizes = [8, 128], strides = [1, 1]} : vector<8x384xf32> to vector<8x128xf32>
    %119 = vector.extract_strided_slice %109 {offsets = [0, 384], sizes = [8, 128], strides = [1, 1]} : vector<8x512xf32> to vector<8x128xf32>
    %120 = math.tanh %119 : vector<8x128xf32>
    %121 = arith.mulf %117, %79 : vector<8x128xf32>
    %122 = arith.mulf %116, %120 : vector<8x128xf32>
    %123 = arith.addf %121, %122 : vector<8x128xf32>
    %124 = math.tanh %123 : vector<8x128xf32>
    %125 = arith.mulf %118, %124 : vector<8x128xf32>
    %cst_36 = arith.constant dense<0.000000e+00> : vector<8x512xf32>
    %126 = tpu.matmul %125, %8, %cst_36 {dimension_numbers = #tpu.dot_dimension_numbers<[1], [0], [0], [1], [0, 0, 1, 1], [], []>} : vector<8x128xf32>, vector<128x512xf32>, vector<8x512xf32> -> vector<8x512xf32>
    %127 = arith.addf %105, %126 : vector<8x512xf32>
    %128 = vector.extract_strided_slice %127 {offsets = [0, 0], sizes = [8, 384], strides = [1, 1]} : vector<8x512xf32> to vector<8x384xf32>
    %129 = arith.negf %128 : vector<8x384xf32>
    %130 = math.exp %129 : vector<8x384xf32>
    %cst_37 = arith.constant 1.000000e+00 : f32
    %131 = vector.broadcast %cst_37 : f32 to vector<8x384xf32>
    %132 = arith.addf %131, %130 : vector<8x384xf32>
    %133 = arith.divf %131, %132 : vector<8x384xf32>
    %134 = vector.extract_strided_slice %133 {offsets = [0, 0], sizes = [8, 128], strides = [1, 1]} : vector<8x384xf32> to vector<8x128xf32>
    %135 = vector.extract_strided_slice %133 {offsets = [0, 128], sizes = [8, 128], strides = [1, 1]} : vector<8x384xf32> to vector<8x128xf32>
    %136 = vector.extract_strided_slice %133 {offsets = [0, 256], sizes = [8, 128], strides = [1, 1]} : vector<8x384xf32> to vector<8x128xf32>
    %137 = vector.extract_strided_slice %127 {offsets = [0, 384], sizes = [8, 128], strides = [1, 1]} : vector<8x512xf32> to vector<8x128xf32>
    %138 = math.tanh %137 : vector<8x128xf32>
    %139 = arith.mulf %135, %97 : vector<8x128xf32>
    %140 = arith.mulf %134, %138 : vector<8x128xf32>
    %141 = arith.addf %139, %140 : vector<8x128xf32>
    %142 = math.tanh %141 : vector<8x128xf32>
    %143 = arith.mulf %136, %142 : vector<8x128xf32>
    %144 = arith.index_cast %103 : i32 to index
    %c0_38 = arith.constant 0 : index
    %145 = vector.load %arg18[%144, %c0_38] : memref<64x128xf32, #tpu.memory_space<vmem>>, vector<8x128xf32>
    tpu.vector_store %arg18[%144, %c0_38], %143 {strides = array<i32>} : memref<64x128xf32, #tpu.memory_space<vmem>>, vector<8x128xf32>,
    %c3_i32 = arith.constant 3 : i32
    %c8_i32_39 = arith.constant 8 : i32
    %146 = arith.muli %c3_i32, %c8_i32_39 : i32
    %147 = tpu.assume_multiple %146, 8 : i32
    %cst_40 = arith.constant dense<0.000000e+00> : vector<8x512xf32>
    %148 = tpu.matmul %143, %9, %cst_40 {dimension_numbers = #tpu.dot_dimension_numbers<[1], [0], [0], [1], [0, 0, 1, 1], [], []>} : vector<8x128xf32>, vector<128x512xf32>, vector<8x512xf32> -> vector<8x512xf32>
    %149 = arith.addf %148, %12 : vector<8x512xf32>
    %150 = arith.index_cast %147 : i32 to index
    %c0_41 = arith.constant 0 : index
    %151 = vector.load %arg17[%150, %c0_41] : memref<64x512xf32, #tpu.memory_space<vmem>>, vector<8x512xf32>
    %cst_42 = arith.constant dense<0.000000e+00> : vector<8x512xf32>
    %152 = tpu.matmul %125, %7, %cst_42 {dimension_numbers = #tpu.dot_dimension_numbers<[1], [0], [0], [1], [0, 0, 1, 1], [], []>} : vector<8x128xf32>, vector<128x512xf32>, vector<8x512xf32> -> vector<8x512xf32>
    %153 = arith.addf %151, %152 : vector<8x512xf32>
    %154 = vector.extract_strided_slice %153 {offsets = [0, 0], sizes = [8, 384], strides = [1, 1]} : vector<8x512xf32> to vector<8x384xf32>
    %155 = arith.negf %154 : vector<8x384xf32>
    %156 = math.exp %155 : vector<8x384xf32>
    %cst_43 = arith.constant 1.000000e+00 : f32
    %157 = vector.broadcast %cst_43 : f32 to vector<8x384xf32>
    %158 = arith.addf %157, %156 : vector<8x384xf32>
    %159 = arith.divf %157, %158 : vector<8x384xf32>
    %160 = vector.extract_strided_slice %159 {offsets = [0, 0], sizes = [8, 128], strides = [1, 1]} : vector<8x384xf32> to vector<8x128xf32>
    %161 = vector.extract_strided_slice %159 {offsets = [0, 128], sizes = [8, 128], strides = [1, 1]} : vector<8x384xf32> to vector<8x128xf32>
    %162 = vector.extract_strided_slice %159 {offsets = [0, 256], sizes = [8, 128], strides = [1, 1]} : vector<8x384xf32> to vector<8x128xf32>
    %163 = vector.extract_strided_slice %153 {offsets = [0, 384], sizes = [8, 128], strides = [1, 1]} : vector<8x512xf32> to vector<8x128xf32>
    %164 = math.tanh %163 : vector<8x128xf32>
    %165 = arith.mulf %161, %123 : vector<8x128xf32>
    %166 = arith.mulf %160, %164 : vector<8x128xf32>
    %167 = arith.addf %165, %166 : vector<8x128xf32>
    %168 = math.tanh %167 : vector<8x128xf32>
    %169 = arith.mulf %162, %168 : vector<8x128xf32>
    %cst_44 = arith.constant dense<0.000000e+00> : vector<8x512xf32>
    %170 = tpu.matmul %169, %8, %cst_44 {dimension_numbers = #tpu.dot_dimension_numbers<[1], [0], [0], [1], [0, 0, 1, 1], [], []>} : vector<8x128xf32>, vector<128x512xf32>, vector<8x512xf32> -> vector<8x512xf32>
    %171 = arith.addf %149, %170 : vector<8x512xf32>
    %172 = vector.extract_strided_slice %171 {offsets = [0, 0], sizes = [8, 384], strides = [1, 1]} : vector<8x512xf32> to vector<8x384xf32>
    %173 = arith.negf %172 : vector<8x384xf32>
    %174 = math.exp %173 : vector<8x384xf32>
    %cst_45 = arith.constant 1.000000e+00 : f32
    %175 = vector.broadcast %cst_45 : f32 to vector<8x384xf32>
    %176 = arith.addf %175, %174 : vector<8x384xf32>
    %177 = arith.divf %175, %176 : vector<8x384xf32>
    %178 = vector.extract_strided_slice %177 {offsets = [0, 0], sizes = [8, 128], strides = [1, 1]} : vector<8x384xf32> to vector<8x128xf32>
    %179 = vector.extract_strided_slice %177 {offsets = [0, 128], sizes = [8, 128], strides = [1, 1]} : vector<8x384xf32> to vector<8x128xf32>
    %180 = vector.extract_strided_slice %177 {offsets = [0, 256], sizes = [8, 128], strides = [1, 1]} : vector<8x384xf32> to vector<8x128xf32>
    %181 = vector.extract_strided_slice %171 {offsets = [0, 384], sizes = [8, 128], strides = [1, 1]} : vector<8x512xf32> to vector<8x128xf32>
    %182 = math.tanh %181 : vector<8x128xf32>
    %183 = arith.mulf %179, %141 : vector<8x128xf32>
    %184 = arith.mulf %178, %182 : vector<8x128xf32>
    %185 = arith.addf %183, %184 : vector<8x128xf32>
    %186 = math.tanh %185 : vector<8x128xf32>
    %187 = arith.mulf %180, %186 : vector<8x128xf32>
    %188 = arith.index_cast %147 : i32 to index
    %c0_46 = arith.constant 0 : index
    %189 = vector.load %arg18[%188, %c0_46] : memref<64x128xf32, #tpu.memory_space<vmem>>, vector<8x128xf32>
    tpu.vector_store %arg18[%188, %c0_46], %187 {strides = array<i32>} : memref<64x128xf32, #tpu.memory_space<vmem>>, vector<8x128xf32>,
    %c4_i32 = arith.constant 4 : i32
    %c8_i32_47 = arith.constant 8 : i32
    %190 = arith.muli %c4_i32, %c8_i32_47 : i32
    %191 = tpu.assume_multiple %190, 8 : i32
    %cst_48 = arith.constant dense<0.000000e+00> : vector<8x512xf32>
    %192 = tpu.matmul %187, %9, %cst_48 {dimension_numbers = #tpu.dot_dimension_numbers<[1], [0], [0], [1], [0, 0, 1, 1], [], []>} : vector<8x128xf32>, vector<128x512xf32>, vector<8x512xf32> -> vector<8x512xf32>
    %193 = arith.addf %192, %12 : vector<8x512xf32>
    %194 = arith.index_cast %191 : i32 to index
    %c0_49 = arith.constant 0 : index
    %195 = vector.load %arg17[%194, %c0_49] : memref<64x512xf32, #tpu.memory_space<vmem>>, vector<8x512xf32>
    %cst_50 = arith.constant dense<0.000000e+00> : vector<8x512xf32>
    %196 = tpu.matmul %169, %7, %cst_50 {dimension_numbers = #tpu.dot_dimension_numbers<[1], [0], [0], [1], [0, 0, 1, 1], [], []>} : vector<8x128xf32>, vector<128x512xf32>, vector<8x512xf32> -> vector<8x512xf32>
    %197 = arith.addf %195, %196 : vector<8x512xf32>
    %198 = vector.extract_strided_slice %197 {offsets = [0, 0], sizes = [8, 384], strides = [1, 1]} : vector<8x512xf32> to vector<8x384xf32>
    %199 = arith.negf %198 : vector<8x384xf32>
    %200 = math.exp %199 : vector<8x384xf32>
    %cst_51 = arith.constant 1.000000e+00 : f32
    %201 = vector.broadcast %cst_51 : f32 to vector<8x384xf32>
    %202 = arith.addf %201, %200 : vector<8x384xf32>
    %203 = arith.divf %201, %202 : vector<8x384xf32>
    %204 = vector.extract_strided_slice %203 {offsets = [0, 0], sizes = [8, 128], strides = [1, 1]} : vector<8x384xf32> to vector<8x128xf32>
    %205 = vector.extract_strided_slice %203 {offsets = [0, 128], sizes = [8, 128], strides = [1, 1]} : vector<8x384xf32> to vector<8x128xf32>
    %206 = vector.extract_strided_slice %203 {offsets = [0, 256], sizes = [8, 128], strides = [1, 1]} : vector<8x384xf32> to vector<8x128xf32>
    %207 = vector.extract_strided_slice %197 {offsets = [0, 384], sizes = [8, 128], strides = [1, 1]} : vector<8x512xf32> to vector<8x128xf32>
    %208 = math.tanh %207 : vector<8x128xf32>
    %209 = arith.mulf %205, %167 : vector<8x128xf32>
    %210 = arith.mulf %204, %208 : vector<8x128xf32>
    %211 = arith.addf %209, %210 : vector<8x128xf32>
    %212 = math.tanh %211 : vector<8x128xf32>
    %213 = arith.mulf %206, %212 : vector<8x128xf32>
    %cst_52 = arith.constant dense<0.000000e+00> : vector<8x512xf32>
    %214 = tpu.matmul %213, %8, %cst_52 {dimension_numbers = #tpu.dot_dimension_numbers<[1], [0], [0], [1], [0, 0, 1, 1], [], []>} : vector<8x128xf32>, vector<128x512xf32>, vector<8x512xf32> -> vector<8x512xf32>
    %215 = arith.addf %193, %214 : vector<8x512xf32>
    %216 = vector.extract_strided_slice %215 {offsets = [0, 0], sizes = [8, 384], strides = [1, 1]} : vector<8x512xf32> to vector<8x384xf32>
    %217 = arith.negf %216 : vector<8x384xf32>
    %218 = math.exp %217 : vector<8x384xf32>
    %cst_53 = arith.constant 1.000000e+00 : f32
    %219 = vector.broadcast %cst_53 : f32 to vector<8x384xf32>
    %220 = arith.addf %219, %218 : vector<8x384xf32>
    %221 = arith.divf %219, %220 : vector<8x384xf32>
    %222 = vector.extract_strided_slice %221 {offsets = [0, 0], sizes = [8, 128], strides = [1, 1]} : vector<8x384xf32> to vector<8x128xf32>
    %223 = vector.extract_strided_slice %221 {offsets = [0, 128], sizes = [8, 128], strides = [1, 1]} : vector<8x384xf32> to vector<8x128xf32>
    %224 = vector.extract_strided_slice %221 {offsets = [0, 256], sizes = [8, 128], strides = [1, 1]} : vector<8x384xf32> to vector<8x128xf32>
    %225 = vector.extract_strided_slice %215 {offsets = [0, 384], sizes = [8, 128], strides = [1, 1]} : vector<8x512xf32> to vector<8x128xf32>
    %226 = math.tanh %225 : vector<8x128xf32>
    %227 = arith.mulf %223, %185 : vector<8x128xf32>
    %228 = arith.mulf %222, %226 : vector<8x128xf32>
    %229 = arith.addf %227, %228 : vector<8x128xf32>
    %230 = math.tanh %229 : vector<8x128xf32>
    %231 = arith.mulf %224, %230 : vector<8x128xf32>
    %232 = arith.index_cast %191 : i32 to index
    %c0_54 = arith.constant 0 : index
    %233 = vector.load %arg18[%232, %c0_54] : memref<64x128xf32, #tpu.memory_space<vmem>>, vector<8x128xf32>
    tpu.vector_store %arg18[%232, %c0_54], %231 {strides = array<i32>} : memref<64x128xf32, #tpu.memory_space<vmem>>, vector<8x128xf32>,
    %c5_i32 = arith.constant 5 : i32
    %c8_i32_55 = arith.constant 8 : i32
    %234 = arith.muli %c5_i32, %c8_i32_55 : i32
    %235 = tpu.assume_multiple %234, 8 : i32
    %cst_56 = arith.constant dense<0.000000e+00> : vector<8x512xf32>
    %236 = tpu.matmul %231, %9, %cst_56 {dimension_numbers = #tpu.dot_dimension_numbers<[1], [0], [0], [1], [0, 0, 1, 1], [], []>} : vector<8x128xf32>, vector<128x512xf32>, vector<8x512xf32> -> vector<8x512xf32>
    %237 = arith.addf %236, %12 : vector<8x512xf32>
    %238 = arith.index_cast %235 : i32 to index
    %c0_57 = arith.constant 0 : index
    %239 = vector.load %arg17[%238, %c0_57] : memref<64x512xf32, #tpu.memory_space<vmem>>, vector<8x512xf32>
    %cst_58 = arith.constant dense<0.000000e+00> : vector<8x512xf32>
    %240 = tpu.matmul %213, %7, %cst_58 {dimension_numbers = #tpu.dot_dimension_numbers<[1], [0], [0], [1], [0, 0, 1, 1], [], []>} : vector<8x128xf32>, vector<128x512xf32>, vector<8x512xf32> -> vector<8x512xf32>
    %241 = arith.addf %239, %240 : vector<8x512xf32>
    %242 = vector.extract_strided_slice %241 {offsets = [0, 0], sizes = [8, 384], strides = [1, 1]} : vector<8x512xf32> to vector<8x384xf32>
    %243 = arith.negf %242 : vector<8x384xf32>
    %244 = math.exp %243 : vector<8x384xf32>
    %cst_59 = arith.constant 1.000000e+00 : f32
    %245 = vector.broadcast %cst_59 : f32 to vector<8x384xf32>
    %246 = arith.addf %245, %244 : vector<8x384xf32>
    %247 = arith.divf %245, %246 : vector<8x384xf32>
    %248 = vector.extract_strided_slice %247 {offsets = [0, 0], sizes = [8, 128], strides = [1, 1]} : vector<8x384xf32> to vector<8x128xf32>
    %249 = vector.extract_strided_slice %247 {offsets = [0, 128], sizes = [8, 128], strides = [1, 1]} : vector<8x384xf32> to vector<8x128xf32>
    %250 = vector.extract_strided_slice %247 {offsets = [0, 256], sizes = [8, 128], strides = [1, 1]} : vector<8x384xf32> to vector<8x128xf32>
    %251 = vector.extract_strided_slice %241 {offsets = [0, 384], sizes = [8, 128], strides = [1, 1]} : vector<8x512xf32> to vector<8x128xf32>
    %252 = math.tanh %251 : vector<8x128xf32>
    %253 = arith.mulf %249, %211 : vector<8x128xf32>
    %254 = arith.mulf %248, %252 : vector<8x128xf32>
    %255 = arith.addf %253, %254 : vector<8x128xf32>
    %256 = math.tanh %255 : vector<8x128xf32>
    %257 = arith.mulf %250, %256 : vector<8x128xf32>
    %cst_60 = arith.constant dense<0.000000e+00> : vector<8x512xf32>
    %258 = tpu.matmul %257, %8, %cst_60 {dimension_numbers = #tpu.dot_dimension_numbers<[1], [0], [0], [1], [0, 0, 1, 1], [], []>} : vector<8x128xf32>, vector<128x512xf32>, vector<8x512xf32> -> vector<8x512xf32>
    %259 = arith.addf %237, %258 : vector<8x512xf32>
    %260 = vector.extract_strided_slice %259 {offsets = [0, 0], sizes = [8, 384], strides = [1, 1]} : vector<8x512xf32> to vector<8x384xf32>
    %261 = arith.negf %260 : vector<8x384xf32>
    %262 = math.exp %261 : vector<8x384xf32>
    %cst_61 = arith.constant 1.000000e+00 : f32
    %263 = vector.broadcast %cst_61 : f32 to vector<8x384xf32>
    %264 = arith.addf %263, %262 : vector<8x384xf32>
    %265 = arith.divf %263, %264 : vector<8x384xf32>
    %266 = vector.extract_strided_slice %265 {offsets = [0, 0], sizes = [8, 128], strides = [1, 1]} : vector<8x384xf32> to vector<8x128xf32>
    %267 = vector.extract_strided_slice %265 {offsets = [0, 128], sizes = [8, 128], strides = [1, 1]} : vector<8x384xf32> to vector<8x128xf32>
    %268 = vector.extract_strided_slice %265 {offsets = [0, 256], sizes = [8, 128], strides = [1, 1]} : vector<8x384xf32> to vector<8x128xf32>
    %269 = vector.extract_strided_slice %259 {offsets = [0, 384], sizes = [8, 128], strides = [1, 1]} : vector<8x512xf32> to vector<8x128xf32>
    %270 = math.tanh %269 : vector<8x128xf32>
    %271 = arith.mulf %267, %229 : vector<8x128xf32>
    %272 = arith.mulf %266, %270 : vector<8x128xf32>
    %273 = arith.addf %271, %272 : vector<8x128xf32>
    %274 = math.tanh %273 : vector<8x128xf32>
    %275 = arith.mulf %268, %274 : vector<8x128xf32>
    %276 = arith.index_cast %235 : i32 to index
    %c0_62 = arith.constant 0 : index
    %277 = vector.load %arg18[%276, %c0_62] : memref<64x128xf32, #tpu.memory_space<vmem>>, vector<8x128xf32>
    tpu.vector_store %arg18[%276, %c0_62], %275 {strides = array<i32>} : memref<64x128xf32, #tpu.memory_space<vmem>>, vector<8x128xf32>,
    %c6_i32 = arith.constant 6 : i32
    %c8_i32_63 = arith.constant 8 : i32
    %278 = arith.muli %c6_i32, %c8_i32_63 : i32
    %279 = tpu.assume_multiple %278, 8 : i32
    %cst_64 = arith.constant dense<0.000000e+00> : vector<8x512xf32>
    %280 = tpu.matmul %275, %9, %cst_64 {dimension_numbers = #tpu.dot_dimension_numbers<[1], [0], [0], [1], [0, 0, 1, 1], [], []>} : vector<8x128xf32>, vector<128x512xf32>, vector<8x512xf32> -> vector<8x512xf32>
    %281 = arith.addf %280, %12 : vector<8x512xf32>
    %282 = arith.index_cast %279 : i32 to index
    %c0_65 = arith.constant 0 : index
    %283 = vector.load %arg17[%282, %c0_65] : memref<64x512xf32, #tpu.memory_space<vmem>>, vector<8x512xf32>
    %cst_66 = arith.constant dense<0.000000e+00> : vector<8x512xf32>
    %284 = tpu.matmul %257, %7, %cst_66 {dimension_numbers = #tpu.dot_dimension_numbers<[1], [0], [0], [1], [0, 0, 1, 1], [], []>} : vector<8x128xf32>, vector<128x512xf32>, vector<8x512xf32> -> vector<8x512xf32>
    %285 = arith.addf %283, %284 : vector<8x512xf32>
    %286 = vector.extract_strided_slice %285 {offsets = [0, 0], sizes = [8, 384], strides = [1, 1]} : vector<8x512xf32> to vector<8x384xf32>
    %287 = arith.negf %286 : vector<8x384xf32>
    %288 = math.exp %287 : vector<8x384xf32>
    %cst_67 = arith.constant 1.000000e+00 : f32
    %289 = vector.broadcast %cst_67 : f32 to vector<8x384xf32>
    %290 = arith.addf %289, %288 : vector<8x384xf32>
    %291 = arith.divf %289, %290 : vector<8x384xf32>
    %292 = vector.extract_strided_slice %291 {offsets = [0, 0], sizes = [8, 128], strides = [1, 1]} : vector<8x384xf32> to vector<8x128xf32>
    %293 = vector.extract_strided_slice %291 {offsets = [0, 128], sizes = [8, 128], strides = [1, 1]} : vector<8x384xf32> to vector<8x128xf32>
    %294 = vector.extract_strided_slice %291 {offsets = [0, 256], sizes = [8, 128], strides = [1, 1]} : vector<8x384xf32> to vector<8x128xf32>
    %295 = vector.extract_strided_slice %285 {offsets = [0, 384], sizes = [8, 128], strides = [1, 1]} : vector<8x512xf32> to vector<8x128xf32>
    %296 = math.tanh %295 : vector<8x128xf32>
    %297 = arith.mulf %293, %255 : vector<8x128xf32>
    %298 = arith.mulf %292, %296 : vector<8x128xf32>
    %299 = arith.addf %297, %298 : vector<8x128xf32>
    %300 = math.tanh %299 : vector<8x128xf32>
    %301 = arith.mulf %294, %300 : vector<8x128xf32>
    %cst_68 = arith.constant dense<0.000000e+00> : vector<8x512xf32>
    %302 = tpu.matmul %301, %8, %cst_68 {dimension_numbers = #tpu.dot_dimension_numbers<[1], [0], [0], [1], [0, 0, 1, 1], [], []>} : vector<8x128xf32>, vector<128x512xf32>, vector<8x512xf32> -> vector<8x512xf32>
    %303 = arith.addf %281, %302 : vector<8x512xf32>
    %304 = vector.extract_strided_slice %303 {offsets = [0, 0], sizes = [8, 384], strides = [1, 1]} : vector<8x512xf32> to vector<8x384xf32>
    %305 = arith.negf %304 : vector<8x384xf32>
    %306 = math.exp %305 : vector<8x384xf32>
    %cst_69 = arith.constant 1.000000e+00 : f32
    %307 = vector.broadcast %cst_69 : f32 to vector<8x384xf32>
    %308 = arith.addf %307, %306 : vector<8x384xf32>
    %309 = arith.divf %307, %308 : vector<8x384xf32>
    %310 = vector.extract_strided_slice %309 {offsets = [0, 0], sizes = [8, 128], strides = [1, 1]} : vector<8x384xf32> to vector<8x128xf32>
    %311 = vector.extract_strided_slice %309 {offsets = [0, 128], sizes = [8, 128], strides = [1, 1]} : vector<8x384xf32> to vector<8x128xf32>
    %312 = vector.extract_strided_slice %309 {offsets = [0, 256], sizes = [8, 128], strides = [1, 1]} : vector<8x384xf32> to vector<8x128xf32>
    %313 = vector.extract_strided_slice %303 {offsets = [0, 384], sizes = [8, 128], strides = [1, 1]} : vector<8x512xf32> to vector<8x128xf32>
    %314 = math.tanh %313 : vector<8x128xf32>
    %315 = arith.mulf %311, %273 : vector<8x128xf32>
    %316 = arith.mulf %310, %314 : vector<8x128xf32>
    %317 = arith.addf %315, %316 : vector<8x128xf32>
    %318 = math.tanh %317 : vector<8x128xf32>
    %319 = arith.mulf %312, %318 : vector<8x128xf32>
    %320 = arith.index_cast %279 : i32 to index
    %c0_70 = arith.constant 0 : index
    %321 = vector.load %arg18[%320, %c0_70] : memref<64x128xf32, #tpu.memory_space<vmem>>, vector<8x128xf32>
    tpu.vector_store %arg18[%320, %c0_70], %319 {strides = array<i32>} : memref<64x128xf32, #tpu.memory_space<vmem>>, vector<8x128xf32>,
    %c7_i32 = arith.constant 7 : i32
    %c8_i32_71 = arith.constant 8 : i32
    %322 = arith.muli %c7_i32, %c8_i32_71 : i32
    %323 = tpu.assume_multiple %322, 8 : i32
    %cst_72 = arith.constant dense<0.000000e+00> : vector<8x512xf32>
    %324 = tpu.matmul %319, %9, %cst_72 {dimension_numbers = #tpu.dot_dimension_numbers<[1], [0], [0], [1], [0, 0, 1, 1], [], []>} : vector<8x128xf32>, vector<128x512xf32>, vector<8x512xf32> -> vector<8x512xf32>
    %325 = arith.addf %324, %12 : vector<8x512xf32>
    %326 = arith.index_cast %323 : i32 to index
    %c0_73 = arith.constant 0 : index
    %327 = vector.load %arg17[%326, %c0_73] : memref<64x512xf32, #tpu.memory_space<vmem>>, vector<8x512xf32>
    %cst_74 = arith.constant dense<0.000000e+00> : vector<8x512xf32>
    %328 = tpu.matmul %301, %7, %cst_74 {dimension_numbers = #tpu.dot_dimension_numbers<[1], [0], [0], [1], [0, 0, 1, 1], [], []>} : vector<8x128xf32>, vector<128x512xf32>, vector<8x512xf32> -> vector<8x512xf32>
    %329 = arith.addf %327, %328 : vector<8x512xf32>
    %330 = vector.extract_strided_slice %329 {offsets = [0, 0], sizes = [8, 384], strides = [1, 1]} : vector<8x512xf32> to vector<8x384xf32>
    %331 = arith.negf %330 : vector<8x384xf32>
    %332 = math.exp %331 : vector<8x384xf32>
    %cst_75 = arith.constant 1.000000e+00 : f32
    %333 = vector.broadcast %cst_75 : f32 to vector<8x384xf32>
    %334 = arith.addf %333, %332 : vector<8x384xf32>
    %335 = arith.divf %333, %334 : vector<8x384xf32>
    %336 = vector.extract_strided_slice %335 {offsets = [0, 0], sizes = [8, 128], strides = [1, 1]} : vector<8x384xf32> to vector<8x128xf32>
    %337 = vector.extract_strided_slice %335 {offsets = [0, 128], sizes = [8, 128], strides = [1, 1]} : vector<8x384xf32> to vector<8x128xf32>
    %338 = vector.extract_strided_slice %335 {offsets = [0, 256], sizes = [8, 128], strides = [1, 1]} : vector<8x384xf32> to vector<8x128xf32>
    %339 = vector.extract_strided_slice %329 {offsets = [0, 384], sizes = [8, 128], strides = [1, 1]} : vector<8x512xf32> to vector<8x128xf32>
    %340 = math.tanh %339 : vector<8x128xf32>
    %341 = arith.mulf %337, %299 : vector<8x128xf32>
    %342 = arith.mulf %336, %340 : vector<8x128xf32>
    %343 = arith.addf %341, %342 : vector<8x128xf32>
    %344 = math.tanh %343 : vector<8x128xf32>
    %345 = arith.mulf %338, %344 : vector<8x128xf32>
    %cst_76 = arith.constant dense<0.000000e+00> : vector<8x512xf32>
    %346 = tpu.matmul %345, %8, %cst_76 {dimension_numbers = #tpu.dot_dimension_numbers<[1], [0], [0], [1], [0, 0, 1, 1], [], []>} : vector<8x128xf32>, vector<128x512xf32>, vector<8x512xf32> -> vector<8x512xf32>
    %347 = arith.addf %325, %346 : vector<8x512xf32>
    %348 = vector.extract_strided_slice %347 {offsets = [0, 0], sizes = [8, 384], strides = [1, 1]} : vector<8x512xf32> to vector<8x384xf32>
    %349 = arith.negf %348 : vector<8x384xf32>
    %350 = math.exp %349 : vector<8x384xf32>
    %cst_77 = arith.constant 1.000000e+00 : f32
    %351 = vector.broadcast %cst_77 : f32 to vector<8x384xf32>
    %352 = arith.addf %351, %350 : vector<8x384xf32>
    %353 = arith.divf %351, %352 : vector<8x384xf32>
    %354 = vector.extract_strided_slice %353 {offsets = [0, 0], sizes = [8, 128], strides = [1, 1]} : vector<8x384xf32> to vector<8x128xf32>
    %355 = vector.extract_strided_slice %353 {offsets = [0, 128], sizes = [8, 128], strides = [1, 1]} : vector<8x384xf32> to vector<8x128xf32>
    %356 = vector.extract_strided_slice %353 {offsets = [0, 256], sizes = [8, 128], strides = [1, 1]} : vector<8x384xf32> to vector<8x128xf32>
    %357 = vector.extract_strided_slice %347 {offsets = [0, 384], sizes = [8, 128], strides = [1, 1]} : vector<8x512xf32> to vector<8x128xf32>
    %358 = math.tanh %357 : vector<8x128xf32>
    %359 = arith.mulf %355, %317 : vector<8x128xf32>
    %360 = arith.mulf %354, %358 : vector<8x128xf32>
    %361 = arith.addf %359, %360 : vector<8x128xf32>
    %362 = math.tanh %361 : vector<8x128xf32>
    %363 = arith.mulf %356, %362 : vector<8x128xf32>
    %364 = arith.index_cast %323 : i32 to index
    %c0_78 = arith.constant 0 : index
    %365 = vector.load %arg18[%364, %c0_78] : memref<64x128xf32, #tpu.memory_space<vmem>>, vector<8x128xf32>
    tpu.vector_store %arg18[%364, %c0_78], %363 {strides = array<i32>} : memref<64x128xf32, #tpu.memory_space<vmem>>, vector<8x128xf32>,
    %c8_i32_79 = arith.constant 8 : i32
    %c0_80 = arith.constant 0 : index
    %c0_81 = arith.constant 0 : index
    %366 = vector.load %arg18[%c0_80, %c0_81] : memref<64x128xf32, #tpu.memory_space<vmem>>, vector<64x128xf32>
    %c0_82 = arith.constant 0 : index
    %c0_83 = arith.constant 0 : index
    %367 = vector.load %arg7[%c0_82, %c0_83] : memref<128x128xf32, #tpu.memory_space<vmem>>, vector<128x128xf32>
    %cst_84 = arith.constant dense<0.000000e+00> : vector<64x128xf32>
    %368 = tpu.matmul %366, %367, %cst_84 {dimension_numbers = #tpu.dot_dimension_numbers<[1], [0], [0], [1], [0, 0, 1, 1], [], []>} : vector<64x128xf32>, vector<128x128xf32>, vector<64x128xf32> -> vector<64x128xf32>
    %c0_85 = arith.constant 0 : index
    %c0_86 = arith.constant 0 : index
    %369 = vector.load %arg8[%c0_85, %c0_86] : memref<1x128xf32, #tpu.memory_space<vmem>>, vector<1x128xf32>
    %370 = vector.broadcast %369 : vector<1x128xf32> to vector<64x128xf32>
    %371 = arith.addf %368, %370 : vector<64x128xf32>
    %cst_87 = arith.constant 2.000000e-01 : f32
    %372 = vector.broadcast %cst_87 : f32 to vector<64x128xf32>
    %373 = arith.mulf %372, %371 : vector<64x128xf32>
    %374 = arith.maximumf %371, %373 : vector<64x128xf32>
    %c0_88 = arith.constant 0 : index
    %c0_89 = arith.constant 0 : index
    %375 = vector.load %arg9[%c0_88, %c0_89] : memref<128x128xf32, #tpu.memory_space<vmem>>, vector<128x128xf32>
    %cst_90 = arith.constant dense<0.000000e+00> : vector<64x128xf32>
    %376 = tpu.matmul %374, %375, %cst_90 {dimension_numbers = #tpu.dot_dimension_numbers<[1], [0], [0], [1], [0, 0, 1, 1], [], []>} : vector<64x128xf32>, vector<128x128xf32>, vector<64x128xf32> -> vector<64x128xf32>
    %c0_91 = arith.constant 0 : index
    %c0_92 = arith.constant 0 : index
    %377 = vector.load %arg10[%c0_91, %c0_92] : memref<1x128xf32, #tpu.memory_space<vmem>>, vector<1x128xf32>
    %378 = vector.broadcast %377 : vector<1x128xf32> to vector<64x128xf32>
    %379 = arith.addf %376, %378 : vector<64x128xf32>
    %c0_93 = arith.constant 0 : index
    %c0_94 = arith.constant 0 : index
    %380 = vector.load %arg0[%c0_93, %c0_94] : memref<64x17xf32, #tpu.memory_space<vmem>>, vector<64x17xf32>
    %c0_95 = arith.constant 0 : index
    %c0_96 = arith.constant 0 : index
    %381 = vector.load %arg12[%c0_95, %c0_96] : memref<17x128xf32, #tpu.memory_space<vmem>>, vector<17x128xf32>
    %cst_97 = arith.constant dense<0.000000e+00> : vector<64x128xf32>
    %382 = tpu.matmul %380, %381, %cst_97 {dimension_numbers = #tpu.dot_dimension_numbers<[1], [0], [0], [1], [0, 0, 1, 1], [], []>} : vector<64x17xf32>, vector<17x128xf32>, vector<64x128xf32> -> vector<64x128xf32>
    %c0_98 = arith.constant 0 : index
    %c0_99 = arith.constant 0 : index
    %383 = vector.load %arg13[%c0_98, %c0_99] : memref<1x128xf32, #tpu.memory_space<vmem>>, vector<1x128xf32>
    %384 = vector.broadcast %383 : vector<1x128xf32> to vector<64x128xf32>
    %385 = arith.addf %382, %384 : vector<64x128xf32>
    %c0_100 = arith.constant 0 : index
    %c0_101 = arith.constant 0 : index
    %386 = vector.load %arg11[%c0_100, %c0_101] : memref<128x128xf32, #tpu.memory_space<vmem>>, vector<128x128xf32>
    %cst_102 = arith.constant dense<0.000000e+00> : vector<64x128xf32>
    %387 = tpu.matmul %379, %386, %cst_102 {dimension_numbers = #tpu.dot_dimension_numbers<[1], [0], [0], [1], [0, 0, 1, 1], [], []>} : vector<64x128xf32>, vector<128x128xf32>, vector<64x128xf32> -> vector<64x128xf32>
    %388 = arith.addf %387, %385 : vector<64x128xf32>
    %cst_103 = arith.constant 2.000000e-01 : f32
    %389 = vector.broadcast %cst_103 : f32 to vector<64x128xf32>
    %390 = arith.mulf %389, %388 : vector<64x128xf32>
    %391 = arith.maximumf %388, %390 : vector<64x128xf32>
    %c0_104 = arith.constant 0 : index
    %c0_105 = arith.constant 0 : index
    %392 = vector.load %arg14[%c0_104, %c0_105] : memref<128x128xf32, #tpu.memory_space<vmem>>, vector<128x128xf32>
    %cst_106 = arith.constant dense<0.000000e+00> : vector<64x128xf32>
    %393 = tpu.matmul %391, %392, %cst_106 {dimension_numbers = #tpu.dot_dimension_numbers<[1], [0], [0], [1], [0, 0, 1, 1], [], []>} : vector<64x128xf32>, vector<128x128xf32>, vector<64x128xf32> -> vector<64x128xf32>
    %c0_107 = arith.constant 0 : index
    %c0_108 = arith.constant 0 : index
    %394 = vector.load %arg15[%c0_107, %c0_108] : memref<1x128xf32, #tpu.memory_space<vmem>>, vector<1x128xf32>
    %395 = vector.broadcast %394 : vector<1x128xf32> to vector<64x128xf32>
    %396 = arith.addf %393, %395 : vector<64x128xf32>
    %397 = arith.addf %379, %396 : vector<64x128xf32>
    %c0_109 = arith.constant 0 : index
    %c0_110 = arith.constant 0 : index
    %398 = vector.load %arg16[%c0_109, %c0_110] : memref<64x128xf32, #tpu.memory_space<vmem>>, vector<64x128xf32>
    tpu.vector_store %arg16[%c0_109, %c0_110], %397 {strides = array<i32>} : memref<64x128xf32, #tpu.memory_space<vmem>>, vector<64x128xf32>,
    return
  }
}

</mosaic_0001>

<bundles_post_ra>
// kernel: tpu_custom_call.1
= control target key start
LH: loop header
LB: loop body
LE: loop exit
PB: predicated region body
PF: predicated region fallthrough
CT: control target
= control target key end

     0   :  { %s9210_s0 = inlined_call_operand.vmem [shape: f32[64,17], index: 0, kind: input, shape index: {}]   ;;  %s9211_s1 = inlined_call_operand.hbm [shape: f32[17,512], index: 1, kind: input, shape index: {}]   ;;  %s9212_s2 = inlined_call_operand.hbm [shape: f32[128,512], index: 2, kind: input, shape index: {}]   ;;  %s9213_s3 = inlined_call_operand.vmem [shape: f32[1,512], index: 3, kind: input, shape index: {}]   ;;  %s9214_s4 = inlined_call_operand.hbm [shape: f32[128,512], index: 4, kind: input, shape index: {}]   ;;  %s9215_s5 = inlined_call_operand.hbm [shape: f32[128,512], index: 5, kind: input, shape index: {}]   ;;  %s9216_s6 = inlined_call_operand.vmem [shape: f32[1,512], index: 6, kind: input, shape index: {}]   ;;  %s9217_s7 = inlined_call_operand.hbm [shape: f32[128,128], index: 7, kind: input, shape index: {}]   ;;  %s9218_s8 = inlined_call_operand.vmem [shape: f32[1,128], index: 8, kind: input, shape index: {}]   ;;  %s9219_s9 = inlined_call_operand.hbm [shape: f32[128,128], index: 9, kind: input, shape index: {}]   ;;  %s9220_s10 = inlined_call_operand.vmem [shape: f32[1,128], index: 10, kind: input, shape index: {}]   ;;  %s9221_s11 = inlined_call_operand.hbm [shape: f32[128,128], index: 11, kind: input, shape index: {}]   ;;  %s9222_s12 = inlined_call_operand.vmem [shape: f32[17,128], index: 12, kind: input, shape index: {}]   ;;  %s9223_s13 = inlined_call_operand.vmem [shape: f32[1,128], index: 13, kind: input, shape index: {}]   ;;  %s9224_s14 = inlined_call_operand.hbm [shape: f32[128,128], index: 14, kind: input, shape index: {}]   ;;  %s9225_s15 = inlined_call_operand.vmem [shape: f32[1,128], index: 15, kind: input, shape index: {}]   ;;  %s9226_s16 = inlined_call_operand.hbm [shape: f32[64,128], index: 16, kind: output, shape index: {}]  }
   0x1   :  { %9779 = sst [smem:[#allocation194_spill]] %s9210_s0 }
   0x2   :  { %21 = vsyncpa [#allocation5], 0 }
   0x3   :  { %22 = vsyncpa [#allocation8], 0 }
   0x4   :  { %23 = vsyncpa [#allocation11], 0 }
   0x5   :  { %24 = vsyncpa [#allocation14], 0 }
   0x6   :  { %25 = vsyncpa [#allocation17], 0 }
   0x7   :  { %26 = vsyncpa [#allocation6], 0  ;;  %s46_s23 = sshll.u32 %s9212_s2, 4  ;;  %s5302_s24 = smov [#allocation7]   ;;  %s47_s23 = int_to_ptr.hbm [resolvable:$true] %s46_s23 }
   0x8   :  { %s48_s25 = sshll.u32 %s5302_s24, 4  ;;  %s74_s28 = sshll.u32 %s9215_s5, 4  ;;  %s49_s25 = int_to_ptr.vmem [resolvable:$true] %s48_s25  ;;  %s75_s28 = int_to_ptr.hbm [resolvable:$true] %s74_s28 }
   0x9   :  { %s5303_s29 = smov 512   ;;  %s5304_s30 = smov 32  }
   0xa   :  { %54 = dma.hbm_to_vmem [thread:$0]  %s47_s23, 8192, %s49_s25, [#allocation8], %s5303_s29, %s5303_s29, %s5304_s30  }
   0xb   :  { %s5305_s0 = smov [#allocation10]   ;;  %s104_s19 = sshll.u32 %s9219_s9, 4  ;;  %s105_s19 = int_to_ptr.hbm [resolvable:$true] %s104_s19 }
   0xc   :  { %s76_s17 = sshll.u32 %s5305_s0, 4  ;;  %s5306_s5 = smov [#allocation13]   ;;  %s77_s17 = int_to_ptr.vmem [resolvable:$true] %s76_s17 }
   0xd   :  { %82 = dma.hbm_to_vmem [thread:$0]  %s75_s28, 8192, %s77_s17, [#allocation11], %s5303_s29, %s5303_s29, %s5304_s30  }
   0xe   :  { %s106_s20 = sshll.u32 %s5306_s5, 4  ;;  %s33_s23 = sshll.u32 %s9211_s1, 4  ;;  %s107_s20 = int_to_ptr.vmem [resolvable:$true] %s106_s20  ;;  %s34_s23 = int_to_ptr.hbm [resolvable:$true] %s33_s23 }
   0xf   :  { %s5307_s24 = smov 128   ;;  %s5308_s25 = smov 8  }
  0x10   :  { %112 = dma.hbm_to_vmem [thread:$0]  %s105_s19, 2048, %s107_s20, [#allocation14], %s5307_s24, %s5307_s24, %s5308_s25  }
  0x11   :  { %s5309_s26 = smov [#allocation4]   ;;  %s61_s9 = sshll.u32 %s9214_s4, 4  ;;  %s62_s9 = int_to_ptr.hbm [resolvable:$true] %s61_s9 }
  0x12   :  { %s35_s27 = sshll.u32 %s5309_s26, 4  ;;  %s89_s2 = sshll.u32 %s9217_s7, 4  ;;  %s36_s27 = int_to_ptr.vmem [resolvable:$true] %s35_s27  ;;  %s90_s2 = int_to_ptr.hbm [resolvable:$true] %s89_s2 }
  0x13   :  { %41 = dma.hbm_to_vmem [thread:$0]  %s34_s23, 1536, %s36_s27, [#allocation5], %s5303_s29, %s5303_s29, %s5304_s30  }
  0x14   :  { %s5310_s18 = smov [#allocation9]   ;;  %s5311_s19 = smov [#allocation12]  }
  0x15   :  { %s63_s5 = sshll.u32 %s5310_s18, 4  ;;  %s91_s4 = sshll.u32 %s5311_s19, 4  ;;  %s64_s5 = int_to_ptr.vmem [resolvable:$true] %s63_s5  ;;  %s92_s4 = int_to_ptr.vmem [resolvable:$true] %s91_s4 }
  0x16   :  { %69 = dma.hbm_to_vmem [thread:$0]  %s62_s9, 8192, %s64_s5, [#allocation8], %s5303_s29, %s5303_s29, %s5304_s30  }
  0x17   :  { %s119_s22 = sshll.u32 %s9221_s11, 4  ;;  %s136_s26 = sshll.u32 %s9224_s14, 4  ;;  %s120_s22 = int_to_ptr.hbm [resolvable:$true] %s119_s22  ;;  %s137_s26 = int_to_ptr.hbm [resolvable:$true] %s136_s26 }
  0x18   :  { %97 = dma.hbm_to_vmem [thread:$0]  %s90_s2, 2048, %s92_s4, [#allocation11], %s5307_s24, %s5307_s24, %s5308_s25  }
  0x19   :  { %s5312_s27 = smov [#allocation15]   ;;  %s5313_s29 = smov [#allocation16]  }
  0x1a   :  { %s121_s28 = sshll.u32 %s5312_s27, 4  ;;  %s138_s11 = sshll.u32 %s5313_s29, 4  ;;  %s122_s28 = int_to_ptr.vmem [resolvable:$true] %s121_s28  ;;  %s139_s11 = int_to_ptr.vmem [resolvable:$true] %s138_s11 }
  0x1b   :  { %127 = dma.hbm_to_vmem [thread:$0]  %s120_s22, 2048, %s122_s28, [#allocation14], %s5307_s24, %s5307_s24, %s5308_s25  }
  0x1c   :  { %144 = dma.hbm_to_vmem [thread:$0]  %s137_s26, 2048, %s139_s11, [#allocation17], %s5307_s24, %s5307_s24, %s5308_s25  }
  0x1d   :  { %5290 = dma.done.wait [#allocation5], 1536  }
  0x1e   :  { %5291 = vsyncadd [#allocation5], 4294965760 }
  0x1f   :  { %5292 = dma.done.wait [#allocation8], 16384  }
  0x20   :  { %5293 = vsyncadd [#allocation8], 4294950912 }
  0x21   :  { %5294 = dma.done.wait [#allocation11], 10240  }
  0x22   :  { %5295 = vsyncadd [#allocation11], 4294957056 }
  0x23   :  { %5296 = dma.done.wait [#allocation14], 4096  }
  0x24   :  { %5297 = vsyncadd [#allocation14], 4294963200 }
  0x25   :  { %5298 = dma.done.wait [#allocation17], 2048  }
  0x26   :  { %5299 = vsyncadd [#allocation17], 4294965248  ;;  %vm234_vm0 = vcmask 1040384   ;;  %v195_v0 = vld [vmem:[#allocation4 + $0x40] sm:$0x1]  ;;  %v193_v4 = vld [vmem:[#allocation4 + $0x30] sm:$0xff] }
  0x27   :  { %v197_v1 = vld [vmem:[#allocation4 + $0x50] sm:$0x1]  ;;  %v198_v2 = vld [vmem:[#allocation4 + $0x58] sm:$0x1]  ;;  %4117 = vmatpush.msk.msra.mxu0 %vm234_vm0, %v195_v0  ;;  %4210 = vmatpush.msk.msra.mxu1 %vm234_vm0, %v195_v0  ;;  %v191_v3 = vld [vmem:[#allocation4 + $0x20] sm:$0xff]  ;;  %s9780_s0 = sld [smem:[#allocation194_spill]] }
  0x28   :  { %v194_v5 = vld [vmem:[#allocation4 + $0x38] sm:$0xff]  ;;  %4135 = vmatpush.msk.msra.mxu2 %vm234_vm0, %v197_v1  ;;  %4144 = vmatpush.msk.msra.mxu3 %vm234_vm0, %v198_v2  ;;  %v187_v6 = vld [vmem:[#allocation4] sm:$0xff]  ;;  %v189_v7 = vld [vmem:[#allocation4 + $0x10] sm:$0xff]  ;;  %vm209_vm1 = vcmask 138240   ;;  %s4093_s1 = sshll.u32 %s9226_s16, 4  ;;  %s4094_s1 = int_to_ptr.hbm [resolvable:$true] %s4093_s1 }
  0x29   :  { %261 = vmatpush.msra.mxu0 %v191_v3  ;;  %4211 = vmatpush.msra.mxu1 %v191_v3  ;;  %v190_v8 = vld [vmem:[#allocation4 + $0x18] sm:$0xff]  ;;  %v196_v11 = vld [vmem:[#allocation4 + $0x48] sm:$0x1]  ;;  %v5461_v12 = vld [vmem:[#allocation10 + $0x1e0] sm:$0xff] }
  0x2a   :  { %343 = vmatpush.msra.mxu2 %v193_v4  ;;  %384 = vmatpush.msra.mxu3 %v194_v5  ;;  %v192_v13 = vld [vmem:[#allocation4 + $0x28] sm:$0xff]  ;;  %v5466_v14 = vld [vmem:[#allocation10 + $0x1f0] sm:$0xff]  ;;  %v5470_v15 = vld [vmem:[#allocation10 + $0x1c0] sm:$0xff] }
  0x2b   :  { %262 = vmatpush.msra.mxu0 %v187_v6  ;;  %4212 = vmatpush.msra.mxu1 %v187_v6  ;;  %v5472_v16 = vld [vmem:[#allocation10 + $0x1f8] sm:$0xff]  ;;  %v188_v17 = vld [vmem:[#allocation4 + $0x8] sm:$0xff]  ;;  %v5476_v18 = vld [vmem:[#allocation10 + $0x1d0] sm:$0xff] }
  0x2c   :  { %344 = vmatpush.msra.mxu2 %v189_v7  ;;  %385 = vmatpush.msra.mxu3 %v190_v8  ;;  %v5478_v19 = vld [vmem:[#allocation10 + $0x1a0] sm:$0xff]  ;;  %v5480_v20 = vld [vmem:[#allocation10 + $0x1e8] sm:$0xff]  ;;  %v5485_v21 = vld [vmem:[#allocation10 + $0x1d8] sm:$0xff] }
  0x2d   :  { %v179_v9 = vld [vmem:[%s9780_s0] sm:$0xff]  ;;  %v5459_v10 = vld [vmem:[%s9780_s0 + $0x38] sm:$0xff]  ;;  %4126 = vmatpush.msk.msrb.mxu1 %vm234_vm0, %v196_v11  ;;  %645 = vmatpush.msrb.mxu0 %v5461_v12  ;;  %v5487_v22 = vld [vmem:[#allocation10 + $0x1b0] sm:$0xff] }
  0x2e   :  { %4118 = vmatmul.msk.f32.vlgmr.msra.gmra.mxu0 %vm209_vm1, %v179_v9  ;;  %4125 = vmatmul.msk.f32.vlgmr.msra.gmra.mxu1 %vm209_vm1, %v5459_v10  ;;  %v180_v23 = vld [vmem:[%s9780_s0 + $0x8] sm:$0xff]  ;;  %v5494_v24 = vld [vmem:[#allocation10 + $0x180] sm:$0xff]  ;;  %v5505_v27 = vld [vmem:[#allocation10 + $0x1b8] sm:$0xff] }
  0x2f   :  { %4136 = vmatmul.msk.f32.vlgmr.msra.gmra.mxu2 %vm209_vm1, %v179_v9  ;;  %4145 = vmatmul.msk.f32.vlgmr.msra.gmra.mxu3 %vm209_vm1, %v179_v9  ;;  %v5497_v25 = vld [vmem:[#allocation10 + $0x1c8] sm:$0xff]  ;;  %v5503_v26 = vld [vmem:[#allocation10 + $0x160] sm:$0xff]  ;;  %v5511_v29 = vld [vmem:[#allocation10 + $0x190] sm:$0xff] }
  0x30   :  { %302 = vmatpush.msrb.mxu1 %v192_v13  ;;  %685 = vmatpush.msrb.mxu2 %v5466_v14  ;;  %v5509_v28 = vld [vmem:[#allocation10 + $0x1a8] sm:$0xff]  ;;  %v5514_v30 = vld [vmem:[#allocation10 + $0x140] sm:$0xff]  ;;  %v5517_v31 = vld [vmem:[#allocation10 + $0x198] sm:$0xff] }
  0x31   :  { %646 = vmatpush.msrb.mxu0 %v5470_v15  ;;  %705 = vmatpush.msrb.mxu3 %v5472_v16  ;;  %v5521_v32 = vld [vmem:[#allocation10 + $0x170] sm:$0xff]  ;;  %v5523_v33 = vld [vmem:[#allocation10 + $0x188] sm:$0xff]  ;;  %v5525_v34 = vld [vmem:[#allocation10 + $0x120] sm:$0xff] }
  0x32   :  { %303 = vmatpush.msrb.mxu1 %v188_v17  ;;  %686 = vmatpush.msrb.mxu2 %v5476_v18  ;;  %v5529_v35 = vld [vmem:[#allocation10 + $0x178] sm:$0xff]  ;;  %v181_v36 = vld [vmem:[%s9780_s0 + $0x10] sm:$0xff]  ;;  %v603_v37 = vld [vmem:[#allocation10 + $0x100] sm:$0xff] }
  0x33   :  { %647 = vmatpush.msrb.mxu0 %v5478_v19  ;;  %706 = vmatpush.msrb.mxu3 %v5485_v21  ;;  %v5540_v38 = vld [vmem:[#allocation10 + $0x150] sm:$0xff]  ;;  %v599_v39 = vld [vmem:[#allocation10 + $0xe0] sm:$0xff]  ;;  %v5544_v40 = vld [vmem:[#allocation10 + $0x158] sm:$0xff] }
  0x34   :  { %665 = vmatpush.msra.mxu1 %v5480_v20  ;;  %687 = vmatpush.msrb.mxu2 %v5487_v22  ;;  %v5547_v41 = vld [vmem:[#allocation10 + $0x130] sm:$0xff]  ;;  %v5549_v42 = vld [vmem:[#allocation10 + $0x168] sm:$0xff]  ;;  %v595_v43 = vld [vmem:[#allocation10 + $0xc0] sm:$0xff] }
  0x35   :  { %648 = vmatpush.msrb.mxu0 %v5494_v24  ;;  %707 = vmatpush.msrb.mxu3 %v5505_v27  ;;  %v5553_v44 = vld [vmem:[#allocation10 + $0x138] sm:$0xff]  ;;  %v5556_v45 = vld [vmem:[#allocation10 + $0x110] sm:$0xff]  ;;  %v5558_v46 = vld [vmem:[#allocation10 + $0x148] sm:$0xff] }
  0x36   :  { %4119 = vmatmul.msk.f32.gmra.mxu0 %vm209_vm1, %v180_v23  ;;  %4127 = vmatmul.msk.f32.vlgmr.msrb.gmra.mxu1 %vm209_vm1, %v179_v9  ;;  %v591_v47 = vld [vmem:[#allocation10 + $0xa0] sm:$0xff]  ;;  %v5562_v48 = vld [vmem:[#allocation10 + $0x118] sm:$0xff]  ;;  %v5571_v51 = vld [vmem:[#allocation10 + $0xf0] sm:$0xff] }
  0x37   :  { %4137 = vmatmul.msk.f32.gmra.mxu2 %vm209_vm1, %v180_v23  ;;  %4146 = vmatmul.msk.f32.gmra.mxu3 %vm209_vm1, %v180_v23  ;;  %v182_v49 = vld [vmem:[%s9780_s0 + $0x18] sm:$0xff]  ;;  %v587_v50 = vld [vmem:[#allocation10 + $0x80] sm:$0xff]  ;;  %v5580_v54 = vld [vmem:[#allocation10 + $0xd0] sm:$0xff] }
  0x38   :  { %666 = vmatpush.msra.mxu1 %v5497_v25  ;;  %649 = vmatpush.msrb.mxu0 %v5503_v26  ;;  %v5575_v52 = vld [vmem:[#allocation10 + $0x60] sm:$0xff]  ;;  %v5577_v53 = vld [vmem:[#allocation10 + $0xf8] sm:$0xff]  ;;  %v5582_v55 = vld [vmem:[#allocation10 + $0x128] sm:$0xff] }
  0x39   :  { %688 = vmatpush.msrb.mxu2 %v5511_v29  ;;  %708 = vmatpush.msrb.mxu3 %v5517_v31  ;;  %v5586_v56 = vld [vmem:[#allocation10 + $0x40] sm:$0xff]  ;;  %v5588_v57 = vld [vmem:[#allocation10 + $0xd8] sm:$0xff]  ;;  %v5592_v58 = vld [vmem:[#allocation10 + $0xb0] sm:$0xff] }
  0x3a   :  { %667 = vmatpush.msra.mxu1 %v5509_v28  ;;  %650 = vmatpush.msrb.mxu0 %v5514_v30  ;;  %9781 = vst [vmem:[#allocation25_spill] sm:$0xff] %v5586_v56  ;;  %v5594_v59 = vld [vmem:[#allocation10 + $0x108] sm:$0xff]  ;;  %v5597_v60 = vld [vmem:[#allocation10 + $0x20] sm:$0xff]  ;;  %v5600_v61 = vld [vmem:[#allocation10 + $0xb8] sm:$0xff] }
  0x3b   :  { %689 = vmatpush.msrb.mxu2 %v5521_v32  ;;  %709 = vmatpush.msrb.mxu3 %v5529_v35  ;;  %9782 = vst [vmem:[#allocation26_spill] sm:$0xff] %v5597_v60  ;;  %v183_v62 = vld [vmem:[%s9780_s0 + $0x20] sm:$0xff]  ;;  %v5611_v0 = vld [vmem:[#allocation10 + $0x90] sm:$0xff]  ;;  %v5615_v1 = vld [vmem:[#allocation10 + $0x98] sm:$0xff] }
  0x3c   :  { %668 = vmatpush.msra.mxu1 %v5523_v33  ;;  %651 = vmatpush.msrb.mxu0 %v5525_v34  ;;  %v5608_v63 = vld [vmem:[#allocation10] sm:$0xff]  ;;  %v5623_v3 = vld [vmem:[#allocation10 + $0xe8] sm:$0xff]  ;;  %v5625_v4 = vld [vmem:[#allocation10 + $0x70] sm:$0xff] }
  0x3d   :  { %690 = vmatpush.msrb.mxu2 %v5540_v38  ;;  %710 = vmatpush.msrb.mxu3 %v5544_v40  ;;  %9783 = vst [vmem:[#allocation27_spill] sm:$0xff] %v5608_v63  ;;  %v5617_v2 = vld [vmem:[#allocation7 + $0x1e0] sm:$0xff]  ;;  %v5629_v5 = vld [vmem:[#allocation10 + $0x78] sm:$0xff]  ;;  %v5635_v7 = vld [vmem:[#allocation10 + $0xc8] sm:$0xff] }
  0x3e   :  { %4120 = vmatmul.msk.f32.gmra.mxu0 %vm209_vm1, %v181_v36  ;;  %4128 = vmatmul.msk.f32.gmra.mxu1 %vm209_vm1, %v180_v23  ;;  %9784 = vst [vmem:[#allocation28_spill] sm:$0xff] %v5617_v2  ;;  %v5631_v6 = vld [vmem:[#allocation7 + $0x1c0] sm:$0xff]  ;;  %v5637_v8 = vld [vmem:[#allocation10 + $0x50] sm:$0xff]  ;;  %v5641_v9 = vld [vmem:[#allocation10 + $0x58] sm:$0xff] }
  0x3f   :  { %4138 = vmatmul.msk.f32.gmra.mxu2 %vm209_vm1, %v181_v36  ;;  %652 = vmatpush.msrb.mxu0 %v603_v37  ;;  %9785 = vst [vmem:[#allocation29_spill] sm:$0xff] %v5631_v6  ;;  %v5643_v11 = vld [vmem:[#allocation7 + $0x1a0] sm:$0xff]  ;;  %v5647_v13 = vld [vmem:[#allocation10 + $0xa8] sm:$0xff]  ;;  %v5649_v17 = vld [vmem:[#allocation10 + $0x30] sm:$0xff] }
  0x40   :  { %4147 = vmatmul.msk.f32.gmra.mxu3 %vm209_vm1, %v181_v36  ;;  %691 = vmatpush.msrb.mxu2 %v5547_v41  ;;  %9786 = vst [vmem:[#allocation30_spill] sm:$0xff] %v5637_v8  ;;  %v5653_v23 = vld [vmem:[#allocation10 + $0x38] sm:$0xff]  ;;  %v184_v37 = vld [vmem:[%s9780_s0 + $0x28] sm:$0xff] }
  0x41   :  { %653 = vmatpush.msrb.mxu0 %v599_v39  ;;  %669 = vmatpush.msra.mxu1 %v5549_v42  ;;  %9787 = vst [vmem:[#allocation31_spill] sm:$0xff] %v5641_v9  ;;  %v5666_v39 = vld [vmem:[#allocation10 + $0x88] sm:$0xff] }
  0x42   :  { %711 = vmatpush.msrb.mxu3 %v5553_v44  ;;  %692 = vmatpush.msrb.mxu2 %v5556_v45  ;;  %9788 = vst [vmem:[#allocation32_spill] sm:$0xff] %v5643_v11 }
  0x43   :  { %654 = vmatpush.msrb.mxu0 %v595_v43  ;;  %670 = vmatpush.msra.mxu1 %v5558_v46  ;;  %9789 = vst [vmem:[#allocation33_spill] sm:$0xff] %v5649_v17  ;;  %v5668_v43 = vld [vmem:[#allocation10 + $0x10] sm:$0xff] }
  0x44   :  { %712 = vmatpush.msrb.mxu3 %v5562_v48  ;;  %693 = vmatpush.msrb.mxu2 %v5571_v51  ;;  %9790 = vst [vmem:[#allocation34_spill] sm:$0xff] %v5653_v23 }
  0x45   :  { %655 = vmatpush.msrb.mxu0 %v591_v47  ;;  %671 = vmatpush.msra.mxu1 %v5582_v55  ;;  %9792 = vst [vmem:[#allocation36_spill] sm:$0xff] %v5668_v43  ;;  %v5672_v47 = vld [vmem:[#allocation10 + $0x18] sm:$0xff] }
  0x46   :  { %4121 = vmatmul.msk.f32.gmra.mxu0 %vm209_vm1, %v182_v49  ;;  %4129 = vmatmul.msk.f32.gmra.mxu1 %vm209_vm1, %v181_v36  ;;  %v5655_v36 = vld [vmem:[#allocation7 + $0x180] sm:$0xff]  ;;  %9793 = vst [vmem:[#allocation37_spill] sm:$0xff] %v5672_v47 }
  0x47   :  { %4139 = vmatmul.msk.f32.gmra.mxu2 %vm209_vm1, %v182_v49  ;;  %656 = vmatpush.msrb.mxu0 %v587_v50  ;;  %9791 = vst [vmem:[#allocation35_spill] sm:$0xff] %v5655_v36  ;;  %v5678_v50 = vld [vmem:[#allocation7 + $0x1f0] sm:$0xff] }
  0x48   :  { %4148 = vmatmul.msk.f32.gmra.mxu3 %vm209_vm1, %v182_v49  ;;  %694 = vmatpush.msrb.mxu2 %v5580_v54  ;;  %9795 = vst [vmem:[#allocation39_spill] sm:$0xff] %v5678_v50 }
  0x49   :  { %657 = vmatpush.msrb.mxu0 %v5575_v52  ;;  %713 = vmatpush.msrb.mxu3 %v5577_v53 }
  0x4a   :  { %695 = vmatpush.msrb.mxu2 %v5592_v58  ;;  %672 = vmatpush.msra.mxu1 %v5594_v59 }
  0x4b   :  { %658 = vmatpush.msrb.mxu0 %v5586_v56  ;;  %714 = vmatpush.msrb.mxu3 %v5588_v57  ;;  %v6078_v56 = vld [vmem:[#allocation9 + $0xe8] sm:$0xff] }
  0x4c   :  { %696 = vmatpush.msrb.mxu2 %v5611_v0  ;;  %673 = vmatpush.msra.mxu1 %v5623_v3  ;;  %9925 = vst [vmem:[#allocation168_spill] sm:$0xff] %v6078_v56 }
  0x4d   :  { %659 = vmatpush.msrb.mxu0 %v5597_v60  ;;  %715 = vmatpush.msrb.mxu3 %v5600_v61  ;;  %v5757_v60 = vld [vmem:[#allocation7 + $0x1a8] sm:$0xff] }
  0x4e   :  { %4122 = vmatmul.msk.f32.gmra.mxu0 %vm209_vm1, %v183_v62  ;;  %4130 = vmatmul.msk.f32.gmra.mxu1 %vm209_vm1, %v182_v49  ;;  %v5674_v49 = vld [vmem:[#allocation7 + $0x160] sm:$0xff]  ;;  %9818 = vst [vmem:[#allocation62_spill] sm:$0xff] %v5757_v60 }
  0x4f   :  { %4140 = vmatmul.msk.f32.gmra.mxu2 %vm209_vm1, %v183_v62  ;;  %660 = vmatpush.msrb.mxu0 %v5608_v63  ;;  %9794 = vst [vmem:[#allocation38_spill] sm:$0xff] %v5674_v49  ;;  %v5696_v63 = vld [vmem:[#allocation10 + $0x48] sm:$0xff] }
  0x50   :  { %4149 = vmatmul.msk.f32.gmra.mxu3 %vm209_vm1, %v183_v62  ;;  %697 = vmatpush.msrb.mxu2 %v5625_v4  ;;  %9800 = vst [vmem:[#allocation44_spill] sm:$0xff] %v5696_v63 }
  0x51   :  { %716 = vmatpush.msrb.mxu3 %v5615_v1  ;;  %732 = vmatpush.msra.mxu0 %v5617_v2  ;;  %v5692_v2 = vld [vmem:[#allocation7 + $0x1d8] sm:$0xff] }
  0x52   :  { %674 = vmatpush.msra.mxu1 %v5635_v7  ;;  %698 = vmatpush.msrb.mxu2 %v5637_v8  ;;  %9799 = vst [vmem:[#allocation43_spill] sm:$0xff] %v5692_v2 }
  0x53   :  { %717 = vmatpush.msrb.mxu3 %v5629_v5  ;;  %733 = vmatpush.msra.mxu0 %v5631_v6  ;;  %v5686_v6 = vld [vmem:[#allocation7 + $0x140] sm:$0xff] }
  0x54   :  { %675 = vmatpush.msra.mxu1 %v5647_v13  ;;  %699 = vmatpush.msrb.mxu2 %v5649_v17  ;;  %9797 = vst [vmem:[#allocation41_spill] sm:$0xff] %v5686_v6  ;;  %v5716_v17 = vld [vmem:[#allocation7 + $0x198] sm:$0xff] }
  0x55   :  { %718 = vmatpush.msrb.mxu3 %v5641_v9  ;;  %734 = vmatpush.msra.mxu0 %v5643_v11  ;;  %v5680_v11 = vld [vmem:[#allocation7 + $0x1f8] sm:$0xff]  ;;  %9807 = vst [vmem:[#allocation51_spill] sm:$0xff] %v5716_v17 }
  0x56   :  { %4123 = vmatmul.msk.f32.gmra.mxu0 %vm209_vm1, %v184_v37  ;;  %4131 = vmatmul.msk.f32.gmra.mxu1 %vm209_vm1, %v183_v62  ;;  %9796 = vst [vmem:[#allocation40_spill] sm:$0xff] %v5680_v11  ;;  %v5690_v62 = vld [vmem:[#allocation7 + $0x1d0] sm:$0xff] }
  0x57   :  { %719 = vmatpush.msrb.mxu3 %v5653_v23  ;;  %735 = vmatpush.msra.mxu0 %v5655_v36  ;;  %v5684_v36 = vld [vmem:[#allocation10 + $0x68] sm:$0xff]  ;;  %9798 = vst [vmem:[#allocation42_spill] sm:$0xff] %v5690_v62  ;;  %v5698_v23 = vld [vmem:[#allocation7 + $0x120] sm:$0xff] }
  0x58   :  { %4141 = vmatmul.msk.f32.gmra.mxu2 %vm209_vm1, %v184_v37  ;;  %4150 = vmatmul.msk.f32.gmra.mxu3 %vm209_vm1, %v184_v37  ;;  %9801 = vst [vmem:[#allocation45_spill] sm:$0xff] %v5698_v23 }
  0x59   :  { %676 = vmatpush.msra.mxu1 %v5666_v39  ;;  %700 = vmatpush.msrb.mxu2 %v5668_v43  ;;  %v5702_v43 = vld [vmem:[#allocation7 + $0x1b0] sm:$0xff] }
  0x5a   :  { %720 = vmatpush.msrb.mxu3 %v5672_v47  ;;  %736 = vmatpush.msra.mxu0 %v5674_v49  ;;  %9802 = vst [vmem:[#allocation46_spill] sm:$0xff] %v5702_v43  ;;  %v5704_v47 = vld [vmem:[#allocation7 + $0x1b8] sm:$0xff]  ;;  %v5708_v49 = vld [vmem:[#allocation10 + $0x28] sm:$0xff] }
  0x5b   :  { %772 = vmatpush.msra.mxu2 %v5678_v50  ;;  %677 = vmatpush.msra.mxu1 %v5684_v36  ;;  %9803 = vst [vmem:[#allocation47_spill] sm:$0xff] %v5704_v47  ;;  %v5710_v50 = vld [vmem:[#allocation7 + $0x100] sm:$0xff] }
  0x5c   :  { %792 = vmatpush.msra.mxu3 %v5680_v11  ;;  %737 = vmatpush.msra.mxu0 %v5686_v6  ;;  %9804 = vst [vmem:[#allocation48_spill] sm:$0xff] %v5708_v49  ;;  %v5714_v11 = vld [vmem:[#allocation7 + $0x190] sm:$0xff] }
  0x5d   :  { %773 = vmatpush.msra.mxu2 %v5690_v62  ;;  %9805 = vst [vmem:[#allocation49_spill] sm:$0xff] %v5710_v50  ;;  %678 = vmatpush.msra.mxu1 %v5696_v63  ;;  %v185_v6 = vld [vmem:[%s9780_s0 + $0x30] sm:$0xff] }
  0x5e   :  { %793 = vmatpush.msra.mxu3 %v5692_v2  ;;  %738 = vmatpush.msra.mxu0 %v5698_v23  ;;  %9806 = vst [vmem:[#allocation50_spill] sm:$0xff] %v5714_v11  ;;  %v5727_v23 = vld [vmem:[#allocation10 + $0x8] sm:$0xff]  ;;  %v5729_v2 = vld [vmem:[#allocation7 + $0xe0] sm:$0xff]  ;;  %v5747_v62 = vld [vmem:[#allocation7 + $0x150] sm:$0xff] }
  0x5f   :  { %774 = vmatpush.msra.mxu2 %v5702_v43  ;;  %679 = vmatpush.msra.mxu1 %v5708_v49  ;;  %9808 = vst [vmem:[#allocation52_spill] sm:$0xff] %v5727_v23  ;;  %v5735_v43 = vld [vmem:[#allocation7 + $0x170] sm:$0xff]  ;;  %v5753_v49 = vld [vmem:[#allocation7 + $0xa0] sm:$0xff] }
  0x60   :  { %794 = vmatpush.msra.mxu3 %v5704_v47  ;;  %739 = vmatpush.msra.mxu0 %v5710_v50  ;;  %9809 = vst [vmem:[#allocation53_spill] sm:$0xff] %v5729_v2  ;;  %v5733_v47 = vld [vmem:[#allocation7 + $0x1e8] sm:$0xff]  ;;  %v5739_v50 = vld [vmem:[#allocation7 + $0x178] sm:$0xff] }
  0x61   :  { %775 = vmatpush.msra.mxu2 %v5714_v11  ;;  %4124 = vmatmul.msk.f32.gmra.mxu0 %vm209_vm1, %v185_v6  ;;  %9810 = vst [vmem:[#allocation54_spill] sm:$0xff] %v5733_v47  ;;  %v5741_v11 = vld [vmem:[#allocation7 + $0xc0] sm:$0xff] }
  0x62   :  { %795 = vmatpush.msra.mxu3 %v5716_v17  ;;  %4132 = vmatmul.msk.f32.gmra.mxu1 %vm209_vm1, %v184_v37  ;;  %9811 = vst [vmem:[#allocation55_spill] sm:$0xff] %v5735_v43  ;;  %v5745_v17 = vld [vmem:[#allocation7 + $0x1c8] sm:$0xff]  ;;  %v5751_v37 = vld [vmem:[#allocation7 + $0x158] sm:$0xff] }
  0x63   :  { %4142 = vmatmul.msk.f32.gmra.mxu2 %vm209_vm1, %v185_v6  ;;  %4151 = vmatmul.msk.f32.gmra.mxu3 %vm209_vm1, %v185_v6  ;;  %9812 = vst [vmem:[#allocation56_spill] sm:$0xff] %v5739_v50 }
  0x64   :  { %9813 = vst [vmem:[#allocation57_spill] sm:$0xff] %v5741_v11  ;;  %680 = vmatpush.msra.mxu1 %v5727_v23  ;;  %740 = vmatpush.msra.mxu0 %v5729_v2  ;;  %v5759_v23 = vld [vmem:[#allocation7 + $0x130] sm:$0xff]  ;;  %v5763_v2 = vld [vmem:[#allocation7 + $0x138] sm:$0xff] }
  0x65   :  { %9814 = vst [vmem:[#allocation58_spill] sm:$0xff] %v5745_v17  ;;  %776 = vmatpush.msra.mxu2 %v5735_v43  ;;  %796 = vmatpush.msra.mxu3 %v5739_v50  ;;  %v5769_v43 = vld [vmem:[#allocation7 + $0x188] sm:$0xff]  ;;  %v5771_v50 = vld [vmem:[#allocation7 + $0x110] sm:$0xff] }
  0x66   :  { %9815 = vst [vmem:[#allocation59_spill] sm:$0xff] %v5747_v62  ;;  %752 = vmatpush.msrb.mxu1 %v5733_v47  ;;  %741 = vmatpush.msra.mxu0 %v5741_v11  ;;  %v5765_v47 = vld [vmem:[#allocation7 + $0x80] sm:$0xff]  ;;  %v5775_v11 = vld [vmem:[#allocation7 + $0x118] sm:$0xff] }
  0x67   :  { %9816 = vst [vmem:[#allocation60_spill] sm:$0xff] %v5751_v37  ;;  %777 = vmatpush.msra.mxu2 %v5747_v62  ;;  %797 = vmatpush.msra.mxu3 %v5751_v37  ;;  %v5781_v37 = vld [vmem:[#allocation7 + $0x168] sm:$0xff]  ;;  %v5787_v62 = vld [vmem:[#allocation7 + $0xf0] sm:$0xff] }
  0x68   :  { %9817 = vst [vmem:[#allocation61_spill] sm:$0xff] %v5753_v49  ;;  %753 = vmatpush.msrb.mxu1 %v5745_v17  ;;  %742 = vmatpush.msra.mxu0 %v5753_v49  ;;  %v5785_v49 = vld [vmem:[#allocation7 + $0x60] sm:$0xff] }
  0x69   :  { %9819 = vst [vmem:[#allocation63_spill] sm:$0xff] %v5759_v23  ;;  %778 = vmatpush.msra.mxu2 %v5759_v23  ;;  %798 = vmatpush.msra.mxu3 %v5763_v2  ;;  %v5805_v23 = vld [vmem:[#allocation7 + $0xd8] sm:$0xff] }
  0x6a   :  { %9820 = vst [vmem:[#allocation64_spill] sm:$0xff] %v5763_v2  ;;  %754 = vmatpush.msrb.mxu1 %v5757_v60  ;;  %743 = vmatpush.msra.mxu0 %v5765_v47  ;;  %v5795_v2 = vld [vmem:[#allocation7 + $0x148] sm:$0xff]  ;;  %v5811_v60 = vld [vmem:[#allocation7 + $0x20] sm:$0xff] }
  0x6b   :  { %9821 = vst [vmem:[#allocation65_spill] sm:$0xff] %v5765_v47  ;;  %779 = vmatpush.msra.mxu2 %v5771_v50  ;;  %799 = vmatpush.msra.mxu3 %v5775_v11  ;;  %v5793_v47 = vld [vmem:[#allocation7 + $0xf8] sm:$0xff] }
  0x6c   :  { %9822 = vst [vmem:[#allocation66_spill] sm:$0xff] %v5769_v43  ;;  %755 = vmatpush.msrb.mxu1 %v5769_v43  ;;  %4143 = vmatmul.msk.f32.gmra.mxu2 %vm209_vm1, %v5459_v10  ;;  %v5807_v43 = vld [vmem:[#allocation7 + $0x128] sm:$0xff] }
  0x6d   :  { %9823 = vst [vmem:[#allocation67_spill] sm:$0xff] %v5771_v50  ;;  %4133 = vmatmul.msk.f32.gmra.mxu1 %vm209_vm1, %v185_v6  ;;  %4152 = vmatmul.msk.f32.gmra.mxu3 %vm209_vm1, %v5459_v10  ;;  %v9267_v50 = vmov 0.0   ;;  %v5799_v6 = vld [vmem:[#allocation7 + $0x40] sm:$0xff] }
  0x6e   :  { %9824 = vst [vmem:[#allocation68_spill] sm:$0xff] %v5775_v11  ;;  %661 = vmatmul.f32.vlgmr.msrb.gmra.mxu0 %v9267_v50  ;;  %756 = vmatpush.msrb.mxu1 %v5781_v37  ;;  %v5801_v11 = vld [vmem:[#allocation7 + $0xd0] sm:$0xff] }
  0x6f   :  { %9825 = vst [vmem:[#allocation69_spill] sm:$0xff] %v5781_v37  ;;  %744 = vmatpush.msra.mxu0 %v5785_v49  ;;  %780 = vmatpush.msra.mxu2 %v5787_v62  ;;  %v5813_v50 = vld [vmem:[#allocation7 + $0xb0] sm:$0xff]  ;;  %v5817_v37 = vld [vmem:[#allocation7 + $0xb8] sm:$0xff] }
  0x70   :  { %9826 = vst [vmem:[#allocation70_spill] sm:$0xff] %v5785_v49  ;;  %800 = vmatpush.msra.mxu3 %v5793_v47  ;;  %757 = vmatpush.msrb.mxu1 %v5795_v2  ;;  %v5819_v49 = vld [vmem:[#allocation7 + $0x108] sm:$0xff] }
  0x71   :  { %9827 = vst [vmem:[#allocation71_spill] sm:$0xff] %v5787_v62  ;;  %745 = vmatpush.msra.mxu0 %v5799_v6  ;;  %781 = vmatpush.msra.mxu2 %v5801_v11  ;;  %v5823_v62 = vld [vmem:[#allocation7] sm:$0xff] }
  0x72   :  { %9828 = vst [vmem:[#allocation72_spill] sm:$0xff] %v5793_v47  ;;  %801 = vmatpush.msra.mxu3 %v5805_v23  ;;  %758 = vmatpush.msrb.mxu1 %v5807_v43  ;;  %v5825_v47 = vld [vmem:[#allocation7 + $0x90] sm:$0xff] }
  0x73   :  { %9829 = vst [vmem:[#allocation73_spill] sm:$0xff] %v5795_v2  ;;  %746 = vmatpush.msra.mxu0 %v5811_v60  ;;  %782 = vmatpush.msra.mxu2 %v5813_v50  ;;  %v5829_v2 = vld [vmem:[#allocation7 + $0x98] sm:$0xff] }
  0x74   :  { %9830 = vst [vmem:[#allocation74_spill] sm:$0xff] %v5799_v6  ;;  %802 = vmatpush.msra.mxu3 %v5817_v37  ;;  %759 = vmatpush.msrb.mxu1 %v5819_v49  ;;  %v5835_v6 = vld [vmem:[#allocation7 + $0xe8] sm:$0xff] }
  0x75   :  { %9831 = vst [vmem:[#allocation75_spill] sm:$0xff] %v5801_v11  ;;  %747 = vmatpush.msra.mxu0 %v5823_v62  ;;  %783 = vmatpush.msra.mxu2 %v5825_v47  ;;  %v5861_v11 = vld [vmem:[#allocation7 + $0x38] sm:$0xff] }
  0x76   :  { %9832 = vst [vmem:[#allocation76_spill] sm:$0xff] %v5805_v23  ;;  %803 = vmatpush.msra.mxu3 %v5829_v2  ;;  %4134 = vmatmul.msk.f32.gmra.mxu1 %vm209_vm1, %v5459_v10  ;;  %v9844_v23 = vmov 0.0   ;;  %v5856_v10 = vld [vmem:[#allocation7 + $0xa8] sm:$0xff] }
  0x77   :  { %9833 = vst [vmem:[#allocation77_spill] sm:$0xff] %v5807_v43  ;;  %701 = vmatmul.f32.vlgmr.msrb.gmra.mxu2 %v9844_v23  ;;  %721 = vmatmul.f32.vlgmr.msrb.gmra.mxu3 %v9844_v23 }
  0x78   :  { %9834 = vst [vmem:[#allocation78_spill] sm:$0xff] %v5811_v60  ;;  %v5840_v60 = vld [vmem:[#allocation7 + $0x70] sm:$0xff]  ;;  %748 = vmatmul.f32.vlgmr.msra.gmra.mxu0 %v9844_v23  ;;  %760 = vmatpush.msrb.mxu1 %v5835_v6 }
  0x79   :  { %9835 = vst [vmem:[#allocation79_spill] sm:$0xff] %v5813_v50  ;;  %v5842_v50 = vld [vmem:[#allocation7 + $0x78] sm:$0xff]  ;;  %784 = vmatpush.msra.mxu2 %v5840_v60 }
  0x7a   :  { %9836 = vst [vmem:[#allocation80_spill] sm:$0xff] %v5817_v37  ;;  %v5846_v37 = vld [vmem:[#allocation7 + $0xc8] sm:$0xff]  ;;  %804 = vmatpush.msra.mxu3 %v5842_v50 }
  0x7b   :  { %9837 = vst [vmem:[#allocation81_spill] sm:$0xff] %v5819_v49  ;;  %761 = vmatpush.msrb.mxu1 %v5846_v37  ;;  %v5868_v49 = vld [vmem:[#allocation7 + $0x10] sm:$0xff] }
  0x7c   :  { %9838 = vst [vmem:[#allocation82_spill] sm:$0xff] %v5823_v62  ;;  %v5850_v62 = vld [vmem:[#allocation7 + $0x50] sm:$0xff] }
  0x7d   :  { %9839 = vst [vmem:[#allocation83_spill] sm:$0xff] %v5825_v47  ;;  %v5859_v47 = vld [vmem:[#allocation7 + $0x30] sm:$0xff]  ;;  %785 = vmatpush.msra.mxu2 %v5850_v62  ;;  %762 = vmatpush.msrb.mxu1 %v5856_v10 }
  0x7e   :  { %9840 = vst [vmem:[#allocation84_spill] sm:$0xff] %v5829_v2  ;;  %v5852_v2 = vld [vmem:[#allocation7 + $0x58] sm:$0xff]  ;;  %681 = vmatmul.f32.vlgmr.msra.gmra.mxu1 %v9844_v23 }
  0x7f   :  { %9841 = vst [vmem:[#allocation85_spill] sm:$0xff] %v5835_v6  ;;  %805 = vmatpush.msra.mxu3 %v5852_v2  ;;  %v5865_v6 = vld [vmem:[#allocation7 + $0x88] sm:$0xff]  ;;  %786 = vmatpush.msra.mxu2 %v5859_v47 }
  0x80   :  { %9842 = vst [vmem:[#allocation86_spill] sm:$0xff] %v5840_v60  ;;  %v5870_v60 = vld [vmem:[#allocation7 + $0x18] sm:$0xff]  ;;  %763 = vmatpush.msrb.mxu1 %v5865_v6 }
  0x81   :  { %9843 = vst [vmem:[#allocation87_spill] sm:$0xff] %v5842_v50  ;;  %806 = vmatpush.msra.mxu3 %v5861_v11  ;;  %v5875_v50 = vld [vmem:[#allocation7 + $0x68] sm:$0xff]  ;;  %787 = vmatpush.msra.mxu2 %v5868_v49 }
  0x82   :  { %9845 = vst [vmem:[#allocation88_spill] sm:$0xff] %v5846_v37  ;;  %788 = vmatmul.f32.vlgmr.msra.gmra.mxu2 %v9844_v23  ;;  %764 = vmatpush.msrb.mxu1 %v5875_v50 }
  0x83   :  { %9846 = vst [vmem:[#allocation89_spill] sm:$0xff] %v5850_v62  ;;  %807 = vmatpush.msra.mxu3 %v5870_v60 }
  0x84   :  { %9847 = vst [vmem:[#allocation90_spill] sm:$0xff] %v5852_v2  ;;  %v5881_v2 = vld [vmem:[#allocation7 + $0x48] sm:$0xff]  ;;  %808 = vmatmul.f32.vlgmr.msra.gmra.mxu3 %v9844_v23 }
  0x85   :  { %9848 = vst [vmem:[#allocation91_spill] sm:$0xff] %v5856_v10  ;;  %765 = vmatpush.msrb.mxu1 %v5881_v2 }
  0x86   :  { %9849 = vst [vmem:[#allocation92_spill] sm:$0xff] %v5859_v47  ;;  %v5885_v47 = vld [vmem:[#allocation7 + $0x28] sm:$0xff] }
  0x87   :  { %9850 = vst [vmem:[#allocation93_spill] sm:$0xff] %v5861_v11  ;;  %v5888_v11 = vld [vmem:[#allocation7 + $0x8] sm:$0xff]  ;;  %766 = vmatpush.msrb.mxu1 %v5885_v47 }
  0x88   :  { %9851 = vst [vmem:[#allocation94_spill] sm:$0xff] %v5865_v6 }
  0x89   :  { %9852 = vst [vmem:[#allocation95_spill] sm:$0xff] %v5868_v49  ;;  %767 = vmatpush.msrb.mxu1 %v5888_v11 }
  0x8a   :  { %9853 = vst [vmem:[#allocation96_spill] sm:$0xff] %v5870_v60  ;;  %768 = vmatmul.f32.vlgmr.msrb.gmra.mxu1 %v9844_v23 }
  0x8b   :  { %9854 = vst [vmem:[#allocation97_spill] sm:$0xff] %v5875_v50 }
  0x8c   :  { %9855 = vst [vmem:[#allocation98_spill] sm:$0xff] %v5881_v2 }
  0x8d   :  { %9856 = vst [vmem:[#allocation99_spill] sm:$0xff] %v5885_v47 }
  0x8e   :  { %9857 = vst [vmem:[#allocation100_spill] sm:$0xff] %v5888_v11 }
  0xab   :  { %v264_v60 = vpop.f32.mrf.mxu0  ;;  %v5893_v49 = vpop.f32.mrf.mxu1 }
  0xac   :  { %9858 = vst [vmem:[#allocation101_spill] sm:$0xff] %v5893_v49 }
  0xb2   :  { %v5895_v62 = vpop.f32.mrf.mxu2  ;;  %v5907_v47 = vpop.f32.mrf.mxu3 }
  0xb3   :  { %v5897_v6 = vpop.f32.mrf.mxu0  ;;  %v5899_v50 = vpop.f32.mrf.mxu1 }
  0xb4   :  { %9859 = vst [vmem:[#allocation102_spill] sm:$0xff] %v5897_v6 }
  0xba   :  { %v5901_v10 = vpop.f32.mrf.mxu2  ;;  %v5915_v49 = vpop.f32.mrf.mxu3 }
  0xbb   :  { %9860 = vst [vmem:[#allocation103_spill] sm:$0xff] %v5901_v10  ;;  %v5903_v2 = vpop.f32.mrf.mxu0  ;;  %v5905_v37 = vpop.f32.mrf.mxu1 }
  0xbc   :  { %9861 = vst [vmem:[#allocation104_spill] sm:$0xff] %v5903_v2 }
  0xbd   :  { %9862 = vst [vmem:[#allocation105_spill] sm:$0xff] %v5905_v37 }
  0xbe   :  { %9866 = vst [vmem:[#allocation109_spill] sm:$0xff] %v5915_v49 }
  0xc2   :  { %v5909_v11 = vpop.f32.mrf.mxu2 }
  0xc3   :  { %9863 = vst [vmem:[#allocation106_spill] sm:$0xff] %v5909_v11  ;;  %v5911_v23 = vpop.f32.mrf.mxu0  ;;  %v5913_v43 = vpop.f32.mrf.mxu1 }
  0xc4   :  { %9864 = vst [vmem:[#allocation107_spill] sm:$0xff] %v5911_v23  ;;  %v5923_v10 = vpop.f32.mrf.mxu3 }
  0xc5   :  { %9865 = vst [vmem:[#allocation108_spill] sm:$0xff] %v5913_v43 }
  0xc6   :  { %9870 = vst [vmem:[#allocation113_spill] sm:$0xff] %v5923_v10 }
  0xca   :  { %v5917_v17 = vpop.f32.mrf.mxu2 }
  0xcb   :  { %9867 = vst [vmem:[#allocation110_spill] sm:$0xff] %v5917_v17  ;;  %v5919_v6 = vpop.f32.mrf.mxu1  ;;  %v5921_v9 = vpop.f32.mrf.mxu0 }
  0xcc   :  { %9868 = vst [vmem:[#allocation111_spill] sm:$0xff] %v5919_v6  ;;  %v5931_v11 = vpop.f32.mrf.mxu3 }
  0xcd   :  { %9869 = vst [vmem:[#allocation112_spill] sm:$0xff] %v5921_v9 }
  0xce   :  { %9874 = vst [vmem:[#allocation117_spill] sm:$0xff] %v5931_v11  ;;  %v5976_v11 = vld [vmem:[#allocation9 + $0x1c8] sm:$0xff] }
  0xcf   :  { %9891 = vst [vmem:[#allocation134_spill] sm:$0xff] %v5976_v11 }
  0xd2   :  { %v5925_v2 = vpop.f32.mrf.mxu2 }
  0xd3   :  { %9871 = vst [vmem:[#allocation114_spill] sm:$0xff] %v5925_v2  ;;  %v5927_v37 = vpop.f32.mrf.mxu1  ;;  %v5929_v8 = vpop.f32.mrf.mxu0 }
  0xd4   :  { %9872 = vst [vmem:[#allocation115_spill] sm:$0xff] %v5927_v37  ;;  %v5939_v17 = vpop.f32.mrf.mxu3 }
  0xd5   :  { %9873 = vst [vmem:[#allocation116_spill] sm:$0xff] %v5929_v8  ;;  %v5950_v8 = vld [vmem:[%s9213_s3] sm:$0xf] }
  0xd6   :  { %9878 = vst [vmem:[#allocation121_spill] sm:$0xff] %v5939_v17  ;;  %v5961_v17 = vld [vmem:[#allocation9 + $0x1e0] sm:$0xff] }
  0xd7   :  { %9886 = vst [vmem:[#allocation129_spill] sm:$0xff] %v5961_v17  ;;  %879 = vmatpush.msrb.mxu0 %v5961_v17  ;;  %v6050_v17 = vperm.slane %v5950_v8, 1 }
  0xd9   :  { %9917 = vst [vmem:[#allocation160_spill] sm:$0xff] %v6050_v17 }
  0xdb   :  { %v5933_v23 = vpop.f32.mrf.mxu2 }
  0xdc   :  { %9875 = vst [vmem:[#allocation118_spill] sm:$0xff] %v5933_v23  ;;  %v5952_v2 = vpop.f32.mrf.mxu3 }
  0xdd   :  { %9882 = vst [vmem:[#allocation125_spill] sm:$0xff] %v5952_v2  ;;  %v5970_v2 = vld [vmem:[#allocation9 + $0x1f8] sm:$0xff] }
  0xde   :  { %v5937_v49 = vpop.f32.mrf.mxu0  ;;  %9889 = vst [vmem:[#allocation132_spill] sm:$0xff] %v5970_v2  ;;  %939 = vmatpush.msrb.mxu3 %v5970_v2  ;;  %v5988_v2 = vld [vmem:[#allocation9 + $0x1a8] sm:$0xff] }
  0xdf   :  { %v5935_v43 = vpop.f32.mrf.mxu1  ;;  %9877 = vst [vmem:[#allocation120_spill] sm:$0xff] %v5937_v49 }
  0xe0   :  { %9876 = vst [vmem:[#allocation119_spill] sm:$0xff] %v5935_v43  ;;  %v5957_v43 = vperm.slane %v5950_v8, 0 }
  0xe1   :  { %9895 = vst [vmem:[#allocation138_spill] sm:$0xff] %v5988_v2 }
  0xe2   :  { %9884 = vst [vmem:[#allocation127_spill] sm:$0xff] %v5957_v43  ;;  %v265_v37 = vadd.f32 %v264_v60, %v5957_v43  ;;  %v5982_v60 = vld [vmem:[#allocation9 + $0x1d8] sm:$0xff]  ;;  %v5986_v43 = vld [vmem:[#allocation9 + $0x1a0] sm:$0xff] }
  0xe3   :  { %9893 = vst [vmem:[#allocation136_spill] sm:$0xff] %v5982_v60  ;;  %940 = vmatpush.msrb.mxu3 %v5982_v60  ;;  %v6000_v60 = vld [vmem:[#allocation9 + $0x180] sm:$0xff] }
  0xe4   :  { %9894 = vst [vmem:[#allocation137_spill] sm:$0xff] %v5986_v43 }
  0xe5   :  { %9899 = vst [vmem:[#allocation142_spill] sm:$0xff] %v6000_v60 }
  0xe6   :  { %v5941_v6 = vpop.f32.mrf.mxu2 }
  0xe7   :  { %9879 = vst [vmem:[#allocation122_spill] sm:$0xff] %v5941_v6  ;;  %v5963_v6 = vld [vmem:[#allocation9 + $0x1e8] sm:$0xff] }
  0xe8   :  { %9887 = vst [vmem:[#allocation130_spill] sm:$0xff] %v5963_v6  ;;  %899 = vmatpush.msra.mxu1 %v5963_v6 }
  0xea   :  { %v5943_v9 = vpop.f32.mrf.mxu1  ;;  %900 = vmatpush.msra.mxu1 %v5976_v11  ;;  %v6004_v11 = vld [vmem:[#allocation9 + $0x190] sm:$0xff] }
  0xeb   :  { %9880 = vst [vmem:[#allocation123_spill] sm:$0xff] %v5943_v9  ;;  %v5945_v10 = vpop.f32.mrf.mxu0  ;;  %v5965_v9 = vld [vmem:[#allocation9 + $0x1f0] sm:$0xff] }
  0xec   :  { %9881 = vst [vmem:[#allocation124_spill] sm:$0xff] %v5945_v10  ;;  %919 = vmatpush.msrb.mxu2 %v5965_v9  ;;  %v5978_v10 = vld [vmem:[#allocation9 + $0x1d0] sm:$0xff]  ;;  %901 = vmatpush.msra.mxu1 %v5988_v2  ;;  %v6010_v2 = vld [vmem:[#allocation9 + $0x198] sm:$0xff] }
  0xed   :  { %9888 = vst [vmem:[#allocation131_spill] sm:$0xff] %v5965_v9  ;;  %v5990_v9 = vld [vmem:[#allocation9 + $0x1b0] sm:$0xff] }
  0xee   :  { %9892 = vst [vmem:[#allocation135_spill] sm:$0xff] %v5978_v10  ;;  %920 = vmatpush.msrb.mxu2 %v5978_v10  ;;  %v6002_v10 = vld [vmem:[#allocation9 + $0x188] sm:$0xff] }
  0xef   :  { %v5954_v23 = vpop.f32.mrf.mxu2  ;;  %9896 = vst [vmem:[#allocation139_spill] sm:$0xff] %v5990_v9  ;;  %902 = vmatpush.msra.mxu1 %v6002_v10 }
  0xf0   :  { %9883 = vst [vmem:[#allocation126_spill] sm:$0xff] %v5954_v23  ;;  %921 = vmatpush.msrb.mxu2 %v5990_v9  ;;  %v6018_v9 = vld [vmem:[#allocation9 + $0x170] sm:$0xff] }
  0xf1   :  { %9900 = vst [vmem:[#allocation143_spill] sm:$0xff] %v6002_v10  ;;  %v6032_v10 = vld [vmem:[#allocation9 + $0x150] sm:$0xff] }
  0xf2   :  { %9901 = vst [vmem:[#allocation144_spill] sm:$0xff] %v6004_v11  ;;  %922 = vmatpush.msrb.mxu2 %v6004_v11  ;;  %v6028_v11 = vld [vmem:[#allocation9 + $0x140] sm:$0xff] }
  0xf3   :  { %v5959_v49 = vpop.f32.mrf.mxu1  ;;  %9903 = vst [vmem:[#allocation146_spill] sm:$0xff] %v6010_v2 }
  0xf4   :  { %9885 = vst [vmem:[#allocation128_spill] sm:$0xff] %v5959_v49  ;;  %v5974_v49 = vld [vmem:[#allocation9 + $0x1c0] sm:$0xff]  ;;  %923 = vmatpush.msrb.mxu2 %v6018_v9 }
  0xf5   :  { %v749_v23 = vpop.f32.mrf.mxu0  ;;  %9890 = vst [vmem:[#allocation133_spill] sm:$0xff] %v5974_v49  ;;  %880 = vmatpush.msrb.mxu0 %v5974_v49 }
  0xf6   :  { %v812_v63 = vadd.f32 %v749_v23, %v265_v37  ;;  %v5994_v37 = vld [vmem:[#allocation9 + $0x1b8] sm:$0xff]  ;;  %v5996_v23 = vpop.f32.mrf.mxu3  ;;  %9906 = vst [vmem:[#allocation149_spill] sm:$0xff] %v6018_v9  ;;  %924 = vmatpush.msrb.mxu2 %v6032_v10  ;;  %v6045_v9 = vld [vmem:[#allocation9 + $0x128] sm:$0xff] }
  0xf7   :  { %881 = vmatpush.msrb.mxu0 %v5986_v43  ;;  %9897 = vst [vmem:[#allocation140_spill] sm:$0xff] %v5994_v37  ;;  %941 = vmatpush.msrb.mxu3 %v5994_v37  ;;  %v6016_v37 = vld [vmem:[#allocation9 + $0x168] sm:$0xff]  ;;  %v6035_v43 = vperm.slane %v5950_v8, 2 }
  0xf8   :  { %v4153_v6 = vmul.f32 -1.442695, %v812_v63  ;;  %9898 = vst [vmem:[#allocation141_spill] sm:$0xff] %v5996_v23  ;;  %v6014_v23 = vld [vmem:[#allocation9 + $0x160] sm:$0xff]  ;;  %903 = vmatpush.msra.mxu1 %v6016_v37 }
  0xf9   :  { %882 = vmatpush.msrb.mxu0 %v6000_v60  ;;  %942 = vmatpush.msrb.mxu3 %v6010_v2  ;;  %9904 = vst [vmem:[#allocation147_spill] sm:$0xff] %v6014_v23  ;;  %v6030_v2 = vld [vmem:[#allocation9 + $0x148] sm:$0xff] }
  0xfa   :  { %4237 = vpow2.f32 %v4153_v6  ;;  %v6006_v63 = vpop.f32.mrf.mxu2  ;;  %9905 = vst [vmem:[#allocation148_spill] sm:$0xff] %v6016_v37  ;;  %v6022_v6 = vld [vmem:[#allocation9 + $0x178] sm:$0xff]  ;;  %904 = vmatpush.msra.mxu1 %v6030_v2 }
  0xfb   :  { %9902 = vst [vmem:[#allocation145_spill] sm:$0xff] %v6006_v63  ;;  %883 = vmatpush.msrb.mxu0 %v6014_v23  ;;  %v6024_v60 = vpop.f32.mrf.mxu1  ;;  %943 = vmatpush.msrb.mxu3 %v6022_v6  ;;  %v6039_v37 = vld [vmem:[#allocation9 + $0x158] sm:$0xff]  ;;  %v6047_v23 = vld [vmem:[#allocation9 + $0x130] sm:$0xff]  ;;  %v347_v63 = vadd.f32 %v5895_v62, %v6035_v43 }
  0xfc   :  { %9907 = vst [vmem:[#allocation150_spill] sm:$0xff] %v6022_v6  ;;  %v6043_v6 = vld [vmem:[#allocation9 + $0x120] sm:$0xff]  ;;  %905 = vmatpush.msra.mxu1 %v6045_v9  ;;  %925 = vmatpush.msrb.mxu2 %v6047_v23  ;;  %v6080_v62 = vld [vmem:[#allocation9 + $0xf0] sm:$0xff] }
  0xfd   :  { %9908 = vst [vmem:[#allocation151_spill] sm:$0xff] %v6024_v60  ;;  %884 = vmatpush.msrb.mxu0 %v6028_v11  ;;  %944 = vmatpush.msrb.mxu3 %v6039_v37 }
  0xfe   :  { %9909 = vst [vmem:[#allocation152_spill] sm:$0xff] %v6028_v11  ;;  %v6062_v11 = vld [vmem:[#allocation9 + $0x110] sm:$0xff] }
  0xff   :  { %9910 = vst [vmem:[#allocation153_spill] sm:$0xff] %v6030_v2  ;;  %885 = vmatpush.msrb.mxu0 %v6043_v6  ;;  %v6054_v2 = vld [vmem:[#allocation9 + $0x138] sm:$0xff]  ;;  %926 = vmatpush.msrb.mxu2 %v6062_v11 }
 0x100   :  { %9911 = vst [vmem:[#allocation154_spill] sm:$0xff] %v6032_v10  ;;  %v4238_v49 = vpop.eup %4237  ;;  %945 = vmatpush.msrb.mxu3 %v6054_v2  ;;  %v6060_v10 = vld [vmem:[#allocation9 + $0x108] sm:$0xff] }
 0x101   :  { %9912 = vst [vmem:[#allocation155_spill] sm:$0xff] %v6035_v43  ;;  %v6066_v60 = vadd.f32 1.0, %v4238_v49  ;;  %906 = vmatpush.msra.mxu1 %v6060_v10  ;;  %v306_v49 = vadd.f32 %v5899_v50, %v6050_v17  ;;  %927 = vmatpush.msrb.mxu2 %v6080_v62  ;;  %v6103_v17 = vld [vmem:[#allocation9 + $0xa0] sm:$0xff] }
 0x102   :  { %9913 = vst [vmem:[#allocation156_spill] sm:$0xff] %v6039_v37  ;;  %v6058_v37 = vld [vmem:[#allocation9 + $0x100] sm:$0xff] }
 0x103   :  { %9914 = vst [vmem:[#allocation157_spill] sm:$0xff] %v6043_v6  ;;  %886 = vmatpush.msrb.mxu0 %v6058_v37  ;;  %v6076_v6 = vld [vmem:[#allocation9 + $0xe0] sm:$0xff]  ;;  %907 = vmatpush.msra.mxu1 %v6078_v56  ;;  %4239 = vrcp.f32 %v6066_v60  ;;  %vm833_vm3 = vweird.f32 %v6066_v60 }
 0x104   :  { %9915 = vst [vmem:[#allocation158_spill] sm:$0xff] %v6045_v9  ;;  %v6070_v9 = vld [vmem:[#allocation9 + $0x118] sm:$0xff] }
 0x105   :  { %9916 = vst [vmem:[#allocation159_spill] sm:$0xff] %v6047_v23  ;;  %v6072_v23 = vpop.f32.mrf.mxu3  ;;  %946 = vmatpush.msrb.mxu3 %v6070_v9  ;;  %887 = vmatpush.msrb.mxu0 %v6076_v6 }
 0x106   :  { %9918 = vst [vmem:[#allocation161_spill] sm:$0xff] %v6054_v2  ;;  %v789_v2 = vpop.f32.mrf.mxu2 }
 0x107   :  { %9919 = vst [vmem:[#allocation162_spill] sm:$0xff] %v6058_v37  ;;  %v814_v43 = vadd.f32 %v789_v2, %v347_v63  ;;  %v6094_v37 = vld [vmem:[#allocation9 + $0xd0] sm:$0xff]  ;;  %v6099_v63 = vld [vmem:[#allocation9 + $0xd8] sm:$0xff] }
 0x108   :  { %9920 = vst [vmem:[#allocation163_spill] sm:$0xff] %v6060_v10  ;;  %v769_v10 = vpop.f32.mrf.mxu1  ;;  %928 = vmatpush.msrb.mxu2 %v6094_v37 }
 0x109   :  { %9921 = vst [vmem:[#allocation164_spill] sm:$0xff] %v6062_v11  ;;  %v6092_v11 = vld [vmem:[#allocation9 + $0xc8] sm:$0xff]  ;;  %v4155_v2 = vmul.f32 -1.442695, %v814_v43  ;;  %v813_v50 = vadd.f32 %v769_v10, %v306_v49  ;;  %v6111_v43 = vld [vmem:[#allocation9 + $0xb8] sm:$0xff]  ;;  %v6115_v10 = vld [vmem:[#allocation9 + $0x80] sm:$0xff] }
 0x10a   :  { %9922 = vst [vmem:[#allocation165_spill] sm:$0xff] %v6070_v9  ;;  %v6090_v9 = vld [vmem:[#allocation9 + $0xc0] sm:$0xff]  ;;  %908 = vmatpush.msra.mxu1 %v6092_v11  ;;  %v6117_v49 = vld [vmem:[#allocation9 + $0x88] sm:$0xff] }
 0x10b   :  { %9923 = vst [vmem:[#allocation166_spill] sm:$0xff] %v6072_v23  ;;  %v6086_v23 = vld [vmem:[#allocation9 + $0xf8] sm:$0xff]  ;;  %888 = vmatpush.msrb.mxu0 %v6090_v9  ;;  %4241 = vpow2.f32 %v4155_v2  ;;  %v4154_v56 = vmul.f32 -1.442695, %v813_v50  ;;  %v6127_v50 = vld [vmem:[#allocation9 + $0x60] sm:$0xff] }
 0x10c   :  { %9924 = vst [vmem:[#allocation167_spill] sm:$0xff] %v6076_v6  ;;  %947 = vmatpush.msrb.mxu3 %v6086_v23  ;;  %v6123_v2 = vld [vmem:[#allocation9 + $0x98] sm:$0xff] }
 0x10d   :  { %9926 = vst [vmem:[#allocation169_spill] sm:$0xff] %v6080_v62  ;;  %v6107_v62 = vld [vmem:[#allocation9 + $0xb0] sm:$0xff]  ;;  %889 = vmatpush.msrb.mxu0 %v6103_v17  ;;  %4243 = vpow2.f32 %v4154_v56 }
 0x10e   :  { %9927 = vst [vmem:[#allocation170_spill] sm:$0xff] %v6086_v23  ;;  %948 = vmatpush.msrb.mxu3 %v6099_v63  ;;  %v6105_v23 = vld [vmem:[#allocation9 + $0xa8] sm:$0xff]  ;;  %929 = vmatpush.msrb.mxu2 %v6107_v62  ;;  %v6135_v56 = vld [vmem:[#allocation9 + $0x70] sm:$0xff] }
 0x10f   :  { %9928 = vst [vmem:[#allocation171_spill] sm:$0xff] %v6090_v9  ;;  %909 = vmatpush.msra.mxu1 %v6105_v23  ;;  %890 = vmatpush.msrb.mxu0 %v6115_v10  ;;  %v6169_v9 = vld [vmem:[#allocation9] sm:$0xff] }
 0x110   :  { %9929 = vst [vmem:[#allocation172_spill] sm:$0xff] %v6092_v11  ;;  %949 = vmatpush.msrb.mxu3 %v6111_v43  ;;  %v6163_v11 = vld [vmem:[#allocation9 + $0x30] sm:$0xff] }
 0x111   :  { %9930 = vst [vmem:[#allocation173_spill] sm:$0xff] %v6094_v37  ;;  %910 = vmatpush.msra.mxu1 %v6117_v49  ;;  %891 = vmatpush.msrb.mxu0 %v6127_v50 }
 0x112   :  { %9931 = vst [vmem:[#allocation174_spill] sm:$0xff] %v6099_v63  ;;  %v6119_v63 = vld [vmem:[#allocation9 + $0x90] sm:$0xff]  ;;  %950 = vmatpush.msrb.mxu3 %v6123_v2 }
 0x113   :  { %9932 = vst [vmem:[#allocation175_spill] sm:$0xff] %v6103_v17  ;;  %930 = vmatpush.msrb.mxu2 %v6119_v63 }
 0x114   :  { %9933 = vst [vmem:[#allocation176_spill] sm:$0xff] %v6105_v23  ;;  %v6147_v23 = vld [vmem:[#allocation9 + $0x50] sm:$0xff] }
 0x115   :  { %9934 = vst [vmem:[#allocation177_spill] sm:$0xff] %v6107_v62  ;;  %v6131_v62 = vpop.eup %4239  ;;  %931 = vmatpush.msrb.mxu2 %v6135_v56 }
 0x116   :  { %9935 = vst [vmem:[#allocation178_spill] sm:$0xff] %v6111_v43  ;;  %v6129_v43 = vld [vmem:[#allocation9 + $0x68] sm:$0xff]  ;;  %v4242_v17 = vpop.eup %4241  ;;  %vm834_vm2 = vweird.f32 %v6131_v62 }
 0x117   :  { %9936 = vst [vmem:[#allocation179_spill] sm:$0xff] %v6115_v10  ;;  %911 = vmatpush.msra.mxu1 %v6129_v43  ;;  %v6137_v10 = vld [vmem:[#allocation9 + $0x78] sm:$0xff]  ;;  %v6155_v37 = vadd.f32 1.0, %v4242_v17  ;;  %932 = vmatpush.msrb.mxu2 %v6147_v23  ;;  %v6171_v17 = vld [vmem:[#allocation9 + $0x8] sm:$0xff]  ;;  %vm6223_vm4 = vmor %vm833_vm3, %vm834_vm2 }
 0x118   :  { %9937 = vst [vmem:[#allocation180_spill] sm:$0xff] %v6117_v49  ;;  %v6139_v49 = vpop.f32.mrf.mxu3  ;;  %951 = vmatpush.msrb.mxu3 %v6137_v10 }
 0x119   :  { %9938 = vst [vmem:[#allocation181_spill] sm:$0xff] %v6119_v63  ;;  %v6145_v63 = vld [vmem:[#allocation9 + $0x48] sm:$0xff]  ;;  %933 = vmatpush.msrb.mxu2 %v6163_v11  ;;  %4245 = vrcp.f32 %v6155_v37  ;;  %vm863_vm11 = vweird.f32 %v6155_v37 }
 0x11a   :  { %9939 = vst [vmem:[#allocation182_spill] sm:$0xff] %v6123_v2  ;;  %v6143_v2 = vld [vmem:[#allocation9 + $0x40] sm:$0xff]  ;;  %912 = vmatpush.msra.mxu1 %v6145_v63 }
 0x11b   :  { %9940 = vst [vmem:[#allocation183_spill] sm:$0xff] %v6127_v50  ;;  %892 = vmatpush.msrb.mxu0 %v6143_v2  ;;  %v829_v50 = vmul.f32 %v6131_v62, %v6066_v60 }
 0x11c   :  { %9941 = vst [vmem:[#allocation184_spill] sm:$0xff] %v6129_v43  ;;  %v6151_v43 = vld [vmem:[#allocation9 + $0x58] sm:$0xff] }
 0x11d   :  { %9942 = vst [vmem:[#allocation185_spill] sm:$0xff] %v6135_v56  ;;  %952 = vmatpush.msrb.mxu3 %v6151_v43  ;;  %v6161_v56 = vld [vmem:[#allocation9 + $0x28] sm:$0xff] }
 0x11e   :  { %9943 = vst [vmem:[#allocation186_spill] sm:$0xff] %v6137_v10  ;;  %v6159_v10 = vld [vmem:[#allocation9 + $0x20] sm:$0xff]  ;;  %913 = vmatpush.msra.mxu1 %v6161_v56 }
 0x11f   :  { %9944 = vst [vmem:[#allocation187_spill] sm:$0xff] %v6143_v2  ;;  %v4244_v2 = vpop.eup %4243  ;;  %893 = vmatpush.msrb.mxu0 %v6159_v10 }
 0x120   :  { %9945 = vst [vmem:[#allocation188_spill] sm:$0xff] %v6145_v63  ;;  %v6167_v63 = vld [vmem:[#allocation9 + $0x38] sm:$0xff]  ;;  %v6179_v6 = vadd.f32 1.0, %v4244_v2  ;;  %914 = vmatpush.msra.mxu1 %v6171_v17  ;;  %v809_v2 = vpop.f32.mrf.mxu3 }
 0x121   :  { %9946 = vst [vmem:[#allocation189_spill] sm:$0xff] %v6147_v23  ;;  %953 = vmatpush.msrb.mxu3 %v6167_v63  ;;  %v6177_v23 = vld [vmem:[#allocation9 + $0x18] sm:$0xff]  ;;  %894 = vmatpush.msrb.mxu0 %v6169_v9 }
 0x122   :  { %9947 = vst [vmem:[#allocation190_spill] sm:$0xff] %v6151_v43  ;;  %v6175_v43 = vld [vmem:[#allocation9 + $0x10] sm:$0xff]  ;;  %4247 = vrcp.f32 %v6179_v6  ;;  %1047 = vmatpush.msrb.mxu1 %v5480_v20  ;;  %vm848_vm7 = vweird.f32 %v6179_v6 }
 0x123   :  { %9948 = vst [vmem:[#allocation191_spill] sm:$0xff] %v6161_v56  ;;  %v830_v56 = vsub.f32 1.0, %v829_v50  ;;  %934 = vmatpush.msrb.mxu2 %v6175_v43  ;;  %954 = vmatpush.msrb.mxu3 %v6177_v23 }
 0x124   :  { %9949 = vst [vmem:[#allocation192_spill] sm:$0xff] %v6163_v11  ;;  %v6187_v11 = vperm.slane %v5950_v8, 3  ;;  %1027 = vmatpush.msra.mxu0 %v5461_v12  ;;  %1048 = vmatpush.msrb.mxu1 %v5497_v25  ;;  %v9979_v25 = vld [vmem:[#allocation50_spill] sm:$0xff] }
 0x125   :  { %1067 = vmatpush.msra.mxu2 %v5466_v14  ;;  %1087 = vmatpush.msra.mxu3 %v5472_v16  ;;  %v831_v50 = vmul.f32 %v6131_v62, %v830_v56  ;;  %v6203_v14 = vpop.eup %4245  ;;  %v9966_v56 = vld [vmem:[#allocation54_spill] sm:$0xff] }
 0x126   :  { %9950 = vst [vmem:[#allocation193_spill] sm:$0xff] %v6187_v11  ;;  %1028 = vmatpush.msra.mxu0 %v5470_v15  ;;  %v388_v12 = vadd.f32 %v5907_v47, %v6187_v11  ;;  %1049 = vmatpush.msrb.mxu1 %v5509_v28  ;;  %v859_v20 = vmul.f32 %v6203_v14, %v6155_v37  ;;  %vm864_vm10 = vweird.f32 %v6203_v14  ;;  %v9961_v47 = vld [vmem:[#allocation27_spill] sm:$0xff] }
 0x127   :  { %1068 = vmatpush.msra.mxu2 %v5476_v18  ;;  %1088 = vmatpush.msra.mxu3 %v5485_v21  ;;  %v832_v18 = vadd.f32 %v6131_v62, %v831_v50  ;;  %v839_v21 = vand.u32 2147483648, %v6066_v60  ;;  %vm865_vm12 = vmor %vm863_vm11, %vm864_vm10  ;;  %v9968_v50 = vld [vmem:[#allocation40_spill] sm:$0xff] }
 0x128   :  { %1029 = vmatpush.msra.mxu0 %v5478_v19  ;;  %v4248_v15 = vpop.eup %4247  ;;  %v815_v16 = vadd.f32 %v809_v2, %v388_v12  ;;  %1050 = vmatpush.msrb.mxu1 %v5523_v33  ;;  %v9967_v2 = vld [vmem:[#allocation39_spill] sm:$0xff]  ;;  %v9969_v12 = vld [vmem:[#allocation29_spill] sm:$0xff] }
 0x129   :  { %1069 = vmatpush.msra.mxu2 %v5487_v22  ;;  %1089 = vmatpush.msra.mxu3 %v5505_v27  ;;  %v844_v19 = vmul.f32 %v4248_v15, %v6179_v6  ;;  %v837_v22 = vand.u32 2147483647, %v6066_v60  ;;  %v854_v27 = vand.u32 2147483648, %v6179_v6  ;;  %vm849_vm5 = vweird.f32 %v4248_v15  ;;  %v9962_v60 = vld [vmem:[#allocation52_spill] sm:$0xff] }
 0x12a   :  { %1030 = vmatpush.msra.mxu0 %v5494_v24  ;;  %1051 = vmatpush.msrb.mxu1 %v5549_v42  ;;  %4249 = vtanh.f32 %v815_v16  ;;  %vm850_vm8 = vmor %vm848_vm7, %vm849_vm5  ;;  %v9972_v16 = vld [vmem:[#allocation43_spill] sm:$0xff] }
 0x12b   :  { %1070 = vmatpush.msra.mxu2 %v5511_v29  ;;  %1090 = vmatpush.msra.mxu3 %v5517_v31  ;;  %v845_v24 = vsub.f32 1.0, %v844_v19  ;;  %v852_v29 = vand.u32 2147483647, %v6179_v6  ;;  %v860_v31 = vsub.f32 1.0, %v859_v20  ;;  %vm838_vm6 = vcmp.eq.f32.partialorder %v837_v22, 8.507059e+37  ;;  %v9964_v6 = vld [vmem:[#allocation37_spill] sm:$0xff] }
 0x12c   :  { %1031 = vmatpush.msra.mxu0 %v5503_v26  ;;  %1052 = vmatpush.msrb.mxu1 %v5558_v46  ;;  %v836_v26 = vsel %vm6223_vm4, %v6131_v62, %v832_v18  ;;  %v9965_v62 = vld [vmem:[#allocation28_spill] sm:$0xff]  ;;  %v9974_v19 = vld [vmem:[#allocation62_spill] sm:$0xff]  ;;  %v9977_v22 = vld [vmem:[#allocation35_spill] sm:$0xff] }
 0x12d   :  { %1071 = vmatpush.msra.mxu2 %v5521_v32  ;;  %1091 = vmatpush.msra.mxu3 %v5529_v35  ;;  %v846_v28 = vmul.f32 %v4248_v15, %v845_v24  ;;  %v840_v32 = vor.u32 1.1754944e-38, %v839_v21  ;;  %v855_v35 = vor.u32 1.1754944e-38, %v854_v27  ;;  %vm853_vm9 = vcmp.eq.f32.partialorder %v852_v29, 8.507059e+37  ;;  %v9973_v18 = vld [vmem:[#allocation32_spill] sm:$0xff]  ;;  %v9975_v20 = vld [vmem:[#allocation46_spill] sm:$0xff]  ;;  %v9976_v21 = vld [vmem:[#allocation47_spill] sm:$0xff] }
 0x12e   :  { %1032 = vmatpush.msra.mxu0 %v5514_v30  ;;  %1053 = vmatpush.msrb.mxu1 %v5582_v55  ;;  %v9978_v24 = vld [vmem:[#allocation66_spill] sm:$0xff]  ;;  %v9980_v27 = vld [vmem:[#allocation51_spill] sm:$0xff] }
 0x12f   :  { %1072 = vmatpush.msra.mxu2 %v5540_v38  ;;  %1092 = vmatpush.msra.mxu3 %v5544_v40  ;;  %v847_v30 = vadd.f32 %v4248_v15, %v846_v28  ;;  %v841_v33 = vsel %vm838_vm6, %v840_v32, %v836_v26  ;;  %v6241_v38 = vld [vmem:[#allocation10 + $0x100] sm:$0xff]  ;;  %v9981_v26 = vld [vmem:[#allocation38_spill] sm:$0xff]  ;;  %v9983_v29 = vld [vmem:[#allocation55_spill] sm:$0xff] }
 0x130   :  { %1033 = vmatpush.msra.mxu0 %v5525_v34  ;;  %1054 = vmatpush.msrb.mxu1 %v5594_v59  ;;  %v4250_v40 = vpop.eup %4249  ;;  %v6254_v59 = vld [vmem:[#allocation10 + $0xc0] sm:$0xff] }
 0x131   :  { %1073 = vmatpush.msra.mxu2 %v5547_v41  ;;  %1093 = vmatpush.msra.mxu3 %v5553_v44  ;;  %v851_v34 = vsel %vm850_vm8, %v4248_v15, %v847_v30  ;;  %v861_v41 = vmul.f32 %v6203_v14, %v860_v31  ;;  %v6248_v44 = vld [vmem:[#allocation10 + $0xe0] sm:$0xff]  ;;  %v875_v46 = vmul.f32 %v4250_v40, %v841_v33  ;;  %v9971_v15 = vld [vmem:[#allocation42_spill] sm:$0xff]  ;;  %v9984_v31 = vld [vmem:[#allocation56_spill] sm:$0xff] }
 0x132   :  { %1034 = vmatpush.msra.mxu0 %v6241_v38  ;;  %v856_v42 = vsel %vm853_vm9, %v855_v35, %v851_v34  ;;  %1055 = vmatpush.msrb.mxu1 %v5623_v3  ;;  %v6264_v3 = vld [vmem:[#allocation10 + $0xa0] sm:$0xff]  ;;  %v9987_v33 = vld [vmem:[#allocation59_spill] sm:$0xff]  ;;  %v9988_v35 = vld [vmem:[#allocation60_spill] sm:$0xff] }
 0x133   :  { %1074 = vmatpush.msra.mxu2 %v5556_v45  ;;  %1094 = vmatpush.msra.mxu3 %v5562_v48  ;;  %v874_v55 = vmul.f32 0.0, %v856_v42  ;;  %v862_v48 = vadd.f32 %v6203_v14, %v861_v41  ;;  %v9982_v28 = vld [vmem:[#allocation69_spill] sm:$0xff]  ;;  %v9991_v41 = vld [vmem:[#allocation63_spill] sm:$0xff]  ;;  %v9992_v42 = vld [vmem:[#allocation64_spill] sm:$0xff] }
 0x134   :  { %1035 = vmatpush.msra.mxu0 %v6248_v44  ;;  %1056 = vmatpush.msrb.mxu1 %v5635_v7  ;;  %v9954_v7 = vld [vmem:[#allocation44_spill] sm:$0xff]  ;;  %v9985_v32 = vld [vmem:[#allocation41_spill] sm:$0xff] }
 0x135   :  { %1075 = vmatpush.msra.mxu2 %v5571_v51  ;;  %1095 = vmatpush.msra.mxu3 %v5577_v53  ;;  %v6258_v45 = vadd.f32 %v875_v46, %v874_v55  ;;  %v869_v51 = vand.u32 2147483648, %v6155_v37  ;;  %v867_v53 = vand.u32 2147483647, %v6155_v37  ;;  %v9963_v37 = vld [vmem:[#allocation36_spill] sm:$0xff]  ;;  %v9986_v30 = vld [vmem:[#allocation73_spill] sm:$0xff] }
 0x136   :  { %1036 = vmatpush.msra.mxu0 %v6254_v59  ;;  %1057 = vmatpush.msrb.mxu1 %v5647_v13  ;;  %v9955_v13 = vld [vmem:[#allocation30_spill] sm:$0xff]  ;;  %v9989_v34 = vld [vmem:[#allocation45_spill] sm:$0xff] }
 0x137   :  { %1076 = vmatpush.msra.mxu2 %v5580_v54  ;;  %1096 = vmatpush.msra.mxu3 %v5588_v57  ;;  %4251 = vtanh.f32 %v6258_v45  ;;  %v6274_v54 = vld [vmem:[#allocation10 + $0x80] sm:$0xff]  ;;  %v866_v57 = vsel %vm865_vm12, %v6203_v14, %v862_v48  ;;  %vm868_vm13 = vcmp.eq.f32.partialorder %v867_v53, 8.507059e+37  ;;  %v9970_v14 = vld [vmem:[#allocation58_spill] sm:$0xff]  ;;  %v9995_v48 = vld [vmem:[#allocation67_spill] sm:$0xff] }
 0x138   :  { %1037 = vmatpush.msra.mxu0 %v6264_v3  ;;  %1058 = vmatpush.msrb.mxu1 %v5666_v39  ;;  %v9990_v40 = vld [vmem:[#allocation77_spill] sm:$0xff] }
 0x139   :  { %1077 = vmatpush.msra.mxu2 %v5592_v58  ;;  %1097 = vmatpush.msra.mxu3 %v5600_v61  ;;  %v870_v58 = vor.u32 1.1754944e-38, %v869_v51  ;;  %v9953_v61 = vld [vmem:[#allocation25_spill] sm:$0xff]  ;;  %v9996_v51 = vld [vmem:[#allocation68_spill] sm:$0xff] }
 0x13a   :  { %1038 = vmatpush.msra.mxu0 %v6274_v54  ;;  %1059 = vmatpush.msrb.mxu1 %v5684_v36  ;;  %v9958_v36 = vld [vmem:[#allocation48_spill] sm:$0xff]  ;;  %v9993_v46 = vld [vmem:[#allocation49_spill] sm:$0xff] }
 0x13b   :  { %1078 = vmatpush.msra.mxu2 %v5611_v0  ;;  %1098 = vmatpush.msra.mxu3 %v5615_v1  ;;  %v871_v0 = vsel %vm868_vm13, %v870_v58, %v866_v57  ;;  %v9956_v1 = vld [vmem:[#allocation31_spill] sm:$0xff]  ;;  %v9994_v55 = vld [vmem:[#allocation81_spill] sm:$0xff] }
 0x13c   :  { %1039 = vmatpush.msra.mxu0 %v5575_v52  ;;  %1060 = vmatpush.msrb.mxu1 %v9954_v7  ;;  %v9957_v52 = vld [vmem:[#allocation26_spill] sm:$0xff]  ;;  %v9997_v53 = vld [vmem:[#allocation53_spill] sm:$0xff]  ;;  %v9999_v58 = vld [vmem:[#allocation71_spill] sm:$0xff] }
 0x13d   :  { %1079 = vmatpush.msra.mxu2 %v5625_v4  ;;  %1099 = vmatpush.msra.mxu3 %v5629_v5  ;;  %v4252_v8 = vpop.eup %4251  ;;  %v9959_v4 = vld [vmem:[#allocation33_spill] sm:$0xff]  ;;  %v9960_v5 = vld [vmem:[#allocation34_spill] sm:$0xff] }
 0x13e   :  { %1040 = vmatpush.msra.mxu0 %v9953_v61  ;;  %v6289_v39 = vmul.f32 %v4252_v8, %v871_v0  ;;  %1061 = vmatpush.msrb.mxu1 %v9958_v36  ;;  %v9998_v57 = vld [vmem:[#allocation85_spill] sm:$0xff]  ;;  %v10000_v61 = vld [vmem:[#allocation72_spill] sm:$0xff]  ;;  %v10003_v0 = vld [vmem:[#allocation75_spill] sm:$0xff] }
 0x13f   :  { %1080 = vmatpush.msra.mxu2 %v9955_v13  ;;  %1100 = vmatpush.msra.mxu3 %v9956_v1  ;;  %v10001_v7 = vld [vmem:[#allocation57_spill] sm:$0xff]  ;;  %v10002_v8 = vld [vmem:[#allocation88_spill] sm:$0xff]  ;;  %v10007_v36 = vld [vmem:[#allocation79_spill] sm:$0xff] }
 0x140   :  { %1041 = vmatpush.msra.mxu0 %v9957_v52  ;;  %915 = vmatmul.f32.vlgmr.msra.gmra.mxu1 %v6289_v39  ;;  %v10004_v13 = vld [vmem:[#allocation76_spill] sm:$0xff]  ;;  %v10005_v1 = vld [vmem:[#allocation61_spill] sm:$0xff]  ;;  %v10006_v52 = vld [vmem:[#allocation91_spill] sm:$0xff] }
 0x141   :  { %1081 = vmatpush.msra.mxu2 %v9959_v4  ;;  %1101 = vmatpush.msra.mxu3 %v9960_v5  ;;  %v10008_v4 = vld [vmem:[#allocation80_spill] sm:$0xff]  ;;  %v10009_v5 = vld [vmem:[#allocation65_spill] sm:$0xff] }
 0x142   :  { %895 = vmatmul.f32.vlgmr.msrb.gmra.mxu0 %v6289_v39  ;;  %935 = vmatmul.f32.vlgmr.msrb.gmra.mxu2 %v6289_v39 }
 0x143   :  { %955 = vmatmul.f32.vlgmr.msrb.gmra.mxu3 %v6289_v39  ;;  %1042 = vmatpush.msra.mxu0 %v9961_v47  ;;  %v10010_v47 = vld [vmem:[#allocation94_spill] sm:$0xff] }
 0x144   :  { %1062 = vmatpush.msrb.mxu1 %v9962_v60  ;;  %1082 = vmatpush.msra.mxu2 %v9963_v37  ;;  %v10011_v60 = vld [vmem:[#allocation83_spill] sm:$0xff]  ;;  %v10012_v37 = vld [vmem:[#allocation84_spill] sm:$0xff] }
 0x145   :  { %1102 = vmatpush.msra.mxu3 %v9964_v6  ;;  %1114 = vmatpush.msrb.mxu0 %v9965_v62  ;;  %v10013_v6 = vld [vmem:[#allocation70_spill] sm:$0xff]  ;;  %v10014_v62 = vld [vmem:[#allocation97_spill] sm:$0xff] }
 0x146   :  { %1134 = vmatpush.msra.mxu1 %v9966_v56  ;;  %1154 = vmatpush.msrb.mxu2 %v9967_v2  ;;  %v10015_v56 = vld [vmem:[#allocation86_spill] sm:$0xff]  ;;  %v10016_v2 = vld [vmem:[#allocation87_spill] sm:$0xff] }
 0x147   :  { %1174 = vmatpush.msrb.mxu3 %v9968_v50  ;;  %1115 = vmatpush.msrb.mxu0 %v9969_v12  ;;  %v10017_v50 = vld [vmem:[#allocation74_spill] sm:$0xff] }
 0x148   :  { %1135 = vmatpush.msra.mxu1 %v9970_v14  ;;  %1155 = vmatpush.msrb.mxu2 %v9971_v15  ;;  %v10018_v12 = vld [vmem:[#allocation98_spill] sm:$0xff]  ;;  %v10019_v14 = vld [vmem:[#allocation89_spill] sm:$0xff] }
 0x149   :  { %1175 = vmatpush.msrb.mxu3 %v9972_v16  ;;  %1116 = vmatpush.msrb.mxu0 %v9973_v18  ;;  %v10020_v15 = vld [vmem:[#allocation90_spill] sm:$0xff]  ;;  %v10022_v18 = vld [vmem:[#allocation99_spill] sm:$0xff] }
 0x14a   :  { %1136 = vmatpush.msra.mxu1 %v9974_v19  ;;  %1156 = vmatpush.msrb.mxu2 %v9975_v20  ;;  %v10021_v16 = vld [vmem:[#allocation78_spill] sm:$0xff]  ;;  %v10023_v19 = vld [vmem:[#allocation92_spill] sm:$0xff]  ;;  %v10024_v20 = vld [vmem:[#allocation93_spill] sm:$0xff] }
 0x14b   :  { %1176 = vmatpush.msrb.mxu3 %v9976_v21  ;;  %1117 = vmatpush.msrb.mxu0 %v9977_v22  ;;  %v10025_v21 = vld [vmem:[#allocation82_spill] sm:$0xff]  ;;  %v10026_v22 = vld [vmem:[#allocation100_spill] sm:$0xff] }
 0x14c   :  { %1137 = vmatpush.msra.mxu1 %v9978_v24  ;;  %1157 = vmatpush.msrb.mxu2 %v9979_v25  ;;  %v10027_v24 = vld [vmem:[#allocation95_spill] sm:$0xff]  ;;  %v10028_v25 = vld [vmem:[#allocation96_spill] sm:$0xff] }
 0x14d   :  { %1177 = vmatpush.msrb.mxu3 %v9980_v27  ;;  %1118 = vmatpush.msrb.mxu0 %v9981_v26  ;;  %v635_v27 = vld [vmem:[%s9216_s6] sm:$0xf] }
 0x14e   :  { %1138 = vmatpush.msra.mxu1 %v9982_v28  ;;  %1158 = vmatpush.msrb.mxu2 %v9983_v29  ;;  %v6370_v26 = vperm.slane %v635_v27, 0  ;;  %v6372_v28 = vperm.slane %v635_v27, 1  ;;  %v10031_v29 = vld [vmem:[#allocation124_spill] sm:$0xff] }
 0x14f   :  { %1178 = vmatpush.msrb.mxu3 %v9984_v31  ;;  %1119 = vmatpush.msrb.mxu0 %v9985_v32  ;;  %v10032_v32 = vld [vmem:[#allocation151_spill] sm:$0xff] }
 0x150   :  { %1139 = vmatpush.msra.mxu1 %v9986_v30  ;;  %1159 = vmatpush.msrb.mxu2 %v9987_v33  ;;  %10029 = vst [vmem:[#allocation25_spill] sm:$0xff] %v6370_v26  ;;  %v663_v31 = vadd.f32 %v10031_v29, %v6370_v26  ;;  %v683_v30 = vadd.f32 %v10032_v32, %v6372_v28 }
 0x151   :  { %1179 = vmatpush.msrb.mxu3 %v9988_v35  ;;  %1120 = vmatpush.msrb.mxu0 %v9989_v34  ;;  %10030 = vst [vmem:[#allocation44_spill] sm:$0xff] %v6372_v28 }
 0x152   :  { %1140 = vmatpush.msra.mxu1 %v9990_v40  ;;  %1160 = vmatpush.msrb.mxu2 %v9991_v41  ;;  %v6378_v41 = vperm.slane %v635_v27, 2 }
 0x153   :  { %1180 = vmatpush.msrb.mxu3 %v9992_v42  ;;  %1121 = vmatpush.msrb.mxu0 %v9993_v46 }
 0x154   :  { %1141 = vmatpush.msra.mxu1 %v9994_v55  ;;  %1161 = vmatpush.msrb.mxu2 %v9995_v48  ;;  %10033 = vst [vmem:[#allocation30_spill] sm:$0xff] %v6378_v41  ;;  %v10034_v55 = vld [vmem:[#allocation145_spill] sm:$0xff] }
 0x155   :  { %1181 = vmatpush.msrb.mxu3 %v9996_v51  ;;  %1122 = vmatpush.msrb.mxu0 %v9997_v53  ;;  %v703_v48 = vadd.f32 %v10034_v55, %v6378_v41 }
 0x156   :  { %1142 = vmatpush.msra.mxu1 %v9998_v57  ;;  %1162 = vmatpush.msrb.mxu2 %v9999_v58 }
 0x157   :  { %1182 = vmatpush.msrb.mxu3 %v10000_v61  ;;  %1123 = vmatpush.msrb.mxu0 %v10001_v7 }
 0x158   :  { %1143 = vmatpush.msra.mxu1 %v10002_v8  ;;  %1163 = vmatpush.msrb.mxu2 %v10003_v0  ;;  %v6382_v0 = vperm.slane %v635_v27, 3 }
 0x159   :  { %1183 = vmatpush.msrb.mxu3 %v10004_v13  ;;  %1124 = vmatpush.msrb.mxu0 %v10005_v1 }
 0x15a   :  { %1144 = vmatpush.msra.mxu1 %v10006_v52  ;;  %1164 = vmatpush.msrb.mxu2 %v10007_v36  ;;  %10035 = vst [vmem:[#allocation31_spill] sm:$0xff] %v6382_v0  ;;  %v723_v52 = vadd.f32 %v6139_v49, %v6382_v0 }
 0x15b   :  { %1184 = vmatpush.msrb.mxu3 %v10008_v4  ;;  %1125 = vmatpush.msrb.mxu0 %v10009_v5 }
 0x15c   :  { %1145 = vmatpush.msra.mxu1 %v10010_v47  ;;  %1165 = vmatpush.msrb.mxu2 %v10011_v60 }
 0x15d   :  { %1185 = vmatpush.msrb.mxu3 %v10012_v37  ;;  %1126 = vmatpush.msrb.mxu0 %v10013_v6 }
 0x15e   :  { %1146 = vmatpush.msra.mxu1 %v10014_v62  ;;  %1166 = vmatpush.msrb.mxu2 %v10015_v56 }
 0x15f   :  { %1186 = vmatpush.msrb.mxu3 %v10016_v2  ;;  %1127 = vmatpush.msrb.mxu0 %v10017_v50 }
 0x160   :  { %1147 = vmatpush.msra.mxu1 %v10018_v12  ;;  %1167 = vmatpush.msrb.mxu2 %v10019_v14 }
 0x161   :  { %1187 = vmatpush.msrb.mxu3 %v10020_v15  ;;  %1128 = vmatpush.msrb.mxu0 %v10021_v16 }
 0x162   :  { %1148 = vmatpush.msra.mxu1 %v10022_v18  ;;  %1168 = vmatpush.msrb.mxu2 %v10023_v19 }
 0x163   :  { %1188 = vmatpush.msrb.mxu3 %v10024_v20  ;;  %1129 = vmatpush.msrb.mxu0 %v10025_v21 }
 0x164   :  { %1149 = vmatpush.msra.mxu1 %v10026_v22  ;;  %1169 = vmatpush.msrb.mxu2 %v10027_v24 }
 0x165   :  { %1189 = vmatpush.msrb.mxu3 %v10028_v25 }
 0x1bd   :  { %v916_v35 = vpop.f32.mrf.mxu1 }
 0x1be   :  { %v960_v40 = vadd.f32 %v916_v35, %v683_v30 }
 0x1bf   :  { %v896_v33 = vpop.f32.mrf.mxu0 }
 0x1c0   :  { %v959_v34 = vadd.f32 %v896_v33, %v663_v31  ;;  %v4157_v46 = vmul.f32 -1.442695, %v960_v40 }
 0x1c2   :  { %v4156_v42 = vmul.f32 -1.442695, %v959_v34 }
 0x1c4   :  { %4253 = vpow2.f32 %v4156_v42 }
 0x1c5   :  { %4255 = vpow2.f32 %v4157_v46  ;;  %v936_v51 = vpop.f32.mrf.mxu2 }
 0x1c6   :  { %v961_v53 = vadd.f32 %v936_v51, %v703_v48  ;;  %v956_v13 = vpop.f32.mrf.mxu3 }
 0x1c7   :  { %v962_v5 = vadd.f32 %v956_v13, %v723_v52  ;;  %v10042_v13 = vld [vmem:[#allocation134_spill] sm:$0xff]  ;;  %v10044_v52 = vld [vmem:[#allocation136_spill] sm:$0xff] }
 0x1c8   :  { %v4158_v57 = vmul.f32 -1.442695, %v961_v53 }
 0x1ca   :  { %v4254_v58 = vpop.eup %4253  ;;  %4257 = vpow2.f32 %v4158_v57  ;;  %v10037_v57 = vld [vmem:[#allocation129_spill] sm:$0xff] }
 0x1cb   :  { %v4256_v61 = vpop.eup %4255  ;;  %v972_v7 = vadd.f32 1.0, %v4254_v58  ;;  %v10038_v58 = vld [vmem:[#allocation130_spill] sm:$0xff] }
 0x1cc   :  { %v973_v8 = vadd.f32 1.0, %v4256_v61  ;;  %v10039_v61 = vld [vmem:[#allocation131_spill] sm:$0xff] }
 0x1cd   :  { %4259 = vrcp.f32 %v972_v7  ;;  %v986_v56 = vand.u32 2147483648, %v972_v7  ;;  %v984_v12 = vand.u32 2147483647, %v972_v7  ;;  %vm980_vm2 = vweird.f32 %v972_v7 }
 0x1ce   :  { %4261 = vrcp.f32 %v973_v8  ;;  %v1001_v2 = vand.u32 2147483648, %v973_v8  ;;  %v999_v15 = vand.u32 2147483647, %v973_v8  ;;  %vm995_vm3 = vweird.f32 %v973_v8 }
 0x1cf   :  { %v987_v19 = vor.u32 1.1754944e-38, %v986_v56  ;;  %vm985_vm5 = vcmp.eq.f32.partialorder %v984_v12, 8.507059e+37  ;;  %v10053_v56 = vld [vmem:[#allocation147_spill] sm:$0xff]  ;;  %v10056_v12 = vld [vmem:[#allocation150_spill] sm:$0xff] }
 0x1d0   :  { %v4258_v1 = vpop.eup %4257  ;;  %v1002_v21 = vor.u32 1.1754944e-38, %v1001_v2  ;;  %vm1000_vm7 = vcmp.eq.f32.partialorder %v999_v15, 8.507059e+37  ;;  %v10054_v2 = vld [vmem:[#allocation148_spill] sm:$0xff]  ;;  %v10058_v15 = vld [vmem:[#allocation153_spill] sm:$0xff] }
 0x1d1   :  { %v974_v36 = vadd.f32 1.0, %v4258_v1  ;;  %v10043_v1 = vld [vmem:[#allocation135_spill] sm:$0xff] }
 0x1d3   :  { %v4260_v4 = vpop.eup %4259  ;;  %4263 = vrcp.f32 %v974_v36  ;;  %v1016_v40 = vand.u32 2147483648, %v974_v36  ;;  %vm1010_vm9 = vweird.f32 %v974_v36  ;;  %v1014_v42 = vand.u32 2147483647, %v974_v36 }
 0x1d4   :  { %v4262_v47 = vpop.eup %4261  ;;  %v976_v60 = vmul.f32 %v4260_v4, %v972_v7  ;;  %4265 = vtanh.f32 %v962_v5  ;;  %vm981_vm14 = vweird.f32 %v4260_v4  ;;  %v10040_v7 = vld [vmem:[#allocation132_spill] sm:$0xff]  ;;  %v10047_v5 = vld [vmem:[#allocation139_spill] sm:$0xff] }
 0x1d5   :  { %v991_v37 = vmul.f32 %v4262_v47, %v973_v8  ;;  %vm996_vm15 = vweird.f32 %v4262_v47  ;;  %vm982_vm4 = vmor %vm980_vm2, %vm981_vm14  ;;  %v1017_v55 = vor.u32 1.1754944e-38, %v1016_v40  ;;  %vm1015_vm11 = vcmp.eq.f32.partialorder %v1014_v42, 8.507059e+37  ;;  %v10041_v8 = vld [vmem:[#allocation133_spill] sm:$0xff]  ;;  %v10076_v40 = vld [vmem:[#allocation174_spill] sm:$0xff] }
 0x1d6   :  { %v977_v6 = vsub.f32 1.0, %v976_v60  ;;  %vm997_vm6 = vmor %vm995_vm3, %vm996_vm15  ;;  %v10049_v60 = vld [vmem:[#allocation142_spill] sm:$0xff]  ;;  %v10077_v42 = vld [vmem:[#allocation175_spill] sm:$0xff] }
 0x1d7   :  { %v992_v62 = vsub.f32 1.0, %v991_v37  ;;  %v10050_v37 = vld [vmem:[#allocation143_spill] sm:$0xff] }
 0x1d8   :  { %v978_v50 = vmul.f32 %v4260_v4, %v977_v6  ;;  %v10051_v6 = vld [vmem:[#allocation144_spill] sm:$0xff] }
 0x1d9   :  { %v993_v14 = vmul.f32 %v4262_v47, %v992_v62  ;;  %v4264_v16 = vpop.eup %4263  ;;  %v10052_v62 = vld [vmem:[#allocation146_spill] sm:$0xff] }
 0x1da   :  { %v979_v49 = vadd.f32 %v4260_v4, %v978_v50  ;;  %v1006_v18 = vmul.f32 %v4264_v16, %v974_v36  ;;  %v4266_v24 = vpop.eup %4265  ;;  %vm1011_vm8 = vweird.f32 %v4264_v16  ;;  %v10045_v36 = vld [vmem:[#allocation137_spill] sm:$0xff] }
 0x1db   :  { %v994_v20 = vadd.f32 %v4262_v47, %v993_v14  ;;  %vm1012_vm10 = vmor %vm1010_vm9, %vm1011_vm8  ;;  %v10055_v50 = vld [vmem:[#allocation149_spill] sm:$0xff]  ;;  %v10057_v14 = vld [vmem:[#allocation152_spill] sm:$0xff] }
 0x1dc   :  { %v983_v22 = vsel %vm982_vm4, %v4260_v4, %v979_v49  ;;  %v1007_v25 = vsub.f32 1.0, %v1006_v18  ;;  %v10046_v4 = vld [vmem:[#allocation138_spill] sm:$0xff]  ;;  %v10061_v49 = vld [vmem:[#allocation157_spill] sm:$0xff] }
 0x1dd   :  { %v988_v27 = vsel %vm985_vm5, %v987_v19, %v983_v22  ;;  %v998_v29 = vsel %vm997_vm6, %v4262_v47, %v994_v20  ;;  %v10048_v47 = vld [vmem:[#allocation140_spill] sm:$0xff]  ;;  %v10062_v18 = vld [vmem:[#allocation158_spill] sm:$0xff]  ;;  %v10063_v19 = vld [vmem:[#allocation159_spill] sm:$0xff] }
 0x1de   :  { %v1003_v31 = vsel %vm1000_vm7, %v1002_v21, %v998_v29  ;;  %v1022_v32 = vmul.f32 %v4266_v24, %v988_v27  ;;  %v1008_v30 = vmul.f32 %v4264_v16, %v1007_v25  ;;  %v10064_v20 = vld [vmem:[#allocation161_spill] sm:$0xff]  ;;  %v10065_v21 = vld [vmem:[#allocation162_spill] sm:$0xff]  ;;  %v10066_v22 = vld [vmem:[#allocation163_spill] sm:$0xff] }
 0x1df   :  { %v1021_v33 = vmul.f32 0.0, %v1003_v31  ;;  %v10067_v24 = vld [vmem:[#allocation164_spill] sm:$0xff]  ;;  %v10068_v25 = vld [vmem:[#allocation165_spill] sm:$0xff]  ;;  %v10069_v27 = vld [vmem:[#allocation167_spill] sm:$0xff] }
 0x1e0   :  { %v1009_v34 = vadd.f32 %v4264_v16, %v1008_v30  ;;  %v10070_v29 = vld [vmem:[#allocation168_spill] sm:$0xff]  ;;  %v10071_v31 = vld [vmem:[#allocation169_spill] sm:$0xff]  ;;  %v10073_v30 = vld [vmem:[#allocation171_spill] sm:$0xff] }
 0x1e1   :  { %v6386_v35 = vadd.f32 %v1022_v32, %v1021_v33  ;;  %v10072_v32 = vld [vmem:[#allocation170_spill] sm:$0xff]  ;;  %v10074_v33 = vld [vmem:[#allocation172_spill] sm:$0xff] }
 0x1e2   :  { %v1013_v46 = vsel %vm1012_vm10, %v4264_v16, %v1009_v34  ;;  %v10060_v16 = vld [vmem:[#allocation156_spill] sm:$0xff]  ;;  %v10075_v34 = vld [vmem:[#allocation173_spill] sm:$0xff] }
 0x1e3   :  { %4267 = vtanh.f32 %v6386_v35  ;;  %v1018_v51 = vsel %vm1015_vm11, %v1017_v55, %v1013_v46  ;;  %v10078_v46 = vld [vmem:[#allocation176_spill] sm:$0xff]  ;;  %v10079_v55 = vld [vmem:[#allocation177_spill] sm:$0xff] }
 0x1e9   :  { %v4268_v48 = vpop.eup %4267 }
 0x1ea   :  { %v6389_v53 = vmul.f32 %v4268_v48, %v1018_v51  ;;  %v10080_v48 = vld [vmem:[#allocation178_spill] sm:$0xff]  ;;  %v10081_v51 = vld [vmem:[#allocation179_spill] sm:$0xff] }
 0x1ec   :  { %10036 = vst [vmem:[#allocation26_spill] sm:$0xff] %v6389_v53  ;;  %1043 = vmatmul.f32.vlgmr.msra.gmra.mxu0 %v6389_v53  ;;  %1063 = vmatmul.f32.vlgmr.msrb.gmra.mxu1 %v6389_v53 }
 0x1ed   :  { %1083 = vmatmul.f32.vlgmr.msra.gmra.mxu2 %v6389_v53  ;;  %1103 = vmatmul.f32.vlgmr.msra.gmra.mxu3 %v6389_v53  ;;  %v6636_v53 = vld [vmem:[#allocation10 + $0x8] sm:$0xff] }
 0x1ee   :  { %1261 = vmatpush.msra.mxu0 %v10037_v57  ;;  %1281 = vmatpush.msrb.mxu1 %v10038_v58  ;;  %v10082_v57 = vld [vmem:[#allocation180_spill] sm:$0xff]  ;;  %v10083_v58 = vld [vmem:[#allocation181_spill] sm:$0xff]  ;;  %10122 = vst [vmem:[#allocation41_spill] sm:$0xff] %v6636_v53 }
 0x1ef   :  { %1301 = vmatpush.msra.mxu2 %v10039_v61  ;;  %1321 = vmatpush.msra.mxu3 %v10040_v7  ;;  %v10084_v61 = vld [vmem:[#allocation182_spill] sm:$0xff]  ;;  %v10085_v7 = vld [vmem:[#allocation183_spill] sm:$0xff] }
 0x1f0   :  { %1262 = vmatpush.msra.mxu0 %v10041_v8  ;;  %1282 = vmatpush.msrb.mxu1 %v10042_v13  ;;  %v10086_v8 = vld [vmem:[#allocation184_spill] sm:$0xff]  ;;  %v10087_v13 = vld [vmem:[#allocation185_spill] sm:$0xff] }
 0x1f1   :  { %1302 = vmatpush.msra.mxu2 %v10043_v1  ;;  %1322 = vmatpush.msra.mxu3 %v10044_v52  ;;  %v10088_v1 = vld [vmem:[#allocation186_spill] sm:$0xff]  ;;  %v10089_v52 = vld [vmem:[#allocation187_spill] sm:$0xff] }
 0x1f2   :  { %1263 = vmatpush.msra.mxu0 %v10045_v36  ;;  %1283 = vmatpush.msrb.mxu1 %v10046_v4  ;;  %v10090_v36 = vld [vmem:[#allocation188_spill] sm:$0xff]  ;;  %v10091_v4 = vld [vmem:[#allocation189_spill] sm:$0xff] }
 0x1f3   :  { %1303 = vmatpush.msra.mxu2 %v10047_v5  ;;  %1323 = vmatpush.msra.mxu3 %v10048_v47  ;;  %v10092_v5 = vld [vmem:[#allocation190_spill] sm:$0xff]  ;;  %v10093_v47 = vld [vmem:[#allocation191_spill] sm:$0xff] }
 0x1f4   :  { %1130 = vmatmul.f32.vlgmr.msrb.gmra.mxu0 %v6289_v39  ;;  %1150 = vmatmul.f32.vlgmr.msra.gmra.mxu1 %v6289_v39 }
 0x1f5   :  { %1170 = vmatmul.f32.vlgmr.msrb.gmra.mxu2 %v6289_v39  ;;  %1190 = vmatmul.f32.vlgmr.msrb.gmra.mxu3 %v6289_v39  ;;  %v10059_v39 = vld [vmem:[#allocation154_spill] sm:$0xff] }
 0x1f6   :  { %1264 = vmatpush.msra.mxu0 %v10049_v60  ;;  %1284 = vmatpush.msrb.mxu1 %v10050_v37  ;;  %v10094_v60 = vld [vmem:[#allocation192_spill] sm:$0xff]  ;;  %v6463_v37 = vld [vmem:[#allocation10 + $0x1e0] sm:$0xff] }
 0x1f7   :  { %1304 = vmatpush.msra.mxu2 %v10051_v6  ;;  %1324 = vmatpush.msra.mxu3 %v10052_v62  ;;  %v6466_v6 = vld [vmem:[#allocation10 + $0x1e8] sm:$0xff]  ;;  %v6487_v62 = vld [vmem:[#allocation10 + $0x1a0] sm:$0xff] }
 0x1f8   :  { %1265 = vmatpush.msra.mxu0 %v10053_v56  ;;  %1285 = vmatpush.msrb.mxu1 %v10054_v2  ;;  %v6490_v56 = vld [vmem:[#allocation10 + $0x1a8] sm:$0xff]  ;;  %v6493_v2 = vld [vmem:[#allocation10 + $0x1b0] sm:$0xff] }
 0x1f9   :  { %1305 = vmatpush.msra.mxu2 %v10055_v50  ;;  %1325 = vmatpush.msra.mxu3 %v10056_v12  ;;  %v6496_v50 = vld [vmem:[#allocation10 + $0x1b8] sm:$0xff]  ;;  %v6499_v12 = vld [vmem:[#allocation10 + $0x180] sm:$0xff] }
 0x1fa   :  { %1266 = vmatpush.msra.mxu0 %v10057_v14  ;;  %1286 = vmatpush.msrb.mxu1 %v10058_v15  ;;  %v6502_v14 = vld [vmem:[#allocation10 + $0x188] sm:$0xff]  ;;  %v6505_v15 = vld [vmem:[#allocation10 + $0x190] sm:$0xff] }
 0x1fb   :  { %1306 = vmatpush.msra.mxu2 %v10059_v39  ;;  %1326 = vmatpush.msra.mxu3 %v10060_v16  ;;  %v6508_v39 = vld [vmem:[#allocation10 + $0x198] sm:$0xff]  ;;  %v6511_v16 = vld [vmem:[#allocation10 + $0x160] sm:$0xff] }
 0x1fc   :  { %1267 = vmatpush.msra.mxu0 %v10061_v49  ;;  %1287 = vmatpush.msrb.mxu1 %v10062_v18  ;;  %v6514_v49 = vld [vmem:[#allocation10 + $0x168] sm:$0xff]  ;;  %v6517_v18 = vld [vmem:[#allocation10 + $0x170] sm:$0xff] }
 0x1fd   :  { %1307 = vmatpush.msra.mxu2 %v10063_v19  ;;  %1327 = vmatpush.msra.mxu3 %v10064_v20  ;;  %v6520_v19 = vld [vmem:[#allocation10 + $0x178] sm:$0xff]  ;;  %v6523_v20 = vld [vmem:[#allocation10 + $0x140] sm:$0xff] }
 0x1fe   :  { %1268 = vmatpush.msra.mxu0 %v10065_v21  ;;  %1288 = vmatpush.msrb.mxu1 %v10066_v22  ;;  %v6526_v21 = vld [vmem:[#allocation10 + $0x148] sm:$0xff]  ;;  %v6529_v22 = vld [vmem:[#allocation10 + $0x150] sm:$0xff] }
 0x1ff   :  { %1308 = vmatpush.msra.mxu2 %v10067_v24  ;;  %1328 = vmatpush.msra.mxu3 %v10068_v25  ;;  %v6532_v24 = vld [vmem:[#allocation10 + $0x158] sm:$0xff]  ;;  %v6535_v25 = vld [vmem:[#allocation10 + $0x120] sm:$0xff] }
 0x200   :  { %1269 = vmatpush.msra.mxu0 %v10069_v27  ;;  %1289 = vmatpush.msrb.mxu1 %v10070_v29  ;;  %v6538_v27 = vld [vmem:[#allocation10 + $0x128] sm:$0xff]  ;;  %v6541_v29 = vld [vmem:[#allocation10 + $0x130] sm:$0xff] }
 0x201   :  { %1309 = vmatpush.msra.mxu2 %v10071_v31  ;;  %1329 = vmatpush.msra.mxu3 %v10072_v32  ;;  %v6544_v31 = vld [vmem:[#allocation10 + $0x138] sm:$0xff]  ;;  %v6548_v32 = vld [vmem:[#allocation10 + $0x108] sm:$0xff] }
 0x202   :  { %1270 = vmatpush.msra.mxu0 %v10073_v30  ;;  %1290 = vmatpush.msrb.mxu1 %v10074_v33  ;;  %v6551_v30 = vld [vmem:[#allocation10 + $0x110] sm:$0xff]  ;;  %v6554_v33 = vld [vmem:[#allocation10 + $0x118] sm:$0xff] }
 0x203   :  { %1310 = vmatpush.msra.mxu2 %v10075_v34  ;;  %1330 = vmatpush.msra.mxu3 %v10076_v40  ;;  %10095 = vst [vmem:[#allocation48_spill] sm:$0xff] %v6551_v30  ;;  %v6558_v34 = vld [vmem:[#allocation10 + $0xe8] sm:$0xff]  ;;  %v6561_v40 = vld [vmem:[#allocation10 + $0xf0] sm:$0xff] }
 0x204   :  { %1271 = vmatpush.msra.mxu0 %v10077_v42  ;;  %1291 = vmatpush.msrb.mxu1 %v10078_v46  ;;  %10096 = vst [vmem:[#allocation33_spill] sm:$0xff] %v6554_v33  ;;  %v6568_v42 = vld [vmem:[#allocation10 + $0xc8] sm:$0xff]  ;;  %v6571_v46 = vld [vmem:[#allocation10 + $0xd0] sm:$0xff] }
 0x205   :  { %1311 = vmatpush.msra.mxu2 %v10079_v55  ;;  %1331 = vmatpush.msra.mxu3 %v10080_v48  ;;  %10097 = vst [vmem:[#allocation34_spill] sm:$0xff] %v6558_v34  ;;  %v6578_v55 = vld [vmem:[#allocation10 + $0xa8] sm:$0xff]  ;;  %v6581_v48 = vld [vmem:[#allocation10 + $0xb0] sm:$0xff] }
 0x206   :  { %1272 = vmatpush.msra.mxu0 %v10081_v51  ;;  %1292 = vmatpush.msrb.mxu1 %v10082_v57  ;;  %10098 = vst [vmem:[#allocation27_spill] sm:$0xff] %v6561_v40  ;;  %v6588_v51 = vld [vmem:[#allocation10 + $0x88] sm:$0xff]  ;;  %v6591_v57 = vld [vmem:[#allocation10 + $0x90] sm:$0xff] }
 0x207   :  { %1312 = vmatpush.msra.mxu2 %v10083_v58  ;;  %1332 = vmatpush.msra.mxu3 %v10084_v61  ;;  %10100 = vst [vmem:[#allocation36_spill] sm:$0xff] %v6568_v42  ;;  %v6597_v58 = vld [vmem:[#allocation10 + $0x60] sm:$0xff]  ;;  %v6600_v61 = vld [vmem:[#allocation10 + $0x68] sm:$0xff] }
 0x208   :  { %1273 = vmatpush.msra.mxu0 %v10085_v7  ;;  %1293 = vmatpush.msrb.mxu1 %v10086_v8  ;;  %10101 = vst [vmem:[#allocation37_spill] sm:$0xff] %v6571_v46  ;;  %v6606_v7 = vld [vmem:[#allocation10 + $0x78] sm:$0xff]  ;;  %v6609_v8 = vld [vmem:[#allocation10 + $0x40] sm:$0xff] }
 0x209   :  { %1313 = vmatpush.msra.mxu2 %v10087_v13  ;;  %1333 = vmatpush.msra.mxu3 %v10088_v1  ;;  %10103 = vst [vmem:[#allocation54_spill] sm:$0xff] %v6578_v55  ;;  %v6612_v13 = vld [vmem:[#allocation10 + $0x48] sm:$0xff]  ;;  %v6615_v1 = vld [vmem:[#allocation10 + $0x50] sm:$0xff] }
 0x20a   :  { %1274 = vmatpush.msra.mxu0 %v10089_v52  ;;  %1294 = vmatpush.msrb.mxu1 %v10090_v36  ;;  %10104 = vst [vmem:[#allocation39_spill] sm:$0xff] %v6581_v48  ;;  %v6618_v52 = vld [vmem:[#allocation10 + $0x58] sm:$0xff]  ;;  %v6621_v36 = vld [vmem:[#allocation10 + $0x20] sm:$0xff] }
 0x20b   :  { %1314 = vmatpush.msra.mxu2 %v10091_v4  ;;  %1334 = vmatpush.msra.mxu3 %v10092_v5  ;;  %10106 = vst [vmem:[#allocation29_spill] sm:$0xff] %v6588_v51  ;;  %v6624_v4 = vld [vmem:[#allocation10 + $0x28] sm:$0xff]  ;;  %v6627_v5 = vld [vmem:[#allocation10 + $0x30] sm:$0xff] }
 0x20c   :  { %1275 = vmatpush.msra.mxu0 %v6159_v10  ;;  %1295 = vmatpush.msrb.mxu1 %v10093_v47  ;;  %v6469_v10 = vld [vmem:[#allocation10 + $0x1f0] sm:$0xff]  ;;  %10107 = vst [vmem:[#allocation58_spill] sm:$0xff] %v6591_v57  ;;  %v6630_v47 = vld [vmem:[#allocation10 + $0x38] sm:$0xff] }
 0x20d   :  { %1315 = vmatpush.msra.mxu2 %v10094_v60  ;;  %1335 = vmatpush.msra.mxu3 %v6167_v63  ;;  %v6472_v63 = vld [vmem:[#allocation10 + $0x1f8] sm:$0xff]  ;;  %10109 = vst [vmem:[#allocation43_spill] sm:$0xff] %v6597_v58  ;;  %v6633_v60 = vld [vmem:[#allocation10] sm:$0xff] }
 0x20e   :  { %1276 = vmatpush.msra.mxu0 %v6169_v9  ;;  %1296 = vmatpush.msrb.mxu1 %v6171_v17  ;;  %v6475_v9 = vld [vmem:[#allocation10 + $0x1c0] sm:$0xff]  ;;  %v6484_v17 = vld [vmem:[#allocation10 + $0x1d8] sm:$0xff]  ;;  %10110 = vst [vmem:[#allocation32_spill] sm:$0xff] %v6600_v61 }
 0x20f   :  { %1316 = vmatpush.msra.mxu2 %v6175_v43  ;;  %1336 = vmatpush.msra.mxu3 %v6177_v23  ;;  %v6478_v23 = vld [vmem:[#allocation10 + $0x1c8] sm:$0xff]  ;;  %v6481_v43 = vld [vmem:[#allocation10 + $0x1d0] sm:$0xff]  ;;  %10112 = vst [vmem:[#allocation46_spill] sm:$0xff] %v6606_v7 }
 0x210   :  { %1410 = vmatpush.msrb.mxu0 %v6463_v37  ;;  %1430 = vmatpush.msra.mxu1 %v6466_v6  ;;  %10113 = vst [vmem:[#allocation47_spill] sm:$0xff] %v6609_v8 }
 0x211   :  { %1450 = vmatpush.msrb.mxu2 %v6469_v10  ;;  %1470 = vmatpush.msrb.mxu3 %v6472_v63  ;;  %10114 = vst [vmem:[#allocation35_spill] sm:$0xff] %v6612_v13 }
 0x212   :  { %1411 = vmatpush.msrb.mxu0 %v6475_v9  ;;  %1431 = vmatpush.msra.mxu1 %v6478_v23  ;;  %10115 = vst [vmem:[#allocation66_spill] sm:$0xff] %v6615_v1 }
 0x213   :  { %1451 = vmatpush.msrb.mxu2 %v6481_v43  ;;  %1471 = vmatpush.msrb.mxu3 %v6484_v17  ;;  %10116 = vst [vmem:[#allocation50_spill] sm:$0xff] %v6618_v52 }
 0x214   :  { %1412 = vmatpush.msrb.mxu0 %v6487_v62  ;;  %1432 = vmatpush.msra.mxu1 %v6490_v56  ;;  %10117 = vst [vmem:[#allocation51_spill] sm:$0xff] %v6621_v36 }
 0x215   :  { %1452 = vmatpush.msrb.mxu2 %v6493_v2  ;;  %1472 = vmatpush.msrb.mxu3 %v6496_v50  ;;  %10118 = vst [vmem:[#allocation38_spill] sm:$0xff] %v6624_v4 }
 0x216   :  { %1413 = vmatpush.msrb.mxu0 %v6499_v12  ;;  %1433 = vmatpush.msra.mxu1 %v6502_v14  ;;  %10119 = vst [vmem:[#allocation69_spill] sm:$0xff] %v6627_v5 }
 0x217   :  { %1453 = vmatpush.msrb.mxu2 %v6505_v15  ;;  %1473 = vmatpush.msrb.mxu3 %v6508_v39  ;;  %10120 = vst [vmem:[#allocation55_spill] sm:$0xff] %v6630_v47 }
 0x218   :  { %1414 = vmatpush.msrb.mxu0 %v6511_v16  ;;  %1434 = vmatpush.msra.mxu1 %v6514_v49  ;;  %10121 = vst [vmem:[#allocation56_spill] sm:$0xff] %v6633_v60 }
 0x219   :  { %1454 = vmatpush.msrb.mxu2 %v6517_v18  ;;  %1474 = vmatpush.msrb.mxu3 %v6520_v19 }
 0x21a   :  { %1415 = vmatpush.msrb.mxu0 %v6523_v20  ;;  %1435 = vmatpush.msra.mxu1 %v6526_v21 }
 0x21b   :  { %1455 = vmatpush.msrb.mxu2 %v6529_v22  ;;  %1475 = vmatpush.msrb.mxu3 %v6532_v24 }
 0x21c   :  { %1416 = vmatpush.msrb.mxu0 %v6535_v25  ;;  %1436 = vmatpush.msra.mxu1 %v6538_v27 }
 0x21d   :  { %1456 = vmatpush.msrb.mxu2 %v6541_v29  ;;  %1476 = vmatpush.msrb.mxu3 %v6544_v31 }
 0x21e   :  { %1417 = vmatpush.msrb.mxu0 %v6241_v38  ;;  %1437 = vmatpush.msra.mxu1 %v6548_v32  ;;  %v6564_v38 = vld [vmem:[#allocation10 + $0xf8] sm:$0xff] }
 0x21f   :  { %1457 = vmatpush.msrb.mxu2 %v6551_v30  ;;  %1477 = vmatpush.msrb.mxu3 %v6554_v33  ;;  %10099 = vst [vmem:[#allocation52_spill] sm:$0xff] %v6564_v38 }
 0x220   :  { %1418 = vmatpush.msrb.mxu0 %v6248_v44  ;;  %1438 = vmatpush.msra.mxu1 %v6558_v34  ;;  %v6574_v44 = vld [vmem:[#allocation10 + $0xd8] sm:$0xff] }
 0x221   :  { %1458 = vmatpush.msrb.mxu2 %v6561_v40  ;;  %1478 = vmatpush.msrb.mxu3 %v6564_v38  ;;  %10102 = vst [vmem:[#allocation28_spill] sm:$0xff] %v6574_v44 }
 0x222   :  { %1419 = vmatpush.msrb.mxu0 %v6254_v59  ;;  %1439 = vmatpush.msra.mxu1 %v6568_v42  ;;  %v6584_v59 = vld [vmem:[#allocation10 + $0xb8] sm:$0xff] }
 0x223   :  { %1459 = vmatpush.msrb.mxu2 %v6571_v46  ;;  %1479 = vmatpush.msrb.mxu3 %v6574_v44  ;;  %10105 = vst [vmem:[#allocation40_spill] sm:$0xff] %v6584_v59 }
 0x224   :  { %1420 = vmatpush.msrb.mxu0 %v6264_v3  ;;  %1440 = vmatpush.msra.mxu1 %v6578_v55  ;;  %v6594_v3 = vld [vmem:[#allocation10 + $0x98] sm:$0xff] }
 0x225   :  { %1460 = vmatpush.msrb.mxu2 %v6581_v48  ;;  %1480 = vmatpush.msrb.mxu3 %v6584_v59  ;;  %10108 = vst [vmem:[#allocation42_spill] sm:$0xff] %v6594_v3 }
 0x226   :  { %1421 = vmatpush.msrb.mxu0 %v6274_v54  ;;  %1441 = vmatpush.msra.mxu1 %v6588_v51  ;;  %v6603_v54 = vld [vmem:[#allocation10 + $0x70] sm:$0xff] }
 0x227   :  { %1461 = vmatpush.msrb.mxu2 %v6591_v57  ;;  %1481 = vmatpush.msrb.mxu3 %v6594_v3  ;;  %10111 = vst [vmem:[#allocation62_spill] sm:$0xff] %v6603_v54  ;;  %v10130_v51 = vld [vmem:[#allocation103_spill] sm:$0xff] }
 0x228   :  { %1422 = vmatpush.msrb.mxu0 %v6597_v58  ;;  %1442 = vmatpush.msra.mxu1 %v6600_v61 }
 0x229   :  { %1462 = vmatpush.msrb.mxu2 %v6603_v54  ;;  %1482 = vmatpush.msrb.mxu3 %v6606_v7 }
 0x22a   :  { %1423 = vmatpush.msrb.mxu0 %v6609_v8  ;;  %1443 = vmatpush.msra.mxu1 %v6612_v13  ;;  %v10128_v8 = vld [vmem:[#allocation105_spill] sm:$0xff] }
 0x22b   :  { %1463 = vmatpush.msrb.mxu2 %v6615_v1  ;;  %1483 = vmatpush.msrb.mxu3 %v6618_v52  ;;  %v10126_v1 = vld [vmem:[#allocation102_spill] sm:$0xff] }
 0x22c   :  { %1424 = vmatpush.msrb.mxu0 %v6621_v36  ;;  %1444 = vmatpush.msra.mxu1 %v6624_v4  ;;  %v6639_v36 = vld [vmem:[#allocation10 + $0x10] sm:$0xff]  ;;  %v6642_v4 = vld [vmem:[#allocation10 + $0x18] sm:$0xff] }
 0x22d   :  { %1464 = vmatpush.msrb.mxu2 %v6627_v5  ;;  %1484 = vmatpush.msrb.mxu3 %v6630_v47  ;;  %10123 = vst [vmem:[#allocation73_spill] sm:$0xff] %v6639_v36  ;;  %v10125_v47 = vld [vmem:[#allocation127_spill] sm:$0xff] }
 0x22e   :  { %1425 = vmatpush.msrb.mxu0 %v6633_v60  ;;  %1445 = vmatpush.msra.mxu1 %v6636_v53  ;;  %10124 = vst [vmem:[#allocation59_spill] sm:$0xff] %v6642_v4  ;;  %v268_v13 = vadd.f32 %v10126_v1, %v10125_v47  ;;  %v10127_v60 = vld [vmem:[#allocation160_spill] sm:$0xff] }
 0x22f   :  { %1465 = vmatpush.msrb.mxu2 %v6639_v36  ;;  %1485 = vmatpush.msrb.mxu3 %v6642_v4  ;;  %v309_v7 = vadd.f32 %v10128_v8, %v10127_v60  ;;  %v10129_v4 = vld [vmem:[#allocation155_spill] sm:$0xff] }
 0x230   :  { %v350_v59 = vadd.f32 %v10130_v51, %v10129_v4 }
 0x269   :  { %v6645_v5 = vpop.f32.mrf.mxu0  ;;  %v6647_v52 = vpop.f32.mrf.mxu1 }
 0x270   :  { %v6653_v54 = vpop.f32.mrf.mxu2  ;;  %v6657_v48 = vpop.f32.mrf.mxu3 }
 0x271   :  { %v1131_v53 = vpop.f32.mrf.mxu0  ;;  %v1151_v61 = vpop.f32.mrf.mxu1 }
 0x272   :  { %v1194_v58 = vadd.f32 %v1131_v53, %v268_v13  ;;  %v1195_v36 = vadd.f32 %v1151_v61, %v309_v7 }
 0x274   :  { %v4159_v3 = vmul.f32 -1.442695, %v1194_v58  ;;  %v4160_v57 = vmul.f32 -1.442695, %v1195_v36 }
 0x276   :  { %4269 = vpow2.f32 %v4159_v3  ;;  %v10131_v3 = vld [vmem:[#allocation109_spill] sm:$0xff] }
 0x277   :  { %4271 = vpow2.f32 %v4160_v57  ;;  %v391_v61 = vadd.f32 %v10131_v3, %v6187_v11 }
 0x278   :  { %v1171_v55 = vpop.f32.mrf.mxu2  ;;  %v1191_v53 = vpop.f32.mrf.mxu3 }
 0x279   :  { %v1196_v1 = vadd.f32 %v1171_v55, %v350_v59  ;;  %v1197_v57 = vadd.f32 %v1191_v53, %v391_v61 }
 0x27b   :  { %v4161_v47 = vmul.f32 -1.442695, %v1196_v1 }
 0x27c   :  { %v4270_v44 = vpop.eup %4269 }
 0x27d   :  { %v4272_v8 = vpop.eup %4271  ;;  %v1207_v60 = vadd.f32 1.0, %v4270_v44  ;;  %4273 = vpow2.f32 %v4161_v47 }
 0x27e   :  { %v1208_v46 = vadd.f32 1.0, %v4272_v8 }
 0x27f   :  { %4275 = vrcp.f32 %v1207_v60  ;;  %v1221_v4 = vand.u32 2147483648, %v1207_v60  ;;  %v1219_v8 = vand.u32 2147483647, %v1207_v60  ;;  %vm1215_vm14 = vweird.f32 %v1207_v60 }
 0x280   :  { %4277 = vrcp.f32 %v1208_v46  ;;  %v1236_v44 = vand.u32 2147483648, %v1208_v46  ;;  %v1234_v38 = vand.u32 2147483647, %v1208_v46  ;;  %vm1230_vm15 = vweird.f32 %v1208_v46 }
 0x281   :  { %vm1220_vm4 = vcmp.eq.f32.partialorder %v1219_v8, 8.507059e+37  ;;  %v6689_v8 = vld [vmem:[#allocation7 + $0x1d0] sm:$0xff] }
 0x282   :  { %vm1235_vm5 = vcmp.eq.f32.partialorder %v1234_v38, 8.507059e+37 }
 0x283   :  { %v4274_v58 = vpop.eup %4273 }
 0x284   :  { %v1209_v7 = vadd.f32 1.0, %v4274_v58  ;;  %v1222_v58 = vor.u32 1.1754944e-38, %v1221_v4 }
 0x285   :  { %v4276_v51 = vpop.eup %4275 }
 0x286   :  { %v4278_v13 = vpop.eup %4277  ;;  %v1211_v36 = vmul.f32 %v4276_v51, %v1207_v60  ;;  %4279 = vrcp.f32 %v1209_v7  ;;  %vm1216_vm12 = vweird.f32 %v4276_v51  ;;  %v1251_v4 = vand.u32 2147483648, %v1209_v7 }
 0x287   :  { %v1226_v55 = vmul.f32 %v4278_v13, %v1208_v46  ;;  %4281 = vtanh.f32 %v1197_v57  ;;  %vm1231_vm13 = vweird.f32 %v4278_v13  ;;  %vm1217_vm2 = vmor %vm1215_vm14, %vm1216_vm12  ;;  %vm1245_vm7 = vweird.f32 %v1209_v7 }
 0x288   :  { %v1212_v59 = vsub.f32 1.0, %v1211_v36  ;;  %vm1232_vm3 = vmor %vm1230_vm15, %vm1231_vm13  ;;  %v1237_v36 = vor.u32 1.1754944e-38, %v1236_v44  ;;  %v1252_v44 = vor.u32 1.1754944e-38, %v1251_v4  ;;  %v6725_v4 = vld [vmem:[#allocation7 + $0x170] sm:$0xff] }
 0x289   :  { %v1227_v1 = vsub.f32 1.0, %v1226_v55  ;;  %10143 = vst [vmem:[#allocation71_spill] sm:$0xff] %v6725_v4 }
 0x28a   :  { %v1213_v47 = vmul.f32 %v4276_v51, %v1212_v59 }
 0x28b   :  { %v1228_v42 = vmul.f32 %v4278_v13, %v1227_v1 }
 0x28c   :  { %v4280_v40 = vpop.eup %4279  ;;  %v1214_v3 = vadd.f32 %v4276_v51, %v1213_v47 }
 0x28d   :  { %v1241_v53 = vmul.f32 %v4280_v40, %v1209_v7  ;;  %v1229_v61 = vadd.f32 %v4278_v13, %v1228_v42  ;;  %v4282_v57 = vpop.eup %4281  ;;  %vm1246_vm6 = vweird.f32 %v4280_v40  ;;  %v1249_v42 = vand.u32 2147483647, %v1209_v7  ;;  %v6686_v7 = vld [vmem:[#allocation7 + $0x1c8] sm:$0xff] }
 0x28e   :  { %v1218_v55 = vsel %vm1217_vm2, %v4276_v51, %v1214_v3  ;;  %vm1247_vm8 = vmor %vm1245_vm7, %vm1246_vm6  ;;  %v6692_v3 = vld [vmem:[#allocation7 + $0x1d8] sm:$0xff] }
 0x28f   :  { %v1242_v11 = vsub.f32 1.0, %v1241_v53  ;;  %v1223_v59 = vsel %vm1220_vm4, %v1222_v58, %v1218_v55  ;;  %v1233_v34 = vsel %vm1232_vm3, %v4278_v13, %v1229_v61  ;;  %vm1250_vm9 = vcmp.eq.f32.partialorder %v1249_v42, 8.507059e+37  ;;  %10132 = vst [vmem:[#allocation60_spill] sm:$0xff] %v6692_v3  ;;  %v6695_v53 = vld [vmem:[#allocation7 + $0x1a0] sm:$0xff]  ;;  %v6698_v58 = vld [vmem:[#allocation7 + $0x1a8] sm:$0xff]  ;;  %v6701_v61 = vld [vmem:[#allocation7 + $0x1b0] sm:$0xff] }
 0x290   :  { %v1238_v1 = vsel %vm1235_vm5, %v1237_v36, %v1233_v34  ;;  %v1257_v33 = vmul.f32 %v4282_v57, %v1223_v59  ;;  %10133 = vst [vmem:[#allocation45_spill] sm:$0xff] %v6695_v53  ;;  %v6704_v36 = vld [vmem:[#allocation7 + $0x1b8] sm:$0xff]  ;;  %v6707_v55 = vld [vmem:[#allocation7 + $0x180] sm:$0xff]  ;;  %v6710_v57 = vld [vmem:[#allocation7 + $0x188] sm:$0xff] }
 0x291   :  { %v1243_v30 = vmul.f32 %v4280_v40, %v1242_v11  ;;  %v1256_v47 = vmul.f32 %v1238_v1, %v6258_v45  ;;  %v6671_v11 = vld [vmem:[#allocation7 + $0x1e0] sm:$0xff]  ;;  %v6674_v45 = vld [vmem:[#allocation7 + $0x1e8] sm:$0xff]  ;;  %10134 = vst [vmem:[#allocation77_spill] sm:$0xff] %v6698_v58  ;;  %v6713_v59 = vld [vmem:[#allocation7 + $0x190] sm:$0xff] }
 0x292   :  { %10135 = vst [vmem:[#allocation63_spill] sm:$0xff] %v6701_v61  ;;  %v6716_v1 = vld [vmem:[#allocation7 + $0x198] sm:$0xff] }
 0x293   :  { %v6662_v60 = vadd.f32 %v1257_v33, %v1256_v47  ;;  %v1244_v46 = vadd.f32 %v4280_v40, %v1243_v30  ;;  %v6677_v30 = vld [vmem:[#allocation7 + $0x1f0] sm:$0xff]  ;;  %v6680_v33 = vld [vmem:[#allocation7 + $0x1f8] sm:$0xff]  ;;  %10136 = vst [vmem:[#allocation64_spill] sm:$0xff] %v6704_v36  ;;  %v6719_v47 = vld [vmem:[#allocation7 + $0x160] sm:$0xff] }
 0x294   :  { %10137 = vst [vmem:[#allocation49_spill] sm:$0xff] %v6707_v55  ;;  %v6728_v42 = vld [vmem:[#allocation7 + $0x178] sm:$0xff] }
 0x295   :  { %4283 = vtanh.f32 %v6662_v60  ;;  %v1248_v51 = vsel %vm1247_vm8, %v4280_v40, %v1244_v46  ;;  %v6683_v40 = vld [vmem:[#allocation7 + $0x1c0] sm:$0xff]  ;;  %10138 = vst [vmem:[#allocation81_spill] sm:$0xff] %v6710_v57  ;;  %v6722_v46 = vld [vmem:[#allocation7 + $0x168] sm:$0xff] }
 0x296   :  { %v1253_v38 = vsel %vm1250_vm9, %v1252_v44, %v1248_v51  ;;  %10139 = vst [vmem:[#allocation67_spill] sm:$0xff] %v6713_v59  ;;  %v6731_v51 = vld [vmem:[#allocation7 + $0x140] sm:$0xff]  ;;  %v6734_v44 = vld [vmem:[#allocation7 + $0x148] sm:$0xff] }
 0x297   :  { %10140 = vst [vmem:[#allocation68_spill] sm:$0xff] %v6716_v1 }
 0x298   :  { %10141 = vst [vmem:[#allocation53_spill] sm:$0xff] %v6719_v47 }
 0x299   :  { %10142 = vst [vmem:[#allocation85_spill] sm:$0xff] %v6722_v46 }
 0x29a   :  { %10144 = vst [vmem:[#allocation72_spill] sm:$0xff] %v6728_v42 }
 0x29b   :  { %v4284_v13 = vpop.eup %4283  ;;  %10145 = vst [vmem:[#allocation57_spill] sm:$0xff] %v6731_v51 }
 0x29c   :  { %v6665_v34 = vmul.f32 %v4284_v13, %v1253_v38  ;;  %10146 = vst [vmem:[#allocation88_spill] sm:$0xff] %v6734_v44  ;;  %v6737_v13 = vld [vmem:[#allocation7 + $0x150] sm:$0xff]  ;;  %v6740_v38 = vld [vmem:[#allocation7 + $0x158] sm:$0xff] }
 0x29d   :  { %10147 = vst [vmem:[#allocation75_spill] sm:$0xff] %v6737_v13 }
 0x29e   :  { %1277 = vmatmul.f32.vlgmr.msra.gmra.mxu0 %v6665_v34  ;;  %1297 = vmatmul.f32.vlgmr.msrb.gmra.mxu1 %v6665_v34  ;;  %10148 = vst [vmem:[#allocation76_spill] sm:$0xff] %v6740_v38 }
 0x29f   :  { %1317 = vmatmul.f32.vlgmr.msra.gmra.mxu2 %v6665_v34  ;;  %1337 = vmatmul.f32.vlgmr.msra.gmra.mxu3 %v6665_v34 }
 0x2a0   :  { %1497 = vmatpush.msra.mxu0 %v6671_v11  ;;  %1517 = vmatpush.msrb.mxu1 %v6674_v45 }
 0x2a1   :  { %1537 = vmatpush.msra.mxu2 %v6677_v30  ;;  %1557 = vmatpush.msra.mxu3 %v6680_v33 }
 0x2a2   :  { %1498 = vmatpush.msra.mxu0 %v6683_v40  ;;  %1518 = vmatpush.msrb.mxu1 %v6686_v7 }
 0x2a3   :  { %1538 = vmatpush.msra.mxu2 %v6689_v8  ;;  %1558 = vmatpush.msra.mxu3 %v6692_v3 }
 0x2a4   :  { %1499 = vmatpush.msra.mxu0 %v6695_v53  ;;  %1519 = vmatpush.msrb.mxu1 %v6698_v58 }
 0x2a5   :  { %1539 = vmatpush.msra.mxu2 %v6701_v61  ;;  %1559 = vmatpush.msra.mxu3 %v6704_v36 }
 0x2a6   :  { %1500 = vmatpush.msra.mxu0 %v6707_v55  ;;  %1520 = vmatpush.msrb.mxu1 %v6710_v57 }
 0x2a7   :  { %1540 = vmatpush.msra.mxu2 %v6713_v59  ;;  %1560 = vmatpush.msra.mxu3 %v6716_v1 }
 0x2a8   :  { %1501 = vmatpush.msra.mxu0 %v6719_v47  ;;  %1521 = vmatpush.msrb.mxu1 %v6722_v46 }
 0x2a9   :  { %1541 = vmatpush.msra.mxu2 %v6725_v4  ;;  %1561 = vmatpush.msra.mxu3 %v6728_v42  ;;  %v6743_v4 = vld [vmem:[#allocation7 + $0x120] sm:$0xff]  ;;  %v6746_v42 = vld [vmem:[#allocation7 + $0x128] sm:$0xff] }
 0x2aa   :  { %1502 = vmatpush.msra.mxu0 %v6731_v51  ;;  %1522 = vmatpush.msrb.mxu1 %v6734_v44  ;;  %10149 = vst [vmem:[#allocation61_spill] sm:$0xff] %v6743_v4  ;;  %v6749_v51 = vld [vmem:[#allocation7 + $0x130] sm:$0xff]  ;;  %v6752_v44 = vld [vmem:[#allocation7 + $0x138] sm:$0xff] }
 0x2ab   :  { %1542 = vmatpush.msra.mxu2 %v6737_v13  ;;  %1562 = vmatpush.msra.mxu3 %v6740_v38  ;;  %10150 = vst [vmem:[#allocation91_spill] sm:$0xff] %v6746_v42  ;;  %v6755_v13 = vld [vmem:[#allocation7 + $0x100] sm:$0xff]  ;;  %v6758_v38 = vld [vmem:[#allocation7 + $0x108] sm:$0xff] }
 0x2ac   :  { %1503 = vmatpush.msra.mxu0 %v6743_v4  ;;  %1523 = vmatpush.msrb.mxu1 %v6746_v42  ;;  %10151 = vst [vmem:[#allocation79_spill] sm:$0xff] %v6749_v51  ;;  %v6761_v4 = vld [vmem:[#allocation7 + $0x110] sm:$0xff]  ;;  %v6764_v42 = vld [vmem:[#allocation7 + $0x118] sm:$0xff] }
 0x2ad   :  { %1543 = vmatpush.msra.mxu2 %v6749_v51  ;;  %10152 = vst [vmem:[#allocation80_spill] sm:$0xff] %v6752_v44  ;;  %1563 = vmatpush.msra.mxu3 %v6752_v44  ;;  %v6767_v51 = vld [vmem:[#allocation7 + $0xe0] sm:$0xff]  ;;  %v6770_v44 = vld [vmem:[#allocation7 + $0xe8] sm:$0xff] }
 0x2ae   :  { %10153 = vst [vmem:[#allocation65_spill] sm:$0xff] %v6755_v13  ;;  %1504 = vmatpush.msra.mxu0 %v6755_v13  ;;  %1524 = vmatpush.msrb.mxu1 %v6758_v38  ;;  %v6773_v13 = vld [vmem:[#allocation7 + $0xf0] sm:$0xff] }
 0x2af   :  { %10154 = vst [vmem:[#allocation94_spill] sm:$0xff] %v6758_v38  ;;  %1544 = vmatpush.msra.mxu2 %v6761_v4  ;;  %1564 = vmatpush.msra.mxu3 %v6764_v42  ;;  %v6776_v38 = vld [vmem:[#allocation7 + $0xf8] sm:$0xff] }
 0x2b0   :  { %10155 = vst [vmem:[#allocation83_spill] sm:$0xff] %v6761_v4  ;;  %1505 = vmatpush.msra.mxu0 %v6767_v51  ;;  %1525 = vmatpush.msrb.mxu1 %v6770_v44  ;;  %v6779_v4 = vld [vmem:[#allocation7 + $0xc0] sm:$0xff] }
 0x2b1   :  { %10156 = vst [vmem:[#allocation84_spill] sm:$0xff] %v6764_v42  ;;  %1545 = vmatpush.msra.mxu2 %v6773_v13  ;;  %1565 = vmatpush.msra.mxu3 %v6776_v38  ;;  %v6782_v42 = vld [vmem:[#allocation7 + $0xc8] sm:$0xff] }
 0x2b2   :  { %10157 = vst [vmem:[#allocation70_spill] sm:$0xff] %v6767_v51  ;;  %1506 = vmatpush.msra.mxu0 %v6779_v4  ;;  %1526 = vmatpush.msrb.mxu1 %v6782_v42  ;;  %v6785_v51 = vld [vmem:[#allocation7 + $0xd0] sm:$0xff] }
 0x2b3   :  { %10158 = vst [vmem:[#allocation97_spill] sm:$0xff] %v6770_v44  ;;  %1546 = vmatpush.msra.mxu2 %v6785_v51  ;;  %v6788_v44 = vld [vmem:[#allocation7 + $0xd8] sm:$0xff] }
 0x2b4   :  { %10159 = vst [vmem:[#allocation86_spill] sm:$0xff] %v6773_v13  ;;  %1566 = vmatpush.msra.mxu3 %v6788_v44  ;;  %v6791_v13 = vld [vmem:[#allocation7 + $0xa0] sm:$0xff] }
 0x2b5   :  { %10160 = vst [vmem:[#allocation87_spill] sm:$0xff] %v6776_v38  ;;  %1507 = vmatpush.msra.mxu0 %v6791_v13  ;;  %v6794_v38 = vld [vmem:[#allocation7 + $0xa8] sm:$0xff] }
 0x2b6   :  { %10161 = vst [vmem:[#allocation74_spill] sm:$0xff] %v6779_v4  ;;  %1527 = vmatpush.msrb.mxu1 %v6794_v38  ;;  %v6797_v4 = vld [vmem:[#allocation7 + $0xb0] sm:$0xff] }
 0x2b7   :  { %10162 = vst [vmem:[#allocation98_spill] sm:$0xff] %v6782_v42  ;;  %1547 = vmatpush.msra.mxu2 %v6797_v4  ;;  %v6800_v42 = vld [vmem:[#allocation7 + $0xb8] sm:$0xff] }
 0x2b8   :  { %10163 = vst [vmem:[#allocation89_spill] sm:$0xff] %v6785_v51  ;;  %1567 = vmatpush.msra.mxu3 %v6800_v42  ;;  %v6803_v51 = vld [vmem:[#allocation7 + $0x80] sm:$0xff] }
 0x2b9   :  { %10164 = vst [vmem:[#allocation90_spill] sm:$0xff] %v6788_v44  ;;  %1508 = vmatpush.msra.mxu0 %v6803_v51  ;;  %v6806_v44 = vld [vmem:[#allocation7 + $0x88] sm:$0xff] }
 0x2ba   :  { %10165 = vst [vmem:[#allocation78_spill] sm:$0xff] %v6791_v13  ;;  %1528 = vmatpush.msrb.mxu1 %v6806_v44  ;;  %v6809_v13 = vld [vmem:[#allocation7 + $0x90] sm:$0xff] }
 0x2bb   :  { %10166 = vst [vmem:[#allocation99_spill] sm:$0xff] %v6794_v38  ;;  %1548 = vmatpush.msra.mxu2 %v6809_v13  ;;  %v6812_v38 = vld [vmem:[#allocation7 + $0x98] sm:$0xff] }
 0x2bc   :  { %10167 = vst [vmem:[#allocation92_spill] sm:$0xff] %v6797_v4  ;;  %1568 = vmatpush.msra.mxu3 %v6812_v38  ;;  %v6815_v4 = vld [vmem:[#allocation7 + $0x60] sm:$0xff] }
 0x2bd   :  { %10168 = vst [vmem:[#allocation93_spill] sm:$0xff] %v6800_v42  ;;  %1509 = vmatpush.msra.mxu0 %v6815_v4  ;;  %v6818_v42 = vld [vmem:[#allocation7 + $0x68] sm:$0xff] }
 0x2be   :  { %10169 = vst [vmem:[#allocation82_spill] sm:$0xff] %v6803_v51  ;;  %1529 = vmatpush.msrb.mxu1 %v6818_v42  ;;  %v6821_v51 = vld [vmem:[#allocation7 + $0x70] sm:$0xff] }
 0x2bf   :  { %10170 = vst [vmem:[#allocation100_spill] sm:$0xff] %v6806_v44  ;;  %1549 = vmatpush.msra.mxu2 %v6821_v51  ;;  %v6824_v44 = vld [vmem:[#allocation7 + $0x78] sm:$0xff] }
 0x2c0   :  { %10171 = vst [vmem:[#allocation95_spill] sm:$0xff] %v6809_v13  ;;  %1569 = vmatpush.msra.mxu3 %v6824_v44  ;;  %v6827_v13 = vld [vmem:[#allocation7 + $0x40] sm:$0xff] }
 0x2c1   :  { %10172 = vst [vmem:[#allocation96_spill] sm:$0xff] %v6812_v38  ;;  %1510 = vmatpush.msra.mxu0 %v6827_v13  ;;  %v6830_v38 = vld [vmem:[#allocation7 + $0x48] sm:$0xff] }
 0x2c2   :  { %10173 = vst [vmem:[#allocation124_spill] sm:$0xff] %v6815_v4  ;;  %1530 = vmatpush.msrb.mxu1 %v6830_v38  ;;  %v6833_v4 = vld [vmem:[#allocation7 + $0x50] sm:$0xff] }
 0x2c3   :  { %10174 = vst [vmem:[#allocation151_spill] sm:$0xff] %v6818_v42  ;;  %1550 = vmatpush.msra.mxu2 %v6833_v4  ;;  %v6836_v42 = vld [vmem:[#allocation7 + $0x58] sm:$0xff] }
 0x2c4   :  { %10175 = vst [vmem:[#allocation145_spill] sm:$0xff] %v6821_v51  ;;  %1570 = vmatpush.msra.mxu3 %v6836_v42  ;;  %v6839_v51 = vld [vmem:[#allocation7 + $0x20] sm:$0xff] }
 0x2c5   :  { %10176 = vst [vmem:[#allocation129_spill] sm:$0xff] %v6824_v44  ;;  %1511 = vmatpush.msra.mxu0 %v6839_v51  ;;  %v6842_v44 = vld [vmem:[#allocation7 + $0x28] sm:$0xff] }
 0x2c6   :  { %10177 = vst [vmem:[#allocation130_spill] sm:$0xff] %v6827_v13  ;;  %1531 = vmatpush.msrb.mxu1 %v6842_v44  ;;  %v6845_v13 = vld [vmem:[#allocation7 + $0x30] sm:$0xff] }
 0x2c7   :  { %10178 = vst [vmem:[#allocation131_spill] sm:$0xff] %v6830_v38  ;;  %1551 = vmatpush.msra.mxu2 %v6845_v13  ;;  %v6848_v38 = vld [vmem:[#allocation7 + $0x38] sm:$0xff] }
 0x2c8   :  { %10179 = vst [vmem:[#allocation132_spill] sm:$0xff] %v6833_v4  ;;  %1571 = vmatpush.msra.mxu3 %v6848_v38  ;;  %v6851_v4 = vld [vmem:[#allocation7] sm:$0xff] }
 0x2c9   :  { %10180 = vst [vmem:[#allocation133_spill] sm:$0xff] %v6836_v42  ;;  %1512 = vmatpush.msra.mxu0 %v6851_v4  ;;  %v6854_v42 = vld [vmem:[#allocation7 + $0x8] sm:$0xff] }
 0x2ca   :  { %10181 = vst [vmem:[#allocation134_spill] sm:$0xff] %v6839_v51  ;;  %1532 = vmatpush.msrb.mxu1 %v6854_v42  ;;  %v6857_v51 = vld [vmem:[#allocation7 + $0x10] sm:$0xff] }
 0x2cb   :  { %10182 = vst [vmem:[#allocation135_spill] sm:$0xff] %v6842_v44  ;;  %1552 = vmatpush.msra.mxu2 %v6857_v51  ;;  %v6860_v44 = vld [vmem:[#allocation7 + $0x18] sm:$0xff] }
 0x2cc   :  { %10183 = vst [vmem:[#allocation136_spill] sm:$0xff] %v6845_v13  ;;  %1572 = vmatpush.msra.mxu3 %v6860_v44  ;;  %v1045_v13 = vadd.f32 %v6645_v5, %v6370_v26 }
 0x2cd   :  { %10184 = vst [vmem:[#allocation137_spill] sm:$0xff] %v6848_v38  ;;  %v1065_v38 = vadd.f32 %v6647_v52, %v6372_v28 }
 0x2ce   :  { %10185 = vst [vmem:[#allocation138_spill] sm:$0xff] %v6851_v4 }
 0x2cf   :  { %10186 = vst [vmem:[#allocation139_spill] sm:$0xff] %v6854_v42 }
 0x2d0   :  { %10187 = vst [vmem:[#allocation140_spill] sm:$0xff] %v6857_v51  ;;  %v1085_v51 = vadd.f32 %v6653_v54, %v6378_v41 }
 0x2d1   :  { %10188 = vst [vmem:[#allocation142_spill] sm:$0xff] %v6860_v44 }
 0x31b   :  { %v1278_v46 = vpop.f32.mrf.mxu0  ;;  %v1298_v4 = vpop.f32.mrf.mxu1 }
 0x31c   :  { %v1341_v47 = vadd.f32 %v1278_v46, %v1045_v13  ;;  %v1342_v1 = vadd.f32 %v1298_v4, %v1065_v38 }
 0x31e   :  { %v4162_v59 = vmul.f32 -1.442695, %v1341_v47  ;;  %v4163_v42 = vmul.f32 -1.442695, %v1342_v1  ;;  %v1105_v1 = vadd.f32 %v6657_v48, %v6382_v0 }
 0x320   :  { %4285 = vpow2.f32 %v4162_v59 }
 0x321   :  { %4287 = vpow2.f32 %v4163_v42 }
 0x322   :  { %v1318_v57 = vpop.f32.mrf.mxu2  ;;  %v1338_v52 = vpop.f32.mrf.mxu3 }
 0x323   :  { %v1343_v55 = vadd.f32 %v1318_v57, %v1085_v51  ;;  %v1344_v4 = vadd.f32 %v1338_v52, %v1105_v1 }
 0x325   :  { %v4164_v44 = vmul.f32 -1.442695, %v1343_v55 }
 0x326   :  { %v4286_v36 = vpop.eup %4285 }
 0x327   :  { %v4288_v61 = vpop.eup %4287  ;;  %v1354_v5 = vadd.f32 1.0, %v4286_v36  ;;  %4289 = vpow2.f32 %v4164_v44 }
 0x328   :  { %v1355_v26 = vadd.f32 1.0, %v4288_v61 }
 0x329   :  { %4291 = vrcp.f32 %v1354_v5  ;;  %v1368_v13 = vand.u32 2147483648, %v1354_v5  ;;  %v1366_v44 = vand.u32 2147483647, %v1354_v5  ;;  %vm1362_vm12 = vweird.f32 %v1354_v5 }
 0x32a   :  { %4293 = vrcp.f32 %v1355_v26  ;;  %v1383_v36 = vand.u32 2147483648, %v1355_v26  ;;  %v1381_v41 = vand.u32 2147483647, %v1355_v26  ;;  %vm1377_vm13 = vweird.f32 %v1355_v26 }
 0x32b   :  { %vm1367_vm2 = vcmp.eq.f32.partialorder %v1366_v44, 8.507059e+37 }
 0x32c   :  { %vm1382_vm3 = vcmp.eq.f32.partialorder %v1381_v41, 8.507059e+37 }
 0x32d   :  { %v4290_v46 = vpop.eup %4289 }
 0x32e   :  { %v1356_v59 = vadd.f32 1.0, %v4290_v46  ;;  %v1369_v46 = vor.u32 1.1754944e-38, %v1368_v13 }
 0x32f   :  { %v4292_v47 = vpop.eup %4291 }
 0x330   :  { %v4294_v54 = vpop.eup %4293  ;;  %v1358_v42 = vmul.f32 %v4292_v47, %v1354_v5  ;;  %4295 = vrcp.f32 %v1356_v59  ;;  %vm1363_vm10 = vweird.f32 %v4292_v47  ;;  %v1398_v13 = vand.u32 2147483648, %v1356_v59 }
 0x331   :  { %v1373_v57 = vmul.f32 %v4294_v54, %v1355_v26  ;;  %4297 = vtanh.f32 %v1344_v4  ;;  %vm1378_vm11 = vweird.f32 %v4294_v54  ;;  %vm1364_vm14 = vmor %vm1362_vm12, %vm1363_vm10  ;;  %vm1392_vm5 = vweird.f32 %v1356_v59 }
 0x332   :  { %v1359_v55 = vsub.f32 1.0, %v1358_v42  ;;  %vm1379_vm15 = vmor %vm1377_vm13, %vm1378_vm11  ;;  %v1384_v42 = vor.u32 1.1754944e-38, %v1383_v36  ;;  %v1399_v44 = vor.u32 1.1754944e-38, %v1398_v13  ;;  %v6942_v13 = vld [vmem:[#allocation9 + $0x178] sm:$0xff] }
 0x333   :  { %v1374_v51 = vsub.f32 1.0, %v1373_v57 }
 0x334   :  { %v1360_v61 = vmul.f32 %v4292_v47, %v1359_v55 }
 0x335   :  { %v1375_v38 = vmul.f32 %v4294_v54, %v1374_v51 }
 0x336   :  { %v4296_v28 = vpop.eup %4295  ;;  %v1361_v48 = vadd.f32 %v4292_v47, %v1360_v61 }
 0x337   :  { %v1388_v52 = vmul.f32 %v4296_v28, %v1356_v59  ;;  %v1376_v1 = vadd.f32 %v4294_v54, %v1375_v38  ;;  %v4298_v4 = vpop.eup %4297  ;;  %vm1393_vm4 = vweird.f32 %v4296_v28  ;;  %v6899_v38 = vld [vmem:[#allocation9 + $0x1d0] sm:$0xff] }
 0x338   :  { %v1365_v57 = vsel %vm1364_vm14, %v4292_v47, %v1361_v48  ;;  %v1396_v47 = vand.u32 2147483647, %v1356_v59  ;;  %vm1394_vm6 = vmor %vm1392_vm5, %vm1393_vm4  ;;  %v6896_v59 = vld [vmem:[#allocation9 + $0x1c8] sm:$0xff]  ;;  %v6902_v48 = vld [vmem:[#allocation9 + $0x1d8] sm:$0xff] }
 0x339   :  { %v1389_v0 = vsub.f32 1.0, %v1388_v52  ;;  %v1370_v55 = vsel %vm1367_vm2, %v1369_v46, %v1365_v57  ;;  %v1380_v58 = vsel %vm1379_vm15, %v4294_v54, %v1376_v1  ;;  %v6905_v52 = vld [vmem:[#allocation9 + $0x1a0] sm:$0xff]  ;;  %v6908_v46 = vld [vmem:[#allocation9 + $0x1a8] sm:$0xff]  ;;  %v6911_v1 = vld [vmem:[#allocation9 + $0x1b0] sm:$0xff] }
 0x33a   :  { %v1385_v51 = vsel %vm1382_vm3, %v1384_v42, %v1380_v58  ;;  %v1404_v53 = vmul.f32 %v4298_v4, %v1370_v55  ;;  %vm1397_vm7 = vcmp.eq.f32.partialorder %v1396_v47, 8.507059e+37  ;;  %v6914_v42 = vld [vmem:[#allocation9 + $0x1b8] sm:$0xff]  ;;  %v6921_v57 = vld [vmem:[#allocation9 + $0x180] sm:$0xff]  ;;  %v6924_v4 = vld [vmem:[#allocation9 + $0x188] sm:$0xff] }
 0x33b   :  { %v1390_v3 = vmul.f32 %v4296_v28, %v1389_v0  ;;  %v1403_v61 = vmul.f32 %v1385_v51, %v6386_v35  ;;  %v6881_v0 = vld [vmem:[#allocation9 + $0x1e0] sm:$0xff]  ;;  %v6884_v35 = vld [vmem:[#allocation9 + $0x1e8] sm:$0xff]  ;;  %v6927_v55 = vld [vmem:[#allocation9 + $0x190] sm:$0xff] }
 0x33c   :  { %v6930_v51 = vld [vmem:[#allocation9 + $0x198] sm:$0xff]  ;;  %v6945_v47 = vld [vmem:[#allocation9 + $0x140] sm:$0xff] }
 0x33d   :  { %v6872_v5 = vadd.f32 %v1404_v53, %v1403_v61  ;;  %v1391_v26 = vadd.f32 %v4296_v28, %v1390_v3  ;;  %v6890_v3 = vld [vmem:[#allocation9 + $0x1f8] sm:$0xff]  ;;  %v6893_v53 = vld [vmem:[#allocation9 + $0x1c0] sm:$0xff]  ;;  %10190 = vst [vmem:[#allocation144_spill] sm:$0xff] %v6945_v47 }
 0x33e   :  { %v6933_v61 = vld [vmem:[#allocation9 + $0x160] sm:$0xff] }
 0x33f   :  { %4299 = vtanh.f32 %v6872_v5  ;;  %v1395_v36 = vsel %vm1394_vm6, %v4296_v28, %v1391_v26  ;;  %v6887_v28 = vld [vmem:[#allocation9 + $0x1f0] sm:$0xff] }
 0x340   :  { %v1400_v41 = vsel %vm1397_vm7, %v1399_v44, %v1395_v36  ;;  %v6939_v26 = vld [vmem:[#allocation9 + $0x170] sm:$0xff]  ;;  %v6948_v36 = vld [vmem:[#allocation9 + $0x148] sm:$0xff] }
 0x341   :  { %10191 = vst [vmem:[#allocation146_spill] sm:$0xff] %v6948_v36  ;;  %v6951_v44 = vld [vmem:[#allocation9 + $0x150] sm:$0xff] }
 0x342   :  { %10192 = vst [vmem:[#allocation147_spill] sm:$0xff] %v6951_v44 }
 0x345   :  { %v4300_v54 = vpop.eup %4299 }
 0x346   :  { %v6875_v58 = vmul.f32 %v4300_v54, %v1400_v41  ;;  %v6954_v54 = vld [vmem:[#allocation9 + $0x158] sm:$0xff]  ;;  %v6957_v41 = vld [vmem:[#allocation9 + $0x120] sm:$0xff] }
 0x347   :  { %10193 = vst [vmem:[#allocation148_spill] sm:$0xff] %v6954_v54 }
 0x348   :  { %10189 = vst [vmem:[#allocation143_spill] sm:$0xff] %v6875_v58  ;;  %1426 = vmatmul.f32.vlgmr.msrb.gmra.mxu0 %v6875_v58  ;;  %1446 = vmatmul.f32.vlgmr.msra.gmra.mxu1 %v6875_v58 }
 0x349   :  { %1466 = vmatmul.f32.vlgmr.msrb.gmra.mxu2 %v6875_v58  ;;  %1486 = vmatmul.f32.vlgmr.msrb.gmra.mxu3 %v6875_v58  ;;  %10194 = vst [vmem:[#allocation149_spill] sm:$0xff] %v6957_v41  ;;  %v6960_v58 = vld [vmem:[#allocation9 + $0x128] sm:$0xff] }
 0x34a   :  { %1644 = vmatpush.msrb.mxu0 %v6881_v0  ;;  %1664 = vmatpush.msra.mxu1 %v6884_v35  ;;  %10195 = vst [vmem:[#allocation150_spill] sm:$0xff] %v6960_v58 }
 0x34b   :  { %1684 = vmatpush.msrb.mxu2 %v6887_v28  ;;  %1704 = vmatpush.msrb.mxu3 %v6890_v3 }
 0x34c   :  { %1645 = vmatpush.msrb.mxu0 %v6893_v53  ;;  %1665 = vmatpush.msra.mxu1 %v6896_v59 }
 0x34d   :  { %1685 = vmatpush.msrb.mxu2 %v6899_v38  ;;  %1705 = vmatpush.msrb.mxu3 %v6902_v48 }
 0x34e   :  { %1646 = vmatpush.msrb.mxu0 %v6905_v52  ;;  %1666 = vmatpush.msra.mxu1 %v6908_v46 }
 0x34f   :  { %1686 = vmatpush.msrb.mxu2 %v6911_v1  ;;  %1706 = vmatpush.msrb.mxu3 %v6914_v42 }
 0x350   :  { %1513 = vmatmul.f32.vlgmr.msra.gmra.mxu0 %v6665_v34  ;;  %1533 = vmatmul.f32.vlgmr.msrb.gmra.mxu1 %v6665_v34 }
 0x351   :  { %1553 = vmatmul.f32.vlgmr.msra.gmra.mxu2 %v6665_v34  ;;  %1573 = vmatmul.f32.vlgmr.msra.gmra.mxu3 %v6665_v34  ;;  %v6936_v34 = vld [vmem:[#allocation9 + $0x168] sm:$0xff] }
 0x352   :  { %1647 = vmatpush.msrb.mxu0 %v6921_v57  ;;  %1667 = vmatpush.msra.mxu1 %v6924_v4 }
 0x353   :  { %1687 = vmatpush.msrb.mxu2 %v6927_v55  ;;  %1707 = vmatpush.msrb.mxu3 %v6930_v51 }
 0x354   :  { %1648 = vmatpush.msrb.mxu0 %v6933_v61  ;;  %1668 = vmatpush.msra.mxu1 %v6936_v34 }
 0x355   :  { %1688 = vmatpush.msrb.mxu2 %v6939_v26  ;;  %1708 = vmatpush.msrb.mxu3 %v6942_v13 }
 0x356   :  { %1649 = vmatpush.msrb.mxu0 %v6945_v47  ;;  %1669 = vmatpush.msra.mxu1 %v6948_v36  ;;  %v6963_v47 = vld [vmem:[#allocation9 + $0x130] sm:$0xff]  ;;  %v6966_v36 = vld [vmem:[#allocation9 + $0x138] sm:$0xff] }
 0x357   :  { %1689 = vmatpush.msrb.mxu2 %v6951_v44  ;;  %1709 = vmatpush.msrb.mxu3 %v6954_v54  ;;  %10196 = vst [vmem:[#allocation152_spill] sm:$0xff] %v6963_v47  ;;  %v6969_v44 = vld [vmem:[#allocation9 + $0x100] sm:$0xff]  ;;  %v6972_v54 = vld [vmem:[#allocation9 + $0x108] sm:$0xff] }
 0x358   :  { %1650 = vmatpush.msrb.mxu0 %v6957_v41  ;;  %1670 = vmatpush.msra.mxu1 %v6960_v58  ;;  %10197 = vst [vmem:[#allocation153_spill] sm:$0xff] %v6966_v36  ;;  %v6975_v41 = vld [vmem:[#allocation9 + $0x110] sm:$0xff]  ;;  %v6978_v58 = vld [vmem:[#allocation9 + $0x118] sm:$0xff] }
 0x359   :  { %1690 = vmatpush.msrb.mxu2 %v6963_v47  ;;  %1710 = vmatpush.msrb.mxu3 %v6966_v36  ;;  %10198 = vst [vmem:[#allocation154_spill] sm:$0xff] %v6969_v44  ;;  %v6981_v47 = vld [vmem:[#allocation9 + $0xe0] sm:$0xff]  ;;  %v6984_v36 = vld [vmem:[#allocation9 + $0xe8] sm:$0xff] }
 0x35a   :  { %1651 = vmatpush.msrb.mxu0 %v6969_v44  ;;  %10199 = vst [vmem:[#allocation156_spill] sm:$0xff] %v6972_v54  ;;  %1671 = vmatpush.msra.mxu1 %v6972_v54  ;;  %v6987_v44 = vld [vmem:[#allocation9 + $0xf0] sm:$0xff]  ;;  %v6990_v54 = vld [vmem:[#allocation9 + $0xf8] sm:$0xff] }
 0x35b   :  { %10200 = vst [vmem:[#allocation157_spill] sm:$0xff] %v6975_v41  ;;  %1691 = vmatpush.msrb.mxu2 %v6975_v41  ;;  %1711 = vmatpush.msrb.mxu3 %v6978_v58  ;;  %v6993_v41 = vld [vmem:[#allocation9 + $0xc0] sm:$0xff] }
 0x35c   :  { %10201 = vst [vmem:[#allocation158_spill] sm:$0xff] %v6978_v58  ;;  %1652 = vmatpush.msrb.mxu0 %v6981_v47  ;;  %1672 = vmatpush.msra.mxu1 %v6984_v36  ;;  %v6996_v58 = vld [vmem:[#allocation9 + $0xc8] sm:$0xff] }
 0x35d   :  { %10202 = vst [vmem:[#allocation159_spill] sm:$0xff] %v6981_v47  ;;  %1692 = vmatpush.msrb.mxu2 %v6987_v44  ;;  %1712 = vmatpush.msrb.mxu3 %v6990_v54  ;;  %v6999_v47 = vld [vmem:[#allocation9 + $0xd0] sm:$0xff] }
 0x35e   :  { %10203 = vst [vmem:[#allocation161_spill] sm:$0xff] %v6984_v36  ;;  %1653 = vmatpush.msrb.mxu0 %v6993_v41  ;;  %1673 = vmatpush.msra.mxu1 %v6996_v58  ;;  %v7002_v36 = vld [vmem:[#allocation9 + $0xd8] sm:$0xff] }
 0x35f   :  { %10204 = vst [vmem:[#allocation162_spill] sm:$0xff] %v6987_v44  ;;  %1693 = vmatpush.msrb.mxu2 %v6999_v47  ;;  %1713 = vmatpush.msrb.mxu3 %v7002_v36  ;;  %v7005_v44 = vld [vmem:[#allocation9 + $0xa0] sm:$0xff] }
 0x360   :  { %10205 = vst [vmem:[#allocation163_spill] sm:$0xff] %v6990_v54  ;;  %1654 = vmatpush.msrb.mxu0 %v7005_v44  ;;  %v7008_v54 = vld [vmem:[#allocation9 + $0xa8] sm:$0xff] }
 0x361   :  { %10206 = vst [vmem:[#allocation164_spill] sm:$0xff] %v6993_v41  ;;  %1674 = vmatpush.msra.mxu1 %v7008_v54  ;;  %v7011_v41 = vld [vmem:[#allocation9 + $0xb0] sm:$0xff] }
 0x362   :  { %10207 = vst [vmem:[#allocation165_spill] sm:$0xff] %v6996_v58  ;;  %1694 = vmatpush.msrb.mxu2 %v7011_v41  ;;  %v7014_v58 = vld [vmem:[#allocation9 + $0xb8] sm:$0xff] }
 0x363   :  { %10208 = vst [vmem:[#allocation167_spill] sm:$0xff] %v6999_v47  ;;  %1714 = vmatpush.msrb.mxu3 %v7014_v58  ;;  %v7017_v47 = vld [vmem:[#allocation9 + $0x80] sm:$0xff] }
 0x364   :  { %10209 = vst [vmem:[#allocation168_spill] sm:$0xff] %v7002_v36  ;;  %1655 = vmatpush.msrb.mxu0 %v7017_v47  ;;  %v7020_v36 = vld [vmem:[#allocation9 + $0x88] sm:$0xff] }
 0x365   :  { %10210 = vst [vmem:[#allocation169_spill] sm:$0xff] %v7005_v44  ;;  %1675 = vmatpush.msra.mxu1 %v7020_v36  ;;  %v7023_v44 = vld [vmem:[#allocation9 + $0x90] sm:$0xff] }
 0x366   :  { %10211 = vst [vmem:[#allocation170_spill] sm:$0xff] %v7008_v54  ;;  %1695 = vmatpush.msrb.mxu2 %v7023_v44  ;;  %v7026_v54 = vld [vmem:[#allocation9 + $0x98] sm:$0xff] }
 0x367   :  { %10212 = vst [vmem:[#allocation171_spill] sm:$0xff] %v7011_v41  ;;  %1715 = vmatpush.msrb.mxu3 %v7026_v54  ;;  %v7029_v41 = vld [vmem:[#allocation9 + $0x60] sm:$0xff] }
 0x368   :  { %10213 = vst [vmem:[#allocation172_spill] sm:$0xff] %v7014_v58  ;;  %1656 = vmatpush.msrb.mxu0 %v7029_v41  ;;  %v7032_v58 = vld [vmem:[#allocation9 + $0x68] sm:$0xff] }
 0x369   :  { %10214 = vst [vmem:[#allocation173_spill] sm:$0xff] %v7017_v47  ;;  %1676 = vmatpush.msra.mxu1 %v7032_v58  ;;  %v7035_v47 = vld [vmem:[#allocation9 + $0x70] sm:$0xff] }
 0x36a   :  { %10215 = vst [vmem:[#allocation174_spill] sm:$0xff] %v7020_v36  ;;  %1696 = vmatpush.msrb.mxu2 %v7035_v47  ;;  %v7038_v36 = vld [vmem:[#allocation9 + $0x78] sm:$0xff] }
 0x36b   :  { %10216 = vst [vmem:[#allocation175_spill] sm:$0xff] %v7023_v44  ;;  %1716 = vmatpush.msrb.mxu3 %v7038_v36  ;;  %v7041_v44 = vld [vmem:[#allocation9 + $0x40] sm:$0xff] }
 0x36c   :  { %10217 = vst [vmem:[#allocation176_spill] sm:$0xff] %v7026_v54  ;;  %1657 = vmatpush.msrb.mxu0 %v7041_v44  ;;  %v7044_v54 = vld [vmem:[#allocation9 + $0x48] sm:$0xff] }
 0x36d   :  { %10218 = vst [vmem:[#allocation177_spill] sm:$0xff] %v7029_v41  ;;  %1677 = vmatpush.msra.mxu1 %v7044_v54  ;;  %v7047_v41 = vld [vmem:[#allocation9 + $0x50] sm:$0xff] }
 0x36e   :  { %10219 = vst [vmem:[#allocation178_spill] sm:$0xff] %v7032_v58  ;;  %1697 = vmatpush.msrb.mxu2 %v7047_v41  ;;  %v7050_v58 = vld [vmem:[#allocation9 + $0x58] sm:$0xff] }
 0x36f   :  { %10220 = vst [vmem:[#allocation179_spill] sm:$0xff] %v7035_v47  ;;  %1717 = vmatpush.msrb.mxu3 %v7050_v58  ;;  %v7053_v47 = vld [vmem:[#allocation9 + $0x20] sm:$0xff] }
 0x370   :  { %10221 = vst [vmem:[#allocation180_spill] sm:$0xff] %v7038_v36  ;;  %1658 = vmatpush.msrb.mxu0 %v7053_v47  ;;  %v7056_v36 = vld [vmem:[#allocation9 + $0x28] sm:$0xff] }
 0x371   :  { %10222 = vst [vmem:[#allocation181_spill] sm:$0xff] %v7041_v44  ;;  %1678 = vmatpush.msra.mxu1 %v7056_v36  ;;  %v7059_v44 = vld [vmem:[#allocation9 + $0x30] sm:$0xff] }
 0x372   :  { %10223 = vst [vmem:[#allocation182_spill] sm:$0xff] %v7044_v54  ;;  %1698 = vmatpush.msrb.mxu2 %v7059_v44  ;;  %v7062_v54 = vld [vmem:[#allocation9 + $0x38] sm:$0xff] }
 0x373   :  { %10224 = vst [vmem:[#allocation183_spill] sm:$0xff] %v7047_v41  ;;  %1718 = vmatpush.msrb.mxu3 %v7062_v54  ;;  %v7065_v41 = vld [vmem:[#allocation9] sm:$0xff] }
 0x374   :  { %10225 = vst [vmem:[#allocation184_spill] sm:$0xff] %v7050_v58  ;;  %1659 = vmatpush.msrb.mxu0 %v7065_v41  ;;  %v7068_v58 = vld [vmem:[#allocation9 + $0x8] sm:$0xff] }
 0x375   :  { %10226 = vst [vmem:[#allocation185_spill] sm:$0xff] %v7053_v47  ;;  %1679 = vmatpush.msra.mxu1 %v7068_v58  ;;  %v7071_v47 = vld [vmem:[#allocation9 + $0x10] sm:$0xff] }
 0x376   :  { %10227 = vst [vmem:[#allocation186_spill] sm:$0xff] %v7056_v36  ;;  %1699 = vmatpush.msrb.mxu2 %v7071_v47  ;;  %v7074_v36 = vld [vmem:[#allocation9 + $0x18] sm:$0xff]  ;;  %1793 = vmatpush.msra.mxu0 %v6463_v37  ;;  %v7105_v37 = vld [vmem:[#allocation10 + $0x100] sm:$0xff] }
 0x377   :  { %1719 = vmatpush.msrb.mxu3 %v7074_v36  ;;  %1813 = vmatpush.msrb.mxu1 %v6466_v6  ;;  %10228 = vst [vmem:[#allocation187_spill] sm:$0xff] %v7105_v37  ;;  %v10229_v6 = vld [vmem:[#allocation48_spill] sm:$0xff] }
 0x378   :  { %1833 = vmatpush.msra.mxu2 %v6469_v10  ;;  %1794 = vmatpush.msra.mxu0 %v6475_v9  ;;  %v10230_v10 = vld [vmem:[#allocation33_spill] sm:$0xff]  ;;  %v10232_v9 = vld [vmem:[#allocation34_spill] sm:$0xff] }
 0x379   :  { %1853 = vmatpush.msra.mxu3 %v6472_v63  ;;  %1814 = vmatpush.msrb.mxu1 %v6478_v23  ;;  %v7111_v63 = vld [vmem:[#allocation10 + $0xe0] sm:$0xff]  ;;  %v10233_v23 = vld [vmem:[#allocation27_spill] sm:$0xff] }
 0x37a   :  { %1834 = vmatpush.msra.mxu2 %v6481_v43  ;;  %1795 = vmatpush.msra.mxu0 %v6487_v62  ;;  %10231 = vst [vmem:[#allocation188_spill] sm:$0xff] %v7111_v63  ;;  %v10234_v43 = vld [vmem:[#allocation52_spill] sm:$0xff] }
 0x37b   :  { %1854 = vmatpush.msra.mxu3 %v6484_v17  ;;  %1815 = vmatpush.msrb.mxu1 %v6490_v56  ;;  %v7117_v17 = vld [vmem:[#allocation10 + $0xc0] sm:$0xff]  ;;  %v10236_v62 = vld [vmem:[#allocation36_spill] sm:$0xff] }
 0x37c   :  { %1835 = vmatpush.msra.mxu2 %v6493_v2  ;;  %1796 = vmatpush.msra.mxu0 %v6499_v12  ;;  %10235 = vst [vmem:[#allocation189_spill] sm:$0xff] %v7117_v17  ;;  %v10237_v56 = vld [vmem:[#allocation37_spill] sm:$0xff]  ;;  %v10238_v2 = vld [vmem:[#allocation28_spill] sm:$0xff]  ;;  %v10240_v12 = vld [vmem:[#allocation54_spill] sm:$0xff] }
 0x37d   :  { %1855 = vmatpush.msra.mxu3 %v6496_v50  ;;  %1816 = vmatpush.msrb.mxu1 %v6502_v14  ;;  %v7123_v50 = vld [vmem:[#allocation10 + $0xa0] sm:$0xff]  ;;  %v10241_v14 = vld [vmem:[#allocation39_spill] sm:$0xff] }
 0x37e   :  { %1836 = vmatpush.msra.mxu2 %v6505_v15  ;;  %1797 = vmatpush.msra.mxu0 %v6511_v16  ;;  %10239 = vst [vmem:[#allocation190_spill] sm:$0xff] %v7123_v50  ;;  %v10242_v15 = vld [vmem:[#allocation40_spill] sm:$0xff]  ;;  %v10244_v16 = vld [vmem:[#allocation29_spill] sm:$0xff] }
 0x37f   :  { %1856 = vmatpush.msra.mxu3 %v6508_v39  ;;  %1817 = vmatpush.msrb.mxu1 %v6514_v49  ;;  %v7129_v39 = vld [vmem:[#allocation10 + $0x80] sm:$0xff]  ;;  %v10245_v49 = vld [vmem:[#allocation58_spill] sm:$0xff] }
 0x380   :  { %1837 = vmatpush.msra.mxu2 %v6517_v18  ;;  %1798 = vmatpush.msra.mxu0 %v6523_v20  ;;  %10243 = vst [vmem:[#allocation191_spill] sm:$0xff] %v7129_v39  ;;  %v10246_v18 = vld [vmem:[#allocation42_spill] sm:$0xff]  ;;  %v10248_v20 = vld [vmem:[#allocation32_spill] sm:$0xff] }
 0x381   :  { %1857 = vmatpush.msra.mxu3 %v6520_v19  ;;  %1818 = vmatpush.msrb.mxu1 %v6526_v21  ;;  %v10247_v19 = vld [vmem:[#allocation43_spill] sm:$0xff]  ;;  %v10249_v21 = vld [vmem:[#allocation62_spill] sm:$0xff] }
 0x382   :  { %1838 = vmatpush.msra.mxu2 %v6529_v22  ;;  %1799 = vmatpush.msra.mxu0 %v6535_v25  ;;  %v10250_v22 = vld [vmem:[#allocation46_spill] sm:$0xff]  ;;  %v10252_v25 = vld [vmem:[#allocation35_spill] sm:$0xff] }
 0x383   :  { %1858 = vmatpush.msra.mxu3 %v6532_v24  ;;  %1819 = vmatpush.msrb.mxu1 %v6538_v27  ;;  %v10251_v24 = vld [vmem:[#allocation47_spill] sm:$0xff]  ;;  %v10253_v27 = vld [vmem:[#allocation66_spill] sm:$0xff] }
 0x384   :  { %1839 = vmatpush.msra.mxu2 %v6541_v29  ;;  %1800 = vmatpush.msra.mxu0 %v7105_v37  ;;  %v10254_v29 = vld [vmem:[#allocation50_spill] sm:$0xff] }
 0x385   :  { %1859 = vmatpush.msra.mxu3 %v6544_v31  ;;  %1820 = vmatpush.msrb.mxu1 %v6548_v32  ;;  %v10255_v31 = vld [vmem:[#allocation51_spill] sm:$0xff]  ;;  %v10256_v32 = vld [vmem:[#allocation38_spill] sm:$0xff] }
 0x386   :  { %1840 = vmatpush.msra.mxu2 %v10229_v6  ;;  %1801 = vmatpush.msra.mxu0 %v7111_v63  ;;  %v10257_v6 = vld [vmem:[#allocation69_spill] sm:$0xff] }
 0x387   :  { %1860 = vmatpush.msra.mxu3 %v10230_v10  ;;  %1821 = vmatpush.msrb.mxu1 %v10232_v9  ;;  %v10258_v10 = vld [vmem:[#allocation55_spill] sm:$0xff]  ;;  %v10259_v9 = vld [vmem:[#allocation56_spill] sm:$0xff] }
 0x388   :  { %1841 = vmatpush.msra.mxu2 %v10233_v23  ;;  %1802 = vmatpush.msra.mxu0 %v7117_v17  ;;  %v10260_v23 = vld [vmem:[#allocation41_spill] sm:$0xff] }
 0x389   :  { %1861 = vmatpush.msra.mxu3 %v10234_v43  ;;  %1822 = vmatpush.msrb.mxu1 %v10236_v62  ;;  %v10261_v43 = vld [vmem:[#allocation73_spill] sm:$0xff]  ;;  %v10262_v62 = vld [vmem:[#allocation59_spill] sm:$0xff] }
 0x38a   :  { %1842 = vmatpush.msra.mxu2 %v10237_v56  ;;  %1803 = vmatpush.msra.mxu0 %v7123_v50 }
 0x38b   :  { %1862 = vmatpush.msra.mxu3 %v10238_v2  ;;  %1823 = vmatpush.msrb.mxu1 %v10240_v12  ;;  %v10263_v12 = vld [vmem:[#allocation127_spill] sm:$0xff] }
 0x38c   :  { %1843 = vmatpush.msra.mxu2 %v10241_v14  ;;  %1804 = vmatpush.msra.mxu0 %v7129_v39  ;;  %v10264_v14 = vld [vmem:[#allocation104_spill] sm:$0xff] }
 0x38d   :  { %1863 = vmatpush.msra.mxu3 %v10242_v15  ;;  %1824 = vmatpush.msrb.mxu1 %v10244_v16  ;;  %v271_v15 = vadd.f32 %v10264_v14, %v10263_v12  ;;  %v10265_v16 = vld [vmem:[#allocation160_spill] sm:$0xff] }
 0x38e   :  { %1844 = vmatpush.msra.mxu2 %v10245_v49  ;;  %1805 = vmatpush.msra.mxu0 %v10247_v19  ;;  %v10266_v49 = vld [vmem:[#allocation108_spill] sm:$0xff] }
 0x38f   :  { %1864 = vmatpush.msra.mxu3 %v10246_v18  ;;  %1825 = vmatpush.msrb.mxu1 %v10248_v20  ;;  %v312_v18 = vadd.f32 %v10266_v49, %v10265_v16 }
 0x390   :  { %1845 = vmatpush.msra.mxu2 %v10249_v21  ;;  %1806 = vmatpush.msra.mxu0 %v10251_v24 }
 0x391   :  { %1865 = vmatpush.msra.mxu3 %v10250_v22  ;;  %1826 = vmatpush.msrb.mxu1 %v10252_v25 }
 0x392   :  { %1846 = vmatpush.msra.mxu2 %v10253_v27  ;;  %1807 = vmatpush.msra.mxu0 %v10255_v31  ;;  %v10268_v31 = vld [vmem:[#allocation106_spill] sm:$0xff] }
 0x393   :  { %1866 = vmatpush.msra.mxu3 %v10254_v29  ;;  %1827 = vmatpush.msrb.mxu1 %v10256_v32  ;;  %v10267_v29 = vld [vmem:[#allocation155_spill] sm:$0xff] }
 0x394   :  { %1847 = vmatpush.msra.mxu2 %v10257_v6  ;;  %1808 = vmatpush.msra.mxu0 %v10259_v9  ;;  %v353_v32 = vadd.f32 %v10268_v31, %v10267_v29 }
 0x395   :  { %1867 = vmatpush.msra.mxu3 %v10258_v10  ;;  %1828 = vmatpush.msrb.mxu1 %v10260_v23 }
 0x396   :  { %1848 = vmatpush.msra.mxu2 %v10261_v43 }
 0x397   :  { %1868 = vmatpush.msra.mxu3 %v10262_v62 }
 0x3c5   :  { %v7151_v56 = vpop.f32.mrf.mxu0  ;;  %v7153_v2 = vpop.f32.mrf.mxu1 }
 0x3cc   :  { %v7159_v19 = vpop.f32.mrf.mxu2  ;;  %v7163_v6 = vpop.f32.mrf.mxu3 }
 0x3cd   :  { %v1514_v20 = vpop.f32.mrf.mxu0  ;;  %v1534_v21 = vpop.f32.mrf.mxu1 }
 0x3ce   :  { %v1577_v22 = vadd.f32 %v1514_v20, %v271_v15  ;;  %v1578_v24 = vadd.f32 %v1534_v21, %v312_v18  ;;  %v10269_v20 = vld [vmem:[#allocation193_spill] sm:$0xff] }
 0x3cf   :  { %v10270_v21 = vld [vmem:[#allocation113_spill] sm:$0xff] }
 0x3d0   :  { %v4165_v25 = vmul.f32 -1.442695, %v1577_v22  ;;  %v4166_v27 = vmul.f32 -1.442695, %v1578_v24  ;;  %v394_v22 = vadd.f32 %v10270_v21, %v10269_v20 }
 0x3d2   :  { %4301 = vpow2.f32 %v4165_v25 }
 0x3d3   :  { %4303 = vpow2.f32 %v4166_v27 }
 0x3d4   :  { %v1554_v10 = vpop.f32.mrf.mxu2  ;;  %v1574_v15 = vpop.f32.mrf.mxu3 }
 0x3d5   :  { %v1579_v9 = vadd.f32 %v1554_v10, %v353_v32  ;;  %v1580_v27 = vadd.f32 %v1574_v15, %v394_v22 }
 0x3d7   :  { %v4167_v23 = vmul.f32 -1.442695, %v1579_v9 }
 0x3d8   :  { %v4302_v43 = vpop.eup %4301 }
 0x3d9   :  { %v4304_v62 = vpop.eup %4303  ;;  %v1590_v14 = vadd.f32 1.0, %v4302_v43  ;;  %4305 = vpow2.f32 %v4167_v23 }
 0x3da   :  { %v1591_v49 = vadd.f32 1.0, %v4304_v62 }
 0x3db   :  { %4307 = vrcp.f32 %v1590_v14  ;;  %v1604_v16 = vand.u32 2147483648, %v1590_v14  ;;  %v1602_v62 = vand.u32 2147483647, %v1590_v14  ;;  %vm1598_vm10 = vweird.f32 %v1590_v14 }
 0x3dc   :  { %4309 = vrcp.f32 %v1591_v49  ;;  %v1619_v23 = vand.u32 2147483648, %v1591_v49  ;;  %v1617_v39 = vand.u32 2147483647, %v1591_v49  ;;  %vm1613_vm11 = vweird.f32 %v1591_v49 }
 0x3dd   :  { %vm1603_vm14 = vcmp.eq.f32.partialorder %v1602_v62, 8.507059e+37  ;;  %v10284_v62 = vld [vmem:[#allocation57_spill] sm:$0xff] }
 0x3de   :  { %vm1618_vm15 = vcmp.eq.f32.partialorder %v1617_v39, 8.507059e+37 }
 0x3df   :  { %v4306_v18 = vpop.eup %4305 }
 0x3e0   :  { %v1592_v24 = vadd.f32 1.0, %v4306_v18  ;;  %v1605_v18 = vor.u32 1.1754944e-38, %v1604_v16 }
 0x3e1   :  { %v4308_v25 = vpop.eup %4307 }
 0x3e2   :  { %v4310_v31 = vpop.eup %4309  ;;  %v1594_v29 = vmul.f32 %v4308_v25, %v1590_v14  ;;  %4311 = vrcp.f32 %v1592_v24  ;;  %vm1599_vm8 = vweird.f32 %v4308_v25  ;;  %v1634_v16 = vand.u32 2147483648, %v1592_v24 }
 0x3e3   :  { %v1609_v32 = vmul.f32 %v4310_v31, %v1591_v49  ;;  %4313 = vtanh.f32 %v1580_v27  ;;  %vm1614_vm9 = vweird.f32 %v4310_v31  ;;  %vm1600_vm12 = vmor %vm1598_vm10, %vm1599_vm8  ;;  %vm1628_vm3 = vweird.f32 %v1592_v24 }
 0x3e4   :  { %v1595_v10 = vsub.f32 1.0, %v1594_v29  ;;  %vm1615_vm13 = vmor %vm1613_vm11, %vm1614_vm9  ;;  %v1620_v29 = vor.u32 1.1754944e-38, %v1619_v23  ;;  %v1635_v23 = vor.u32 1.1754944e-38, %v1634_v16  ;;  %v10296_v16 = vld [vmem:[#allocation70_spill] sm:$0xff] }
 0x3e5   :  { %v1610_v9 = vsub.f32 1.0, %v1609_v32 }
 0x3e6   :  { %v1596_v43 = vmul.f32 %v4308_v25, %v1595_v10 }
 0x3e7   :  { %v1611_v12 = vmul.f32 %v4310_v31, %v1610_v9 }
 0x3e8   :  { %v4312_v50 = vpop.eup %4311  ;;  %v1597_v21 = vadd.f32 %v4308_v25, %v1596_v43 }
 0x3e9   :  { %v1624_v15 = vmul.f32 %v4312_v50, %v1592_v24  ;;  %v1612_v22 = vadd.f32 %v4310_v31, %v1611_v12  ;;  %v4314_v27 = vpop.eup %4313  ;;  %vm1629_vm2 = vweird.f32 %v4312_v50  ;;  %v1632_v12 = vand.u32 2147483647, %v1592_v24  ;;  %v10283_v24 = vld [vmem:[#allocation72_spill] sm:$0xff] }
 0x3ea   :  { %v1601_v32 = vsel %vm1600_vm12, %v4308_v25, %v1597_v21  ;;  %vm1630_vm4 = vmor %vm1628_vm3, %vm1629_vm2  ;;  %v10285_v21 = vld [vmem:[#allocation88_spill] sm:$0xff] }
 0x3eb   :  { %v1625_v20 = vsub.f32 1.0, %v1624_v15  ;;  %v1606_v10 = vsel %vm1603_vm14, %v1605_v18, %v1601_v32  ;;  %v1616_v17 = vsel %vm1615_vm13, %v4310_v31, %v1612_v22  ;;  %vm1633_vm5 = vcmp.eq.f32.partialorder %v1632_v12, 8.507059e+37  ;;  %v10286_v15 = vld [vmem:[#allocation75_spill] sm:$0xff]  ;;  %v10287_v18 = vld [vmem:[#allocation76_spill] sm:$0xff]  ;;  %v10288_v22 = vld [vmem:[#allocation61_spill] sm:$0xff] }
 0x3ec   :  { %v1621_v9 = vsel %vm1618_vm15, %v1620_v29, %v1616_v17  ;;  %v1640_v63 = vmul.f32 %v4314_v27, %v1606_v10  ;;  %v10289_v29 = vld [vmem:[#allocation91_spill] sm:$0xff]  ;;  %v10291_v27 = vld [vmem:[#allocation80_spill] sm:$0xff]  ;;  %v10292_v10 = vld [vmem:[#allocation65_spill] sm:$0xff] }
 0x3ed   :  { %v1626_v37 = vmul.f32 %v4312_v50, %v1625_v20  ;;  %v1639_v43 = vmul.f32 %v1621_v9, %v6662_v60  ;;  %v10271_v60 = vld [vmem:[#allocation60_spill] sm:$0xff]  ;;  %v10282_v20 = vld [vmem:[#allocation71_spill] sm:$0xff]  ;;  %v10293_v9 = vld [vmem:[#allocation94_spill] sm:$0xff] }
 0x3ee   :  { %v10290_v32 = vld [vmem:[#allocation79_spill] sm:$0xff]  ;;  %v10297_v12 = vld [vmem:[#allocation97_spill] sm:$0xff] }
 0x3ef   :  { %v7168_v14 = vadd.f32 %v1640_v63, %v1639_v43  ;;  %v1627_v49 = vadd.f32 %v4312_v50, %v1626_v37  ;;  %v10272_v37 = vld [vmem:[#allocation45_spill] sm:$0xff]  ;;  %v10294_v43 = vld [vmem:[#allocation83_spill] sm:$0xff] }
 0x3f0   :  { %v10273_v63 = vld [vmem:[#allocation77_spill] sm:$0xff] }
 0x3f1   :  { %4315 = vtanh.f32 %v7168_v14  ;;  %v1631_v25 = vsel %vm1630_vm4, %v4312_v50, %v1627_v49  ;;  %v10274_v50 = vld [vmem:[#allocation63_spill] sm:$0xff]  ;;  %v10295_v49 = vld [vmem:[#allocation84_spill] sm:$0xff] }
 0x3f2   :  { %v1636_v39 = vsel %vm1633_vm5, %v1635_v23, %v1631_v25  ;;  %v10298_v25 = vld [vmem:[#allocation86_spill] sm:$0xff]  ;;  %v10299_v23 = vld [vmem:[#allocation87_spill] sm:$0xff] }
 0x3f7   :  { %v4316_v31 = vpop.eup %4315 }
 0x3f8   :  { %v7171_v17 = vmul.f32 %v4316_v31, %v1636_v39  ;;  %v10300_v31 = vld [vmem:[#allocation74_spill] sm:$0xff] }
 0x3f9   :  { %v10301_v39 = vld [vmem:[#allocation98_spill] sm:$0xff] }
 0x3fa   :  { %1660 = vmatmul.f32.vlgmr.msrb.gmra.mxu0 %v7171_v17  ;;  %1680 = vmatmul.f32.vlgmr.msra.gmra.mxu1 %v7171_v17 }
 0x3fb   :  { %1700 = vmatmul.f32.vlgmr.msrb.gmra.mxu2 %v7171_v17  ;;  %1720 = vmatmul.f32.vlgmr.msrb.gmra.mxu3 %v7171_v17 }
 0x3fc   :  { %1880 = vmatpush.msrb.mxu0 %v6671_v11  ;;  %1900 = vmatpush.msra.mxu1 %v6674_v45  ;;  %v10275_v11 = vld [vmem:[#allocation64_spill] sm:$0xff]  ;;  %v10276_v45 = vld [vmem:[#allocation49_spill] sm:$0xff] }
 0x3fd   :  { %1920 = vmatpush.msrb.mxu2 %v6677_v30  ;;  %1940 = vmatpush.msrb.mxu3 %v6680_v33  ;;  %v10277_v30 = vld [vmem:[#allocation81_spill] sm:$0xff]  ;;  %v10278_v33 = vld [vmem:[#allocation67_spill] sm:$0xff] }
 0x3fe   :  { %1881 = vmatpush.msrb.mxu0 %v6683_v40  ;;  %1901 = vmatpush.msra.mxu1 %v6686_v7  ;;  %v10279_v40 = vld [vmem:[#allocation68_spill] sm:$0xff]  ;;  %v10280_v7 = vld [vmem:[#allocation53_spill] sm:$0xff] }
 0x3ff   :  { %1921 = vmatpush.msrb.mxu2 %v6689_v8  ;;  %1941 = vmatpush.msrb.mxu3 %v10271_v60  ;;  %v10281_v8 = vld [vmem:[#allocation85_spill] sm:$0xff] }
 0x400   :  { %1882 = vmatpush.msrb.mxu0 %v10272_v37  ;;  %1902 = vmatpush.msra.mxu1 %v10273_v63  ;;  %v10302_v60 = vld [vmem:[#allocation89_spill] sm:$0xff]  ;;  %v10303_v37 = vld [vmem:[#allocation90_spill] sm:$0xff] }
 0x401   :  { %1922 = vmatpush.msrb.mxu2 %v10274_v50  ;;  %1942 = vmatpush.msrb.mxu3 %v10275_v11  ;;  %v10304_v63 = vld [vmem:[#allocation78_spill] sm:$0xff]  ;;  %v10305_v50 = vld [vmem:[#allocation99_spill] sm:$0xff]  ;;  %v10306_v11 = vld [vmem:[#allocation92_spill] sm:$0xff] }
 0x402   :  { %1883 = vmatpush.msrb.mxu0 %v10276_v45  ;;  %1903 = vmatpush.msra.mxu1 %v10277_v30  ;;  %v10307_v45 = vld [vmem:[#allocation93_spill] sm:$0xff]  ;;  %v10308_v30 = vld [vmem:[#allocation82_spill] sm:$0xff] }
 0x403   :  { %1923 = vmatpush.msrb.mxu2 %v10278_v33  ;;  %1943 = vmatpush.msrb.mxu3 %v10279_v40  ;;  %v10309_v33 = vld [vmem:[#allocation100_spill] sm:$0xff]  ;;  %v10310_v40 = vld [vmem:[#allocation95_spill] sm:$0xff] }
 0x404   :  { %1884 = vmatpush.msrb.mxu0 %v10280_v7  ;;  %1904 = vmatpush.msra.mxu1 %v10281_v8  ;;  %v10311_v7 = vld [vmem:[#allocation96_spill] sm:$0xff] }
 0x405   :  { %1924 = vmatpush.msrb.mxu2 %v10282_v20  ;;  %1944 = vmatpush.msrb.mxu3 %v10283_v24  ;;  %v10312_v8 = vld [vmem:[#allocation124_spill] sm:$0xff]  ;;  %v10313_v20 = vld [vmem:[#allocation151_spill] sm:$0xff]  ;;  %v10314_v24 = vld [vmem:[#allocation145_spill] sm:$0xff] }
 0x406   :  { %1885 = vmatpush.msrb.mxu0 %v10284_v62  ;;  %1905 = vmatpush.msra.mxu1 %v10285_v21  ;;  %v10315_v62 = vld [vmem:[#allocation129_spill] sm:$0xff]  ;;  %v10316_v21 = vld [vmem:[#allocation130_spill] sm:$0xff] }
 0x407   :  { %1925 = vmatpush.msrb.mxu2 %v10286_v15  ;;  %1945 = vmatpush.msrb.mxu3 %v10287_v18  ;;  %v10317_v15 = vld [vmem:[#allocation131_spill] sm:$0xff]  ;;  %v10318_v18 = vld [vmem:[#allocation132_spill] sm:$0xff] }
 0x408   :  { %1886 = vmatpush.msrb.mxu0 %v10288_v22  ;;  %1906 = vmatpush.msra.mxu1 %v10289_v29  ;;  %v10319_v22 = vld [vmem:[#allocation133_spill] sm:$0xff]  ;;  %v10320_v29 = vld [vmem:[#allocation134_spill] sm:$0xff] }
 0x409   :  { %1926 = vmatpush.msrb.mxu2 %v10290_v32  ;;  %1946 = vmatpush.msrb.mxu3 %v10291_v27  ;;  %v10321_v32 = vld [vmem:[#allocation135_spill] sm:$0xff]  ;;  %v10322_v27 = vld [vmem:[#allocation136_spill] sm:$0xff] }
 0x40a   :  { %1887 = vmatpush.msrb.mxu0 %v10292_v10  ;;  %1907 = vmatpush.msra.mxu1 %v10293_v9  ;;  %v10323_v10 = vld [vmem:[#allocation137_spill] sm:$0xff]  ;;  %v10324_v9 = vld [vmem:[#allocation138_spill] sm:$0xff] }
 0x40b   :  { %1927 = vmatpush.msrb.mxu2 %v10294_v43  ;;  %1947 = vmatpush.msrb.mxu3 %v10295_v49  ;;  %v10325_v43 = vld [vmem:[#allocation139_spill] sm:$0xff]  ;;  %v10326_v49 = vld [vmem:[#allocation140_spill] sm:$0xff] }
 0x40c   :  { %1888 = vmatpush.msrb.mxu0 %v10296_v16  ;;  %1908 = vmatpush.msra.mxu1 %v10297_v12  ;;  %v10327_v16 = vld [vmem:[#allocation142_spill] sm:$0xff]  ;;  %v10328_v12 = vld [vmem:[#allocation25_spill] sm:$0xff] }
 0x40d   :  { %1928 = vmatpush.msrb.mxu2 %v10298_v25  ;;  %1948 = vmatpush.msrb.mxu3 %v10299_v23  ;;  %v1428_v25 = vadd.f32 %v7151_v56, %v10328_v12  ;;  %v10329_v23 = vld [vmem:[#allocation44_spill] sm:$0xff] }
 0x40e   :  { %1889 = vmatpush.msrb.mxu0 %v10300_v31  ;;  %1909 = vmatpush.msra.mxu1 %v10301_v39  ;;  %v1448_v31 = vadd.f32 %v7153_v2, %v10329_v23 }
 0x40f   :  { %1929 = vmatpush.msrb.mxu2 %v10302_v60  ;;  %1949 = vmatpush.msrb.mxu3 %v10303_v37 }
 0x410   :  { %1890 = vmatpush.msrb.mxu0 %v10304_v63  ;;  %1910 = vmatpush.msra.mxu1 %v10305_v50 }
 0x411   :  { %1930 = vmatpush.msrb.mxu2 %v10306_v11  ;;  %1950 = vmatpush.msrb.mxu3 %v10307_v45  ;;  %v10330_v45 = vld [vmem:[#allocation30_spill] sm:$0xff] }
 0x412   :  { %1891 = vmatpush.msrb.mxu0 %v10308_v30  ;;  %1911 = vmatpush.msra.mxu1 %v10309_v33  ;;  %v1468_v30 = vadd.f32 %v7159_v19, %v10330_v45 }
 0x413   :  { %1931 = vmatpush.msrb.mxu2 %v10310_v40  ;;  %1951 = vmatpush.msrb.mxu3 %v10311_v7 }
 0x414   :  { %1892 = vmatpush.msrb.mxu0 %v10312_v8  ;;  %1912 = vmatpush.msra.mxu1 %v10313_v20 }
 0x415   :  { %1932 = vmatpush.msrb.mxu2 %v10314_v24  ;;  %1952 = vmatpush.msrb.mxu3 %v10315_v62 }
 0x416   :  { %1893 = vmatpush.msrb.mxu0 %v10316_v21  ;;  %1913 = vmatpush.msra.mxu1 %v10317_v15  ;;  %v10331_v21 = vld [vmem:[#allocation31_spill] sm:$0xff] }
 0x417   :  { %1933 = vmatpush.msrb.mxu2 %v10318_v18  ;;  %1953 = vmatpush.msrb.mxu3 %v10319_v22  ;;  %v1488_v15 = vadd.f32 %v7163_v6, %v10331_v21 }
 0x418   :  { %1894 = vmatpush.msrb.mxu0 %v10320_v29  ;;  %1914 = vmatpush.msra.mxu1 %v10321_v32 }
 0x419   :  { %1934 = vmatpush.msrb.mxu2 %v10322_v27  ;;  %1954 = vmatpush.msrb.mxu3 %v10323_v10 }
 0x41a   :  { %1895 = vmatpush.msrb.mxu0 %v10324_v9  ;;  %1915 = vmatpush.msra.mxu1 %v10325_v43 }
 0x41b   :  { %1935 = vmatpush.msrb.mxu2 %v10326_v49  ;;  %1955 = vmatpush.msrb.mxu3 %v10327_v16 }
 0x477   :  { %v1661_v39 = vpop.f32.mrf.mxu0  ;;  %v1681_v60 = vpop.f32.mrf.mxu1 }
 0x478   :  { %v1724_v37 = vadd.f32 %v1661_v39, %v1428_v25  ;;  %v1725_v63 = vadd.f32 %v1681_v60, %v1448_v31 }
 0x47a   :  { %v4168_v50 = vmul.f32 -1.442695, %v1724_v37  ;;  %v4169_v11 = vmul.f32 -1.442695, %v1725_v63 }
 0x47c   :  { %4317 = vpow2.f32 %v4168_v50 }
 0x47d   :  { %4319 = vpow2.f32 %v4169_v11 }
 0x47e   :  { %v1701_v33 = vpop.f32.mrf.mxu2  ;;  %v1721_v2 = vpop.f32.mrf.mxu3 }
 0x47f   :  { %v1726_v40 = vadd.f32 %v1701_v33, %v1468_v30  ;;  %v1727_v29 = vadd.f32 %v1721_v2, %v1488_v15 }
 0x481   :  { %v4170_v7 = vmul.f32 -1.442695, %v1726_v40 }
 0x482   :  { %v4318_v8 = vpop.eup %4317 }
 0x483   :  { %v4320_v20 = vpop.eup %4319  ;;  %v1737_v56 = vadd.f32 1.0, %v4318_v8  ;;  %4321 = vpow2.f32 %v4170_v7 }
 0x484   :  { %v1738_v24 = vadd.f32 1.0, %v4320_v20 }
 0x485   :  { %4323 = vrcp.f32 %v1737_v56  ;;  %v1751_v43 = vand.u32 2147483648, %v1737_v56  ;;  %v1749_v25 = vand.u32 2147483647, %v1737_v56  ;;  %vm1745_vm8 = vweird.f32 %v1737_v56 }
 0x486   :  { %4325 = vrcp.f32 %v1738_v24  ;;  %v1766_v49 = vand.u32 2147483648, %v1738_v24  ;;  %v1764_v39 = vand.u32 2147483647, %v1738_v24  ;;  %vm1760_vm9 = vweird.f32 %v1738_v24 }
 0x487   :  { %v1752_v50 = vor.u32 1.1754944e-38, %v1751_v43  ;;  %vm1750_vm12 = vcmp.eq.f32.partialorder %v1749_v25, 8.507059e+37  ;;  %v10356_v43 = vld [vmem:[#allocation172_spill] sm:$0xff]  ;;  %v10359_v25 = vld [vmem:[#allocation175_spill] sm:$0xff] }
 0x488   :  { %v1767_v11 = vor.u32 1.1754944e-38, %v1766_v49  ;;  %vm1765_vm13 = vcmp.eq.f32.partialorder %v1764_v39, 8.507059e+37  ;;  %v10357_v49 = vld [vmem:[#allocation173_spill] sm:$0xff] }
 0x489   :  { %v4322_v62 = vpop.eup %4321  ;;  %v10361_v39 = vld [vmem:[#allocation177_spill] sm:$0xff] }
 0x48a   :  { %v1739_v18 = vadd.f32 1.0, %v4322_v62 }
 0x48b   :  { %v4324_v22 = vpop.eup %4323 }
 0x48c   :  { %v4326_v19 = vpop.eup %4325  ;;  %v1741_v32 = vmul.f32 %v4324_v22, %v1737_v56  ;;  %4327 = vrcp.f32 %v1739_v18  ;;  %vm1746_vm6 = vweird.f32 %v4324_v22  ;;  %vm1775_vm15 = vweird.f32 %v1739_v18 }
 0x48d   :  { %v1756_v27 = vmul.f32 %v4326_v19, %v1738_v24  ;;  %4329 = vtanh.f32 %v1727_v29  ;;  %vm1761_vm7 = vweird.f32 %v4326_v19  ;;  %vm1747_vm10 = vmor %vm1745_vm8, %vm1746_vm6  ;;  %v1781_v29 = vand.u32 2147483648, %v1739_v18 }
 0x48e   :  { %v1742_v10 = vsub.f32 1.0, %v1741_v32  ;;  %vm1762_vm11 = vmor %vm1760_vm9, %vm1761_vm7 }
 0x48f   :  { %v1757_v9 = vsub.f32 1.0, %v1756_v27  ;;  %v1782_v27 = vor.u32 1.1754944e-38, %v1781_v29  ;;  %v7366_v29 = vld [vmem:[#allocation10 + $0x188] sm:$0xff] }
 0x490   :  { %v1743_v16 = vmul.f32 %v4324_v22, %v1742_v10 }
 0x491   :  { %v1758_v31 = vmul.f32 %v4326_v19, %v1757_v9 }
 0x492   :  { %v4328_v60 = vpop.eup %4327  ;;  %v1744_v6 = vadd.f32 %v4324_v22, %v1743_v16  ;;  %v10358_v16 = vld [vmem:[#allocation174_spill] sm:$0xff] }
 0x493   :  { %v1759_v37 = vadd.f32 %v4326_v19, %v1758_v31  ;;  %v1771_v63 = vmul.f32 %v4328_v60, %v1739_v18  ;;  %v4330_v33 = vpop.eup %4329  ;;  %vm1776_vm14 = vweird.f32 %v4328_v60  ;;  %v10360_v31 = vld [vmem:[#allocation176_spill] sm:$0xff] }
 0x494   :  { %v1748_v30 = vsel %vm1747_vm10, %v4324_v22, %v1744_v6  ;;  %v1779_v22 = vand.u32 2147483647, %v1739_v18  ;;  %vm1777_vm2 = vmor %vm1775_vm15, %vm1776_vm14  ;;  %v10355_v18 = vld [vmem:[#allocation171_spill] sm:$0xff] }
 0x495   :  { %v1772_v40 = vsub.f32 1.0, %v1771_v63  ;;  %v1753_v7 = vsel %vm1750_vm12, %v1752_v50, %v1748_v30  ;;  %v1763_v8 = vsel %vm1762_vm11, %v4326_v19, %v1759_v37  ;;  %v10363_v6 = vld [vmem:[#allocation179_spill] sm:$0xff]  ;;  %v10364_v37 = vld [vmem:[#allocation180_spill] sm:$0xff]  ;;  %v10365_v63 = vld [vmem:[#allocation181_spill] sm:$0xff] }
 0x496   :  { %v1768_v20 = vsel %vm1765_vm13, %v1767_v11, %v1763_v8  ;;  %v1787_v2 = vmul.f32 %v4330_v33, %v1753_v7  ;;  %vm1780_vm3 = vcmp.eq.f32.partialorder %v1779_v22, 8.507059e+37  ;;  %v10366_v50 = vld [vmem:[#allocation182_spill] sm:$0xff]  ;;  %v10367_v11 = vld [vmem:[#allocation183_spill] sm:$0xff]  ;;  %v10368_v30 = vld [vmem:[#allocation184_spill] sm:$0xff] }
 0x497   :  { %v1773_v62 = vmul.f32 %v4328_v60, %v1772_v40  ;;  %v1786_v15 = vmul.f32 %v1768_v20, %v6872_v5  ;;  %v10333_v5 = vld [vmem:[#allocation144_spill] sm:$0xff]  ;;  %v10369_v33 = vld [vmem:[#allocation185_spill] sm:$0xff]  ;;  %v10370_v40 = vld [vmem:[#allocation186_spill] sm:$0xff] }
 0x498   :  { %v7327_v7 = vld [vmem:[#allocation10 + $0x1e0] sm:$0xff]  ;;  %v7330_v8 = vld [vmem:[#allocation10 + $0x1e8] sm:$0xff]  ;;  %v7333_v20 = vld [vmem:[#allocation10 + $0x1f0] sm:$0xff] }
 0x499   :  { %v7250_v56 = vadd.f32 %v1787_v2, %v1786_v15  ;;  %v1774_v24 = vadd.f32 %v4328_v60, %v1773_v62  ;;  %v7354_v2 = vld [vmem:[#allocation10 + $0x1a8] sm:$0xff]  ;;  %v7357_v62 = vld [vmem:[#allocation10 + $0x1b0] sm:$0xff]  ;;  %v7360_v15 = vld [vmem:[#allocation10 + $0x1b8] sm:$0xff] }
 0x49a   :  { %v7369_v22 = vld [vmem:[#allocation10 + $0x190] sm:$0xff] }
 0x49b   :  { %4331 = vtanh.f32 %v7250_v56  ;;  %v1778_v32 = vsel %vm1777_vm2, %v4328_v60, %v1774_v24  ;;  %v10362_v60 = vld [vmem:[#allocation178_spill] sm:$0xff]  ;;  %v7363_v24 = vld [vmem:[#allocation10 + $0x180] sm:$0xff] }
 0x49c   :  { %v1783_v19 = vsel %vm1780_vm3, %v1782_v27, %v1778_v32  ;;  %v7372_v32 = vld [vmem:[#allocation10 + $0x198] sm:$0xff]  ;;  %v7375_v27 = vld [vmem:[#allocation10 + $0x160] sm:$0xff] }
 0x4a1   :  { %v4332_v10 = vpop.eup %4331 }
 0x4a2   :  { %v7253_v9 = vmul.f32 %v4332_v10, %v1783_v19  ;;  %v7378_v10 = vld [vmem:[#allocation10 + $0x168] sm:$0xff]  ;;  %v7381_v19 = vld [vmem:[#allocation10 + $0x170] sm:$0xff] }
 0x4a4   :  { %10332 = vst [vmem:[#allocation192_spill] sm:$0xff] %v7253_v9  ;;  %1809 = vmatmul.f32.vlgmr.msra.gmra.mxu0 %v7253_v9  ;;  %1829 = vmatmul.f32.vlgmr.msrb.gmra.mxu1 %v7253_v9 }
 0x4a5   :  { %1849 = vmatmul.f32.vlgmr.msra.gmra.mxu2 %v7253_v9  ;;  %1869 = vmatmul.f32.vlgmr.msra.gmra.mxu3 %v7253_v9  ;;  %v7503_v9 = vld [vmem:[#allocation10 + $0x10] sm:$0xff] }
 0x4a6   :  { %2027 = vmatpush.msra.mxu0 %v6881_v0  ;;  %2047 = vmatpush.msrb.mxu1 %v6884_v35  ;;  %v10334_v0 = vld [vmem:[#allocation146_spill] sm:$0xff]  ;;  %v10335_v35 = vld [vmem:[#allocation147_spill] sm:$0xff]  ;;  %10404 = vst [vmem:[#allocation69_spill] sm:$0xff] %v7503_v9 }
 0x4a7   :  { %2067 = vmatpush.msra.mxu2 %v6887_v28  ;;  %2087 = vmatpush.msra.mxu3 %v6890_v3  ;;  %v10336_v28 = vld [vmem:[#allocation148_spill] sm:$0xff]  ;;  %v10337_v3 = vld [vmem:[#allocation149_spill] sm:$0xff] }
 0x4a8   :  { %2028 = vmatpush.msra.mxu0 %v6893_v53  ;;  %2048 = vmatpush.msrb.mxu1 %v6896_v59  ;;  %v10338_v53 = vld [vmem:[#allocation150_spill] sm:$0xff]  ;;  %v10339_v59 = vld [vmem:[#allocation152_spill] sm:$0xff] }
 0x4a9   :  { %2068 = vmatpush.msra.mxu2 %v6899_v38  ;;  %2088 = vmatpush.msra.mxu3 %v6902_v48  ;;  %v10340_v38 = vld [vmem:[#allocation153_spill] sm:$0xff]  ;;  %v10341_v48 = vld [vmem:[#allocation154_spill] sm:$0xff] }
 0x4aa   :  { %2029 = vmatpush.msra.mxu0 %v6905_v52  ;;  %2049 = vmatpush.msrb.mxu1 %v6908_v46  ;;  %v10342_v52 = vld [vmem:[#allocation156_spill] sm:$0xff]  ;;  %v10343_v46 = vld [vmem:[#allocation157_spill] sm:$0xff] }
 0x4ab   :  { %2069 = vmatpush.msra.mxu2 %v6911_v1  ;;  %2089 = vmatpush.msra.mxu3 %v6914_v42  ;;  %v10344_v1 = vld [vmem:[#allocation158_spill] sm:$0xff]  ;;  %v10345_v42 = vld [vmem:[#allocation159_spill] sm:$0xff] }
 0x4ac   :  { %1896 = vmatmul.f32.vlgmr.msrb.gmra.mxu0 %v7171_v17  ;;  %1916 = vmatmul.f32.vlgmr.msra.gmra.mxu1 %v7171_v17 }
 0x4ad   :  { %1936 = vmatmul.f32.vlgmr.msrb.gmra.mxu2 %v7171_v17  ;;  %1956 = vmatmul.f32.vlgmr.msrb.gmra.mxu3 %v7171_v17  ;;  %v10354_v17 = vld [vmem:[#allocation170_spill] sm:$0xff] }
 0x4ae   :  { %2030 = vmatpush.msra.mxu0 %v6921_v57  ;;  %2050 = vmatpush.msrb.mxu1 %v6924_v4  ;;  %v10346_v57 = vld [vmem:[#allocation161_spill] sm:$0xff]  ;;  %v10347_v4 = vld [vmem:[#allocation162_spill] sm:$0xff] }
 0x4af   :  { %2070 = vmatpush.msra.mxu2 %v6927_v55  ;;  %2090 = vmatpush.msra.mxu3 %v6930_v51  ;;  %v10348_v55 = vld [vmem:[#allocation163_spill] sm:$0xff]  ;;  %v10349_v51 = vld [vmem:[#allocation164_spill] sm:$0xff] }
 0x4b0   :  { %2031 = vmatpush.msra.mxu0 %v6933_v61  ;;  %2051 = vmatpush.msrb.mxu1 %v6936_v34  ;;  %v10350_v61 = vld [vmem:[#allocation165_spill] sm:$0xff]  ;;  %v10351_v34 = vld [vmem:[#allocation167_spill] sm:$0xff] }
 0x4b1   :  { %2071 = vmatpush.msra.mxu2 %v6939_v26  ;;  %2091 = vmatpush.msra.mxu3 %v6942_v13  ;;  %v10352_v26 = vld [vmem:[#allocation168_spill] sm:$0xff]  ;;  %v10353_v13 = vld [vmem:[#allocation169_spill] sm:$0xff] }
 0x4b2   :  { %2032 = vmatpush.msra.mxu0 %v10333_v5  ;;  %2052 = vmatpush.msrb.mxu1 %v10334_v0  ;;  %v7384_v5 = vld [vmem:[#allocation10 + $0x178] sm:$0xff]  ;;  %v7387_v0 = vld [vmem:[#allocation10 + $0x140] sm:$0xff] }
 0x4b3   :  { %2072 = vmatpush.msra.mxu2 %v10335_v35  ;;  %2092 = vmatpush.msra.mxu3 %v10336_v28  ;;  %v7390_v35 = vld [vmem:[#allocation10 + $0x148] sm:$0xff]  ;;  %v7393_v28 = vld [vmem:[#allocation10 + $0x150] sm:$0xff] }
 0x4b4   :  { %2033 = vmatpush.msra.mxu0 %v10337_v3  ;;  %2053 = vmatpush.msrb.mxu1 %v10338_v53  ;;  %v7396_v3 = vld [vmem:[#allocation10 + $0x158] sm:$0xff]  ;;  %v7399_v53 = vld [vmem:[#allocation10 + $0x120] sm:$0xff] }
 0x4b5   :  { %2073 = vmatpush.msra.mxu2 %v10339_v59  ;;  %2093 = vmatpush.msra.mxu3 %v10340_v38  ;;  %v7402_v59 = vld [vmem:[#allocation10 + $0x128] sm:$0xff]  ;;  %v7405_v38 = vld [vmem:[#allocation10 + $0x130] sm:$0xff] }
 0x4b6   :  { %2034 = vmatpush.msra.mxu0 %v10341_v48  ;;  %2054 = vmatpush.msrb.mxu1 %v10342_v52  ;;  %v7408_v48 = vld [vmem:[#allocation10 + $0x138] sm:$0xff]  ;;  %v10371_v52 = vld [vmem:[#allocation187_spill] sm:$0xff] }
 0x4b7   :  { %2074 = vmatpush.msra.mxu2 %v10343_v46  ;;  %2094 = vmatpush.msra.mxu3 %v10344_v1  ;;  %v7412_v46 = vld [vmem:[#allocation10 + $0x108] sm:$0xff]  ;;  %v7415_v1 = vld [vmem:[#allocation10 + $0x110] sm:$0xff] }
 0x4b8   :  { %2035 = vmatpush.msra.mxu0 %v10345_v42  ;;  %2055 = vmatpush.msrb.mxu1 %v10346_v57  ;;  %10372 = vst [vmem:[#allocation102_spill] sm:$0xff] %v7415_v1  ;;  %v7418_v42 = vld [vmem:[#allocation10 + $0x118] sm:$0xff] }
 0x4b9   :  { %2075 = vmatpush.msra.mxu2 %v10347_v4  ;;  %2095 = vmatpush.msra.mxu3 %v10348_v55  ;;  %10373 = vst [vmem:[#allocation105_spill] sm:$0xff] %v7418_v42  ;;  %v10374_v57 = vld [vmem:[#allocation188_spill] sm:$0xff]  ;;  %v7422_v4 = vld [vmem:[#allocation10 + $0xe8] sm:$0xff]  ;;  %v7425_v55 = vld [vmem:[#allocation10 + $0xf0] sm:$0xff] }
 0x4ba   :  { %2036 = vmatpush.msra.mxu0 %v10349_v51  ;;  %2056 = vmatpush.msrb.mxu1 %v10350_v61  ;;  %10375 = vst [vmem:[#allocation103_spill] sm:$0xff] %v7422_v4  ;;  %v7428_v51 = vld [vmem:[#allocation10 + $0xf8] sm:$0xff]  ;;  %v10378_v61 = vld [vmem:[#allocation189_spill] sm:$0xff] }
 0x4bb   :  { %2076 = vmatpush.msra.mxu2 %v10351_v34  ;;  %2096 = vmatpush.msra.mxu3 %v10352_v26  ;;  %10376 = vst [vmem:[#allocation109_spill] sm:$0xff] %v7425_v55  ;;  %v7432_v34 = vld [vmem:[#allocation10 + $0xc8] sm:$0xff]  ;;  %v7435_v26 = vld [vmem:[#allocation10 + $0xd0] sm:$0xff] }
 0x4bc   :  { %2037 = vmatpush.msra.mxu0 %v10353_v13  ;;  %2057 = vmatpush.msrb.mxu1 %v10354_v17  ;;  %10377 = vst [vmem:[#allocation48_spill] sm:$0xff] %v7428_v51  ;;  %v7438_v13 = vld [vmem:[#allocation10 + $0xd8] sm:$0xff]  ;;  %v10382_v17 = vld [vmem:[#allocation190_spill] sm:$0xff] }
 0x4bd   :  { %2077 = vmatpush.msra.mxu2 %v10355_v18  ;;  %2097 = vmatpush.msra.mxu3 %v10356_v43  ;;  %10379 = vst [vmem:[#allocation33_spill] sm:$0xff] %v7432_v34  ;;  %v7442_v18 = vld [vmem:[#allocation10 + $0xa8] sm:$0xff]  ;;  %v7445_v43 = vld [vmem:[#allocation10 + $0xb0] sm:$0xff] }
 0x4be   :  { %2038 = vmatpush.msra.mxu0 %v10357_v49  ;;  %2058 = vmatpush.msrb.mxu1 %v10358_v16  ;;  %10380 = vst [vmem:[#allocation34_spill] sm:$0xff] %v7435_v26  ;;  %v7448_v49 = vld [vmem:[#allocation10 + $0xb8] sm:$0xff]  ;;  %v10386_v16 = vld [vmem:[#allocation191_spill] sm:$0xff] }
 0x4bf   :  { %2078 = vmatpush.msra.mxu2 %v10359_v25  ;;  %2098 = vmatpush.msra.mxu3 %v10360_v31  ;;  %10381 = vst [vmem:[#allocation27_spill] sm:$0xff] %v7438_v13  ;;  %v7452_v25 = vld [vmem:[#allocation10 + $0x88] sm:$0xff]  ;;  %v7455_v31 = vld [vmem:[#allocation10 + $0x90] sm:$0xff] }
 0x4c0   :  { %2039 = vmatpush.msra.mxu0 %v10361_v39  ;;  %2059 = vmatpush.msrb.mxu1 %v10362_v60  ;;  %10383 = vst [vmem:[#allocation52_spill] sm:$0xff] %v7442_v18  ;;  %v7458_v39 = vld [vmem:[#allocation10 + $0x98] sm:$0xff]  ;;  %v7461_v60 = vld [vmem:[#allocation10 + $0x60] sm:$0xff] }
 0x4c1   :  { %2079 = vmatpush.msra.mxu2 %v10363_v6  ;;  %2099 = vmatpush.msra.mxu3 %v10364_v37  ;;  %10384 = vst [vmem:[#allocation36_spill] sm:$0xff] %v7445_v43  ;;  %v7464_v6 = vld [vmem:[#allocation10 + $0x68] sm:$0xff]  ;;  %v7467_v37 = vld [vmem:[#allocation10 + $0x70] sm:$0xff] }
 0x4c2   :  { %2040 = vmatpush.msra.mxu0 %v10365_v63  ;;  %2060 = vmatpush.msrb.mxu1 %v10366_v50  ;;  %10385 = vst [vmem:[#allocation37_spill] sm:$0xff] %v7448_v49  ;;  %v7470_v63 = vld [vmem:[#allocation10 + $0x78] sm:$0xff]  ;;  %v7473_v50 = vld [vmem:[#allocation10 + $0x40] sm:$0xff] }
 0x4c3   :  { %2080 = vmatpush.msra.mxu2 %v10367_v11  ;;  %2100 = vmatpush.msra.mxu3 %v10368_v30  ;;  %10387 = vst [vmem:[#allocation28_spill] sm:$0xff] %v7452_v25  ;;  %v7476_v11 = vld [vmem:[#allocation10 + $0x48] sm:$0xff]  ;;  %v7479_v30 = vld [vmem:[#allocation10 + $0x50] sm:$0xff] }
 0x4c4   :  { %2041 = vmatpush.msra.mxu0 %v10369_v33  ;;  %2061 = vmatpush.msrb.mxu1 %v10370_v40  ;;  %10388 = vst [vmem:[#allocation54_spill] sm:$0xff] %v7455_v31  ;;  %v7482_v33 = vld [vmem:[#allocation10 + $0x58] sm:$0xff]  ;;  %v7485_v40 = vld [vmem:[#allocation10 + $0x20] sm:$0xff] }
 0x4c5   :  { %2081 = vmatpush.msra.mxu2 %v7059_v44  ;;  %2101 = vmatpush.msra.mxu3 %v7062_v54  ;;  %v7336_v44 = vld [vmem:[#allocation10 + $0x1f8] sm:$0xff]  ;;  %10389 = vst [vmem:[#allocation39_spill] sm:$0xff] %v7458_v39 }
 0x4c6   :  { %2042 = vmatpush.msra.mxu0 %v7065_v41  ;;  %2062 = vmatpush.msrb.mxu1 %v7068_v58  ;;  %v7339_v58 = vld [vmem:[#allocation10 + $0x1c0] sm:$0xff]  ;;  %v7348_v54 = vld [vmem:[#allocation10 + $0x1d8] sm:$0xff]  ;;  %10390 = vst [vmem:[#allocation40_spill] sm:$0xff] %v7461_v60 }
 0x4c7   :  { %2082 = vmatpush.msra.mxu2 %v7071_v47  ;;  %2102 = vmatpush.msra.mxu3 %v7074_v36  ;;  %v7342_v47 = vld [vmem:[#allocation10 + $0x1c8] sm:$0xff]  ;;  %v7345_v36 = vld [vmem:[#allocation10 + $0x1d0] sm:$0xff]  ;;  %v7351_v41 = vld [vmem:[#allocation10 + $0x1a0] sm:$0xff]  ;;  %10391 = vst [vmem:[#allocation29_spill] sm:$0xff] %v7464_v6 }
 0x4c8   :  { %2176 = vmatpush.msrb.mxu0 %v7327_v7  ;;  %2196 = vmatpush.msra.mxu1 %v7330_v8  ;;  %10392 = vst [vmem:[#allocation58_spill] sm:$0xff] %v7467_v37 }
 0x4c9   :  { %2216 = vmatpush.msrb.mxu2 %v7333_v20  ;;  %2236 = vmatpush.msrb.mxu3 %v7336_v44  ;;  %10393 = vst [vmem:[#allocation42_spill] sm:$0xff] %v7470_v63 }
 0x4ca   :  { %2177 = vmatpush.msrb.mxu0 %v7339_v58  ;;  %2197 = vmatpush.msra.mxu1 %v7342_v47  ;;  %10394 = vst [vmem:[#allocation43_spill] sm:$0xff] %v7473_v50 }
 0x4cb   :  { %2217 = vmatpush.msrb.mxu2 %v7345_v36  ;;  %2237 = vmatpush.msrb.mxu3 %v7348_v54  ;;  %10395 = vst [vmem:[#allocation32_spill] sm:$0xff] %v7476_v11 }
 0x4cc   :  { %2178 = vmatpush.msrb.mxu0 %v7351_v41  ;;  %2198 = vmatpush.msra.mxu1 %v7354_v2  ;;  %10396 = vst [vmem:[#allocation62_spill] sm:$0xff] %v7479_v30 }
 0x4cd   :  { %2218 = vmatpush.msrb.mxu2 %v7357_v62  ;;  %2238 = vmatpush.msrb.mxu3 %v7360_v15  ;;  %10397 = vst [vmem:[#allocation46_spill] sm:$0xff] %v7482_v33 }
 0x4ce   :  { %2179 = vmatpush.msrb.mxu0 %v7363_v24  ;;  %2199 = vmatpush.msra.mxu1 %v7366_v29  ;;  %10398 = vst [vmem:[#allocation47_spill] sm:$0xff] %v7485_v40 }
 0x4cf   :  { %2219 = vmatpush.msrb.mxu2 %v7369_v22  ;;  %2239 = vmatpush.msrb.mxu3 %v7372_v32 }
 0x4d0   :  { %2180 = vmatpush.msrb.mxu0 %v7375_v27  ;;  %2200 = vmatpush.msra.mxu1 %v7378_v10 }
 0x4d1   :  { %2220 = vmatpush.msrb.mxu2 %v7381_v19  ;;  %2240 = vmatpush.msrb.mxu3 %v7384_v5 }
 0x4d2   :  { %2181 = vmatpush.msrb.mxu0 %v7387_v0  ;;  %2201 = vmatpush.msra.mxu1 %v7390_v35 }
 0x4d3   :  { %2221 = vmatpush.msrb.mxu2 %v7393_v28  ;;  %2241 = vmatpush.msrb.mxu3 %v7396_v3 }
 0x4d4   :  { %2182 = vmatpush.msrb.mxu0 %v7399_v53  ;;  %2202 = vmatpush.msra.mxu1 %v7402_v59 }
 0x4d5   :  { %2222 = vmatpush.msrb.mxu2 %v7405_v38  ;;  %2242 = vmatpush.msrb.mxu3 %v7408_v48 }
 0x4d6   :  { %2183 = vmatpush.msrb.mxu0 %v10371_v52  ;;  %2203 = vmatpush.msra.mxu1 %v7412_v46  ;;  %v7488_v52 = vld [vmem:[#allocation10 + $0x28] sm:$0xff] }
 0x4d7   :  { %2223 = vmatpush.msrb.mxu2 %v7415_v1  ;;  %2243 = vmatpush.msrb.mxu3 %v7418_v42  ;;  %10399 = vst [vmem:[#allocation35_spill] sm:$0xff] %v7488_v52 }
 0x4d8   :  { %2184 = vmatpush.msrb.mxu0 %v10374_v57  ;;  %2204 = vmatpush.msra.mxu1 %v7422_v4  ;;  %v7491_v57 = vld [vmem:[#allocation10 + $0x30] sm:$0xff] }
 0x4d9   :  { %2224 = vmatpush.msrb.mxu2 %v7425_v55  ;;  %2244 = vmatpush.msrb.mxu3 %v7428_v51  ;;  %10400 = vst [vmem:[#allocation66_spill] sm:$0xff] %v7491_v57 }
 0x4da   :  { %2185 = vmatpush.msrb.mxu0 %v10378_v61  ;;  %2205 = vmatpush.msra.mxu1 %v7432_v34  ;;  %v7494_v61 = vld [vmem:[#allocation10 + $0x38] sm:$0xff] }
 0x4db   :  { %2225 = vmatpush.msrb.mxu2 %v7435_v26  ;;  %2245 = vmatpush.msrb.mxu3 %v7438_v13  ;;  %10401 = vst [vmem:[#allocation50_spill] sm:$0xff] %v7494_v61 }
 0x4dc   :  { %2186 = vmatpush.msrb.mxu0 %v10382_v17  ;;  %2206 = vmatpush.msra.mxu1 %v7442_v18  ;;  %v7497_v17 = vld [vmem:[#allocation10] sm:$0xff] }
 0x4dd   :  { %2226 = vmatpush.msrb.mxu2 %v7445_v43  ;;  %2246 = vmatpush.msrb.mxu3 %v7448_v49  ;;  %10402 = vst [vmem:[#allocation51_spill] sm:$0xff] %v7497_v17 }
 0x4de   :  { %2187 = vmatpush.msrb.mxu0 %v10386_v16  ;;  %2207 = vmatpush.msra.mxu1 %v7452_v25  ;;  %v7500_v16 = vld [vmem:[#allocation10 + $0x8] sm:$0xff] }
 0x4df   :  { %2227 = vmatpush.msrb.mxu2 %v7455_v31  ;;  %2247 = vmatpush.msrb.mxu3 %v7458_v39  ;;  %10403 = vst [vmem:[#allocation38_spill] sm:$0xff] %v7500_v16  ;;  %v10411_v31 = vld [vmem:[#allocation110_spill] sm:$0xff] }
 0x4e0   :  { %2188 = vmatpush.msrb.mxu0 %v7461_v60  ;;  %2208 = vmatpush.msra.mxu1 %v7464_v6 }
 0x4e1   :  { %2228 = vmatpush.msrb.mxu2 %v7467_v37  ;;  %2248 = vmatpush.msrb.mxu3 %v7470_v63 }
 0x4e2   :  { %2189 = vmatpush.msrb.mxu0 %v7473_v50  ;;  %2209 = vmatpush.msra.mxu1 %v7476_v11  ;;  %v10409_v11 = vld [vmem:[#allocation111_spill] sm:$0xff] }
 0x4e3   :  { %2229 = vmatpush.msrb.mxu2 %v7479_v30  ;;  %2249 = vmatpush.msrb.mxu3 %v7482_v33  ;;  %v10407_v33 = vld [vmem:[#allocation107_spill] sm:$0xff] }
 0x4e4   :  { %2190 = vmatpush.msrb.mxu0 %v7485_v40  ;;  %2210 = vmatpush.msra.mxu1 %v7488_v52  ;;  %v7506_v52 = vld [vmem:[#allocation10 + $0x18] sm:$0xff] }
 0x4e5   :  { %2230 = vmatpush.msrb.mxu2 %v7491_v57  ;;  %2250 = vmatpush.msrb.mxu3 %v7494_v61  ;;  %10405 = vst [vmem:[#allocation55_spill] sm:$0xff] %v7506_v52  ;;  %v10406_v61 = vld [vmem:[#allocation127_spill] sm:$0xff] }
 0x4e6   :  { %2191 = vmatpush.msrb.mxu0 %v7497_v17  ;;  %2211 = vmatpush.msra.mxu1 %v7500_v16  ;;  %v274_v30 = vadd.f32 %v10407_v33, %v10406_v61  ;;  %v10408_v17 = vld [vmem:[#allocation160_spill] sm:$0xff] }
 0x4e7   :  { %2231 = vmatpush.msrb.mxu2 %v7503_v9  ;;  %2251 = vmatpush.msrb.mxu3 %v7506_v52  ;;  %v315_v50 = vadd.f32 %v10409_v11, %v10408_v17  ;;  %v10410_v52 = vld [vmem:[#allocation155_spill] sm:$0xff] }
 0x4e8   :  { %v356_v25 = vadd.f32 %v10411_v31, %v10410_v52 }
 0x521   :  { %v7509_v57 = vpop.f32.mrf.mxu0  ;;  %v7511_v40 = vpop.f32.mrf.mxu1 }
 0x528   :  { %v7517_v63 = vpop.f32.mrf.mxu2  ;;  %v7521_v49 = vpop.f32.mrf.mxu3 }
 0x529   :  { %v1897_v16 = vpop.f32.mrf.mxu0  ;;  %v1917_v37 = vpop.f32.mrf.mxu1 }
 0x52a   :  { %v1960_v6 = vadd.f32 %v1897_v16, %v274_v30  ;;  %v1961_v9 = vadd.f32 %v1917_v37, %v315_v50 }
 0x52c   :  { %v4171_v60 = vmul.f32 -1.442695, %v1960_v6  ;;  %v4172_v39 = vmul.f32 -1.442695, %v1961_v9  ;;  %v10412_v9 = vld [vmem:[#allocation193_spill] sm:$0xff] }
 0x52e   :  { %4333 = vpow2.f32 %v4171_v60  ;;  %v10413_v60 = vld [vmem:[#allocation117_spill] sm:$0xff] }
 0x52f   :  { %4335 = vpow2.f32 %v4172_v39  ;;  %v397_v50 = vadd.f32 %v10413_v60, %v10412_v9 }
 0x530   :  { %v1937_v43 = vpop.f32.mrf.mxu2  ;;  %v1957_v37 = vpop.f32.mrf.mxu3 }
 0x531   :  { %v1962_v33 = vadd.f32 %v1937_v43, %v356_v25  ;;  %v1963_v39 = vadd.f32 %v1957_v37, %v397_v50 }
 0x533   :  { %v4173_v61 = vmul.f32 -1.442695, %v1962_v33 }
 0x534   :  { %v4334_v18 = vpop.eup %4333 }
 0x535   :  { %v4336_v11 = vpop.eup %4335  ;;  %v1973_v17 = vadd.f32 1.0, %v4334_v18  ;;  %4337 = vpow2.f32 %v4173_v61 }
 0x536   :  { %v1974_v13 = vadd.f32 1.0, %v4336_v11 }
 0x537   :  { %4339 = vrcp.f32 %v1973_v17  ;;  %v1987_v26 = vand.u32 2147483648, %v1973_v17  ;;  %v1985_v11 = vand.u32 2147483647, %v1973_v17  ;;  %vm1981_vm6 = vweird.f32 %v1973_v17 }
 0x538   :  { %4341 = vrcp.f32 %v1974_v13  ;;  %v2002_v61 = vand.u32 2147483648, %v1974_v13  ;;  %v2000_v51 = vand.u32 2147483647, %v1974_v13  ;;  %vm1996_vm7 = vweird.f32 %v1974_v13 }
 0x539   :  { %v1988_v50 = vor.u32 1.1754944e-38, %v1987_v26  ;;  %vm1986_vm10 = vcmp.eq.f32.partialorder %v1985_v11, 8.507059e+37  ;;  %v7553_v11 = vld [vmem:[#allocation7 + $0x1d0] sm:$0xff] }
 0x53a   :  { %vm2001_vm11 = vcmp.eq.f32.partialorder %v2000_v51, 8.507059e+37 }
 0x53b   :  { %v4338_v6 = vpop.eup %4337 }
 0x53c   :  { %v1975_v30 = vadd.f32 1.0, %v4338_v6 }
 0x53d   :  { %v4340_v31 = vpop.eup %4339 }
 0x53e   :  { %v4342_v16 = vpop.eup %4341  ;;  %v1977_v52 = vmul.f32 %v4340_v31, %v1973_v17  ;;  %4343 = vrcp.f32 %v1975_v30  ;;  %vm1982_vm4 = vweird.f32 %v4340_v31  ;;  %vm2011_vm13 = vweird.f32 %v1975_v30 }
 0x53f   :  { %v1992_v43 = vmul.f32 %v4342_v16, %v1974_v13  ;;  %4345 = vtanh.f32 %v1963_v39  ;;  %vm1997_vm5 = vweird.f32 %v4342_v16  ;;  %vm1983_vm8 = vmor %vm1981_vm6, %vm1982_vm4  ;;  %v2017_v13 = vand.u32 2147483648, %v1975_v30 }
 0x540   :  { %v1978_v25 = vsub.f32 1.0, %v1977_v52  ;;  %vm1998_vm9 = vmor %vm1996_vm7, %vm1997_vm5  ;;  %v2003_v52 = vor.u32 1.1754944e-38, %v2002_v61  ;;  %v2015_v26 = vand.u32 2147483647, %v1975_v30 }
 0x541   :  { %v1993_v33 = vsub.f32 1.0, %v1992_v43  ;;  %v2018_v51 = vor.u32 1.1754944e-38, %v2017_v13  ;;  %v7589_v13 = vld [vmem:[#allocation7 + $0x170] sm:$0xff] }
 0x542   :  { %v1979_v18 = vmul.f32 %v4340_v31, %v1978_v25  ;;  %vm2016_vm15 = vcmp.eq.f32.partialorder %v2015_v26, 8.507059e+37  ;;  %10425 = vst [vmem:[#allocation63_spill] sm:$0xff] %v7589_v13  ;;  %v7592_v26 = vld [vmem:[#allocation7 + $0x178] sm:$0xff] }
 0x543   :  { %v1994_v34 = vmul.f32 %v4342_v16, %v1993_v33  ;;  %10426 = vst [vmem:[#allocation64_spill] sm:$0xff] %v7592_v26 }
 0x544   :  { %v4344_v55 = vpop.eup %4343  ;;  %v1980_v60 = vadd.f32 %v4340_v31, %v1979_v18 }
 0x545   :  { %v1995_v6 = vadd.f32 %v4342_v16, %v1994_v34  ;;  %v2007_v37 = vmul.f32 %v4344_v55, %v1975_v30  ;;  %v4346_v39 = vpop.eup %4345  ;;  %vm2012_vm12 = vweird.f32 %v4344_v55  ;;  %v7550_v30 = vld [vmem:[#allocation7 + $0x1c8] sm:$0xff] }
 0x546   :  { %v1984_v43 = vsel %vm1983_vm8, %v4340_v31, %v1980_v60  ;;  %vm2013_vm14 = vmor %vm2011_vm13, %vm2012_vm12  ;;  %v7556_v60 = vld [vmem:[#allocation7 + $0x1d8] sm:$0xff] }
 0x547   :  { %v2008_v25 = vsub.f32 1.0, %v2007_v37  ;;  %v1989_v9 = vsel %vm1986_vm10, %v1988_v50, %v1984_v43  ;;  %v1999_v4 = vsel %vm1998_vm9, %v4342_v16, %v1995_v6  ;;  %10414 = vst [vmem:[#allocation56_spill] sm:$0xff] %v7556_v60  ;;  %v7559_v6 = vld [vmem:[#allocation7 + $0x1a0] sm:$0xff]  ;;  %v7562_v37 = vld [vmem:[#allocation7 + $0x1a8] sm:$0xff]  ;;  %v7565_v50 = vld [vmem:[#allocation7 + $0x1b0] sm:$0xff] }
 0x548   :  { %v2004_v33 = vsel %vm2001_vm11, %v2003_v52, %v1999_v4  ;;  %v2023_v42 = vmul.f32 %v4346_v39, %v1989_v9  ;;  %v7547_v9 = vld [vmem:[#allocation7 + $0x1c0] sm:$0xff]  ;;  %10415 = vst [vmem:[#allocation41_spill] sm:$0xff] %v7559_v6  ;;  %v7568_v52 = vld [vmem:[#allocation7 + $0x1b8] sm:$0xff]  ;;  %v7574_v39 = vld [vmem:[#allocation7 + $0x188] sm:$0xff] }
 0x549   :  { %v2009_v1 = vmul.f32 %v4344_v55, %v2008_v25  ;;  %v2022_v18 = vmul.f32 %v2004_v33, %v7168_v14  ;;  %v7535_v14 = vld [vmem:[#allocation7 + $0x1e0] sm:$0xff]  ;;  %10416 = vst [vmem:[#allocation73_spill] sm:$0xff] %v7562_v37  ;;  %v7577_v25 = vld [vmem:[#allocation7 + $0x190] sm:$0xff]  ;;  %v7580_v33 = vld [vmem:[#allocation7 + $0x198] sm:$0xff] }
 0x54a   :  { %10417 = vst [vmem:[#allocation59_spill] sm:$0xff] %v7565_v50  ;;  %v7571_v43 = vld [vmem:[#allocation7 + $0x180] sm:$0xff] }
 0x54b   :  { %v7526_v17 = vadd.f32 %v2023_v42, %v2022_v18  ;;  %v2010_v34 = vadd.f32 %v4344_v55, %v2009_v1  ;;  %v7538_v1 = vld [vmem:[#allocation7 + $0x1e8] sm:$0xff]  ;;  %v7541_v42 = vld [vmem:[#allocation7 + $0x1f0] sm:$0xff]  ;;  %10418 = vst [vmem:[#allocation104_spill] sm:$0xff] %v7568_v52  ;;  %v7583_v18 = vld [vmem:[#allocation7 + $0x160] sm:$0xff] }
 0x54c   :  { %10419 = vst [vmem:[#allocation108_spill] sm:$0xff] %v7571_v43 }
 0x54d   :  { %4347 = vtanh.f32 %v7526_v17  ;;  %v2014_v31 = vsel %vm2013_vm14, %v4344_v55, %v2010_v34  ;;  %v7544_v55 = vld [vmem:[#allocation7 + $0x1f8] sm:$0xff]  ;;  %10420 = vst [vmem:[#allocation106_spill] sm:$0xff] %v7574_v39  ;;  %v7586_v34 = vld [vmem:[#allocation7 + $0x168] sm:$0xff] }
 0x54e   :  { %v2019_v16 = vsel %vm2016_vm15, %v2018_v51, %v2014_v31  ;;  %10421 = vst [vmem:[#allocation113_spill] sm:$0xff] %v7577_v25  ;;  %v7595_v31 = vld [vmem:[#allocation7 + $0x140] sm:$0xff]  ;;  %v7598_v51 = vld [vmem:[#allocation7 + $0x148] sm:$0xff] }
 0x54f   :  { %10422 = vst [vmem:[#allocation60_spill] sm:$0xff] %v7580_v33 }
 0x550   :  { %10423 = vst [vmem:[#allocation45_spill] sm:$0xff] %v7583_v18 }
 0x551   :  { %10424 = vst [vmem:[#allocation77_spill] sm:$0xff] %v7586_v34 }
 0x552   :  { %10427 = vst [vmem:[#allocation49_spill] sm:$0xff] %v7595_v31 }
 0x553   :  { %v4348_v61 = vpop.eup %4347  ;;  %10428 = vst [vmem:[#allocation81_spill] sm:$0xff] %v7598_v51 }
 0x554   :  { %v7529_v4 = vmul.f32 %v4348_v61, %v2019_v16  ;;  %v7601_v61 = vld [vmem:[#allocation7 + $0x150] sm:$0xff]  ;;  %v7604_v16 = vld [vmem:[#allocation7 + $0x158] sm:$0xff] }
 0x555   :  { %10429 = vst [vmem:[#allocation67_spill] sm:$0xff] %v7601_v61 }
 0x556   :  { %2043 = vmatmul.f32.vlgmr.msra.gmra.mxu0 %v7529_v4  ;;  %2063 = vmatmul.f32.vlgmr.msrb.gmra.mxu1 %v7529_v4  ;;  %10430 = vst [vmem:[#allocation68_spill] sm:$0xff] %v7604_v16 }
 0x557   :  { %2083 = vmatmul.f32.vlgmr.msra.gmra.mxu2 %v7529_v4  ;;  %2103 = vmatmul.f32.vlgmr.msra.gmra.mxu3 %v7529_v4 }
 0x558   :  { %2263 = vmatpush.msra.mxu0 %v7535_v14  ;;  %2283 = vmatpush.msrb.mxu1 %v7538_v1 }
 0x559   :  { %2303 = vmatpush.msra.mxu2 %v7541_v42  ;;  %2323 = vmatpush.msra.mxu3 %v7544_v55 }
 0x55a   :  { %2264 = vmatpush.msra.mxu0 %v7547_v9  ;;  %2284 = vmatpush.msrb.mxu1 %v7550_v30 }
 0x55b   :  { %2304 = vmatpush.msra.mxu2 %v7553_v11  ;;  %2324 = vmatpush.msra.mxu3 %v7556_v60 }
 0x55c   :  { %2265 = vmatpush.msra.mxu0 %v7559_v6  ;;  %2285 = vmatpush.msrb.mxu1 %v7562_v37 }
 0x55d   :  { %2305 = vmatpush.msra.mxu2 %v7565_v50  ;;  %2325 = vmatpush.msra.mxu3 %v7568_v52 }
 0x55e   :  { %2266 = vmatpush.msra.mxu0 %v7571_v43  ;;  %2286 = vmatpush.msrb.mxu1 %v7574_v39 }
 0x55f   :  { %2306 = vmatpush.msra.mxu2 %v7577_v25  ;;  %2326 = vmatpush.msra.mxu3 %v7580_v33 }
 0x560   :  { %2267 = vmatpush.msra.mxu0 %v7583_v18  ;;  %2287 = vmatpush.msrb.mxu1 %v7586_v34 }
 0x561   :  { %2307 = vmatpush.msra.mxu2 %v7589_v13  ;;  %2327 = vmatpush.msra.mxu3 %v7592_v26  ;;  %v7607_v13 = vld [vmem:[#allocation7 + $0x120] sm:$0xff]  ;;  %v7610_v26 = vld [vmem:[#allocation7 + $0x128] sm:$0xff] }
 0x562   :  { %2268 = vmatpush.msra.mxu0 %v7595_v31  ;;  %2288 = vmatpush.msrb.mxu1 %v7598_v51  ;;  %10431 = vst [vmem:[#allocation53_spill] sm:$0xff] %v7607_v13  ;;  %v7613_v31 = vld [vmem:[#allocation7 + $0x130] sm:$0xff]  ;;  %v7616_v51 = vld [vmem:[#allocation7 + $0x138] sm:$0xff] }
 0x563   :  { %2308 = vmatpush.msra.mxu2 %v7601_v61  ;;  %2328 = vmatpush.msra.mxu3 %v7604_v16  ;;  %10432 = vst [vmem:[#allocation85_spill] sm:$0xff] %v7610_v26  ;;  %v7619_v61 = vld [vmem:[#allocation7 + $0x100] sm:$0xff]  ;;  %v7622_v16 = vld [vmem:[#allocation7 + $0x108] sm:$0xff] }
 0x564   :  { %2269 = vmatpush.msra.mxu0 %v7607_v13  ;;  %2289 = vmatpush.msrb.mxu1 %v7610_v26  ;;  %10433 = vst [vmem:[#allocation71_spill] sm:$0xff] %v7613_v31  ;;  %v7625_v13 = vld [vmem:[#allocation7 + $0x110] sm:$0xff]  ;;  %v7628_v26 = vld [vmem:[#allocation7 + $0x118] sm:$0xff] }
 0x565   :  { %2309 = vmatpush.msra.mxu2 %v7613_v31  ;;  %10434 = vst [vmem:[#allocation72_spill] sm:$0xff] %v7616_v51  ;;  %2329 = vmatpush.msra.mxu3 %v7616_v51  ;;  %v7631_v31 = vld [vmem:[#allocation7 + $0xe0] sm:$0xff]  ;;  %v7634_v51 = vld [vmem:[#allocation7 + $0xe8] sm:$0xff] }
 0x566   :  { %10435 = vst [vmem:[#allocation57_spill] sm:$0xff] %v7619_v61  ;;  %2270 = vmatpush.msra.mxu0 %v7619_v61  ;;  %2290 = vmatpush.msrb.mxu1 %v7622_v16  ;;  %v7637_v61 = vld [vmem:[#allocation7 + $0xf0] sm:$0xff] }
 0x567   :  { %10436 = vst [vmem:[#allocation88_spill] sm:$0xff] %v7622_v16  ;;  %2310 = vmatpush.msra.mxu2 %v7625_v13  ;;  %2330 = vmatpush.msra.mxu3 %v7628_v26  ;;  %v7640_v16 = vld [vmem:[#allocation7 + $0xf8] sm:$0xff] }
 0x568   :  { %10437 = vst [vmem:[#allocation75_spill] sm:$0xff] %v7625_v13  ;;  %2271 = vmatpush.msra.mxu0 %v7631_v31  ;;  %2291 = vmatpush.msrb.mxu1 %v7634_v51  ;;  %v7643_v13 = vld [vmem:[#allocation7 + $0xc0] sm:$0xff] }
 0x569   :  { %10438 = vst [vmem:[#allocation76_spill] sm:$0xff] %v7628_v26  ;;  %2311 = vmatpush.msra.mxu2 %v7637_v61  ;;  %2331 = vmatpush.msra.mxu3 %v7640_v16  ;;  %v7646_v26 = vld [vmem:[#allocation7 + $0xc8] sm:$0xff] }
 0x56a   :  { %10439 = vst [vmem:[#allocation61_spill] sm:$0xff] %v7631_v31  ;;  %2272 = vmatpush.msra.mxu0 %v7643_v13  ;;  %2292 = vmatpush.msrb.mxu1 %v7646_v26  ;;  %v7649_v31 = vld [vmem:[#allocation7 + $0xd0] sm:$0xff] }
 0x56b   :  { %10440 = vst [vmem:[#allocation91_spill] sm:$0xff] %v7634_v51  ;;  %2312 = vmatpush.msra.mxu2 %v7649_v31  ;;  %v7652_v51 = vld [vmem:[#allocation7 + $0xd8] sm:$0xff] }
 0x56c   :  { %10441 = vst [vmem:[#allocation79_spill] sm:$0xff] %v7637_v61  ;;  %2332 = vmatpush.msra.mxu3 %v7652_v51  ;;  %v7655_v61 = vld [vmem:[#allocation7 + $0xa0] sm:$0xff] }
 0x56d   :  { %10442 = vst [vmem:[#allocation80_spill] sm:$0xff] %v7640_v16  ;;  %2273 = vmatpush.msra.mxu0 %v7655_v61  ;;  %v7658_v16 = vld [vmem:[#allocation7 + $0xa8] sm:$0xff] }
 0x56e   :  { %10443 = vst [vmem:[#allocation65_spill] sm:$0xff] %v7643_v13  ;;  %2293 = vmatpush.msrb.mxu1 %v7658_v16  ;;  %v7661_v13 = vld [vmem:[#allocation7 + $0xb0] sm:$0xff] }
 0x56f   :  { %10444 = vst [vmem:[#allocation94_spill] sm:$0xff] %v7646_v26  ;;  %2313 = vmatpush.msra.mxu2 %v7661_v13  ;;  %v7664_v26 = vld [vmem:[#allocation7 + $0xb8] sm:$0xff] }
 0x570   :  { %10445 = vst [vmem:[#allocation83_spill] sm:$0xff] %v7649_v31  ;;  %2333 = vmatpush.msra.mxu3 %v7664_v26  ;;  %v7667_v31 = vld [vmem:[#allocation7 + $0x80] sm:$0xff] }
 0x571   :  { %10446 = vst [vmem:[#allocation84_spill] sm:$0xff] %v7652_v51  ;;  %2274 = vmatpush.msra.mxu0 %v7667_v31  ;;  %v7670_v51 = vld [vmem:[#allocation7 + $0x88] sm:$0xff] }
 0x572   :  { %10447 = vst [vmem:[#allocation70_spill] sm:$0xff] %v7655_v61  ;;  %2294 = vmatpush.msrb.mxu1 %v7670_v51  ;;  %v7673_v61 = vld [vmem:[#allocation7 + $0x90] sm:$0xff] }
 0x573   :  { %10448 = vst [vmem:[#allocation97_spill] sm:$0xff] %v7658_v16  ;;  %2314 = vmatpush.msra.mxu2 %v7673_v61  ;;  %v7676_v16 = vld [vmem:[#allocation7 + $0x98] sm:$0xff] }
 0x574   :  { %10449 = vst [vmem:[#allocation86_spill] sm:$0xff] %v7661_v13  ;;  %2334 = vmatpush.msra.mxu3 %v7676_v16  ;;  %v7679_v13 = vld [vmem:[#allocation7 + $0x60] sm:$0xff] }
 0x575   :  { %10450 = vst [vmem:[#allocation87_spill] sm:$0xff] %v7664_v26  ;;  %2275 = vmatpush.msra.mxu0 %v7679_v13  ;;  %v7682_v26 = vld [vmem:[#allocation7 + $0x68] sm:$0xff] }
 0x576   :  { %10451 = vst [vmem:[#allocation74_spill] sm:$0xff] %v7667_v31  ;;  %2295 = vmatpush.msrb.mxu1 %v7682_v26  ;;  %v7685_v31 = vld [vmem:[#allocation7 + $0x70] sm:$0xff] }
 0x577   :  { %10452 = vst [vmem:[#allocation98_spill] sm:$0xff] %v7670_v51  ;;  %2315 = vmatpush.msra.mxu2 %v7685_v31  ;;  %v7688_v51 = vld [vmem:[#allocation7 + $0x78] sm:$0xff] }
 0x578   :  { %10453 = vst [vmem:[#allocation89_spill] sm:$0xff] %v7673_v61  ;;  %2335 = vmatpush.msra.mxu3 %v7688_v51  ;;  %v7691_v61 = vld [vmem:[#allocation7 + $0x40] sm:$0xff] }
 0x579   :  { %10454 = vst [vmem:[#allocation90_spill] sm:$0xff] %v7676_v16  ;;  %2276 = vmatpush.msra.mxu0 %v7691_v61  ;;  %v7694_v16 = vld [vmem:[#allocation7 + $0x48] sm:$0xff] }
 0x57a   :  { %10455 = vst [vmem:[#allocation78_spill] sm:$0xff] %v7679_v13  ;;  %2296 = vmatpush.msrb.mxu1 %v7694_v16  ;;  %v7697_v13 = vld [vmem:[#allocation7 + $0x50] sm:$0xff] }
 0x57b   :  { %10456 = vst [vmem:[#allocation99_spill] sm:$0xff] %v7682_v26  ;;  %2316 = vmatpush.msra.mxu2 %v7697_v13  ;;  %v7700_v26 = vld [vmem:[#allocation7 + $0x58] sm:$0xff] }
 0x57c   :  { %10457 = vst [vmem:[#allocation92_spill] sm:$0xff] %v7685_v31  ;;  %2336 = vmatpush.msra.mxu3 %v7700_v26  ;;  %v7703_v31 = vld [vmem:[#allocation7 + $0x20] sm:$0xff] }
 0x57d   :  { %10458 = vst [vmem:[#allocation93_spill] sm:$0xff] %v7688_v51  ;;  %2277 = vmatpush.msra.mxu0 %v7703_v31  ;;  %v7706_v51 = vld [vmem:[#allocation7 + $0x28] sm:$0xff] }
 0x57e   :  { %10459 = vst [vmem:[#allocation82_spill] sm:$0xff] %v7691_v61  ;;  %2297 = vmatpush.msrb.mxu1 %v7706_v51  ;;  %v7709_v61 = vld [vmem:[#allocation7 + $0x30] sm:$0xff] }
 0x57f   :  { %10460 = vst [vmem:[#allocation100_spill] sm:$0xff] %v7694_v16  ;;  %2317 = vmatpush.msra.mxu2 %v7709_v61  ;;  %v7712_v16 = vld [vmem:[#allocation7 + $0x38] sm:$0xff] }
 0x580   :  { %10461 = vst [vmem:[#allocation95_spill] sm:$0xff] %v7697_v13  ;;  %2337 = vmatpush.msra.mxu3 %v7712_v16  ;;  %v7715_v13 = vld [vmem:[#allocation7] sm:$0xff] }
 0x581   :  { %10462 = vst [vmem:[#allocation96_spill] sm:$0xff] %v7700_v26  ;;  %2278 = vmatpush.msra.mxu0 %v7715_v13  ;;  %v7718_v26 = vld [vmem:[#allocation7 + $0x8] sm:$0xff] }
 0x582   :  { %10463 = vst [vmem:[#allocation124_spill] sm:$0xff] %v7703_v31  ;;  %2298 = vmatpush.msrb.mxu1 %v7718_v26  ;;  %v7721_v31 = vld [vmem:[#allocation7 + $0x10] sm:$0xff] }
 0x583   :  { %10464 = vst [vmem:[#allocation151_spill] sm:$0xff] %v7706_v51  ;;  %2318 = vmatpush.msra.mxu2 %v7721_v31  ;;  %v7724_v51 = vld [vmem:[#allocation7 + $0x18] sm:$0xff] }
 0x584   :  { %10465 = vst [vmem:[#allocation145_spill] sm:$0xff] %v7709_v61  ;;  %2338 = vmatpush.msra.mxu3 %v7724_v51  ;;  %v1811_v61 = vadd.f32 %v7509_v57, %v10328_v12 }
 0x585   :  { %10466 = vst [vmem:[#allocation129_spill] sm:$0xff] %v7712_v16  ;;  %v1831_v16 = vadd.f32 %v7511_v40, %v10329_v23 }
 0x586   :  { %10467 = vst [vmem:[#allocation130_spill] sm:$0xff] %v7715_v13 }
 0x587   :  { %10468 = vst [vmem:[#allocation131_spill] sm:$0xff] %v7718_v26 }
 0x588   :  { %10469 = vst [vmem:[#allocation132_spill] sm:$0xff] %v7721_v31  ;;  %v1851_v31 = vadd.f32 %v7517_v63, %v10330_v45 }
 0x589   :  { %10470 = vst [vmem:[#allocation133_spill] sm:$0xff] %v7724_v51 }
 0x5d3   :  { %v2044_v34 = vpop.f32.mrf.mxu0  ;;  %v2064_v13 = vpop.f32.mrf.mxu1 }
 0x5d4   :  { %v2107_v18 = vadd.f32 %v2044_v34, %v1811_v61  ;;  %v2108_v33 = vadd.f32 %v2064_v13, %v1831_v16 }
 0x5d6   :  { %v4174_v25 = vmul.f32 -1.442695, %v2107_v18  ;;  %v4175_v26 = vmul.f32 -1.442695, %v2108_v33  ;;  %v1871_v33 = vadd.f32 %v7521_v49, %v10331_v21 }
 0x5d8   :  { %4349 = vpow2.f32 %v4174_v25 }
 0x5d9   :  { %4351 = vpow2.f32 %v4175_v26 }
 0x5da   :  { %v2084_v39 = vpop.f32.mrf.mxu2  ;;  %v2104_v40 = vpop.f32.mrf.mxu3 }
 0x5db   :  { %v2109_v43 = vadd.f32 %v2084_v39, %v1851_v31  ;;  %v2110_v13 = vadd.f32 %v2104_v40, %v1871_v33 }
 0x5dd   :  { %v4176_v51 = vmul.f32 -1.442695, %v2109_v43 }
 0x5de   :  { %v4350_v52 = vpop.eup %4349 }
 0x5df   :  { %v4352_v50 = vpop.eup %4351  ;;  %v2120_v57 = vadd.f32 1.0, %v4350_v52  ;;  %4353 = vpow2.f32 %v4176_v51 }
 0x5e0   :  { %v2121_v12 = vadd.f32 1.0, %v4352_v50 }
 0x5e1   :  { %4355 = vrcp.f32 %v2120_v57  ;;  %v2134_v61 = vand.u32 2147483648, %v2120_v57  ;;  %v2132_v51 = vand.u32 2147483647, %v2120_v57  ;;  %vm2128_vm4 = vweird.f32 %v2120_v57 }
 0x5e2   :  { %4357 = vrcp.f32 %v2121_v12  ;;  %v2149_v52 = vand.u32 2147483648, %v2121_v12  ;;  %v2147_v45 = vand.u32 2147483647, %v2121_v12  ;;  %vm2143_vm5 = vweird.f32 %v2121_v12 }
 0x5e3   :  { %vm2133_vm8 = vcmp.eq.f32.partialorder %v2132_v51, 8.507059e+37 }
 0x5e4   :  { %vm2148_vm9 = vcmp.eq.f32.partialorder %v2147_v45, 8.507059e+37 }
 0x5e5   :  { %v4354_v34 = vpop.eup %4353 }
 0x5e6   :  { %v2122_v25 = vadd.f32 1.0, %v4354_v34  ;;  %v2135_v34 = vor.u32 1.1754944e-38, %v2134_v61 }
 0x5e7   :  { %v4356_v18 = vpop.eup %4355 }
 0x5e8   :  { %v4358_v63 = vpop.eup %4357  ;;  %v2124_v26 = vmul.f32 %v4356_v18, %v2120_v57  ;;  %4359 = vrcp.f32 %v2122_v25  ;;  %vm2129_vm2 = vweird.f32 %v4356_v18  ;;  %v2164_v61 = vand.u32 2147483648, %v2122_v25 }
 0x5e9   :  { %v2139_v39 = vmul.f32 %v4358_v63, %v2121_v12  ;;  %4361 = vtanh.f32 %v2110_v13  ;;  %vm2144_vm3 = vweird.f32 %v4358_v63  ;;  %vm2130_vm6 = vmor %vm2128_vm4, %vm2129_vm2  ;;  %vm2158_vm11 = vweird.f32 %v2122_v25 }
 0x5ea   :  { %v2125_v43 = vsub.f32 1.0, %v2124_v26  ;;  %vm2145_vm7 = vmor %vm2143_vm5, %vm2144_vm3  ;;  %v2150_v26 = vor.u32 1.1754944e-38, %v2149_v52  ;;  %v2165_v51 = vor.u32 1.1754944e-38, %v2164_v61  ;;  %v7806_v61 = vld [vmem:[#allocation9 + $0x178] sm:$0xff] }
 0x5eb   :  { %v2140_v31 = vsub.f32 1.0, %v2139_v39 }
 0x5ec   :  { %v2126_v50 = vmul.f32 %v4356_v18, %v2125_v43 }
 0x5ed   :  { %v2141_v16 = vmul.f32 %v4358_v63, %v2140_v31 }
 0x5ee   :  { %v4360_v23 = vpop.eup %4359  ;;  %v2127_v49 = vadd.f32 %v4356_v18, %v2126_v50 }
 0x5ef   :  { %v2154_v40 = vmul.f32 %v4360_v23, %v2122_v25  ;;  %v2142_v33 = vadd.f32 %v4358_v63, %v2141_v16  ;;  %v4362_v13 = vpop.eup %4361  ;;  %vm2159_vm10 = vweird.f32 %v4360_v23  ;;  %v7763_v16 = vld [vmem:[#allocation9 + $0x1d0] sm:$0xff] }
 0x5f0   :  { %v2131_v39 = vsel %vm2130_vm6, %v4356_v18, %v2127_v49  ;;  %v2162_v18 = vand.u32 2147483647, %v2122_v25  ;;  %vm2160_vm12 = vmor %vm2158_vm11, %vm2159_vm10  ;;  %v7760_v25 = vld [vmem:[#allocation9 + $0x1c8] sm:$0xff]  ;;  %v7766_v49 = vld [vmem:[#allocation9 + $0x1d8] sm:$0xff] }
 0x5f1   :  { %v2155_v21 = vsub.f32 1.0, %v2154_v40  ;;  %v2136_v43 = vsel %vm2133_vm8, %v2135_v34, %v2131_v39  ;;  %v2146_v37 = vsel %vm2145_vm7, %v4358_v63, %v2142_v33  ;;  %v7769_v40 = vld [vmem:[#allocation9 + $0x1a0] sm:$0xff]  ;;  %v7772_v34 = vld [vmem:[#allocation9 + $0x1a8] sm:$0xff]  ;;  %v7775_v33 = vld [vmem:[#allocation9 + $0x1b0] sm:$0xff] }
 0x5f2   :  { %v2151_v31 = vsel %vm2148_vm9, %v2150_v26, %v2146_v37  ;;  %v2170_v6 = vmul.f32 %v4362_v13, %v2136_v43  ;;  %vm2163_vm13 = vcmp.eq.f32.partialorder %v2162_v18, 8.507059e+37  ;;  %v7778_v26 = vld [vmem:[#allocation9 + $0x1b8] sm:$0xff]  ;;  %v7785_v39 = vld [vmem:[#allocation9 + $0x180] sm:$0xff]  ;;  %v7788_v13 = vld [vmem:[#allocation9 + $0x188] sm:$0xff] }
 0x5f3   :  { %v2156_v60 = vmul.f32 %v4360_v23, %v2155_v21  ;;  %v2169_v50 = vmul.f32 %v2151_v31, %v7250_v56  ;;  %v7745_v21 = vld [vmem:[#allocation9 + $0x1e0] sm:$0xff]  ;;  %v7748_v56 = vld [vmem:[#allocation9 + $0x1e8] sm:$0xff]  ;;  %v7791_v43 = vld [vmem:[#allocation9 + $0x190] sm:$0xff] }
 0x5f4   :  { %v7794_v31 = vld [vmem:[#allocation9 + $0x198] sm:$0xff]  ;;  %v7809_v18 = vld [vmem:[#allocation9 + $0x140] sm:$0xff] }
 0x5f5   :  { %v7736_v57 = vadd.f32 %v2170_v6, %v2169_v50  ;;  %v2157_v12 = vadd.f32 %v4360_v23, %v2156_v60  ;;  %v7754_v60 = vld [vmem:[#allocation9 + $0x1f8] sm:$0xff]  ;;  %v7757_v6 = vld [vmem:[#allocation9 + $0x1c0] sm:$0xff]  ;;  %10472 = vst [vmem:[#allocation135_spill] sm:$0xff] %v7809_v18 }
 0x5f6   :  { %v7797_v50 = vld [vmem:[#allocation9 + $0x160] sm:$0xff] }
 0x5f7   :  { %4363 = vtanh.f32 %v7736_v57  ;;  %v2161_v52 = vsel %vm2160_vm12, %v4360_v23, %v2157_v12  ;;  %v7751_v23 = vld [vmem:[#allocation9 + $0x1f0] sm:$0xff] }
 0x5f8   :  { %v2166_v45 = vsel %vm2163_vm13, %v2165_v51, %v2161_v52  ;;  %v7803_v12 = vld [vmem:[#allocation9 + $0x170] sm:$0xff]  ;;  %v7812_v52 = vld [vmem:[#allocation9 + $0x148] sm:$0xff] }
 0x5f9   :  { %10473 = vst [vmem:[#allocation136_spill] sm:$0xff] %v7812_v52  ;;  %v7815_v51 = vld [vmem:[#allocation9 + $0x150] sm:$0xff] }
 0x5fa   :  { %10474 = vst [vmem:[#allocation137_spill] sm:$0xff] %v7815_v51 }
 0x5fd   :  { %v4364_v63 = vpop.eup %4363 }
 0x5fe   :  { %v7739_v37 = vmul.f32 %v4364_v63, %v2166_v45  ;;  %v7818_v63 = vld [vmem:[#allocation9 + $0x158] sm:$0xff]  ;;  %v7821_v45 = vld [vmem:[#allocation9 + $0x120] sm:$0xff] }
 0x5ff   :  { %10475 = vst [vmem:[#allocation138_spill] sm:$0xff] %v7818_v63 }
 0x600   :  { %10471 = vst [vmem:[#allocation134_spill] sm:$0xff] %v7739_v37  ;;  %2192 = vmatmul.f32.vlgmr.msrb.gmra.mxu0 %v7739_v37  ;;  %2212 = vmatmul.f32.vlgmr.msra.gmra.mxu1 %v7739_v37 }
 0x601   :  { %2232 = vmatmul.f32.vlgmr.msrb.gmra.mxu2 %v7739_v37  ;;  %2252 = vmatmul.f32.vlgmr.msrb.gmra.mxu3 %v7739_v37  ;;  %10476 = vst [vmem:[#allocation139_spill] sm:$0xff] %v7821_v45  ;;  %v7824_v37 = vld [vmem:[#allocation9 + $0x128] sm:$0xff] }
 0x602   :  { %2410 = vmatpush.msrb.mxu0 %v7745_v21  ;;  %2430 = vmatpush.msra.mxu1 %v7748_v56  ;;  %10477 = vst [vmem:[#allocation140_spill] sm:$0xff] %v7824_v37 }
 0x603   :  { %2450 = vmatpush.msrb.mxu2 %v7751_v23  ;;  %2470 = vmatpush.msrb.mxu3 %v7754_v60 }
 0x604   :  { %2411 = vmatpush.msrb.mxu0 %v7757_v6  ;;  %2431 = vmatpush.msra.mxu1 %v7760_v25 }
 0x605   :  { %2451 = vmatpush.msrb.mxu2 %v7763_v16  ;;  %2471 = vmatpush.msrb.mxu3 %v7766_v49 }
 0x606   :  { %2412 = vmatpush.msrb.mxu0 %v7769_v40  ;;  %2432 = vmatpush.msra.mxu1 %v7772_v34 }
 0x607   :  { %2452 = vmatpush.msrb.mxu2 %v7775_v33  ;;  %2472 = vmatpush.msrb.mxu3 %v7778_v26 }
 0x608   :  { %2279 = vmatmul.f32.vlgmr.msra.gmra.mxu0 %v7529_v4  ;;  %2299 = vmatmul.f32.vlgmr.msrb.gmra.mxu1 %v7529_v4 }
 0x609   :  { %2319 = vmatmul.f32.vlgmr.msra.gmra.mxu2 %v7529_v4  ;;  %2339 = vmatmul.f32.vlgmr.msra.gmra.mxu3 %v7529_v4  ;;  %v7800_v4 = vld [vmem:[#allocation9 + $0x168] sm:$0xff] }
 0x60a   :  { %2413 = vmatpush.msrb.mxu0 %v7785_v39  ;;  %2433 = vmatpush.msra.mxu1 %v7788_v13 }
 0x60b   :  { %2453 = vmatpush.msrb.mxu2 %v7791_v43  ;;  %2473 = vmatpush.msrb.mxu3 %v7794_v31 }
 0x60c   :  { %2414 = vmatpush.msrb.mxu0 %v7797_v50  ;;  %2434 = vmatpush.msra.mxu1 %v7800_v4 }
 0x60d   :  { %2454 = vmatpush.msrb.mxu2 %v7803_v12  ;;  %2474 = vmatpush.msrb.mxu3 %v7806_v61 }
 0x60e   :  { %2415 = vmatpush.msrb.mxu0 %v7809_v18  ;;  %2435 = vmatpush.msra.mxu1 %v7812_v52  ;;  %v7827_v18 = vld [vmem:[#allocation9 + $0x130] sm:$0xff]  ;;  %v7830_v52 = vld [vmem:[#allocation9 + $0x138] sm:$0xff] }
 0x60f   :  { %2455 = vmatpush.msrb.mxu2 %v7815_v51  ;;  %2475 = vmatpush.msrb.mxu3 %v7818_v63  ;;  %10478 = vst [vmem:[#allocation142_spill] sm:$0xff] %v7827_v18  ;;  %v7833_v51 = vld [vmem:[#allocation9 + $0x100] sm:$0xff]  ;;  %v7836_v63 = vld [vmem:[#allocation9 + $0x108] sm:$0xff] }
 0x610   :  { %2416 = vmatpush.msrb.mxu0 %v7821_v45  ;;  %2436 = vmatpush.msra.mxu1 %v7824_v37  ;;  %10479 = vst [vmem:[#allocation144_spill] sm:$0xff] %v7830_v52  ;;  %v7839_v45 = vld [vmem:[#allocation9 + $0x110] sm:$0xff]  ;;  %v7842_v37 = vld [vmem:[#allocation9 + $0x118] sm:$0xff] }
 0x611   :  { %2456 = vmatpush.msrb.mxu2 %v7827_v18  ;;  %2476 = vmatpush.msrb.mxu3 %v7830_v52  ;;  %10480 = vst [vmem:[#allocation146_spill] sm:$0xff] %v7833_v51  ;;  %v7845_v18 = vld [vmem:[#allocation9 + $0xe0] sm:$0xff]  ;;  %v7848_v52 = vld [vmem:[#allocation9 + $0xe8] sm:$0xff] }
 0x612   :  { %2417 = vmatpush.msrb.mxu0 %v7833_v51  ;;  %10481 = vst [vmem:[#allocation147_spill] sm:$0xff] %v7836_v63  ;;  %2437 = vmatpush.msra.mxu1 %v7836_v63  ;;  %v7851_v51 = vld [vmem:[#allocation9 + $0xf0] sm:$0xff]  ;;  %v7854_v63 = vld [vmem:[#allocation9 + $0xf8] sm:$0xff] }
 0x613   :  { %10482 = vst [vmem:[#allocation148_spill] sm:$0xff] %v7839_v45  ;;  %2457 = vmatpush.msrb.mxu2 %v7839_v45  ;;  %2477 = vmatpush.msrb.mxu3 %v7842_v37  ;;  %v7857_v45 = vld [vmem:[#allocation9 + $0xc0] sm:$0xff] }
 0x614   :  { %10483 = vst [vmem:[#allocation149_spill] sm:$0xff] %v7842_v37  ;;  %2418 = vmatpush.msrb.mxu0 %v7845_v18  ;;  %2438 = vmatpush.msra.mxu1 %v7848_v52  ;;  %v7860_v37 = vld [vmem:[#allocation9 + $0xc8] sm:$0xff] }
 0x615   :  { %10484 = vst [vmem:[#allocation150_spill] sm:$0xff] %v7845_v18  ;;  %2458 = vmatpush.msrb.mxu2 %v7851_v51  ;;  %2478 = vmatpush.msrb.mxu3 %v7854_v63  ;;  %v7863_v18 = vld [vmem:[#allocation9 + $0xd0] sm:$0xff] }
 0x616   :  { %10485 = vst [vmem:[#allocation152_spill] sm:$0xff] %v7848_v52  ;;  %2419 = vmatpush.msrb.mxu0 %v7857_v45  ;;  %2439 = vmatpush.msra.mxu1 %v7860_v37  ;;  %v7866_v52 = vld [vmem:[#allocation9 + $0xd8] sm:$0xff] }
 0x617   :  { %10486 = vst [vmem:[#allocation153_spill] sm:$0xff] %v7851_v51  ;;  %2459 = vmatpush.msrb.mxu2 %v7863_v18  ;;  %2479 = vmatpush.msrb.mxu3 %v7866_v52  ;;  %v7869_v51 = vld [vmem:[#allocation9 + $0xa0] sm:$0xff] }
 0x618   :  { %10487 = vst [vmem:[#allocation154_spill] sm:$0xff] %v7854_v63  ;;  %2420 = vmatpush.msrb.mxu0 %v7869_v51  ;;  %v7872_v63 = vld [vmem:[#allocation9 + $0xa8] sm:$0xff] }
 0x619   :  { %10488 = vst [vmem:[#allocation156_spill] sm:$0xff] %v7857_v45  ;;  %2440 = vmatpush.msra.mxu1 %v7872_v63  ;;  %v7875_v45 = vld [vmem:[#allocation9 + $0xb0] sm:$0xff] }
 0x61a   :  { %10489 = vst [vmem:[#allocation157_spill] sm:$0xff] %v7860_v37  ;;  %2460 = vmatpush.msrb.mxu2 %v7875_v45  ;;  %v7878_v37 = vld [vmem:[#allocation9 + $0xb8] sm:$0xff] }
 0x61b   :  { %10490 = vst [vmem:[#allocation158_spill] sm:$0xff] %v7863_v18  ;;  %2480 = vmatpush.msrb.mxu3 %v7878_v37  ;;  %v7881_v18 = vld [vmem:[#allocation9 + $0x80] sm:$0xff] }
 0x61c   :  { %10491 = vst [vmem:[#allocation159_spill] sm:$0xff] %v7866_v52  ;;  %2421 = vmatpush.msrb.mxu0 %v7881_v18  ;;  %v7884_v52 = vld [vmem:[#allocation9 + $0x88] sm:$0xff] }
 0x61d   :  { %10492 = vst [vmem:[#allocation161_spill] sm:$0xff] %v7869_v51  ;;  %2441 = vmatpush.msra.mxu1 %v7884_v52  ;;  %v7887_v51 = vld [vmem:[#allocation9 + $0x90] sm:$0xff] }
 0x61e   :  { %10493 = vst [vmem:[#allocation162_spill] sm:$0xff] %v7872_v63  ;;  %2461 = vmatpush.msrb.mxu2 %v7887_v51  ;;  %v7890_v63 = vld [vmem:[#allocation9 + $0x98] sm:$0xff] }
 0x61f   :  { %10494 = vst [vmem:[#allocation163_spill] sm:$0xff] %v7875_v45  ;;  %2481 = vmatpush.msrb.mxu3 %v7890_v63  ;;  %v7893_v45 = vld [vmem:[#allocation9 + $0x60] sm:$0xff] }
 0x620   :  { %10495 = vst [vmem:[#allocation164_spill] sm:$0xff] %v7878_v37  ;;  %2422 = vmatpush.msrb.mxu0 %v7893_v45  ;;  %v7896_v37 = vld [vmem:[#allocation9 + $0x68] sm:$0xff] }
 0x621   :  { %10496 = vst [vmem:[#allocation165_spill] sm:$0xff] %v7881_v18  ;;  %2442 = vmatpush.msra.mxu1 %v7896_v37  ;;  %v7899_v18 = vld [vmem:[#allocation9 + $0x70] sm:$0xff] }
 0x622   :  { %10497 = vst [vmem:[#allocation167_spill] sm:$0xff] %v7884_v52  ;;  %2462 = vmatpush.msrb.mxu2 %v7899_v18  ;;  %v7902_v52 = vld [vmem:[#allocation9 + $0x78] sm:$0xff] }
 0x623   :  { %10498 = vst [vmem:[#allocation168_spill] sm:$0xff] %v7887_v51  ;;  %2482 = vmatpush.msrb.mxu3 %v7902_v52  ;;  %v7905_v51 = vld [vmem:[#allocation9 + $0x40] sm:$0xff] }
 0x624   :  { %10499 = vst [vmem:[#allocation169_spill] sm:$0xff] %v7890_v63  ;;  %2423 = vmatpush.msrb.mxu0 %v7905_v51  ;;  %v7908_v63 = vld [vmem:[#allocation9 + $0x48] sm:$0xff] }
 0x625   :  { %10500 = vst [vmem:[#allocation170_spill] sm:$0xff] %v7893_v45  ;;  %2443 = vmatpush.msra.mxu1 %v7908_v63  ;;  %v7911_v45 = vld [vmem:[#allocation9 + $0x50] sm:$0xff] }
 0x626   :  { %10501 = vst [vmem:[#allocation171_spill] sm:$0xff] %v7896_v37  ;;  %2463 = vmatpush.msrb.mxu2 %v7911_v45  ;;  %v7914_v37 = vld [vmem:[#allocation9 + $0x58] sm:$0xff] }
 0x627   :  { %10502 = vst [vmem:[#allocation172_spill] sm:$0xff] %v7899_v18  ;;  %2483 = vmatpush.msrb.mxu3 %v7914_v37  ;;  %v7917_v18 = vld [vmem:[#allocation9 + $0x20] sm:$0xff] }
 0x628   :  { %10503 = vst [vmem:[#allocation173_spill] sm:$0xff] %v7902_v52  ;;  %2424 = vmatpush.msrb.mxu0 %v7917_v18  ;;  %v7920_v52 = vld [vmem:[#allocation9 + $0x28] sm:$0xff] }
 0x629   :  { %10504 = vst [vmem:[#allocation174_spill] sm:$0xff] %v7905_v51  ;;  %2444 = vmatpush.msra.mxu1 %v7920_v52  ;;  %v7923_v51 = vld [vmem:[#allocation9 + $0x30] sm:$0xff] }
 0x62a   :  { %10505 = vst [vmem:[#allocation175_spill] sm:$0xff] %v7908_v63  ;;  %2464 = vmatpush.msrb.mxu2 %v7923_v51  ;;  %v7926_v63 = vld [vmem:[#allocation9 + $0x38] sm:$0xff] }
 0x62b   :  { %10506 = vst [vmem:[#allocation176_spill] sm:$0xff] %v7911_v45  ;;  %2484 = vmatpush.msrb.mxu3 %v7926_v63  ;;  %v7929_v45 = vld [vmem:[#allocation9] sm:$0xff] }
 0x62c   :  { %10507 = vst [vmem:[#allocation177_spill] sm:$0xff] %v7914_v37  ;;  %2425 = vmatpush.msrb.mxu0 %v7929_v45  ;;  %v7932_v37 = vld [vmem:[#allocation9 + $0x8] sm:$0xff] }
 0x62d   :  { %10508 = vst [vmem:[#allocation178_spill] sm:$0xff] %v7917_v18  ;;  %2445 = vmatpush.msra.mxu1 %v7932_v37  ;;  %v7935_v18 = vld [vmem:[#allocation9 + $0x10] sm:$0xff] }
 0x62e   :  { %10509 = vst [vmem:[#allocation179_spill] sm:$0xff] %v7920_v52  ;;  %2465 = vmatpush.msrb.mxu2 %v7935_v18  ;;  %v7938_v52 = vld [vmem:[#allocation9 + $0x18] sm:$0xff]  ;;  %2559 = vmatpush.msra.mxu0 %v7327_v7  ;;  %v7969_v7 = vld [vmem:[#allocation10 + $0x100] sm:$0xff] }
 0x62f   :  { %2485 = vmatpush.msrb.mxu3 %v7938_v52  ;;  %2579 = vmatpush.msrb.mxu1 %v7330_v8  ;;  %10510 = vst [vmem:[#allocation180_spill] sm:$0xff] %v7969_v7  ;;  %v10511_v8 = vld [vmem:[#allocation102_spill] sm:$0xff] }
 0x630   :  { %2599 = vmatpush.msra.mxu2 %v7333_v20  ;;  %2560 = vmatpush.msra.mxu0 %v7339_v58  ;;  %v10512_v20 = vld [vmem:[#allocation105_spill] sm:$0xff]  ;;  %v10514_v58 = vld [vmem:[#allocation103_spill] sm:$0xff] }
 0x631   :  { %2619 = vmatpush.msra.mxu3 %v7336_v44  ;;  %2580 = vmatpush.msrb.mxu1 %v7342_v47  ;;  %v7975_v44 = vld [vmem:[#allocation10 + $0xe0] sm:$0xff] }
 0x632   :  { %2600 = vmatpush.msra.mxu2 %v7345_v36  ;;  %2561 = vmatpush.msra.mxu0 %v7351_v41  ;;  %10513 = vst [vmem:[#allocation181_spill] sm:$0xff] %v7975_v44  ;;  %v10515_v47 = vld [vmem:[#allocation109_spill] sm:$0xff]  ;;  %v10516_v36 = vld [vmem:[#allocation48_spill] sm:$0xff] }
 0x633   :  { %2620 = vmatpush.msra.mxu3 %v7348_v54  ;;  %2581 = vmatpush.msrb.mxu1 %v7354_v2  ;;  %v7981_v54 = vld [vmem:[#allocation10 + $0xc0] sm:$0xff]  ;;  %v10519_v2 = vld [vmem:[#allocation34_spill] sm:$0xff] }
 0x634   :  { %2601 = vmatpush.msra.mxu2 %v7357_v62  ;;  %2562 = vmatpush.msra.mxu0 %v7363_v24  ;;  %10517 = vst [vmem:[#allocation182_spill] sm:$0xff] %v7981_v54  ;;  %v10518_v41 = vld [vmem:[#allocation33_spill] sm:$0xff]  ;;  %v10520_v62 = vld [vmem:[#allocation27_spill] sm:$0xff]  ;;  %v10522_v24 = vld [vmem:[#allocation52_spill] sm:$0xff] }
 0x635   :  { %2621 = vmatpush.msra.mxu3 %v7360_v15  ;;  %2582 = vmatpush.msrb.mxu1 %v7366_v29  ;;  %v7987_v15 = vld [vmem:[#allocation10 + $0xa0] sm:$0xff]  ;;  %v10523_v29 = vld [vmem:[#allocation36_spill] sm:$0xff] }
 0x636   :  { %2602 = vmatpush.msra.mxu2 %v7369_v22  ;;  %2563 = vmatpush.msra.mxu0 %v7375_v27  ;;  %10521 = vst [vmem:[#allocation183_spill] sm:$0xff] %v7987_v15  ;;  %v10524_v22 = vld [vmem:[#allocation37_spill] sm:$0xff]  ;;  %v10526_v27 = vld [vmem:[#allocation28_spill] sm:$0xff] }
 0x637   :  { %2622 = vmatpush.msra.mxu3 %v7372_v32  ;;  %2583 = vmatpush.msrb.mxu1 %v7378_v10  ;;  %v7993_v32 = vld [vmem:[#allocation10 + $0x80] sm:$0xff]  ;;  %v10527_v10 = vld [vmem:[#allocation54_spill] sm:$0xff] }
 0x638   :  { %2603 = vmatpush.msra.mxu2 %v7381_v19  ;;  %2564 = vmatpush.msra.mxu0 %v7387_v0  ;;  %10525 = vst [vmem:[#allocation184_spill] sm:$0xff] %v7993_v32  ;;  %v10528_v19 = vld [vmem:[#allocation39_spill] sm:$0xff]  ;;  %v10530_v0 = vld [vmem:[#allocation29_spill] sm:$0xff] }
 0x639   :  { %2623 = vmatpush.msra.mxu3 %v7384_v5  ;;  %2584 = vmatpush.msrb.mxu1 %v7390_v35  ;;  %v10529_v5 = vld [vmem:[#allocation40_spill] sm:$0xff]  ;;  %v10531_v35 = vld [vmem:[#allocation58_spill] sm:$0xff] }
 0x63a   :  { %2604 = vmatpush.msra.mxu2 %v7393_v28  ;;  %2565 = vmatpush.msra.mxu0 %v7399_v53  ;;  %v10532_v28 = vld [vmem:[#allocation42_spill] sm:$0xff]  ;;  %v10534_v53 = vld [vmem:[#allocation32_spill] sm:$0xff] }
 0x63b   :  { %2624 = vmatpush.msra.mxu3 %v7396_v3  ;;  %2585 = vmatpush.msrb.mxu1 %v7402_v59  ;;  %v10533_v3 = vld [vmem:[#allocation43_spill] sm:$0xff]  ;;  %v10535_v59 = vld [vmem:[#allocation62_spill] sm:$0xff] }
 0x63c   :  { %2605 = vmatpush.msra.mxu2 %v7405_v38  ;;  %2566 = vmatpush.msra.mxu0 %v7969_v7  ;;  %v10536_v38 = vld [vmem:[#allocation46_spill] sm:$0xff] }
 0x63d   :  { %2625 = vmatpush.msra.mxu3 %v7408_v48  ;;  %2586 = vmatpush.msrb.mxu1 %v7412_v46  ;;  %v10537_v48 = vld [vmem:[#allocation47_spill] sm:$0xff] }
 0x63e   :  { %2606 = vmatpush.msra.mxu2 %v10511_v8  ;;  %2567 = vmatpush.msra.mxu0 %v7975_v44  ;;  %v10538_v46 = vld [vmem:[#allocation35_spill] sm:$0xff]  ;;  %v10539_v8 = vld [vmem:[#allocation66_spill] sm:$0xff] }
 0x63f   :  { %2626 = vmatpush.msra.mxu3 %v10512_v20  ;;  %2587 = vmatpush.msrb.mxu1 %v10514_v58  ;;  %v10540_v20 = vld [vmem:[#allocation50_spill] sm:$0xff]  ;;  %v10541_v58 = vld [vmem:[#allocation51_spill] sm:$0xff] }
 0x640   :  { %2607 = vmatpush.msra.mxu2 %v10515_v47  ;;  %2568 = vmatpush.msra.mxu0 %v7981_v54  ;;  %v10542_v47 = vld [vmem:[#allocation38_spill] sm:$0xff] }
 0x641   :  { %2627 = vmatpush.msra.mxu3 %v10516_v36  ;;  %2588 = vmatpush.msrb.mxu1 %v10518_v41  ;;  %v10543_v36 = vld [vmem:[#allocation69_spill] sm:$0xff]  ;;  %v10544_v41 = vld [vmem:[#allocation55_spill] sm:$0xff] }
 0x642   :  { %2608 = vmatpush.msra.mxu2 %v10519_v2  ;;  %2569 = vmatpush.msra.mxu0 %v7987_v15 }
 0x643   :  { %2628 = vmatpush.msra.mxu3 %v10520_v62  ;;  %2589 = vmatpush.msrb.mxu1 %v10522_v24  ;;  %v10545_v24 = vld [vmem:[#allocation127_spill] sm:$0xff] }
 0x644   :  { %2609 = vmatpush.msra.mxu2 %v10523_v29  ;;  %2570 = vmatpush.msra.mxu0 %v7993_v32  ;;  %v10546_v29 = vld [vmem:[#allocation112_spill] sm:$0xff] }
 0x645   :  { %2629 = vmatpush.msra.mxu3 %v10524_v22  ;;  %2590 = vmatpush.msrb.mxu1 %v10526_v27  ;;  %v277_v22 = vadd.f32 %v10546_v29, %v10545_v24  ;;  %v10547_v27 = vld [vmem:[#allocation160_spill] sm:$0xff] }
 0x646   :  { %2610 = vmatpush.msra.mxu2 %v10527_v10  ;;  %2571 = vmatpush.msra.mxu0 %v10529_v5  ;;  %v10548_v10 = vld [vmem:[#allocation115_spill] sm:$0xff] }
 0x647   :  { %2630 = vmatpush.msra.mxu3 %v10528_v19  ;;  %2591 = vmatpush.msrb.mxu1 %v10530_v0  ;;  %v318_v19 = vadd.f32 %v10548_v10, %v10547_v27 }
 0x648   :  { %2611 = vmatpush.msra.mxu2 %v10531_v35  ;;  %2572 = vmatpush.msra.mxu0 %v10533_v3 }
 0x649   :  { %2631 = vmatpush.msra.mxu3 %v10532_v28  ;;  %2592 = vmatpush.msrb.mxu1 %v10534_v53 }
 0x64a   :  { %2612 = vmatpush.msra.mxu2 %v10535_v59  ;;  %2573 = vmatpush.msra.mxu0 %v10537_v48  ;;  %v10550_v48 = vld [vmem:[#allocation114_spill] sm:$0xff] }
 0x64b   :  { %2632 = vmatpush.msra.mxu3 %v10536_v38  ;;  %2593 = vmatpush.msrb.mxu1 %v10538_v46  ;;  %v10549_v38 = vld [vmem:[#allocation155_spill] sm:$0xff] }
 0x64c   :  { %2613 = vmatpush.msra.mxu2 %v10539_v8  ;;  %2574 = vmatpush.msra.mxu0 %v10541_v58  ;;  %v359_v46 = vadd.f32 %v10550_v48, %v10549_v38 }
 0x64d   :  { %2633 = vmatpush.msra.mxu3 %v10540_v20  ;;  %2594 = vmatpush.msrb.mxu1 %v10542_v47 }
 0x64e   :  { %2614 = vmatpush.msra.mxu2 %v10543_v36 }
 0x64f   :  { %2634 = vmatpush.msra.mxu3 %v10544_v41 }
 0x67d   :  { %v8015_v2 = vpop.f32.mrf.mxu0  ;;  %v8017_v62 = vpop.f32.mrf.mxu1 }
 0x684   :  { %v8023_v5 = vpop.f32.mrf.mxu2  ;;  %v8027_v8 = vpop.f32.mrf.mxu3 }
 0x685   :  { %v2280_v0 = vpop.f32.mrf.mxu0  ;;  %v2300_v35 = vpop.f32.mrf.mxu1 }
 0x686   :  { %v2343_v28 = vadd.f32 %v2280_v0, %v277_v22  ;;  %v2344_v3 = vadd.f32 %v2300_v35, %v318_v19  ;;  %v10551_v0 = vld [vmem:[#allocation193_spill] sm:$0xff] }
 0x687   :  { %v10552_v35 = vld [vmem:[#allocation121_spill] sm:$0xff] }
 0x688   :  { %v4177_v53 = vmul.f32 -1.442695, %v2343_v28  ;;  %v4178_v59 = vmul.f32 -1.442695, %v2344_v3  ;;  %v400_v28 = vadd.f32 %v10552_v35, %v10551_v0 }
 0x68a   :  { %4365 = vpow2.f32 %v4177_v53 }
 0x68b   :  { %4367 = vpow2.f32 %v4178_v59 }
 0x68c   :  { %v2320_v20 = vpop.f32.mrf.mxu2  ;;  %v2340_v22 = vpop.f32.mrf.mxu3 }
 0x68d   :  { %v2345_v58 = vadd.f32 %v2320_v20, %v359_v46  ;;  %v2346_v59 = vadd.f32 %v2340_v22, %v400_v28 }
 0x68f   :  { %v4179_v47 = vmul.f32 -1.442695, %v2345_v58 }
 0x690   :  { %v4366_v36 = vpop.eup %4365 }
 0x691   :  { %v4368_v41 = vpop.eup %4367  ;;  %v2356_v29 = vadd.f32 1.0, %v4366_v36  ;;  %4369 = vpow2.f32 %v4179_v47 }
 0x692   :  { %v2357_v10 = vadd.f32 1.0, %v4368_v41 }
 0x693   :  { %4371 = vrcp.f32 %v2356_v29  ;;  %v2370_v27 = vand.u32 2147483648, %v2356_v29  ;;  %v2368_v41 = vand.u32 2147483647, %v2356_v29  ;;  %vm2364_vm2 = vweird.f32 %v2356_v29 }
 0x694   :  { %4373 = vrcp.f32 %v2357_v10  ;;  %v2385_v47 = vand.u32 2147483648, %v2357_v10  ;;  %v2383_v32 = vand.u32 2147483647, %v2357_v10  ;;  %vm2379_vm3 = vweird.f32 %v2357_v10 }
 0x695   :  { %vm2369_vm6 = vcmp.eq.f32.partialorder %v2368_v41, 8.507059e+37  ;;  %v10566_v41 = vld [vmem:[#allocation49_spill] sm:$0xff] }
 0x696   :  { %vm2384_vm7 = vcmp.eq.f32.partialorder %v2383_v32, 8.507059e+37 }
 0x697   :  { %v4370_v19 = vpop.eup %4369 }
 0x698   :  { %v2358_v3 = vadd.f32 1.0, %v4370_v19  ;;  %v2371_v19 = vor.u32 1.1754944e-38, %v2370_v27 }
 0x699   :  { %v4372_v53 = vpop.eup %4371 }
 0x69a   :  { %v4374_v48 = vpop.eup %4373  ;;  %v2360_v38 = vmul.f32 %v4372_v53, %v2356_v29  ;;  %4375 = vrcp.f32 %v2358_v3  ;;  %vm2365_vm14 = vweird.f32 %v4372_v53  ;;  %v2400_v27 = vand.u32 2147483648, %v2358_v3 }
 0x69b   :  { %v2375_v46 = vmul.f32 %v4374_v48, %v2357_v10  ;;  %4377 = vtanh.f32 %v2346_v59  ;;  %vm2380_vm15 = vweird.f32 %v4374_v48  ;;  %vm2366_vm4 = vmor %vm2364_vm2, %vm2365_vm14  ;;  %vm2394_vm9 = vweird.f32 %v2358_v3 }
 0x69c   :  { %v2361_v20 = vsub.f32 1.0, %v2360_v38  ;;  %vm2381_vm5 = vmor %vm2379_vm3, %vm2380_vm15  ;;  %v2386_v38 = vor.u32 1.1754944e-38, %v2385_v47  ;;  %v2401_v47 = vor.u32 1.1754944e-38, %v2400_v27  ;;  %v10578_v27 = vld [vmem:[#allocation61_spill] sm:$0xff] }
 0x69d   :  { %v2376_v58 = vsub.f32 1.0, %v2375_v46 }
 0x69e   :  { %v2362_v36 = vmul.f32 %v4372_v53, %v2361_v20 }
 0x69f   :  { %v2377_v24 = vmul.f32 %v4374_v48, %v2376_v58 }
 0x6a0   :  { %v4376_v15 = vpop.eup %4375  ;;  %v2363_v35 = vadd.f32 %v4372_v53, %v2362_v36 }
 0x6a1   :  { %v2390_v22 = vmul.f32 %v4376_v15, %v2358_v3  ;;  %v2378_v28 = vadd.f32 %v4374_v48, %v2377_v24  ;;  %v4378_v59 = vpop.eup %4377  ;;  %vm2395_vm8 = vweird.f32 %v4376_v15  ;;  %v2398_v24 = vand.u32 2147483647, %v2358_v3  ;;  %v10565_v3 = vld [vmem:[#allocation64_spill] sm:$0xff] }
 0x6a2   :  { %v2367_v46 = vsel %vm2366_vm4, %v4372_v53, %v2363_v35  ;;  %vm2396_vm10 = vmor %vm2394_vm9, %vm2395_vm8  ;;  %v10567_v35 = vld [vmem:[#allocation81_spill] sm:$0xff] }
 0x6a3   :  { %v2391_v0 = vsub.f32 1.0, %v2390_v22  ;;  %v2372_v20 = vsel %vm2369_vm6, %v2371_v19, %v2367_v46  ;;  %v2382_v54 = vsel %vm2381_vm5, %v4374_v48, %v2378_v28  ;;  %vm2399_vm11 = vcmp.eq.f32.partialorder %v2398_v24, 8.507059e+37  ;;  %v10568_v22 = vld [vmem:[#allocation67_spill] sm:$0xff]  ;;  %v10569_v19 = vld [vmem:[#allocation68_spill] sm:$0xff]  ;;  %v10570_v28 = vld [vmem:[#allocation53_spill] sm:$0xff] }
 0x6a4   :  { %v2387_v58 = vsel %vm2384_vm7, %v2386_v38, %v2382_v54  ;;  %v2406_v44 = vmul.f32 %v4378_v59, %v2372_v20  ;;  %v10571_v38 = vld [vmem:[#allocation85_spill] sm:$0xff]  ;;  %v10572_v46 = vld [vmem:[#allocation71_spill] sm:$0xff]  ;;  %v10573_v59 = vld [vmem:[#allocation72_spill] sm:$0xff] }
 0x6a5   :  { %v2392_v7 = vmul.f32 %v4376_v15, %v2391_v0  ;;  %v2405_v36 = vmul.f32 %v2387_v58, %v7526_v17  ;;  %v10553_v17 = vld [vmem:[#allocation56_spill] sm:$0xff]  ;;  %v10564_v0 = vld [vmem:[#allocation63_spill] sm:$0xff]  ;;  %v10574_v20 = vld [vmem:[#allocation57_spill] sm:$0xff] }
 0x6a6   :  { %v10575_v58 = vld [vmem:[#allocation88_spill] sm:$0xff]  ;;  %v10579_v24 = vld [vmem:[#allocation91_spill] sm:$0xff] }
 0x6a7   :  { %v8032_v29 = vadd.f32 %v2406_v44, %v2405_v36  ;;  %v2393_v10 = vadd.f32 %v4376_v15, %v2392_v7  ;;  %v10554_v7 = vld [vmem:[#allocation41_spill] sm:$0xff]  ;;  %v10576_v36 = vld [vmem:[#allocation75_spill] sm:$0xff] }
 0x6a8   :  { %v10555_v44 = vld [vmem:[#allocation73_spill] sm:$0xff] }
 0x6a9   :  { %4379 = vtanh.f32 %v8032_v29  ;;  %v2397_v53 = vsel %vm2396_vm10, %v4376_v15, %v2393_v10  ;;  %v10556_v15 = vld [vmem:[#allocation59_spill] sm:$0xff]  ;;  %v10577_v10 = vld [vmem:[#allocation76_spill] sm:$0xff] }
 0x6aa   :  { %v2402_v32 = vsel %vm2399_vm11, %v2401_v47, %v2397_v53  ;;  %v10580_v53 = vld [vmem:[#allocation79_spill] sm:$0xff]  ;;  %v10581_v47 = vld [vmem:[#allocation80_spill] sm:$0xff] }
 0x6af   :  { %v4380_v48 = vpop.eup %4379 }
 0x6b0   :  { %v8035_v54 = vmul.f32 %v4380_v48, %v2402_v32  ;;  %v10582_v48 = vld [vmem:[#allocation65_spill] sm:$0xff]  ;;  %v10583_v32 = vld [vmem:[#allocation94_spill] sm:$0xff] }
 0x6b2   :  { %2426 = vmatmul.f32.vlgmr.msrb.gmra.mxu0 %v8035_v54  ;;  %2446 = vmatmul.f32.vlgmr.msra.gmra.mxu1 %v8035_v54 }
 0x6b3   :  { %2466 = vmatmul.f32.vlgmr.msrb.gmra.mxu2 %v8035_v54  ;;  %2486 = vmatmul.f32.vlgmr.msrb.gmra.mxu3 %v8035_v54 }
 0x6b4   :  { %2646 = vmatpush.msrb.mxu0 %v7535_v14  ;;  %2666 = vmatpush.msra.mxu1 %v7538_v1  ;;  %v10557_v14 = vld [vmem:[#allocation104_spill] sm:$0xff] }
 0x6b5   :  { %2686 = vmatpush.msrb.mxu2 %v7541_v42  ;;  %2706 = vmatpush.msrb.mxu3 %v7544_v55  ;;  %v10558_v1 = vld [vmem:[#allocation108_spill] sm:$0xff]  ;;  %v10559_v42 = vld [vmem:[#allocation106_spill] sm:$0xff]  ;;  %v10560_v55 = vld [vmem:[#allocation113_spill] sm:$0xff] }
 0x6b6   :  { %2647 = vmatpush.msrb.mxu0 %v7547_v9  ;;  %2667 = vmatpush.msra.mxu1 %v7550_v30  ;;  %v10561_v9 = vld [vmem:[#allocation60_spill] sm:$0xff]  ;;  %v10562_v30 = vld [vmem:[#allocation45_spill] sm:$0xff] }
 0x6b7   :  { %2687 = vmatpush.msrb.mxu2 %v7553_v11  ;;  %2707 = vmatpush.msrb.mxu3 %v10553_v17  ;;  %v10563_v11 = vld [vmem:[#allocation77_spill] sm:$0xff]  ;;  %v10584_v17 = vld [vmem:[#allocation83_spill] sm:$0xff] }
 0x6b8   :  { %2648 = vmatpush.msrb.mxu0 %v10554_v7  ;;  %2668 = vmatpush.msra.mxu1 %v10555_v44  ;;  %v10585_v7 = vld [vmem:[#allocation84_spill] sm:$0xff]  ;;  %v10586_v44 = vld [vmem:[#allocation70_spill] sm:$0xff] }
 0x6b9   :  { %2688 = vmatpush.msrb.mxu2 %v10556_v15  ;;  %2708 = vmatpush.msrb.mxu3 %v10557_v14  ;;  %v10587_v15 = vld [vmem:[#allocation97_spill] sm:$0xff]  ;;  %v10588_v14 = vld [vmem:[#allocation86_spill] sm:$0xff] }
 0x6ba   :  { %2649 = vmatpush.msrb.mxu0 %v10558_v1  ;;  %2669 = vmatpush.msra.mxu1 %v10559_v42  ;;  %v10589_v1 = vld [vmem:[#allocation87_spill] sm:$0xff]  ;;  %v10590_v42 = vld [vmem:[#allocation74_spill] sm:$0xff] }
 0x6bb   :  { %2689 = vmatpush.msrb.mxu2 %v10560_v55  ;;  %2709 = vmatpush.msrb.mxu3 %v10561_v9  ;;  %v10591_v55 = vld [vmem:[#allocation98_spill] sm:$0xff]  ;;  %v10592_v9 = vld [vmem:[#allocation89_spill] sm:$0xff] }
 0x6bc   :  { %2650 = vmatpush.msrb.mxu0 %v10562_v30  ;;  %2670 = vmatpush.msra.mxu1 %v10563_v11  ;;  %v10593_v30 = vld [vmem:[#allocation90_spill] sm:$0xff] }
 0x6bd   :  { %2690 = vmatpush.msrb.mxu2 %v10564_v0  ;;  %2710 = vmatpush.msrb.mxu3 %v10565_v3  ;;  %v10594_v11 = vld [vmem:[#allocation78_spill] sm:$0xff]  ;;  %v10595_v0 = vld [vmem:[#allocation99_spill] sm:$0xff]  ;;  %v10596_v3 = vld [vmem:[#allocation92_spill] sm:$0xff] }
 0x6be   :  { %2651 = vmatpush.msrb.mxu0 %v10566_v41  ;;  %2671 = vmatpush.msra.mxu1 %v10567_v35  ;;  %v10597_v41 = vld [vmem:[#allocation93_spill] sm:$0xff]  ;;  %v10598_v35 = vld [vmem:[#allocation82_spill] sm:$0xff] }
 0x6bf   :  { %2691 = vmatpush.msrb.mxu2 %v10568_v22  ;;  %2711 = vmatpush.msrb.mxu3 %v10569_v19  ;;  %v10599_v22 = vld [vmem:[#allocation100_spill] sm:$0xff]  ;;  %v10600_v19 = vld [vmem:[#allocation95_spill] sm:$0xff] }
 0x6c0   :  { %2652 = vmatpush.msrb.mxu0 %v10570_v28  ;;  %2672 = vmatpush.msra.mxu1 %v10571_v38  ;;  %v10601_v28 = vld [vmem:[#allocation96_spill] sm:$0xff] }
 0x6c1   :  { %2692 = vmatpush.msrb.mxu2 %v10572_v46  ;;  %2712 = vmatpush.msrb.mxu3 %v10573_v59  ;;  %v10602_v38 = vld [vmem:[#allocation124_spill] sm:$0xff]  ;;  %v10603_v46 = vld [vmem:[#allocation151_spill] sm:$0xff]  ;;  %v10604_v59 = vld [vmem:[#allocation145_spill] sm:$0xff] }
 0x6c2   :  { %2653 = vmatpush.msrb.mxu0 %v10574_v20  ;;  %2673 = vmatpush.msra.mxu1 %v10575_v58  ;;  %v10605_v20 = vld [vmem:[#allocation129_spill] sm:$0xff]  ;;  %v10606_v58 = vld [vmem:[#allocation130_spill] sm:$0xff] }
 0x6c3   :  { %2693 = vmatpush.msrb.mxu2 %v10576_v36  ;;  %2713 = vmatpush.msrb.mxu3 %v10577_v10  ;;  %v10607_v36 = vld [vmem:[#allocation131_spill] sm:$0xff]  ;;  %v10608_v10 = vld [vmem:[#allocation132_spill] sm:$0xff] }
 0x6c4   :  { %2654 = vmatpush.msrb.mxu0 %v10578_v27  ;;  %2674 = vmatpush.msra.mxu1 %v10579_v24  ;;  %v10609_v27 = vld [vmem:[#allocation133_spill] sm:$0xff] }
 0x6c5   :  { %2694 = vmatpush.msrb.mxu2 %v10580_v53  ;;  %2714 = vmatpush.msrb.mxu3 %v10581_v47  ;;  %v10610_v24 = vld [vmem:[#allocation25_spill] sm:$0xff]  ;;  %v10611_v47 = vld [vmem:[#allocation44_spill] sm:$0xff] }
 0x6c6   :  { %2655 = vmatpush.msrb.mxu0 %v10582_v48  ;;  %2675 = vmatpush.msra.mxu1 %v10583_v32  ;;  %v2194_v53 = vadd.f32 %v8015_v2, %v10610_v24  ;;  %v2214_v48 = vadd.f32 %v8017_v62, %v10611_v47 }
 0x6c7   :  { %2695 = vmatpush.msrb.mxu2 %v10584_v17  ;;  %2715 = vmatpush.msrb.mxu3 %v10585_v7 }
 0x6c8   :  { %2656 = vmatpush.msrb.mxu0 %v10586_v44  ;;  %2676 = vmatpush.msra.mxu1 %v10587_v15 }
 0x6c9   :  { %2696 = vmatpush.msrb.mxu2 %v10588_v14  ;;  %2716 = vmatpush.msrb.mxu3 %v10589_v1  ;;  %v10612_v1 = vld [vmem:[#allocation30_spill] sm:$0xff] }
 0x6ca   :  { %2657 = vmatpush.msrb.mxu0 %v10590_v42  ;;  %2677 = vmatpush.msra.mxu1 %v10591_v55  ;;  %v2234_v42 = vadd.f32 %v8023_v5, %v10612_v1 }
 0x6cb   :  { %2697 = vmatpush.msrb.mxu2 %v10592_v9  ;;  %2717 = vmatpush.msrb.mxu3 %v10593_v30 }
 0x6cc   :  { %2658 = vmatpush.msrb.mxu0 %v10594_v11  ;;  %2678 = vmatpush.msra.mxu1 %v10595_v0 }
 0x6cd   :  { %2698 = vmatpush.msrb.mxu2 %v10596_v3  ;;  %2718 = vmatpush.msrb.mxu3 %v10597_v41 }
 0x6ce   :  { %2659 = vmatpush.msrb.mxu0 %v10598_v35  ;;  %2679 = vmatpush.msra.mxu1 %v10599_v22  ;;  %v10613_v35 = vld [vmem:[#allocation31_spill] sm:$0xff] }
 0x6cf   :  { %2699 = vmatpush.msrb.mxu2 %v10600_v19  ;;  %2719 = vmatpush.msrb.mxu3 %v10601_v28  ;;  %v2254_v22 = vadd.f32 %v8027_v8, %v10613_v35 }
 0x6d0   :  { %2660 = vmatpush.msrb.mxu0 %v10602_v38  ;;  %2680 = vmatpush.msra.mxu1 %v10603_v46 }
 0x6d1   :  { %2700 = vmatpush.msrb.mxu2 %v10604_v59  ;;  %2720 = vmatpush.msrb.mxu3 %v10605_v20 }
 0x6d2   :  { %2661 = vmatpush.msrb.mxu0 %v10606_v58  ;;  %2681 = vmatpush.msra.mxu1 %v10607_v36 }
 0x6d3   :  { %2701 = vmatpush.msrb.mxu2 %v10608_v10  ;;  %2721 = vmatpush.msrb.mxu3 %v10609_v27 }
 0x72f   :  { %v2427_v32 = vpop.f32.mrf.mxu0  ;;  %v2447_v17 = vpop.f32.mrf.mxu1 }
 0x730   :  { %v2490_v7 = vadd.f32 %v2427_v32, %v2194_v53  ;;  %v2491_v44 = vadd.f32 %v2447_v17, %v2214_v48 }
 0x732   :  { %v4180_v15 = vmul.f32 -1.442695, %v2490_v7  ;;  %v4181_v14 = vmul.f32 -1.442695, %v2491_v44 }
 0x734   :  { %4381 = vpow2.f32 %v4180_v15 }
 0x735   :  { %4383 = vpow2.f32 %v4181_v14 }
 0x736   :  { %v2467_v55 = vpop.f32.mrf.mxu2  ;;  %v2487_v62 = vpop.f32.mrf.mxu3 }
 0x737   :  { %v2492_v9 = vadd.f32 %v2467_v55, %v2234_v42  ;;  %v2493_v38 = vadd.f32 %v2487_v62, %v2254_v22 }
 0x739   :  { %v4182_v30 = vmul.f32 -1.442695, %v2492_v9 }
 0x73a   :  { %v4382_v11 = vpop.eup %4381 }
 0x73b   :  { %v4384_v0 = vpop.eup %4383  ;;  %v2503_v2 = vadd.f32 1.0, %v4382_v11  ;;  %4385 = vpow2.f32 %v4182_v30 }
 0x73c   :  { %v2504_v3 = vadd.f32 1.0, %v4384_v0 }
 0x73d   :  { %4387 = vrcp.f32 %v2503_v2  ;;  %v2517_v36 = vand.u32 2147483648, %v2503_v2  ;;  %v2515_v53 = vand.u32 2147483647, %v2503_v2  ;;  %vm2511_vm14 = vweird.f32 %v2503_v2 }
 0x73e   :  { %4389 = vrcp.f32 %v2504_v3  ;;  %v2532_v10 = vand.u32 2147483648, %v2504_v3  ;;  %v2530_v32 = vand.u32 2147483647, %v2504_v3  ;;  %vm2526_vm15 = vweird.f32 %v2504_v3 }
 0x73f   :  { %v2518_v44 = vor.u32 1.1754944e-38, %v2517_v36  ;;  %vm2516_vm4 = vcmp.eq.f32.partialorder %v2515_v53, 8.507059e+37  ;;  %v10638_v36 = vld [vmem:[#allocation164_spill] sm:$0xff] }
 0x740   :  { %v2533_v14 = vor.u32 1.1754944e-38, %v2532_v10  ;;  %vm2531_vm5 = vcmp.eq.f32.partialorder %v2530_v32, 8.507059e+37  ;;  %v10639_v10 = vld [vmem:[#allocation165_spill] sm:$0xff]  ;;  %v10641_v53 = vld [vmem:[#allocation168_spill] sm:$0xff]  ;;  %v10643_v32 = vld [vmem:[#allocation170_spill] sm:$0xff] }
 0x741   :  { %v4386_v41 = vpop.eup %4385 }
 0x742   :  { %v2505_v19 = vadd.f32 1.0, %v4386_v41 }
 0x743   :  { %v4388_v28 = vpop.eup %4387 }
 0x744   :  { %v4390_v5 = vpop.eup %4389  ;;  %v2507_v46 = vmul.f32 %v4388_v28, %v2503_v2  ;;  %4391 = vrcp.f32 %v2505_v19  ;;  %vm2512_vm12 = vweird.f32 %v4388_v28  ;;  %vm2541_vm7 = vweird.f32 %v2505_v19 }
 0x745   :  { %v2522_v59 = vmul.f32 %v4390_v5, %v2504_v3  ;;  %4393 = vtanh.f32 %v2493_v38  ;;  %vm2527_vm13 = vweird.f32 %v4390_v5  ;;  %vm2513_vm2 = vmor %vm2511_vm14, %vm2512_vm12  ;;  %v2547_v38 = vand.u32 2147483648, %v2505_v19 }
 0x746   :  { %v2508_v20 = vsub.f32 1.0, %v2507_v46  ;;  %vm2528_vm3 = vmor %vm2526_vm15, %vm2527_vm13 }
 0x747   :  { %v2523_v58 = vsub.f32 1.0, %v2522_v59  ;;  %v2548_v59 = vor.u32 1.1754944e-38, %v2547_v38  ;;  %v8230_v38 = vld [vmem:[#allocation10 + $0x188] sm:$0xff] }
 0x748   :  { %v2509_v27 = vmul.f32 %v4388_v28, %v2508_v20 }
 0x749   :  { %v2524_v48 = vmul.f32 %v4390_v5, %v2523_v58 }
 0x74a   :  { %v4392_v17 = vpop.eup %4391  ;;  %v2510_v8 = vadd.f32 %v4388_v28, %v2509_v27  ;;  %v10640_v27 = vld [vmem:[#allocation167_spill] sm:$0xff] }
 0x74b   :  { %v2537_v7 = vmul.f32 %v4392_v17, %v2505_v19  ;;  %v2525_v15 = vadd.f32 %v4390_v5, %v2524_v48  ;;  %v4394_v55 = vpop.eup %4393  ;;  %vm2542_vm6 = vweird.f32 %v4392_v17  ;;  %v10642_v48 = vld [vmem:[#allocation169_spill] sm:$0xff] }
 0x74c   :  { %v2514_v42 = vsel %vm2513_vm2, %v4388_v28, %v2510_v8  ;;  %v2545_v28 = vand.u32 2147483647, %v2505_v19  ;;  %vm2543_vm8 = vmor %vm2541_vm7, %vm2542_vm6  ;;  %v10637_v19 = vld [vmem:[#allocation163_spill] sm:$0xff]  ;;  %v10645_v8 = vld [vmem:[#allocation172_spill] sm:$0xff] }
 0x74d   :  { %v2538_v9 = vsub.f32 1.0, %v2537_v7  ;;  %v2519_v30 = vsel %vm2516_vm4, %v2518_v44, %v2514_v42  ;;  %v2529_v11 = vsel %vm2528_vm3, %v4390_v5, %v2525_v15  ;;  %v10646_v7 = vld [vmem:[#allocation173_spill] sm:$0xff]  ;;  %v10647_v44 = vld [vmem:[#allocation174_spill] sm:$0xff]  ;;  %v10648_v15 = vld [vmem:[#allocation175_spill] sm:$0xff] }
 0x74e   :  { %v2534_v0 = vsel %vm2531_vm5, %v2533_v14, %v2529_v11  ;;  %v2553_v62 = vmul.f32 %v4394_v55, %v2519_v30  ;;  %vm2546_vm9 = vcmp.eq.f32.partialorder %v2545_v28, 8.507059e+37  ;;  %v10649_v14 = vld [vmem:[#allocation176_spill] sm:$0xff]  ;;  %v10650_v42 = vld [vmem:[#allocation177_spill] sm:$0xff]  ;;  %v10651_v55 = vld [vmem:[#allocation178_spill] sm:$0xff] }
 0x74f   :  { %v2539_v41 = vmul.f32 %v4392_v17, %v2538_v9  ;;  %v2552_v22 = vmul.f32 %v2534_v0, %v7736_v57  ;;  %v10615_v57 = vld [vmem:[#allocation135_spill] sm:$0xff]  ;;  %v8191_v30 = vld [vmem:[#allocation10 + $0x1e0] sm:$0xff]  ;;  %v8194_v11 = vld [vmem:[#allocation10 + $0x1e8] sm:$0xff] }
 0x750   :  { %v10652_v9 = vld [vmem:[#allocation179_spill] sm:$0xff] }
 0x751   :  { %v8114_v2 = vadd.f32 %v2553_v62, %v2552_v22  ;;  %v2540_v3 = vadd.f32 %v4392_v17, %v2539_v41  ;;  %v8197_v0 = vld [vmem:[#allocation10 + $0x1f0] sm:$0xff]  ;;  %v8218_v62 = vld [vmem:[#allocation10 + $0x1a8] sm:$0xff]  ;;  %v8224_v22 = vld [vmem:[#allocation10 + $0x1b8] sm:$0xff] }
 0x752   :  { %v8221_v41 = vld [vmem:[#allocation10 + $0x1b0] sm:$0xff] }
 0x753   :  { %4395 = vtanh.f32 %v8114_v2  ;;  %v2544_v46 = vsel %vm2543_vm8, %v4392_v17, %v2540_v3  ;;  %v10644_v17 = vld [vmem:[#allocation171_spill] sm:$0xff]  ;;  %v8227_v3 = vld [vmem:[#allocation10 + $0x180] sm:$0xff] }
 0x754   :  { %v2549_v20 = vsel %vm2546_vm9, %v2548_v59, %v2544_v46  ;;  %v8233_v28 = vld [vmem:[#allocation10 + $0x190] sm:$0xff]  ;;  %v8236_v46 = vld [vmem:[#allocation10 + $0x198] sm:$0xff]  ;;  %v8239_v59 = vld [vmem:[#allocation10 + $0x160] sm:$0xff] }
 0x759   :  { %v4396_v5 = vpop.eup %4395 }
 0x75a   :  { %v8117_v58 = vmul.f32 %v4396_v5, %v2549_v20  ;;  %v8242_v5 = vld [vmem:[#allocation10 + $0x168] sm:$0xff]  ;;  %v8245_v20 = vld [vmem:[#allocation10 + $0x170] sm:$0xff] }
 0x75c   :  { %10614 = vst [vmem:[#allocation185_spill] sm:$0xff] %v8117_v58  ;;  %2575 = vmatmul.f32.vlgmr.msra.gmra.mxu0 %v8117_v58  ;;  %2595 = vmatmul.f32.vlgmr.msrb.gmra.mxu1 %v8117_v58 }
 0x75d   :  { %2615 = vmatmul.f32.vlgmr.msra.gmra.mxu2 %v8117_v58  ;;  %2635 = vmatmul.f32.vlgmr.msra.gmra.mxu3 %v8117_v58  ;;  %v8367_v58 = vld [vmem:[#allocation10 + $0x10] sm:$0xff] }
 0x75e   :  { %2793 = vmatpush.msra.mxu0 %v7745_v21  ;;  %2813 = vmatpush.msrb.mxu1 %v7748_v56  ;;  %v10616_v21 = vld [vmem:[#allocation136_spill] sm:$0xff]  ;;  %v10617_v56 = vld [vmem:[#allocation137_spill] sm:$0xff]  ;;  %10686 = vst [vmem:[#allocation43_spill] sm:$0xff] %v8367_v58 }
 0x75f   :  { %2833 = vmatpush.msra.mxu2 %v7751_v23  ;;  %2853 = vmatpush.msra.mxu3 %v7754_v60  ;;  %v10618_v23 = vld [vmem:[#allocation138_spill] sm:$0xff]  ;;  %v10619_v60 = vld [vmem:[#allocation139_spill] sm:$0xff] }
 0x760   :  { %2794 = vmatpush.msra.mxu0 %v7757_v6  ;;  %2814 = vmatpush.msrb.mxu1 %v7760_v25  ;;  %v10620_v6 = vld [vmem:[#allocation140_spill] sm:$0xff]  ;;  %v10621_v25 = vld [vmem:[#allocation142_spill] sm:$0xff] }
 0x761   :  { %2834 = vmatpush.msra.mxu2 %v7763_v16  ;;  %2854 = vmatpush.msra.mxu3 %v7766_v49  ;;  %v10622_v16 = vld [vmem:[#allocation144_spill] sm:$0xff]  ;;  %v10623_v49 = vld [vmem:[#allocation146_spill] sm:$0xff] }
 0x762   :  { %2795 = vmatpush.msra.mxu0 %v7769_v40  ;;  %2815 = vmatpush.msrb.mxu1 %v7772_v34  ;;  %v10624_v40 = vld [vmem:[#allocation147_spill] sm:$0xff]  ;;  %v10625_v34 = vld [vmem:[#allocation148_spill] sm:$0xff] }
 0x763   :  { %2835 = vmatpush.msra.mxu2 %v7775_v33  ;;  %2855 = vmatpush.msra.mxu3 %v7778_v26  ;;  %v10626_v33 = vld [vmem:[#allocation149_spill] sm:$0xff]  ;;  %v10627_v26 = vld [vmem:[#allocation150_spill] sm:$0xff] }
 0x764   :  { %2662 = vmatmul.f32.vlgmr.msrb.gmra.mxu0 %v8035_v54  ;;  %2682 = vmatmul.f32.vlgmr.msra.gmra.mxu1 %v8035_v54 }
 0x765   :  { %2702 = vmatmul.f32.vlgmr.msrb.gmra.mxu2 %v8035_v54  ;;  %2722 = vmatmul.f32.vlgmr.msrb.gmra.mxu3 %v8035_v54  ;;  %v10636_v54 = vld [vmem:[#allocation162_spill] sm:$0xff] }
 0x766   :  { %2796 = vmatpush.msra.mxu0 %v7785_v39  ;;  %2816 = vmatpush.msrb.mxu1 %v7788_v13  ;;  %v10628_v39 = vld [vmem:[#allocation152_spill] sm:$0xff]  ;;  %v10629_v13 = vld [vmem:[#allocation153_spill] sm:$0xff] }
 0x767   :  { %2836 = vmatpush.msra.mxu2 %v7791_v43  ;;  %2856 = vmatpush.msra.mxu3 %v7794_v31  ;;  %v10630_v43 = vld [vmem:[#allocation154_spill] sm:$0xff]  ;;  %v10631_v31 = vld [vmem:[#allocation156_spill] sm:$0xff] }
 0x768   :  { %2797 = vmatpush.msra.mxu0 %v7797_v50  ;;  %2817 = vmatpush.msrb.mxu1 %v7800_v4  ;;  %v10632_v50 = vld [vmem:[#allocation157_spill] sm:$0xff]  ;;  %v10633_v4 = vld [vmem:[#allocation158_spill] sm:$0xff] }
 0x769   :  { %2837 = vmatpush.msra.mxu2 %v7803_v12  ;;  %2857 = vmatpush.msra.mxu3 %v7806_v61  ;;  %v10634_v12 = vld [vmem:[#allocation159_spill] sm:$0xff]  ;;  %v10635_v61 = vld [vmem:[#allocation161_spill] sm:$0xff] }
 0x76a   :  { %2798 = vmatpush.msra.mxu0 %v10615_v57  ;;  %2818 = vmatpush.msrb.mxu1 %v10616_v21  ;;  %v8248_v57 = vld [vmem:[#allocation10 + $0x178] sm:$0xff]  ;;  %v8251_v21 = vld [vmem:[#allocation10 + $0x140] sm:$0xff] }
 0x76b   :  { %2838 = vmatpush.msra.mxu2 %v10617_v56  ;;  %2858 = vmatpush.msra.mxu3 %v10618_v23  ;;  %v8254_v56 = vld [vmem:[#allocation10 + $0x148] sm:$0xff]  ;;  %v8257_v23 = vld [vmem:[#allocation10 + $0x150] sm:$0xff] }
 0x76c   :  { %2799 = vmatpush.msra.mxu0 %v10619_v60  ;;  %2819 = vmatpush.msrb.mxu1 %v10620_v6  ;;  %v8260_v60 = vld [vmem:[#allocation10 + $0x158] sm:$0xff]  ;;  %v8263_v6 = vld [vmem:[#allocation10 + $0x120] sm:$0xff] }
 0x76d   :  { %2839 = vmatpush.msra.mxu2 %v10621_v25  ;;  %2859 = vmatpush.msra.mxu3 %v10622_v16  ;;  %v8266_v25 = vld [vmem:[#allocation10 + $0x128] sm:$0xff]  ;;  %v8269_v16 = vld [vmem:[#allocation10 + $0x130] sm:$0xff] }
 0x76e   :  { %2800 = vmatpush.msra.mxu0 %v10623_v49  ;;  %2820 = vmatpush.msrb.mxu1 %v10624_v40  ;;  %v8272_v49 = vld [vmem:[#allocation10 + $0x138] sm:$0xff] }
 0x76f   :  { %2840 = vmatpush.msra.mxu2 %v10625_v34  ;;  %2860 = vmatpush.msra.mxu3 %v10626_v33  ;;  %v10653_v40 = vld [vmem:[#allocation180_spill] sm:$0xff]  ;;  %v8276_v34 = vld [vmem:[#allocation10 + $0x108] sm:$0xff]  ;;  %v8279_v33 = vld [vmem:[#allocation10 + $0x110] sm:$0xff] }
 0x770   :  { %2801 = vmatpush.msra.mxu0 %v10627_v26  ;;  %2821 = vmatpush.msrb.mxu1 %v10628_v39  ;;  %10654 = vst [vmem:[#allocation186_spill] sm:$0xff] %v8279_v33  ;;  %v8282_v26 = vld [vmem:[#allocation10 + $0x118] sm:$0xff]  ;;  %v10656_v39 = vld [vmem:[#allocation181_spill] sm:$0xff] }
 0x771   :  { %2841 = vmatpush.msra.mxu2 %v10629_v13  ;;  %2861 = vmatpush.msra.mxu3 %v10630_v43  ;;  %10655 = vst [vmem:[#allocation187_spill] sm:$0xff] %v8282_v26  ;;  %v8286_v13 = vld [vmem:[#allocation10 + $0xe8] sm:$0xff]  ;;  %v8289_v43 = vld [vmem:[#allocation10 + $0xf0] sm:$0xff] }
 0x772   :  { %2802 = vmatpush.msra.mxu0 %v10631_v31  ;;  %2822 = vmatpush.msrb.mxu1 %v10632_v50  ;;  %10657 = vst [vmem:[#allocation188_spill] sm:$0xff] %v8286_v13  ;;  %v8292_v31 = vld [vmem:[#allocation10 + $0xf8] sm:$0xff]  ;;  %v10660_v50 = vld [vmem:[#allocation182_spill] sm:$0xff] }
 0x773   :  { %2842 = vmatpush.msra.mxu2 %v10633_v4  ;;  %2862 = vmatpush.msra.mxu3 %v10634_v12  ;;  %10658 = vst [vmem:[#allocation189_spill] sm:$0xff] %v8289_v43  ;;  %v8296_v4 = vld [vmem:[#allocation10 + $0xc8] sm:$0xff]  ;;  %v8299_v12 = vld [vmem:[#allocation10 + $0xd0] sm:$0xff] }
 0x774   :  { %2803 = vmatpush.msra.mxu0 %v10635_v61  ;;  %2823 = vmatpush.msrb.mxu1 %v10636_v54  ;;  %10659 = vst [vmem:[#allocation190_spill] sm:$0xff] %v8292_v31  ;;  %v8302_v61 = vld [vmem:[#allocation10 + $0xd8] sm:$0xff]  ;;  %v10664_v54 = vld [vmem:[#allocation183_spill] sm:$0xff] }
 0x775   :  { %2843 = vmatpush.msra.mxu2 %v10637_v19  ;;  %2863 = vmatpush.msra.mxu3 %v10638_v36  ;;  %10661 = vst [vmem:[#allocation191_spill] sm:$0xff] %v8296_v4  ;;  %v8306_v19 = vld [vmem:[#allocation10 + $0xa8] sm:$0xff]  ;;  %v8309_v36 = vld [vmem:[#allocation10 + $0xb0] sm:$0xff] }
 0x776   :  { %2804 = vmatpush.msra.mxu0 %v10639_v10  ;;  %2824 = vmatpush.msrb.mxu1 %v10640_v27  ;;  %10662 = vst [vmem:[#allocation107_spill] sm:$0xff] %v8299_v12  ;;  %v8312_v10 = vld [vmem:[#allocation10 + $0xb8] sm:$0xff] }
 0x777   :  { %2844 = vmatpush.msra.mxu2 %v10641_v53  ;;  %2864 = vmatpush.msra.mxu3 %v10642_v48  ;;  %10663 = vst [vmem:[#allocation111_spill] sm:$0xff] %v8302_v61  ;;  %v10668_v27 = vld [vmem:[#allocation184_spill] sm:$0xff]  ;;  %v8316_v53 = vld [vmem:[#allocation10 + $0x88] sm:$0xff]  ;;  %v8319_v48 = vld [vmem:[#allocation10 + $0x90] sm:$0xff] }
 0x778   :  { %2805 = vmatpush.msra.mxu0 %v10643_v32  ;;  %2825 = vmatpush.msrb.mxu1 %v10644_v17  ;;  %10665 = vst [vmem:[#allocation110_spill] sm:$0xff] %v8306_v19  ;;  %v8322_v32 = vld [vmem:[#allocation10 + $0x98] sm:$0xff]  ;;  %v8325_v17 = vld [vmem:[#allocation10 + $0x60] sm:$0xff] }
 0x779   :  { %2845 = vmatpush.msra.mxu2 %v10645_v8  ;;  %2865 = vmatpush.msra.mxu3 %v10646_v7  ;;  %10666 = vst [vmem:[#allocation117_spill] sm:$0xff] %v8309_v36  ;;  %v8328_v8 = vld [vmem:[#allocation10 + $0x68] sm:$0xff]  ;;  %v8331_v7 = vld [vmem:[#allocation10 + $0x70] sm:$0xff] }
 0x77a   :  { %2806 = vmatpush.msra.mxu0 %v10647_v44  ;;  %2826 = vmatpush.msrb.mxu1 %v10648_v15  ;;  %10667 = vst [vmem:[#allocation102_spill] sm:$0xff] %v8312_v10  ;;  %v8334_v44 = vld [vmem:[#allocation10 + $0x78] sm:$0xff]  ;;  %v8337_v15 = vld [vmem:[#allocation10 + $0x40] sm:$0xff] }
 0x77b   :  { %2846 = vmatpush.msra.mxu2 %v10649_v14  ;;  %2866 = vmatpush.msra.mxu3 %v10650_v42  ;;  %10669 = vst [vmem:[#allocation105_spill] sm:$0xff] %v8316_v53  ;;  %v8340_v14 = vld [vmem:[#allocation10 + $0x48] sm:$0xff]  ;;  %v8343_v42 = vld [vmem:[#allocation10 + $0x50] sm:$0xff] }
 0x77c   :  { %2807 = vmatpush.msra.mxu0 %v10651_v55  ;;  %2827 = vmatpush.msrb.mxu1 %v10652_v9  ;;  %10670 = vst [vmem:[#allocation103_spill] sm:$0xff] %v8319_v48  ;;  %v8346_v55 = vld [vmem:[#allocation10 + $0x58] sm:$0xff]  ;;  %v8349_v9 = vld [vmem:[#allocation10 + $0x20] sm:$0xff] }
 0x77d   :  { %2847 = vmatpush.msra.mxu2 %v7923_v51  ;;  %2867 = vmatpush.msra.mxu3 %v7926_v63  ;;  %v8200_v51 = vld [vmem:[#allocation10 + $0x1f8] sm:$0xff]  ;;  %10671 = vst [vmem:[#allocation109_spill] sm:$0xff] %v8322_v32 }
 0x77e   :  { %2808 = vmatpush.msra.mxu0 %v7929_v45  ;;  %2828 = vmatpush.msrb.mxu1 %v7932_v37  ;;  %v8203_v37 = vld [vmem:[#allocation10 + $0x1c0] sm:$0xff]  ;;  %v8212_v63 = vld [vmem:[#allocation10 + $0x1d8] sm:$0xff]  ;;  %10672 = vst [vmem:[#allocation48_spill] sm:$0xff] %v8325_v17 }
 0x77f   :  { %2848 = vmatpush.msra.mxu2 %v7935_v18  ;;  %2868 = vmatpush.msra.mxu3 %v7938_v52  ;;  %v8206_v18 = vld [vmem:[#allocation10 + $0x1c8] sm:$0xff]  ;;  %v8209_v52 = vld [vmem:[#allocation10 + $0x1d0] sm:$0xff]  ;;  %v8215_v45 = vld [vmem:[#allocation10 + $0x1a0] sm:$0xff]  ;;  %10673 = vst [vmem:[#allocation33_spill] sm:$0xff] %v8328_v8 }
 0x780   :  { %2942 = vmatpush.msrb.mxu0 %v8191_v30  ;;  %2962 = vmatpush.msra.mxu1 %v8194_v11  ;;  %10674 = vst [vmem:[#allocation34_spill] sm:$0xff] %v8331_v7 }
 0x781   :  { %2982 = vmatpush.msrb.mxu2 %v8197_v0  ;;  %3002 = vmatpush.msrb.mxu3 %v8200_v51  ;;  %10675 = vst [vmem:[#allocation27_spill] sm:$0xff] %v8334_v44 }
 0x782   :  { %2943 = vmatpush.msrb.mxu0 %v8203_v37  ;;  %2963 = vmatpush.msra.mxu1 %v8206_v18  ;;  %10676 = vst [vmem:[#allocation52_spill] sm:$0xff] %v8337_v15 }
 0x783   :  { %2983 = vmatpush.msrb.mxu2 %v8209_v52  ;;  %3003 = vmatpush.msrb.mxu3 %v8212_v63  ;;  %10677 = vst [vmem:[#allocation36_spill] sm:$0xff] %v8340_v14 }
 0x784   :  { %2944 = vmatpush.msrb.mxu0 %v8215_v45  ;;  %2964 = vmatpush.msra.mxu1 %v8218_v62  ;;  %10678 = vst [vmem:[#allocation37_spill] sm:$0xff] %v8343_v42 }
 0x785   :  { %2984 = vmatpush.msrb.mxu2 %v8221_v41  ;;  %3004 = vmatpush.msrb.mxu3 %v8224_v22  ;;  %10679 = vst [vmem:[#allocation28_spill] sm:$0xff] %v8346_v55 }
 0x786   :  { %2945 = vmatpush.msrb.mxu0 %v8227_v3  ;;  %2965 = vmatpush.msra.mxu1 %v8230_v38  ;;  %10680 = vst [vmem:[#allocation54_spill] sm:$0xff] %v8349_v9 }
 0x787   :  { %2985 = vmatpush.msrb.mxu2 %v8233_v28  ;;  %3005 = vmatpush.msrb.mxu3 %v8236_v46 }
 0x788   :  { %2946 = vmatpush.msrb.mxu0 %v8239_v59  ;;  %2966 = vmatpush.msra.mxu1 %v8242_v5 }
 0x789   :  { %2986 = vmatpush.msrb.mxu2 %v8245_v20  ;;  %3006 = vmatpush.msrb.mxu3 %v8248_v57 }
 0x78a   :  { %2947 = vmatpush.msrb.mxu0 %v8251_v21  ;;  %2967 = vmatpush.msra.mxu1 %v8254_v56 }
 0x78b   :  { %2987 = vmatpush.msrb.mxu2 %v8257_v23  ;;  %3007 = vmatpush.msrb.mxu3 %v8260_v60 }
 0x78c   :  { %2948 = vmatpush.msrb.mxu0 %v8263_v6  ;;  %2968 = vmatpush.msra.mxu1 %v8266_v25 }
 0x78d   :  { %2988 = vmatpush.msrb.mxu2 %v8269_v16  ;;  %3008 = vmatpush.msrb.mxu3 %v8272_v49 }
 0x78e   :  { %2949 = vmatpush.msrb.mxu0 %v10653_v40  ;;  %2969 = vmatpush.msra.mxu1 %v8276_v34  ;;  %v8352_v40 = vld [vmem:[#allocation10 + $0x28] sm:$0xff] }
 0x78f   :  { %2989 = vmatpush.msrb.mxu2 %v8279_v33  ;;  %3009 = vmatpush.msrb.mxu3 %v8282_v26  ;;  %10681 = vst [vmem:[#allocation39_spill] sm:$0xff] %v8352_v40 }
 0x790   :  { %2950 = vmatpush.msrb.mxu0 %v10656_v39  ;;  %2970 = vmatpush.msra.mxu1 %v8286_v13  ;;  %v8355_v39 = vld [vmem:[#allocation10 + $0x30] sm:$0xff] }
 0x791   :  { %2990 = vmatpush.msrb.mxu2 %v8289_v43  ;;  %3010 = vmatpush.msrb.mxu3 %v8292_v31  ;;  %10682 = vst [vmem:[#allocation40_spill] sm:$0xff] %v8355_v39 }
 0x792   :  { %2951 = vmatpush.msrb.mxu0 %v10660_v50  ;;  %2971 = vmatpush.msra.mxu1 %v8296_v4  ;;  %v8358_v50 = vld [vmem:[#allocation10 + $0x38] sm:$0xff] }
 0x793   :  { %2991 = vmatpush.msrb.mxu2 %v8299_v12  ;;  %3011 = vmatpush.msrb.mxu3 %v8302_v61  ;;  %10683 = vst [vmem:[#allocation29_spill] sm:$0xff] %v8358_v50 }
 0x794   :  { %2952 = vmatpush.msrb.mxu0 %v10664_v54  ;;  %2972 = vmatpush.msra.mxu1 %v8306_v19  ;;  %v8361_v54 = vld [vmem:[#allocation10] sm:$0xff] }
 0x795   :  { %2992 = vmatpush.msrb.mxu2 %v8309_v36  ;;  %3012 = vmatpush.msrb.mxu3 %v8312_v10  ;;  %10684 = vst [vmem:[#allocation58_spill] sm:$0xff] %v8361_v54 }
 0x796   :  { %2953 = vmatpush.msrb.mxu0 %v10668_v27  ;;  %2973 = vmatpush.msra.mxu1 %v8316_v53  ;;  %v8364_v27 = vld [vmem:[#allocation10 + $0x8] sm:$0xff] }
 0x797   :  { %2993 = vmatpush.msrb.mxu2 %v8319_v48  ;;  %3013 = vmatpush.msrb.mxu3 %v8322_v32  ;;  %10685 = vst [vmem:[#allocation42_spill] sm:$0xff] %v8364_v27  ;;  %v10693_v48 = vld [vmem:[#allocation118_spill] sm:$0xff] }
 0x798   :  { %2954 = vmatpush.msrb.mxu0 %v8325_v17  ;;  %2974 = vmatpush.msra.mxu1 %v8328_v8 }
 0x799   :  { %2994 = vmatpush.msrb.mxu2 %v8331_v7  ;;  %3014 = vmatpush.msrb.mxu3 %v8334_v44 }
 0x79a   :  { %2955 = vmatpush.msrb.mxu0 %v8337_v15  ;;  %2975 = vmatpush.msra.mxu1 %v8340_v14  ;;  %v10691_v14 = vld [vmem:[#allocation119_spill] sm:$0xff] }
 0x79b   :  { %2995 = vmatpush.msrb.mxu2 %v8343_v42  ;;  %3015 = vmatpush.msrb.mxu3 %v8346_v55  ;;  %v10689_v55 = vld [vmem:[#allocation116_spill] sm:$0xff] }
 0x79c   :  { %2956 = vmatpush.msrb.mxu0 %v8349_v9  ;;  %2976 = vmatpush.msra.mxu1 %v8352_v40  ;;  %v8370_v40 = vld [vmem:[#allocation10 + $0x18] sm:$0xff] }
 0x79d   :  { %2996 = vmatpush.msrb.mxu2 %v8355_v39  ;;  %3016 = vmatpush.msrb.mxu3 %v8358_v50  ;;  %10687 = vst [vmem:[#allocation32_spill] sm:$0xff] %v8370_v40  ;;  %v10688_v50 = vld [vmem:[#allocation127_spill] sm:$0xff] }
 0x79e   :  { %2957 = vmatpush.msrb.mxu0 %v8361_v54  ;;  %2977 = vmatpush.msra.mxu1 %v8364_v27  ;;  %v280_v42 = vadd.f32 %v10689_v55, %v10688_v50  ;;  %v10690_v54 = vld [vmem:[#allocation160_spill] sm:$0xff] }
 0x79f   :  { %2997 = vmatpush.msrb.mxu2 %v8367_v58  ;;  %3017 = vmatpush.msrb.mxu3 %v8370_v40  ;;  %v321_v15 = vadd.f32 %v10691_v14, %v10690_v54  ;;  %v10692_v40 = vld [vmem:[#allocation155_spill] sm:$0xff] }
 0x7a0   :  { %v362_v53 = vadd.f32 %v10693_v48, %v10692_v40 }
 0x7d9   :  { %v8373_v39 = vpop.f32.mrf.mxu0  ;;  %v8375_v9 = vpop.f32.mrf.mxu1 }
 0x7e0   :  { %v8381_v44 = vpop.f32.mrf.mxu2  ;;  %v8385_v10 = vpop.f32.mrf.mxu3 }
 0x7e1   :  { %v2663_v27 = vpop.f32.mrf.mxu0  ;;  %v2683_v7 = vpop.f32.mrf.mxu1 }
 0x7e2   :  { %v2726_v8 = vadd.f32 %v2663_v27, %v280_v42  ;;  %v2727_v58 = vadd.f32 %v2683_v7, %v321_v15 }
 0x7e4   :  { %v4183_v17 = vmul.f32 -1.442695, %v2726_v8  ;;  %v4184_v32 = vmul.f32 -1.442695, %v2727_v58  ;;  %v10694_v58 = vld [vmem:[#allocation193_spill] sm:$0xff] }
 0x7e6   :  { %4397 = vpow2.f32 %v4183_v17  ;;  %v10695_v17 = vld [vmem:[#allocation125_spill] sm:$0xff] }
 0x7e7   :  { %4399 = vpow2.f32 %v4184_v32  ;;  %v403_v15 = vadd.f32 %v10695_v17, %v10694_v58 }
 0x7e8   :  { %v2703_v36 = vpop.f32.mrf.mxu2  ;;  %v2723_v7 = vpop.f32.mrf.mxu3 }
 0x7e9   :  { %v2728_v55 = vadd.f32 %v2703_v36, %v362_v53  ;;  %v2729_v32 = vadd.f32 %v2723_v7, %v403_v15 }
 0x7eb   :  { %v4185_v50 = vmul.f32 -1.442695, %v2728_v55 }
 0x7ec   :  { %v4398_v19 = vpop.eup %4397 }
 0x7ed   :  { %v4400_v14 = vpop.eup %4399  ;;  %v2739_v54 = vadd.f32 1.0, %v4398_v19  ;;  %4401 = vpow2.f32 %v4185_v50 }
 0x7ee   :  { %v2740_v61 = vadd.f32 1.0, %v4400_v14 }
 0x7ef   :  { %4403 = vrcp.f32 %v2739_v54  ;;  %v2753_v12 = vand.u32 2147483648, %v2739_v54  ;;  %v2751_v14 = vand.u32 2147483647, %v2739_v54  ;;  %vm2747_vm12 = vweird.f32 %v2739_v54 }
 0x7f0   :  { %4405 = vrcp.f32 %v2740_v61  ;;  %v2768_v19 = vand.u32 2147483648, %v2740_v61  ;;  %v2766_v31 = vand.u32 2147483647, %v2740_v61  ;;  %vm2762_vm13 = vweird.f32 %v2740_v61 }
 0x7f1   :  { %vm2752_vm2 = vcmp.eq.f32.partialorder %v2751_v14, 8.507059e+37  ;;  %v8417_v14 = vld [vmem:[#allocation7 + $0x1d0] sm:$0xff] }
 0x7f2   :  { %vm2767_vm3 = vcmp.eq.f32.partialorder %v2766_v31, 8.507059e+37 }
 0x7f3   :  { %v4402_v8 = vpop.eup %4401 }
 0x7f4   :  { %v2741_v42 = vadd.f32 1.0, %v4402_v8  ;;  %v2754_v8 = vor.u32 1.1754944e-38, %v2753_v12 }
 0x7f5   :  { %v4404_v48 = vpop.eup %4403 }
 0x7f6   :  { %v4406_v27 = vpop.eup %4405  ;;  %v2743_v40 = vmul.f32 %v4404_v48, %v2739_v54  ;;  %4407 = vrcp.f32 %v2741_v42  ;;  %vm2748_vm10 = vweird.f32 %v4404_v48  ;;  %v2783_v12 = vand.u32 2147483648, %v2741_v42 }
 0x7f7   :  { %v2758_v36 = vmul.f32 %v4406_v27, %v2740_v61  ;;  %4409 = vtanh.f32 %v2729_v32  ;;  %vm2763_vm11 = vweird.f32 %v4406_v27  ;;  %vm2749_vm14 = vmor %vm2747_vm12, %vm2748_vm10  ;;  %vm2777_vm5 = vweird.f32 %v2741_v42 }
 0x7f8   :  { %v2744_v53 = vsub.f32 1.0, %v2743_v40  ;;  %vm2764_vm15 = vmor %vm2762_vm13, %vm2763_vm11  ;;  %v2769_v40 = vor.u32 1.1754944e-38, %v2768_v19  ;;  %v2784_v19 = vor.u32 1.1754944e-38, %v2783_v12  ;;  %v8453_v12 = vld [vmem:[#allocation7 + $0x170] sm:$0xff] }
 0x7f9   :  { %v2759_v55 = vsub.f32 1.0, %v2758_v36  ;;  %10707 = vst [vmem:[#allocation115_spill] sm:$0xff] %v8453_v12 }
 0x7fa   :  { %v2745_v50 = vmul.f32 %v4404_v48, %v2744_v53 }
 0x7fb   :  { %v2760_v4 = vmul.f32 %v4406_v27, %v2759_v55 }
 0x7fc   :  { %v4408_v43 = vpop.eup %4407  ;;  %v2746_v17 = vadd.f32 %v4404_v48, %v2745_v50 }
 0x7fd   :  { %v2773_v7 = vmul.f32 %v4408_v43, %v2741_v42  ;;  %v2761_v15 = vadd.f32 %v4406_v27, %v2760_v4  ;;  %v4410_v32 = vpop.eup %4409  ;;  %vm2778_vm4 = vweird.f32 %v4408_v43  ;;  %v2781_v4 = vand.u32 2147483647, %v2741_v42  ;;  %v8414_v42 = vld [vmem:[#allocation7 + $0x1c8] sm:$0xff] }
 0x7fe   :  { %v2750_v36 = vsel %vm2749_vm14, %v4404_v48, %v2746_v17  ;;  %vm2779_vm6 = vmor %vm2777_vm5, %vm2778_vm4  ;;  %v8420_v17 = vld [vmem:[#allocation7 + $0x1d8] sm:$0xff] }
 0x7ff   :  { %v2774_v58 = vsub.f32 1.0, %v2773_v7  ;;  %v2755_v53 = vsel %vm2752_vm2, %v2754_v8, %v2750_v36  ;;  %v2765_v13 = vsel %vm2764_vm15, %v4406_v27, %v2761_v15  ;;  %vm2782_vm7 = vcmp.eq.f32.partialorder %v2781_v4, 8.507059e+37  ;;  %10696 = vst [vmem:[#allocation62_spill] sm:$0xff] %v8420_v17  ;;  %v8423_v7 = vld [vmem:[#allocation7 + $0x1a0] sm:$0xff]  ;;  %v8426_v8 = vld [vmem:[#allocation7 + $0x1a8] sm:$0xff]  ;;  %v8429_v15 = vld [vmem:[#allocation7 + $0x1b0] sm:$0xff] }
 0x800   :  { %v2770_v55 = vsel %vm2767_vm3, %v2769_v40, %v2765_v13  ;;  %v2789_v26 = vmul.f32 %v4410_v32, %v2755_v53  ;;  %10697 = vst [vmem:[#allocation46_spill] sm:$0xff] %v8423_v7  ;;  %v8432_v40 = vld [vmem:[#allocation7 + $0x1b8] sm:$0xff]  ;;  %v8435_v36 = vld [vmem:[#allocation7 + $0x180] sm:$0xff]  ;;  %v8438_v32 = vld [vmem:[#allocation7 + $0x188] sm:$0xff] }
 0x801   :  { %v2775_v33 = vmul.f32 %v4408_v43, %v2774_v58  ;;  %v2788_v50 = vmul.f32 %v2770_v55, %v8032_v29  ;;  %v8399_v29 = vld [vmem:[#allocation7 + $0x1e0] sm:$0xff]  ;;  %10698 = vst [vmem:[#allocation47_spill] sm:$0xff] %v8426_v8  ;;  %v8441_v53 = vld [vmem:[#allocation7 + $0x190] sm:$0xff]  ;;  %v8444_v55 = vld [vmem:[#allocation7 + $0x198] sm:$0xff] }
 0x802   :  { %v8411_v58 = vld [vmem:[#allocation7 + $0x1c0] sm:$0xff]  ;;  %10699 = vst [vmem:[#allocation35_spill] sm:$0xff] %v8429_v15  ;;  %v8456_v4 = vld [vmem:[#allocation7 + $0x178] sm:$0xff] }
 0x803   :  { %v8390_v54 = vadd.f32 %v2789_v26, %v2788_v50  ;;  %v2776_v61 = vadd.f32 %v4408_v43, %v2775_v33  ;;  %v8402_v33 = vld [vmem:[#allocation7 + $0x1e8] sm:$0xff]  ;;  %v8405_v26 = vld [vmem:[#allocation7 + $0x1f0] sm:$0xff]  ;;  %10700 = vst [vmem:[#allocation66_spill] sm:$0xff] %v8432_v40  ;;  %v8447_v50 = vld [vmem:[#allocation7 + $0x160] sm:$0xff] }
 0x804   :  { %10701 = vst [vmem:[#allocation50_spill] sm:$0xff] %v8435_v36 }
 0x805   :  { %4411 = vtanh.f32 %v8390_v54  ;;  %v2780_v48 = vsel %vm2779_vm6, %v4408_v43, %v2776_v61  ;;  %v8408_v43 = vld [vmem:[#allocation7 + $0x1f8] sm:$0xff]  ;;  %10702 = vst [vmem:[#allocation51_spill] sm:$0xff] %v8438_v32  ;;  %v8450_v61 = vld [vmem:[#allocation7 + $0x168] sm:$0xff] }
 0x806   :  { %v2785_v31 = vsel %vm2782_vm7, %v2784_v19, %v2780_v48  ;;  %10703 = vst [vmem:[#allocation38_spill] sm:$0xff] %v8441_v53  ;;  %v8459_v48 = vld [vmem:[#allocation7 + $0x140] sm:$0xff]  ;;  %v8462_v19 = vld [vmem:[#allocation7 + $0x148] sm:$0xff] }
 0x807   :  { %10704 = vst [vmem:[#allocation69_spill] sm:$0xff] %v8444_v55 }
 0x808   :  { %10705 = vst [vmem:[#allocation55_spill] sm:$0xff] %v8447_v50 }
 0x809   :  { %10706 = vst [vmem:[#allocation112_spill] sm:$0xff] %v8450_v61 }
 0x80a   :  { %10708 = vst [vmem:[#allocation114_spill] sm:$0xff] %v8456_v4 }
 0x80b   :  { %v4412_v27 = vpop.eup %4411  ;;  %10709 = vst [vmem:[#allocation121_spill] sm:$0xff] %v8459_v48 }
 0x80c   :  { %v8393_v13 = vmul.f32 %v4412_v27, %v2785_v31  ;;  %10710 = vst [vmem:[#allocation56_spill] sm:$0xff] %v8462_v19  ;;  %v8465_v27 = vld [vmem:[#allocation7 + $0x150] sm:$0xff]  ;;  %v8468_v31 = vld [vmem:[#allocation7 + $0x158] sm:$0xff] }
 0x80d   :  { %10711 = vst [vmem:[#allocation41_spill] sm:$0xff] %v8465_v27 }
 0x80e   :  { %2809 = vmatmul.f32.vlgmr.msra.gmra.mxu0 %v8393_v13  ;;  %2829 = vmatmul.f32.vlgmr.msrb.gmra.mxu1 %v8393_v13  ;;  %10712 = vst [vmem:[#allocation73_spill] sm:$0xff] %v8468_v31 }
 0x80f   :  { %2849 = vmatmul.f32.vlgmr.msra.gmra.mxu2 %v8393_v13  ;;  %2869 = vmatmul.f32.vlgmr.msra.gmra.mxu3 %v8393_v13 }
 0x810   :  { %3029 = vmatpush.msra.mxu0 %v8399_v29  ;;  %3049 = vmatpush.msrb.mxu1 %v8402_v33 }
 0x811   :  { %3069 = vmatpush.msra.mxu2 %v8405_v26  ;;  %3089 = vmatpush.msra.mxu3 %v8408_v43 }
 0x812   :  { %3030 = vmatpush.msra.mxu0 %v8411_v58  ;;  %3050 = vmatpush.msrb.mxu1 %v8414_v42 }
 0x813   :  { %3070 = vmatpush.msra.mxu2 %v8417_v14  ;;  %3090 = vmatpush.msra.mxu3 %v8420_v17 }
 0x814   :  { %3031 = vmatpush.msra.mxu0 %v8423_v7  ;;  %3051 = vmatpush.msrb.mxu1 %v8426_v8 }
 0x815   :  { %3071 = vmatpush.msra.mxu2 %v8429_v15  ;;  %3091 = vmatpush.msra.mxu3 %v8432_v40 }
 0x816   :  { %3032 = vmatpush.msra.mxu0 %v8435_v36  ;;  %3052 = vmatpush.msrb.mxu1 %v8438_v32 }
 0x817   :  { %3072 = vmatpush.msra.mxu2 %v8441_v53  ;;  %3092 = vmatpush.msra.mxu3 %v8444_v55 }
 0x818   :  { %3033 = vmatpush.msra.mxu0 %v8447_v50  ;;  %3053 = vmatpush.msrb.mxu1 %v8450_v61 }
 0x819   :  { %3073 = vmatpush.msra.mxu2 %v8453_v12  ;;  %3093 = vmatpush.msra.mxu3 %v8456_v4  ;;  %v8471_v12 = vld [vmem:[#allocation7 + $0x120] sm:$0xff]  ;;  %v8474_v4 = vld [vmem:[#allocation7 + $0x128] sm:$0xff] }
 0x81a   :  { %3034 = vmatpush.msra.mxu0 %v8459_v48  ;;  %3054 = vmatpush.msrb.mxu1 %v8462_v19  ;;  %10713 = vst [vmem:[#allocation59_spill] sm:$0xff] %v8471_v12  ;;  %v8477_v48 = vld [vmem:[#allocation7 + $0x130] sm:$0xff]  ;;  %v8480_v19 = vld [vmem:[#allocation7 + $0x138] sm:$0xff] }
 0x81b   :  { %3074 = vmatpush.msra.mxu2 %v8465_v27  ;;  %3094 = vmatpush.msra.mxu3 %v8468_v31  ;;  %10714 = vst [vmem:[#allocation104_spill] sm:$0xff] %v8474_v4  ;;  %v8483_v27 = vld [vmem:[#allocation7 + $0x100] sm:$0xff]  ;;  %v8486_v31 = vld [vmem:[#allocation7 + $0x108] sm:$0xff] }
 0x81c   :  { %3035 = vmatpush.msra.mxu0 %v8471_v12  ;;  %3055 = vmatpush.msrb.mxu1 %v8474_v4  ;;  %10715 = vst [vmem:[#allocation108_spill] sm:$0xff] %v8477_v48  ;;  %v8489_v12 = vld [vmem:[#allocation7 + $0x110] sm:$0xff]  ;;  %v8492_v4 = vld [vmem:[#allocation7 + $0x118] sm:$0xff] }
 0x81d   :  { %3075 = vmatpush.msra.mxu2 %v8477_v48  ;;  %10716 = vst [vmem:[#allocation106_spill] sm:$0xff] %v8480_v19  ;;  %3095 = vmatpush.msra.mxu3 %v8480_v19  ;;  %v8495_v48 = vld [vmem:[#allocation7 + $0xe0] sm:$0xff]  ;;  %v8498_v19 = vld [vmem:[#allocation7 + $0xe8] sm:$0xff] }
 0x81e   :  { %10717 = vst [vmem:[#allocation113_spill] sm:$0xff] %v8483_v27  ;;  %3036 = vmatpush.msra.mxu0 %v8483_v27  ;;  %3056 = vmatpush.msrb.mxu1 %v8486_v31  ;;  %v8501_v27 = vld [vmem:[#allocation7 + $0xf0] sm:$0xff] }
 0x81f   :  { %10718 = vst [vmem:[#allocation60_spill] sm:$0xff] %v8486_v31  ;;  %3076 = vmatpush.msra.mxu2 %v8489_v12  ;;  %3096 = vmatpush.msra.mxu3 %v8492_v4  ;;  %v8504_v31 = vld [vmem:[#allocation7 + $0xf8] sm:$0xff] }
 0x820   :  { %10719 = vst [vmem:[#allocation45_spill] sm:$0xff] %v8489_v12  ;;  %3037 = vmatpush.msra.mxu0 %v8495_v48  ;;  %3057 = vmatpush.msrb.mxu1 %v8498_v19  ;;  %v8507_v12 = vld [vmem:[#allocation7 + $0xc0] sm:$0xff] }
 0x821   :  { %10720 = vst [vmem:[#allocation77_spill] sm:$0xff] %v8492_v4  ;;  %3077 = vmatpush.msra.mxu2 %v8501_v27  ;;  %3097 = vmatpush.msra.mxu3 %v8504_v31  ;;  %v8510_v4 = vld [vmem:[#allocation7 + $0xc8] sm:$0xff] }
 0x822   :  { %10721 = vst [vmem:[#allocation63_spill] sm:$0xff] %v8495_v48  ;;  %3038 = vmatpush.msra.mxu0 %v8507_v12  ;;  %3058 = vmatpush.msrb.mxu1 %v8510_v4  ;;  %v8513_v48 = vld [vmem:[#allocation7 + $0xd0] sm:$0xff] }
 0x823   :  { %10722 = vst [vmem:[#allocation64_spill] sm:$0xff] %v8498_v19  ;;  %3078 = vmatpush.msra.mxu2 %v8513_v48  ;;  %v8516_v19 = vld [vmem:[#allocation7 + $0xd8] sm:$0xff] }
 0x824   :  { %10723 = vst [vmem:[#allocation49_spill] sm:$0xff] %v8501_v27  ;;  %3098 = vmatpush.msra.mxu3 %v8516_v19  ;;  %v8519_v27 = vld [vmem:[#allocation7 + $0xa0] sm:$0xff] }
 0x825   :  { %10724 = vst [vmem:[#allocation81_spill] sm:$0xff] %v8504_v31  ;;  %3039 = vmatpush.msra.mxu0 %v8519_v27  ;;  %v8522_v31 = vld [vmem:[#allocation7 + $0xa8] sm:$0xff] }
 0x826   :  { %10725 = vst [vmem:[#allocation67_spill] sm:$0xff] %v8507_v12  ;;  %3059 = vmatpush.msrb.mxu1 %v8522_v31  ;;  %v8525_v12 = vld [vmem:[#allocation7 + $0xb0] sm:$0xff] }
 0x827   :  { %10726 = vst [vmem:[#allocation68_spill] sm:$0xff] %v8510_v4  ;;  %3079 = vmatpush.msra.mxu2 %v8525_v12  ;;  %v8528_v4 = vld [vmem:[#allocation7 + $0xb8] sm:$0xff] }
 0x828   :  { %10727 = vst [vmem:[#allocation53_spill] sm:$0xff] %v8513_v48  ;;  %3099 = vmatpush.msra.mxu3 %v8528_v4  ;;  %v8531_v48 = vld [vmem:[#allocation7 + $0x80] sm:$0xff] }
 0x829   :  { %10728 = vst [vmem:[#allocation85_spill] sm:$0xff] %v8516_v19  ;;  %3040 = vmatpush.msra.mxu0 %v8531_v48  ;;  %v8534_v19 = vld [vmem:[#allocation7 + $0x88] sm:$0xff] }
 0x82a   :  { %10729 = vst [vmem:[#allocation71_spill] sm:$0xff] %v8519_v27  ;;  %3060 = vmatpush.msrb.mxu1 %v8534_v19  ;;  %v8537_v27 = vld [vmem:[#allocation7 + $0x90] sm:$0xff] }
 0x82b   :  { %10730 = vst [vmem:[#allocation72_spill] sm:$0xff] %v8522_v31  ;;  %3080 = vmatpush.msra.mxu2 %v8537_v27  ;;  %v8540_v31 = vld [vmem:[#allocation7 + $0x98] sm:$0xff] }
 0x82c   :  { %10731 = vst [vmem:[#allocation57_spill] sm:$0xff] %v8525_v12  ;;  %3100 = vmatpush.msra.mxu3 %v8540_v31  ;;  %v8543_v12 = vld [vmem:[#allocation7 + $0x60] sm:$0xff] }
 0x82d   :  { %10732 = vst [vmem:[#allocation88_spill] sm:$0xff] %v8528_v4  ;;  %3041 = vmatpush.msra.mxu0 %v8543_v12  ;;  %v8546_v4 = vld [vmem:[#allocation7 + $0x68] sm:$0xff] }
 0x82e   :  { %10733 = vst [vmem:[#allocation75_spill] sm:$0xff] %v8531_v48  ;;  %3061 = vmatpush.msrb.mxu1 %v8546_v4  ;;  %v8549_v48 = vld [vmem:[#allocation7 + $0x70] sm:$0xff] }
 0x82f   :  { %10734 = vst [vmem:[#allocation76_spill] sm:$0xff] %v8534_v19  ;;  %3081 = vmatpush.msra.mxu2 %v8549_v48  ;;  %v8552_v19 = vld [vmem:[#allocation7 + $0x78] sm:$0xff] }
 0x830   :  { %10735 = vst [vmem:[#allocation61_spill] sm:$0xff] %v8537_v27  ;;  %3101 = vmatpush.msra.mxu3 %v8552_v19  ;;  %v8555_v27 = vld [vmem:[#allocation7 + $0x40] sm:$0xff] }
 0x831   :  { %10736 = vst [vmem:[#allocation91_spill] sm:$0xff] %v8540_v31  ;;  %3042 = vmatpush.msra.mxu0 %v8555_v27  ;;  %v8558_v31 = vld [vmem:[#allocation7 + $0x48] sm:$0xff] }
 0x832   :  { %10737 = vst [vmem:[#allocation79_spill] sm:$0xff] %v8543_v12  ;;  %3062 = vmatpush.msrb.mxu1 %v8558_v31  ;;  %v8561_v12 = vld [vmem:[#allocation7 + $0x50] sm:$0xff] }
 0x833   :  { %10738 = vst [vmem:[#allocation80_spill] sm:$0xff] %v8546_v4  ;;  %3082 = vmatpush.msra.mxu2 %v8561_v12  ;;  %v8564_v4 = vld [vmem:[#allocation7 + $0x58] sm:$0xff] }
 0x834   :  { %10739 = vst [vmem:[#allocation65_spill] sm:$0xff] %v8549_v48  ;;  %3102 = vmatpush.msra.mxu3 %v8564_v4  ;;  %v8567_v48 = vld [vmem:[#allocation7 + $0x20] sm:$0xff] }
 0x835   :  { %10740 = vst [vmem:[#allocation94_spill] sm:$0xff] %v8552_v19  ;;  %3043 = vmatpush.msra.mxu0 %v8567_v48  ;;  %v8570_v19 = vld [vmem:[#allocation7 + $0x28] sm:$0xff] }
 0x836   :  { %10741 = vst [vmem:[#allocation83_spill] sm:$0xff] %v8555_v27  ;;  %3063 = vmatpush.msrb.mxu1 %v8570_v19  ;;  %v8573_v27 = vld [vmem:[#allocation7 + $0x30] sm:$0xff] }
 0x837   :  { %10742 = vst [vmem:[#allocation84_spill] sm:$0xff] %v8558_v31  ;;  %3083 = vmatpush.msra.mxu2 %v8573_v27  ;;  %v8576_v31 = vld [vmem:[#allocation7 + $0x38] sm:$0xff] }
 0x838   :  { %10743 = vst [vmem:[#allocation70_spill] sm:$0xff] %v8561_v12  ;;  %3103 = vmatpush.msra.mxu3 %v8576_v31  ;;  %v8579_v12 = vld [vmem:[#allocation7] sm:$0xff] }
 0x839   :  { %10744 = vst [vmem:[#allocation97_spill] sm:$0xff] %v8564_v4  ;;  %3044 = vmatpush.msra.mxu0 %v8579_v12  ;;  %v8582_v4 = vld [vmem:[#allocation7 + $0x8] sm:$0xff] }
 0x83a   :  { %10745 = vst [vmem:[#allocation86_spill] sm:$0xff] %v8567_v48  ;;  %3064 = vmatpush.msrb.mxu1 %v8582_v4  ;;  %v8585_v48 = vld [vmem:[#allocation7 + $0x10] sm:$0xff] }
 0x83b   :  { %10746 = vst [vmem:[#allocation87_spill] sm:$0xff] %v8570_v19  ;;  %3084 = vmatpush.msra.mxu2 %v8585_v48  ;;  %v8588_v19 = vld [vmem:[#allocation7 + $0x18] sm:$0xff] }
 0x83c   :  { %10747 = vst [vmem:[#allocation74_spill] sm:$0xff] %v8573_v27  ;;  %3104 = vmatpush.msra.mxu3 %v8588_v19  ;;  %v2577_v27 = vadd.f32 %v8373_v39, %v10610_v24 }
 0x83d   :  { %10748 = vst [vmem:[#allocation98_spill] sm:$0xff] %v8576_v31  ;;  %v2597_v31 = vadd.f32 %v8375_v9, %v10611_v47 }
 0x83e   :  { %10749 = vst [vmem:[#allocation89_spill] sm:$0xff] %v8579_v12 }
 0x83f   :  { %10750 = vst [vmem:[#allocation90_spill] sm:$0xff] %v8582_v4 }
 0x840   :  { %10751 = vst [vmem:[#allocation78_spill] sm:$0xff] %v8585_v48  ;;  %v2617_v48 = vadd.f32 %v8381_v44, %v10612_v1 }
 0x841   :  { %10752 = vst [vmem:[#allocation99_spill] sm:$0xff] %v8588_v19 }
 0x88b   :  { %v2810_v61 = vpop.f32.mrf.mxu0  ;;  %v2830_v12 = vpop.f32.mrf.mxu1 }
 0x88c   :  { %v2873_v50 = vadd.f32 %v2810_v61, %v2577_v27  ;;  %v2874_v55 = vadd.f32 %v2830_v12, %v2597_v31 }
 0x88e   :  { %v4186_v53 = vmul.f32 -1.442695, %v2873_v50  ;;  %v4187_v4 = vmul.f32 -1.442695, %v2874_v55  ;;  %v2637_v55 = vadd.f32 %v8385_v10, %v10613_v35 }
 0x890   :  { %4413 = vpow2.f32 %v4186_v53 }
 0x891   :  { %4415 = vpow2.f32 %v4187_v4 }
 0x892   :  { %v2850_v32 = vpop.f32.mrf.mxu2  ;;  %v2870_v9 = vpop.f32.mrf.mxu3 }
 0x893   :  { %v2875_v36 = vadd.f32 %v2850_v32, %v2617_v48  ;;  %v2876_v12 = vadd.f32 %v2870_v9, %v2637_v55 }
 0x895   :  { %v4188_v19 = vmul.f32 -1.442695, %v2875_v36 }
 0x896   :  { %v4414_v40 = vpop.eup %4413 }
 0x897   :  { %v4416_v15 = vpop.eup %4415  ;;  %v2886_v39 = vadd.f32 1.0, %v4414_v40  ;;  %4417 = vpow2.f32 %v4188_v19 }
 0x898   :  { %v2887_v24 = vadd.f32 1.0, %v4416_v15 }
 0x899   :  { %4419 = vrcp.f32 %v2886_v39  ;;  %v2900_v27 = vand.u32 2147483648, %v2886_v39  ;;  %v2898_v19 = vand.u32 2147483647, %v2886_v39  ;;  %vm2894_vm10 = vweird.f32 %v2886_v39 }
 0x89a   :  { %4421 = vrcp.f32 %v2887_v24  ;;  %v2915_v40 = vand.u32 2147483648, %v2887_v24  ;;  %v2913_v1 = vand.u32 2147483647, %v2887_v24  ;;  %vm2909_vm11 = vweird.f32 %v2887_v24 }
 0x89b   :  { %vm2899_vm14 = vcmp.eq.f32.partialorder %v2898_v19, 8.507059e+37 }
 0x89c   :  { %vm2914_vm15 = vcmp.eq.f32.partialorder %v2913_v1, 8.507059e+37 }
 0x89d   :  { %v4418_v61 = vpop.eup %4417 }
 0x89e   :  { %v2888_v53 = vadd.f32 1.0, %v4418_v61  ;;  %v2901_v61 = vor.u32 1.1754944e-38, %v2900_v27 }
 0x89f   :  { %v4420_v50 = vpop.eup %4419 }
 0x8a0   :  { %v4422_v44 = vpop.eup %4421  ;;  %v2890_v4 = vmul.f32 %v4420_v50, %v2886_v39  ;;  %4423 = vrcp.f32 %v2888_v53  ;;  %vm2895_vm8 = vweird.f32 %v4420_v50  ;;  %v2930_v27 = vand.u32 2147483648, %v2888_v53 }
 0x8a1   :  { %v2905_v32 = vmul.f32 %v4422_v44, %v2887_v24  ;;  %4425 = vtanh.f32 %v2876_v12  ;;  %vm2910_vm9 = vweird.f32 %v4422_v44  ;;  %vm2896_vm12 = vmor %vm2894_vm10, %vm2895_vm8  ;;  %vm2924_vm3 = vweird.f32 %v2888_v53 }
 0x8a2   :  { %v2891_v36 = vsub.f32 1.0, %v2890_v4  ;;  %vm2911_vm13 = vmor %vm2909_vm11, %vm2910_vm9  ;;  %v2916_v4 = vor.u32 1.1754944e-38, %v2915_v40  ;;  %v2931_v19 = vor.u32 1.1754944e-38, %v2930_v27  ;;  %v8670_v27 = vld [vmem:[#allocation9 + $0x178] sm:$0xff] }
 0x8a3   :  { %v2906_v48 = vsub.f32 1.0, %v2905_v32 }
 0x8a4   :  { %v2892_v15 = vmul.f32 %v4420_v50, %v2891_v36 }
 0x8a5   :  { %v2907_v31 = vmul.f32 %v4422_v44, %v2906_v48 }
 0x8a6   :  { %v4424_v47 = vpop.eup %4423  ;;  %v2893_v10 = vadd.f32 %v4420_v50, %v2892_v15 }
 0x8a7   :  { %v2920_v9 = vmul.f32 %v4424_v47, %v2888_v53  ;;  %v2908_v55 = vadd.f32 %v4422_v44, %v2907_v31  ;;  %v4426_v12 = vpop.eup %4425  ;;  %vm2925_vm2 = vweird.f32 %v4424_v47  ;;  %v8627_v31 = vld [vmem:[#allocation9 + $0x1d0] sm:$0xff] }
 0x8a8   :  { %v2897_v32 = vsel %vm2896_vm12, %v4420_v50, %v2893_v10  ;;  %v2928_v50 = vand.u32 2147483647, %v2888_v53  ;;  %vm2926_vm4 = vmor %vm2924_vm3, %vm2925_vm2  ;;  %v8624_v53 = vld [vmem:[#allocation9 + $0x1c8] sm:$0xff]  ;;  %v8630_v10 = vld [vmem:[#allocation9 + $0x1d8] sm:$0xff] }
 0x8a9   :  { %v2921_v35 = vsub.f32 1.0, %v2920_v9  ;;  %v2902_v36 = vsel %vm2899_vm14, %v2901_v61, %v2897_v32  ;;  %v2912_v8 = vsel %vm2911_vm13, %v4422_v44, %v2908_v55  ;;  %v8633_v9 = vld [vmem:[#allocation9 + $0x1a0] sm:$0xff]  ;;  %v8636_v61 = vld [vmem:[#allocation9 + $0x1a8] sm:$0xff]  ;;  %v8639_v55 = vld [vmem:[#allocation9 + $0x1b0] sm:$0xff] }
 0x8aa   :  { %v2917_v48 = vsel %vm2914_vm15, %v2916_v4, %v2912_v8  ;;  %v2936_v7 = vmul.f32 %v4426_v12, %v2902_v36  ;;  %vm2929_vm5 = vcmp.eq.f32.partialorder %v2928_v50, 8.507059e+37  ;;  %v8642_v4 = vld [vmem:[#allocation9 + $0x1b8] sm:$0xff]  ;;  %v8649_v32 = vld [vmem:[#allocation9 + $0x180] sm:$0xff]  ;;  %v8652_v12 = vld [vmem:[#allocation9 + $0x188] sm:$0xff] }
 0x8ab   :  { %v2922_v17 = vmul.f32 %v4424_v47, %v2921_v35  ;;  %v2935_v15 = vmul.f32 %v2917_v48, %v8114_v2  ;;  %v8609_v35 = vld [vmem:[#allocation9 + $0x1e0] sm:$0xff]  ;;  %v8612_v2 = vld [vmem:[#allocation9 + $0x1e8] sm:$0xff]  ;;  %v8655_v36 = vld [vmem:[#allocation9 + $0x190] sm:$0xff] }
 0x8ac   :  { %v8658_v48 = vld [vmem:[#allocation9 + $0x198] sm:$0xff]  ;;  %v8673_v50 = vld [vmem:[#allocation9 + $0x140] sm:$0xff] }
 0x8ad   :  { %v8600_v39 = vadd.f32 %v2936_v7, %v2935_v15  ;;  %v2923_v24 = vadd.f32 %v4424_v47, %v2922_v17  ;;  %v8618_v17 = vld [vmem:[#allocation9 + $0x1f8] sm:$0xff]  ;;  %v8621_v7 = vld [vmem:[#allocation9 + $0x1c0] sm:$0xff]  ;;  %10754 = vst [vmem:[#allocation93_spill] sm:$0xff] %v8673_v50 }
 0x8ae   :  { %v8661_v15 = vld [vmem:[#allocation9 + $0x160] sm:$0xff] }
 0x8af   :  { %4427 = vtanh.f32 %v8600_v39  ;;  %v2927_v40 = vsel %vm2926_vm4, %v4424_v47, %v2923_v24  ;;  %v8615_v47 = vld [vmem:[#allocation9 + $0x1f0] sm:$0xff] }
 0x8b0   :  { %v2932_v1 = vsel %vm2929_vm5, %v2931_v19, %v2927_v40  ;;  %v8667_v24 = vld [vmem:[#allocation9 + $0x170] sm:$0xff]  ;;  %v8676_v40 = vld [vmem:[#allocation9 + $0x148] sm:$0xff] }
 0x8b1   :  { %10755 = vst [vmem:[#allocation82_spill] sm:$0xff] %v8676_v40  ;;  %v8679_v19 = vld [vmem:[#allocation9 + $0x150] sm:$0xff] }
 0x8b2   :  { %10756 = vst [vmem:[#allocation100_spill] sm:$0xff] %v8679_v19 }
 0x8b5   :  { %v4428_v44 = vpop.eup %4427 }
 0x8b6   :  { %v8603_v8 = vmul.f32 %v4428_v44, %v2932_v1  ;;  %v8682_v44 = vld [vmem:[#allocation9 + $0x158] sm:$0xff]  ;;  %v8685_v1 = vld [vmem:[#allocation9 + $0x120] sm:$0xff] }
 0x8b7   :  { %10757 = vst [vmem:[#allocation95_spill] sm:$0xff] %v8682_v44 }
 0x8b8   :  { %10753 = vst [vmem:[#allocation92_spill] sm:$0xff] %v8603_v8  ;;  %2958 = vmatmul.f32.vlgmr.msrb.gmra.mxu0 %v8603_v8  ;;  %2978 = vmatmul.f32.vlgmr.msra.gmra.mxu1 %v8603_v8 }
 0x8b9   :  { %2998 = vmatmul.f32.vlgmr.msrb.gmra.mxu2 %v8603_v8  ;;  %3018 = vmatmul.f32.vlgmr.msrb.gmra.mxu3 %v8603_v8  ;;  %10758 = vst [vmem:[#allocation96_spill] sm:$0xff] %v8685_v1  ;;  %v8688_v8 = vld [vmem:[#allocation9 + $0x128] sm:$0xff] }
 0x8ba   :  { %3176 = vmatpush.msrb.mxu0 %v8609_v35  ;;  %3196 = vmatpush.msra.mxu1 %v8612_v2  ;;  %10759 = vst [vmem:[#allocation124_spill] sm:$0xff] %v8688_v8 }
 0x8bb   :  { %3216 = vmatpush.msrb.mxu2 %v8615_v47  ;;  %3236 = vmatpush.msrb.mxu3 %v8618_v17 }
 0x8bc   :  { %3177 = vmatpush.msrb.mxu0 %v8621_v7  ;;  %3197 = vmatpush.msra.mxu1 %v8624_v53 }
 0x8bd   :  { %3217 = vmatpush.msrb.mxu2 %v8627_v31  ;;  %3237 = vmatpush.msrb.mxu3 %v8630_v10 }
 0x8be   :  { %3178 = vmatpush.msrb.mxu0 %v8633_v9  ;;  %3198 = vmatpush.msra.mxu1 %v8636_v61 }
 0x8bf   :  { %3218 = vmatpush.msrb.mxu2 %v8639_v55  ;;  %3238 = vmatpush.msrb.mxu3 %v8642_v4 }
 0x8c0   :  { %3045 = vmatmul.f32.vlgmr.msra.gmra.mxu0 %v8393_v13  ;;  %3065 = vmatmul.f32.vlgmr.msrb.gmra.mxu1 %v8393_v13 }
 0x8c1   :  { %3085 = vmatmul.f32.vlgmr.msra.gmra.mxu2 %v8393_v13  ;;  %3105 = vmatmul.f32.vlgmr.msra.gmra.mxu3 %v8393_v13  ;;  %v8664_v13 = vld [vmem:[#allocation9 + $0x168] sm:$0xff] }
 0x8c2   :  { %3179 = vmatpush.msrb.mxu0 %v8649_v32  ;;  %3199 = vmatpush.msra.mxu1 %v8652_v12 }
 0x8c3   :  { %3219 = vmatpush.msrb.mxu2 %v8655_v36  ;;  %3239 = vmatpush.msrb.mxu3 %v8658_v48 }
 0x8c4   :  { %3180 = vmatpush.msrb.mxu0 %v8661_v15  ;;  %3200 = vmatpush.msra.mxu1 %v8664_v13 }
 0x8c5   :  { %3220 = vmatpush.msrb.mxu2 %v8667_v24  ;;  %3240 = vmatpush.msrb.mxu3 %v8670_v27 }
 0x8c6   :  { %3181 = vmatpush.msrb.mxu0 %v8673_v50  ;;  %3201 = vmatpush.msra.mxu1 %v8676_v40  ;;  %v8691_v50 = vld [vmem:[#allocation9 + $0x130] sm:$0xff]  ;;  %v8694_v40 = vld [vmem:[#allocation9 + $0x138] sm:$0xff] }
 0x8c7   :  { %3221 = vmatpush.msrb.mxu2 %v8679_v19  ;;  %3241 = vmatpush.msrb.mxu3 %v8682_v44  ;;  %10760 = vst [vmem:[#allocation151_spill] sm:$0xff] %v8691_v50  ;;  %v8697_v19 = vld [vmem:[#allocation9 + $0x100] sm:$0xff]  ;;  %v8700_v44 = vld [vmem:[#allocation9 + $0x108] sm:$0xff] }
 0x8c8   :  { %3182 = vmatpush.msrb.mxu0 %v8685_v1  ;;  %3202 = vmatpush.msra.mxu1 %v8688_v8  ;;  %10761 = vst [vmem:[#allocation145_spill] sm:$0xff] %v8694_v40  ;;  %v8703_v1 = vld [vmem:[#allocation9 + $0x110] sm:$0xff]  ;;  %v8706_v8 = vld [vmem:[#allocation9 + $0x118] sm:$0xff] }
 0x8c9   :  { %3222 = vmatpush.msrb.mxu2 %v8691_v50  ;;  %3242 = vmatpush.msrb.mxu3 %v8694_v40  ;;  %10762 = vst [vmem:[#allocation129_spill] sm:$0xff] %v8697_v19  ;;  %v8709_v50 = vld [vmem:[#allocation9 + $0xe0] sm:$0xff]  ;;  %v8712_v40 = vld [vmem:[#allocation9 + $0xe8] sm:$0xff] }
 0x8ca   :  { %3183 = vmatpush.msrb.mxu0 %v8697_v19  ;;  %10763 = vst [vmem:[#allocation130_spill] sm:$0xff] %v8700_v44  ;;  %3203 = vmatpush.msra.mxu1 %v8700_v44  ;;  %v8715_v19 = vld [vmem:[#allocation9 + $0xf0] sm:$0xff]  ;;  %v8718_v44 = vld [vmem:[#allocation9 + $0xf8] sm:$0xff] }
 0x8cb   :  { %10764 = vst [vmem:[#allocation131_spill] sm:$0xff] %v8703_v1  ;;  %3223 = vmatpush.msrb.mxu2 %v8703_v1  ;;  %3243 = vmatpush.msrb.mxu3 %v8706_v8  ;;  %v8721_v1 = vld [vmem:[#allocation9 + $0xc0] sm:$0xff] }
 0x8cc   :  { %10765 = vst [vmem:[#allocation132_spill] sm:$0xff] %v8706_v8  ;;  %3184 = vmatpush.msrb.mxu0 %v8709_v50  ;;  %3204 = vmatpush.msra.mxu1 %v8712_v40  ;;  %v8724_v8 = vld [vmem:[#allocation9 + $0xc8] sm:$0xff] }
 0x8cd   :  { %10766 = vst [vmem:[#allocation133_spill] sm:$0xff] %v8709_v50  ;;  %3224 = vmatpush.msrb.mxu2 %v8715_v19  ;;  %3244 = vmatpush.msrb.mxu3 %v8718_v44  ;;  %v8727_v50 = vld [vmem:[#allocation9 + $0xd0] sm:$0xff] }
 0x8ce   :  { %10767 = vst [vmem:[#allocation135_spill] sm:$0xff] %v8712_v40  ;;  %3185 = vmatpush.msrb.mxu0 %v8721_v1  ;;  %3205 = vmatpush.msra.mxu1 %v8724_v8  ;;  %v8730_v40 = vld [vmem:[#allocation9 + $0xd8] sm:$0xff] }
 0x8cf   :  { %10768 = vst [vmem:[#allocation136_spill] sm:$0xff] %v8715_v19  ;;  %3225 = vmatpush.msrb.mxu2 %v8727_v50  ;;  %3245 = vmatpush.msrb.mxu3 %v8730_v40  ;;  %v8733_v19 = vld [vmem:[#allocation9 + $0xa0] sm:$0xff] }
 0x8d0   :  { %10769 = vst [vmem:[#allocation137_spill] sm:$0xff] %v8718_v44  ;;  %3186 = vmatpush.msrb.mxu0 %v8733_v19  ;;  %v8736_v44 = vld [vmem:[#allocation9 + $0xa8] sm:$0xff] }
 0x8d1   :  { %10770 = vst [vmem:[#allocation138_spill] sm:$0xff] %v8721_v1  ;;  %3206 = vmatpush.msra.mxu1 %v8736_v44  ;;  %v8739_v1 = vld [vmem:[#allocation9 + $0xb0] sm:$0xff] }
 0x8d2   :  { %10771 = vst [vmem:[#allocation139_spill] sm:$0xff] %v8724_v8  ;;  %3226 = vmatpush.msrb.mxu2 %v8739_v1  ;;  %v8742_v8 = vld [vmem:[#allocation9 + $0xb8] sm:$0xff] }
 0x8d3   :  { %10772 = vst [vmem:[#allocation140_spill] sm:$0xff] %v8727_v50  ;;  %3246 = vmatpush.msrb.mxu3 %v8742_v8  ;;  %v8745_v50 = vld [vmem:[#allocation9 + $0x80] sm:$0xff] }
 0x8d4   :  { %10773 = vst [vmem:[#allocation142_spill] sm:$0xff] %v8730_v40  ;;  %3187 = vmatpush.msrb.mxu0 %v8745_v50  ;;  %v8748_v40 = vld [vmem:[#allocation9 + $0x88] sm:$0xff] }
 0x8d5   :  { %10774 = vst [vmem:[#allocation144_spill] sm:$0xff] %v8733_v19  ;;  %3207 = vmatpush.msra.mxu1 %v8748_v40  ;;  %v8751_v19 = vld [vmem:[#allocation9 + $0x90] sm:$0xff] }
 0x8d6   :  { %10775 = vst [vmem:[#allocation146_spill] sm:$0xff] %v8736_v44  ;;  %3227 = vmatpush.msrb.mxu2 %v8751_v19  ;;  %v8754_v44 = vld [vmem:[#allocation9 + $0x98] sm:$0xff] }
 0x8d7   :  { %10776 = vst [vmem:[#allocation147_spill] sm:$0xff] %v8739_v1  ;;  %3247 = vmatpush.msrb.mxu3 %v8754_v44  ;;  %v8757_v1 = vld [vmem:[#allocation9 + $0x60] sm:$0xff] }
 0x8d8   :  { %10777 = vst [vmem:[#allocation148_spill] sm:$0xff] %v8742_v8  ;;  %3188 = vmatpush.msrb.mxu0 %v8757_v1  ;;  %v8760_v8 = vld [vmem:[#allocation9 + $0x68] sm:$0xff] }
 0x8d9   :  { %10778 = vst [vmem:[#allocation149_spill] sm:$0xff] %v8745_v50  ;;  %3208 = vmatpush.msra.mxu1 %v8760_v8  ;;  %v8763_v50 = vld [vmem:[#allocation9 + $0x70] sm:$0xff] }
 0x8da   :  { %10779 = vst [vmem:[#allocation150_spill] sm:$0xff] %v8748_v40  ;;  %3228 = vmatpush.msrb.mxu2 %v8763_v50  ;;  %v8766_v40 = vld [vmem:[#allocation9 + $0x78] sm:$0xff] }
 0x8db   :  { %10780 = vst [vmem:[#allocation152_spill] sm:$0xff] %v8751_v19  ;;  %3248 = vmatpush.msrb.mxu3 %v8766_v40  ;;  %v8769_v19 = vld [vmem:[#allocation9 + $0x40] sm:$0xff] }
 0x8dc   :  { %10781 = vst [vmem:[#allocation153_spill] sm:$0xff] %v8754_v44  ;;  %3189 = vmatpush.msrb.mxu0 %v8769_v19  ;;  %v8772_v44 = vld [vmem:[#allocation9 + $0x48] sm:$0xff] }
 0x8dd   :  { %10782 = vst [vmem:[#allocation154_spill] sm:$0xff] %v8757_v1  ;;  %3209 = vmatpush.msra.mxu1 %v8772_v44  ;;  %v8775_v1 = vld [vmem:[#allocation9 + $0x50] sm:$0xff] }
 0x8de   :  { %10783 = vst [vmem:[#allocation156_spill] sm:$0xff] %v8760_v8  ;;  %3229 = vmatpush.msrb.mxu2 %v8775_v1  ;;  %v8778_v8 = vld [vmem:[#allocation9 + $0x58] sm:$0xff] }
 0x8df   :  { %10784 = vst [vmem:[#allocation157_spill] sm:$0xff] %v8763_v50  ;;  %3249 = vmatpush.msrb.mxu3 %v8778_v8  ;;  %v8781_v50 = vld [vmem:[#allocation9 + $0x20] sm:$0xff] }
 0x8e0   :  { %10785 = vst [vmem:[#allocation158_spill] sm:$0xff] %v8766_v40  ;;  %3190 = vmatpush.msrb.mxu0 %v8781_v50  ;;  %v8784_v40 = vld [vmem:[#allocation9 + $0x28] sm:$0xff] }
 0x8e1   :  { %10786 = vst [vmem:[#allocation159_spill] sm:$0xff] %v8769_v19  ;;  %3210 = vmatpush.msra.mxu1 %v8784_v40  ;;  %v8787_v19 = vld [vmem:[#allocation9 + $0x30] sm:$0xff] }
 0x8e2   :  { %10787 = vst [vmem:[#allocation161_spill] sm:$0xff] %v8772_v44  ;;  %3230 = vmatpush.msrb.mxu2 %v8787_v19  ;;  %v8790_v44 = vld [vmem:[#allocation9 + $0x38] sm:$0xff] }
 0x8e3   :  { %10788 = vst [vmem:[#allocation162_spill] sm:$0xff] %v8775_v1  ;;  %3250 = vmatpush.msrb.mxu3 %v8790_v44  ;;  %v8793_v1 = vld [vmem:[#allocation9] sm:$0xff] }
 0x8e4   :  { %10789 = vst [vmem:[#allocation163_spill] sm:$0xff] %v8778_v8  ;;  %3191 = vmatpush.msrb.mxu0 %v8793_v1  ;;  %v8796_v8 = vld [vmem:[#allocation9 + $0x8] sm:$0xff] }
 0x8e5   :  { %10790 = vst [vmem:[#allocation164_spill] sm:$0xff] %v8781_v50  ;;  %3211 = vmatpush.msra.mxu1 %v8796_v8  ;;  %v8799_v50 = vld [vmem:[#allocation9 + $0x10] sm:$0xff] }
 0x8e6   :  { %10791 = vst [vmem:[#allocation165_spill] sm:$0xff] %v8784_v40  ;;  %3231 = vmatpush.msrb.mxu2 %v8799_v50  ;;  %v8802_v40 = vld [vmem:[#allocation9 + $0x18] sm:$0xff]  ;;  %3325 = vmatpush.msra.mxu0 %v8191_v30  ;;  %v5069_v30 = vld [vmem:[#allocation10 + $0x100] sm:$0xff] }
 0x8e7   :  { %3251 = vmatpush.msrb.mxu3 %v8802_v40  ;;  %3345 = vmatpush.msrb.mxu1 %v8194_v11  ;;  %v10792_v11 = vld [vmem:[#allocation186_spill] sm:$0xff] }
 0x8e8   :  { %3365 = vmatpush.msra.mxu2 %v8197_v0  ;;  %3326 = vmatpush.msra.mxu0 %v8203_v37  ;;  %v10793_v0 = vld [vmem:[#allocation187_spill] sm:$0xff]  ;;  %v10794_v37 = vld [vmem:[#allocation188_spill] sm:$0xff] }
 0x8e9   :  { %3385 = vmatpush.msra.mxu3 %v8200_v51  ;;  %3346 = vmatpush.msrb.mxu1 %v8206_v18  ;;  %v5070_v51 = vld [vmem:[#allocation10 + $0xe0] sm:$0xff] }
 0x8ea   :  { %3366 = vmatpush.msra.mxu2 %v8209_v52  ;;  %3327 = vmatpush.msra.mxu0 %v8215_v45  ;;  %v10795_v18 = vld [vmem:[#allocation189_spill] sm:$0xff]  ;;  %v10796_v52 = vld [vmem:[#allocation190_spill] sm:$0xff]  ;;  %v10797_v45 = vld [vmem:[#allocation191_spill] sm:$0xff] }
 0x8eb   :  { %3386 = vmatpush.msra.mxu3 %v8212_v63  ;;  %3347 = vmatpush.msrb.mxu1 %v8218_v62  ;;  %v5071_v63 = vld [vmem:[#allocation10 + $0xc0] sm:$0xff]  ;;  %v10798_v62 = vld [vmem:[#allocation107_spill] sm:$0xff] }
 0x8ec   :  { %3367 = vmatpush.msra.mxu2 %v8221_v41  ;;  %3328 = vmatpush.msra.mxu0 %v8227_v3  ;;  %v10799_v41 = vld [vmem:[#allocation111_spill] sm:$0xff]  ;;  %v10800_v3 = vld [vmem:[#allocation110_spill] sm:$0xff] }
 0x8ed   :  { %3387 = vmatpush.msra.mxu3 %v8224_v22  ;;  %3348 = vmatpush.msrb.mxu1 %v8230_v38  ;;  %v5072_v22 = vld [vmem:[#allocation10 + $0xa0] sm:$0xff] }
 0x8ee   :  { %3368 = vmatpush.msra.mxu2 %v8233_v28  ;;  %3329 = vmatpush.msra.mxu0 %v8239_v59  ;;  %v10801_v38 = vld [vmem:[#allocation117_spill] sm:$0xff]  ;;  %v10802_v28 = vld [vmem:[#allocation102_spill] sm:$0xff] }
 0x8ef   :  { %3388 = vmatpush.msra.mxu3 %v8236_v46  ;;  %3349 = vmatpush.msrb.mxu1 %v8242_v5  ;;  %v5073_v46 = vld [vmem:[#allocation10 + $0x80] sm:$0xff]  ;;  %v10804_v5 = vld [vmem:[#allocation103_spill] sm:$0xff] }
 0x8f0   :  { %3369 = vmatpush.msra.mxu2 %v8245_v20  ;;  %3330 = vmatpush.msra.mxu0 %v8251_v21  ;;  %v10803_v59 = vld [vmem:[#allocation105_spill] sm:$0xff] }
 0x8f1   :  { %3389 = vmatpush.msra.mxu3 %v8248_v57  ;;  %3350 = vmatpush.msrb.mxu1 %v8254_v56  ;;  %v10805_v20 = vld [vmem:[#allocation109_spill] sm:$0xff]  ;;  %v10806_v57 = vld [vmem:[#allocation48_spill] sm:$0xff]  ;;  %v10808_v56 = vld [vmem:[#allocation34_spill] sm:$0xff] }
 0x8f2   :  { %3370 = vmatpush.msra.mxu2 %v8257_v23  ;;  %3331 = vmatpush.msra.mxu0 %v8263_v6  ;;  %v10807_v21 = vld [vmem:[#allocation33_spill] sm:$0xff]  ;;  %v10809_v23 = vld [vmem:[#allocation27_spill] sm:$0xff]  ;;  %v10811_v6 = vld [vmem:[#allocation36_spill] sm:$0xff] }
 0x8f3   :  { %3390 = vmatpush.msra.mxu3 %v8260_v60  ;;  %3351 = vmatpush.msrb.mxu1 %v8266_v25  ;;  %v10810_v60 = vld [vmem:[#allocation52_spill] sm:$0xff]  ;;  %v10812_v25 = vld [vmem:[#allocation37_spill] sm:$0xff] }
 0x8f4   :  { %3371 = vmatpush.msra.mxu2 %v8269_v16  ;;  %3332 = vmatpush.msra.mxu0 %v5069_v30  ;;  %v10813_v16 = vld [vmem:[#allocation28_spill] sm:$0xff] }
 0x8f5   :  { %3391 = vmatpush.msra.mxu3 %v8272_v49  ;;  %3352 = vmatpush.msrb.mxu1 %v8276_v34  ;;  %v10814_v49 = vld [vmem:[#allocation54_spill] sm:$0xff]  ;;  %v10815_v34 = vld [vmem:[#allocation39_spill] sm:$0xff]  ;;  %v10816_v30 = vld [vmem:[#allocation40_spill] sm:$0xff] }
 0x8f6   :  { %3372 = vmatpush.msra.mxu2 %v10792_v11  ;;  %3333 = vmatpush.msra.mxu0 %v5070_v51  ;;  %v10817_v11 = vld [vmem:[#allocation29_spill] sm:$0xff]  ;;  %v10819_v51 = vld [vmem:[#allocation42_spill] sm:$0xff] }
 0x8f7   :  { %3392 = vmatpush.msra.mxu3 %v10793_v0  ;;  %3353 = vmatpush.msrb.mxu1 %v10794_v37  ;;  %v10818_v0 = vld [vmem:[#allocation58_spill] sm:$0xff]  ;;  %v10820_v37 = vld [vmem:[#allocation43_spill] sm:$0xff] }
 0x8f8   :  { %3373 = vmatpush.msra.mxu2 %v10795_v18  ;;  %3334 = vmatpush.msra.mxu0 %v5071_v63  ;;  %v10821_v18 = vld [vmem:[#allocation32_spill] sm:$0xff] }
 0x8f9   :  { %3393 = vmatpush.msra.mxu3 %v10796_v52  ;;  %3354 = vmatpush.msrb.mxu1 %v10797_v45  ;;  %v10822_v45 = vld [vmem:[#allocation127_spill] sm:$0xff] }
 0x8fa   :  { %3374 = vmatpush.msra.mxu2 %v10798_v62  ;;  %3335 = vmatpush.msra.mxu0 %v5072_v22  ;;  %v10823_v62 = vld [vmem:[#allocation120_spill] sm:$0xff] }
 0x8fb   :  { %3394 = vmatpush.msra.mxu3 %v10799_v41  ;;  %3355 = vmatpush.msrb.mxu1 %v10800_v3  ;;  %v283_v41 = vadd.f32 %v10823_v62, %v10822_v45  ;;  %v10824_v22 = vld [vmem:[#allocation160_spill] sm:$0xff]  ;;  %v10825_v3 = vld [vmem:[#allocation123_spill] sm:$0xff]  ;;  %v10829_v62 = vld [vmem:[#allocation141_spill] sm:$0xff] }
 0x8fc   :  { %3375 = vmatpush.msra.mxu2 %v10801_v38  ;;  %3336 = vmatpush.msra.mxu0 %v5073_v46  ;;  %v324_v38 = vadd.f32 %v10825_v3, %v10824_v22 }
 0x8fd   :  { %3395 = vmatpush.msra.mxu3 %v10802_v28  ;;  %3356 = vmatpush.msrb.mxu1 %v10803_v59 }
 0x8fe   :  { %3376 = vmatpush.msra.mxu2 %v10804_v5  ;;  %3337 = vmatpush.msra.mxu0 %v10806_v57 }
 0x8ff   :  { %3396 = vmatpush.msra.mxu3 %v10805_v20  ;;  %3357 = vmatpush.msrb.mxu1 %v10807_v21 }
 0x900   :  { %3377 = vmatpush.msra.mxu2 %v10808_v56  ;;  %3338 = vmatpush.msra.mxu0 %v10810_v60  ;;  %v10826_v56 = vld [vmem:[#allocation155_spill] sm:$0xff] }
 0x901   :  { %3397 = vmatpush.msra.mxu3 %v10809_v23  ;;  %3358 = vmatpush.msrb.mxu1 %v10811_v6  ;;  %v10827_v23 = vld [vmem:[#allocation122_spill] sm:$0xff] }
 0x902   :  { %3378 = vmatpush.msra.mxu2 %v10812_v25  ;;  %3339 = vmatpush.msra.mxu0 %v10814_v49  ;;  %v365_v60 = vadd.f32 %v10827_v23, %v10826_v56 }
 0x903   :  { %3398 = vmatpush.msra.mxu3 %v10813_v16  ;;  %3359 = vmatpush.msrb.mxu1 %v10815_v34 }
 0x904   :  { %3379 = vmatpush.msra.mxu2 %v10816_v30  ;;  %3340 = vmatpush.msra.mxu0 %v10818_v0 }
 0x905   :  { %3399 = vmatpush.msra.mxu3 %v10817_v11  ;;  %3360 = vmatpush.msrb.mxu1 %v10819_v51 }
 0x906   :  { %3380 = vmatpush.msra.mxu2 %v10820_v37 }
 0x907   :  { %3400 = vmatpush.msra.mxu3 %v10821_v18  ;;  %v10828_v18 = vld [vmem:[#allocation193_spill] sm:$0xff] }
 0x935   :  { %v8864_v52 = vpop.f32.mrf.mxu0  ;;  %v8866_v63 = vpop.f32.mrf.mxu1 }
 0x93c   :  { %v8872_v28 = vpop.f32.mrf.mxu2  ;;  %v8876_v6 = vpop.f32.mrf.mxu3 }
 0x93d   :  { %v3046_v46 = vpop.f32.mrf.mxu0  ;;  %v3066_v59 = vpop.f32.mrf.mxu1 }
 0x93e   :  { %v3109_v5 = vadd.f32 %v3046_v46, %v283_v41  ;;  %v3110_v20 = vadd.f32 %v3066_v59, %v324_v38  ;;  %v406_v41 = vadd.f32 %v10829_v62, %v10828_v18 }
 0x940   :  { %v4189_v57 = vmul.f32 -1.442695, %v3109_v5  ;;  %v4190_v21 = vmul.f32 -1.442695, %v3110_v20 }
 0x942   :  { %4429 = vpow2.f32 %v4189_v57 }
 0x943   :  { %4431 = vpow2.f32 %v4190_v21 }
 0x944   :  { %v3086_v25 = vpop.f32.mrf.mxu2  ;;  %v3106_v51 = vpop.f32.mrf.mxu3 }
 0x945   :  { %v3111_v16 = vadd.f32 %v3086_v25, %v365_v60  ;;  %v3112_v46 = vadd.f32 %v3106_v51, %v406_v41 }
 0x947   :  { %v4191_v49 = vmul.f32 -1.442695, %v3111_v16 }
 0x948   :  { %v4430_v34 = vpop.eup %4429 }
 0x949   :  { %v4432_v30 = vpop.eup %4431  ;;  %v3122_v11 = vadd.f32 1.0, %v4430_v34  ;;  %4433 = vpow2.f32 %v4191_v49 }
 0x94a   :  { %v3123_v0 = vadd.f32 1.0, %v4432_v30 }
 0x94b   :  { %4435 = vrcp.f32 %v3122_v11  ;;  %v3136_v23 = vand.u32 2147483648, %v3122_v11  ;;  %v3134_v16 = vand.u32 2147483647, %v3122_v11  ;;  %vm3130_vm8 = vweird.f32 %v3122_v11 }
 0x94c   :  { %4437 = vrcp.f32 %v3123_v0  ;;  %v3151_v60 = vand.u32 2147483648, %v3123_v0  ;;  %v3149_v34 = vand.u32 2147483647, %v3123_v0  ;;  %vm3145_vm9 = vweird.f32 %v3123_v0 }
 0x94d   :  { %vm3135_vm12 = vcmp.eq.f32.partialorder %v3134_v16, 8.507059e+37 }
 0x94e   :  { %vm3150_vm13 = vcmp.eq.f32.partialorder %v3149_v34, 8.507059e+37  ;;  %v10842_v34 = vld [vmem:[#allocation114_spill] sm:$0xff] }
 0x94f   :  { %v4434_v37 = vpop.eup %4433 }
 0x950   :  { %v3124_v3 = vadd.f32 1.0, %v4434_v37  ;;  %v3137_v37 = vor.u32 1.1754944e-38, %v3136_v23 }
 0x951   :  { %v4436_v38 = vpop.eup %4435 }
 0x952   :  { %v4438_v59 = vpop.eup %4437  ;;  %v3126_v5 = vmul.f32 %v4436_v38, %v3122_v11  ;;  %4439 = vrcp.f32 %v3124_v3  ;;  %vm3131_vm6 = vweird.f32 %v4436_v38  ;;  %v3166_v23 = vand.u32 2147483648, %v3124_v3 }
 0x953   :  { %v3141_v20 = vmul.f32 %v4438_v59, %v3123_v0  ;;  %4441 = vtanh.f32 %v3112_v46  ;;  %vm3146_vm7 = vweird.f32 %v4438_v59  ;;  %vm3132_vm10 = vmor %vm3130_vm8, %vm3131_vm6  ;;  %vm3160_vm15 = vweird.f32 %v3124_v3 }
 0x954   :  { %v3127_v57 = vsub.f32 1.0, %v3126_v5  ;;  %vm3147_vm11 = vmor %vm3145_vm9, %vm3146_vm7  ;;  %v3152_v5 = vor.u32 1.1754944e-38, %v3151_v60  ;;  %v3167_v16 = vor.u32 1.1754944e-38, %v3166_v23  ;;  %v10855_v23 = vld [vmem:[#allocation63_spill] sm:$0xff] }
 0x955   :  { %v3142_v21 = vsub.f32 1.0, %v3141_v20 }
 0x956   :  { %v3128_v25 = vmul.f32 %v4436_v38, %v3127_v57 }
 0x957   :  { %v3143_v49 = vmul.f32 %v4438_v59, %v3142_v21 }
 0x958   :  { %v4440_v30 = vpop.eup %4439  ;;  %v3129_v62 = vadd.f32 %v4436_v38, %v3128_v25 }
 0x959   :  { %v3156_v51 = vmul.f32 %v4440_v30, %v3124_v3  ;;  %v3144_v41 = vadd.f32 %v4438_v59, %v3143_v49  ;;  %v4442_v46 = vpop.eup %4441  ;;  %vm3161_vm14 = vweird.f32 %v4440_v30 }
 0x95a   :  { %v3133_v20 = vsel %vm3132_vm10, %v4436_v38, %v3129_v62  ;;  %v3164_v38 = vand.u32 2147483647, %v3124_v3  ;;  %vm3162_vm2 = vmor %vm3160_vm15, %vm3161_vm14  ;;  %v10841_v3 = vld [vmem:[#allocation115_spill] sm:$0xff]  ;;  %v10844_v62 = vld [vmem:[#allocation56_spill] sm:$0xff] }
 0x95b   :  { %v3157_v18 = vsub.f32 1.0, %v3156_v51  ;;  %v3138_v57 = vsel %vm3135_vm12, %v3137_v37, %v3133_v20  ;;  %v3148_v56 = vsel %vm3147_vm11, %v4438_v59, %v3144_v41  ;;  %v10845_v51 = vld [vmem:[#allocation41_spill] sm:$0xff]  ;;  %v10847_v41 = vld [vmem:[#allocation59_spill] sm:$0xff]  ;;  %v10849_v20 = vld [vmem:[#allocation108_spill] sm:$0xff] }
 0x95c   :  { %v3153_v21 = vsel %vm3150_vm13, %v3152_v5, %v3148_v56  ;;  %v3172_v22 = vmul.f32 %v4442_v46, %v3138_v57  ;;  %vm3165_vm3 = vcmp.eq.f32.partialorder %v3164_v38, 8.507059e+37  ;;  %v10846_v37 = vld [vmem:[#allocation73_spill] sm:$0xff]  ;;  %v10848_v5 = vld [vmem:[#allocation104_spill] sm:$0xff]  ;;  %v10850_v46 = vld [vmem:[#allocation106_spill] sm:$0xff] }
 0x95d   :  { %v3158_v45 = vmul.f32 %v4440_v30, %v3157_v18  ;;  %v3171_v25 = vmul.f32 %v3153_v21, %v8390_v54  ;;  %v10830_v54 = vld [vmem:[#allocation62_spill] sm:$0xff]  ;;  %v10833_v18 = vld [vmem:[#allocation35_spill] sm:$0xff]  ;;  %v10851_v57 = vld [vmem:[#allocation113_spill] sm:$0xff] }
 0x95e   :  { %v10852_v21 = vld [vmem:[#allocation60_spill] sm:$0xff] }
 0x95f   :  { %v8881_v11 = vadd.f32 %v3172_v22, %v3171_v25  ;;  %v3159_v0 = vadd.f32 %v4440_v30, %v3158_v45  ;;  %v10831_v45 = vld [vmem:[#allocation46_spill] sm:$0xff]  ;;  %v10832_v22 = vld [vmem:[#allocation47_spill] sm:$0xff]  ;;  %v10853_v25 = vld [vmem:[#allocation45_spill] sm:$0xff] }
 0x960   :  { %v10856_v38 = vld [vmem:[#allocation64_spill] sm:$0xff] }
 0x961   :  { %4443 = vtanh.f32 %v8881_v11  ;;  %v3163_v60 = vsel %vm3162_vm2, %v4440_v30, %v3159_v0  ;;  %v10843_v30 = vld [vmem:[#allocation121_spill] sm:$0xff] }
 0x962   :  { %v3168_v49 = vsel %vm3165_vm3, %v3167_v16, %v3163_v60  ;;  %v10854_v0 = vld [vmem:[#allocation77_spill] sm:$0xff] }
 0x963   :  { %v10857_v60 = vld [vmem:[#allocation49_spill] sm:$0xff] }
 0x964   :  { %v10858_v16 = vld [vmem:[#allocation81_spill] sm:$0xff] }
 0x967   :  { %v4444_v59 = vpop.eup %4443 }
 0x968   :  { %v8884_v56 = vmul.f32 %v4444_v59, %v3168_v49  ;;  %v10859_v59 = vld [vmem:[#allocation67_spill] sm:$0xff]  ;;  %v10860_v49 = vld [vmem:[#allocation68_spill] sm:$0xff] }
 0x96a   :  { %3192 = vmatmul.f32.vlgmr.msrb.gmra.mxu0 %v8884_v56  ;;  %3212 = vmatmul.f32.vlgmr.msra.gmra.mxu1 %v8884_v56 }
 0x96b   :  { %3232 = vmatmul.f32.vlgmr.msrb.gmra.mxu2 %v8884_v56  ;;  %3252 = vmatmul.f32.vlgmr.msrb.gmra.mxu3 %v8884_v56 }
 0x96c   :  { %3412 = vmatpush.msrb.mxu0 %v8399_v29  ;;  %3432 = vmatpush.msra.mxu1 %v8402_v33  ;;  %v10834_v29 = vld [vmem:[#allocation66_spill] sm:$0xff] }
 0x96d   :  { %3452 = vmatpush.msrb.mxu2 %v8405_v26  ;;  %3472 = vmatpush.msrb.mxu3 %v8408_v43  ;;  %v10835_v33 = vld [vmem:[#allocation50_spill] sm:$0xff]  ;;  %v10836_v26 = vld [vmem:[#allocation51_spill] sm:$0xff] }
 0x96e   :  { %3413 = vmatpush.msrb.mxu0 %v8411_v58  ;;  %3433 = vmatpush.msra.mxu1 %v8414_v42  ;;  %v10837_v43 = vld [vmem:[#allocation38_spill] sm:$0xff]  ;;  %v10838_v58 = vld [vmem:[#allocation69_spill] sm:$0xff]  ;;  %v10839_v42 = vld [vmem:[#allocation55_spill] sm:$0xff] }
 0x96f   :  { %3453 = vmatpush.msrb.mxu2 %v8417_v14  ;;  %3473 = vmatpush.msrb.mxu3 %v10830_v54  ;;  %v10840_v14 = vld [vmem:[#allocation112_spill] sm:$0xff]  ;;  %v10861_v54 = vld [vmem:[#allocation53_spill] sm:$0xff] }
 0x970   :  { %3414 = vmatpush.msrb.mxu0 %v10831_v45  ;;  %3434 = vmatpush.msra.mxu1 %v10832_v22  ;;  %v10862_v45 = vld [vmem:[#allocation85_spill] sm:$0xff]  ;;  %v10863_v22 = vld [vmem:[#allocation71_spill] sm:$0xff] }
 0x971   :  { %3454 = vmatpush.msrb.mxu2 %v10833_v18  ;;  %3474 = vmatpush.msrb.mxu3 %v10834_v29  ;;  %v10864_v18 = vld [vmem:[#allocation72_spill] sm:$0xff]  ;;  %v10865_v29 = vld [vmem:[#allocation57_spill] sm:$0xff] }
 0x972   :  { %3415 = vmatpush.msrb.mxu0 %v10835_v33  ;;  %3435 = vmatpush.msra.mxu1 %v10836_v26  ;;  %v10866_v33 = vld [vmem:[#allocation88_spill] sm:$0xff]  ;;  %v10867_v26 = vld [vmem:[#allocation75_spill] sm:$0xff] }
 0x973   :  { %3455 = vmatpush.msrb.mxu2 %v10837_v43  ;;  %3475 = vmatpush.msrb.mxu3 %v10838_v58  ;;  %v10868_v43 = vld [vmem:[#allocation76_spill] sm:$0xff]  ;;  %v10869_v58 = vld [vmem:[#allocation61_spill] sm:$0xff] }
 0x974   :  { %3416 = vmatpush.msrb.mxu0 %v10839_v42  ;;  %3436 = vmatpush.msra.mxu1 %v10840_v14  ;;  %v10870_v42 = vld [vmem:[#allocation91_spill] sm:$0xff] }
 0x975   :  { %3456 = vmatpush.msrb.mxu2 %v10841_v3  ;;  %3476 = vmatpush.msrb.mxu3 %v10842_v34  ;;  %v10871_v14 = vld [vmem:[#allocation79_spill] sm:$0xff]  ;;  %v10872_v3 = vld [vmem:[#allocation80_spill] sm:$0xff]  ;;  %v10873_v34 = vld [vmem:[#allocation65_spill] sm:$0xff] }
 0x976   :  { %3417 = vmatpush.msrb.mxu0 %v10843_v30  ;;  %3437 = vmatpush.msra.mxu1 %v10844_v62  ;;  %v10874_v30 = vld [vmem:[#allocation94_spill] sm:$0xff]  ;;  %v10875_v62 = vld [vmem:[#allocation83_spill] sm:$0xff] }
 0x977   :  { %3457 = vmatpush.msrb.mxu2 %v10845_v51  ;;  %3477 = vmatpush.msrb.mxu3 %v10846_v37  ;;  %v10876_v51 = vld [vmem:[#allocation84_spill] sm:$0xff]  ;;  %v10877_v37 = vld [vmem:[#allocation70_spill] sm:$0xff] }
 0x978   :  { %3418 = vmatpush.msrb.mxu0 %v10847_v41  ;;  %3438 = vmatpush.msra.mxu1 %v10848_v5  ;;  %v10878_v41 = vld [vmem:[#allocation97_spill] sm:$0xff]  ;;  %v10879_v5 = vld [vmem:[#allocation86_spill] sm:$0xff] }
 0x979   :  { %3458 = vmatpush.msrb.mxu2 %v10849_v20  ;;  %3478 = vmatpush.msrb.mxu3 %v10850_v46  ;;  %v10880_v20 = vld [vmem:[#allocation87_spill] sm:$0xff]  ;;  %v10881_v46 = vld [vmem:[#allocation74_spill] sm:$0xff] }
 0x97a   :  { %3419 = vmatpush.msrb.mxu0 %v10851_v57  ;;  %3439 = vmatpush.msra.mxu1 %v10852_v21  ;;  %v10882_v57 = vld [vmem:[#allocation98_spill] sm:$0xff]  ;;  %v10883_v21 = vld [vmem:[#allocation89_spill] sm:$0xff] }
 0x97b   :  { %3459 = vmatpush.msrb.mxu2 %v10853_v25  ;;  %3479 = vmatpush.msrb.mxu3 %v10854_v0  ;;  %v10884_v25 = vld [vmem:[#allocation90_spill] sm:$0xff] }
 0x97c   :  { %3420 = vmatpush.msrb.mxu0 %v10855_v23  ;;  %3440 = vmatpush.msra.mxu1 %v10856_v38  ;;  %v10885_v0 = vld [vmem:[#allocation78_spill] sm:$0xff]  ;;  %v10886_v23 = vld [vmem:[#allocation99_spill] sm:$0xff]  ;;  %v10887_v38 = vld [vmem:[#allocation25_spill] sm:$0xff] }
 0x97d   :  { %3460 = vmatpush.msrb.mxu2 %v10857_v60  ;;  %3480 = vmatpush.msrb.mxu3 %v10858_v16  ;;  %v2960_v60 = vadd.f32 %v8864_v52, %v10887_v38  ;;  %v10888_v16 = vld [vmem:[#allocation44_spill] sm:$0xff] }
 0x97e   :  { %3421 = vmatpush.msrb.mxu0 %v10859_v59  ;;  %3441 = vmatpush.msra.mxu1 %v10860_v49  ;;  %v2980_v59 = vadd.f32 %v8866_v63, %v10888_v16 }
 0x97f   :  { %3461 = vmatpush.msrb.mxu2 %v10861_v54  ;;  %3481 = vmatpush.msrb.mxu3 %v10862_v45 }
 0x980   :  { %3422 = vmatpush.msrb.mxu0 %v10863_v22  ;;  %3442 = vmatpush.msra.mxu1 %v10864_v18 }
 0x981   :  { %3462 = vmatpush.msrb.mxu2 %v10865_v29  ;;  %3482 = vmatpush.msrb.mxu3 %v10866_v33  ;;  %v10889_v33 = vld [vmem:[#allocation30_spill] sm:$0xff] }
 0x982   :  { %3423 = vmatpush.msrb.mxu0 %v10867_v26  ;;  %3443 = vmatpush.msra.mxu1 %v10868_v43  ;;  %v3000_v26 = vadd.f32 %v8872_v28, %v10889_v33 }
 0x983   :  { %3463 = vmatpush.msrb.mxu2 %v10869_v58  ;;  %3483 = vmatpush.msrb.mxu3 %v10870_v42 }
 0x984   :  { %3424 = vmatpush.msrb.mxu0 %v10871_v14  ;;  %3444 = vmatpush.msra.mxu1 %v10872_v3 }
 0x985   :  { %3464 = vmatpush.msrb.mxu2 %v10873_v34  ;;  %3484 = vmatpush.msrb.mxu3 %v10874_v30 }
 0x986   :  { %3425 = vmatpush.msrb.mxu0 %v10875_v62  ;;  %3445 = vmatpush.msra.mxu1 %v10876_v51  ;;  %v10890_v62 = vld [vmem:[#allocation31_spill] sm:$0xff] }
 0x987   :  { %3465 = vmatpush.msrb.mxu2 %v10877_v37  ;;  %3485 = vmatpush.msrb.mxu3 %v10878_v41  ;;  %v3020_v51 = vadd.f32 %v8876_v6, %v10890_v62 }
 0x988   :  { %3426 = vmatpush.msrb.mxu0 %v10879_v5  ;;  %3446 = vmatpush.msra.mxu1 %v10880_v20 }
 0x989   :  { %3466 = vmatpush.msrb.mxu2 %v10881_v46  ;;  %3486 = vmatpush.msrb.mxu3 %v10882_v57 }
 0x98a   :  { %3427 = vmatpush.msrb.mxu0 %v10883_v21  ;;  %3447 = vmatpush.msra.mxu1 %v10884_v25 }
 0x98b   :  { %3467 = vmatpush.msrb.mxu2 %v10885_v0  ;;  %3487 = vmatpush.msrb.mxu3 %v10886_v23 }
 0x9e7   :  { %v3193_v49 = vpop.f32.mrf.mxu0  ;;  %v3213_v54 = vpop.f32.mrf.mxu1 }
 0x9e8   :  { %v3256_v45 = vadd.f32 %v3193_v49, %v2960_v60  ;;  %v3257_v22 = vadd.f32 %v3213_v54, %v2980_v59 }
 0x9ea   :  { %v4192_v18 = vmul.f32 -1.442695, %v3256_v45  ;;  %v4193_v29 = vmul.f32 -1.442695, %v3257_v22 }
 0x9ec   :  { %4445 = vpow2.f32 %v4192_v18 }
 0x9ed   :  { %4447 = vpow2.f32 %v4193_v29 }
 0x9ee   :  { %v3233_v43 = vpop.f32.mrf.mxu2  ;;  %v3253_v63 = vpop.f32.mrf.mxu3 }
 0x9ef   :  { %v3258_v58 = vadd.f32 %v3233_v43, %v3000_v26  ;;  %v3259_v5 = vadd.f32 %v3253_v63, %v3020_v51 }
 0x9f1   :  { %v4194_v42 = vmul.f32 -1.442695, %v3258_v58 }
 0x9f2   :  { %v4446_v14 = vpop.eup %4445 }
 0x9f3   :  { %v4448_v3 = vpop.eup %4447  ;;  %v3269_v52 = vadd.f32 1.0, %v4446_v14  ;;  %4449 = vpow2.f32 %v4194_v42 }
 0x9f4   :  { %v3270_v34 = vadd.f32 1.0, %v4448_v3 }
 0x9f5   :  { %4451 = vrcp.f32 %v3269_v52  ;;  %v3283_v25 = vand.u32 2147483648, %v3269_v52  ;;  %v3281_v60 = vand.u32 2147483647, %v3269_v52  ;;  %vm3277_vm6 = vweird.f32 %v3269_v52 }
 0x9f6   :  { %4453 = vrcp.f32 %v3270_v34  ;;  %v3298_v0 = vand.u32 2147483648, %v3270_v34  ;;  %v3296_v49 = vand.u32 2147483647, %v3270_v34  ;;  %vm3292_vm7 = vweird.f32 %v3270_v34 }
 0x9f7   :  { %v3284_v22 = vor.u32 1.1754944e-38, %v3283_v25  ;;  %vm3282_vm10 = vcmp.eq.f32.partialorder %v3281_v60, 8.507059e+37  ;;  %v10914_v25 = vld [vmem:[#allocation148_spill] sm:$0xff] }
 0x9f8   :  { %v3299_v29 = vor.u32 1.1754944e-38, %v3298_v0  ;;  %vm3297_vm11 = vcmp.eq.f32.partialorder %v3296_v49, 8.507059e+37  ;;  %v10915_v0 = vld [vmem:[#allocation149_spill] sm:$0xff]  ;;  %v10917_v60 = vld [vmem:[#allocation152_spill] sm:$0xff]  ;;  %v10919_v49 = vld [vmem:[#allocation154_spill] sm:$0xff] }
 0x9f9   :  { %v4450_v30 = vpop.eup %4449 }
 0x9fa   :  { %v3271_v37 = vadd.f32 1.0, %v4450_v30 }
 0x9fb   :  { %v4452_v41 = vpop.eup %4451 }
 0x9fc   :  { %v4454_v28 = vpop.eup %4453  ;;  %v3273_v20 = vmul.f32 %v4452_v41, %v3269_v52  ;;  %4455 = vrcp.f32 %v3271_v37  ;;  %vm3278_vm4 = vweird.f32 %v4452_v41  ;;  %vm3307_vm13 = vweird.f32 %v3271_v37 }
 0x9fd   :  { %v3288_v46 = vmul.f32 %v4454_v28, %v3270_v34  ;;  %4457 = vtanh.f32 %v3259_v5  ;;  %vm3293_vm5 = vweird.f32 %v4454_v28  ;;  %vm3279_vm8 = vmor %vm3277_vm6, %vm3278_vm4  ;;  %v3313_v5 = vand.u32 2147483648, %v3271_v37 }
 0x9fe   :  { %v3274_v57 = vsub.f32 1.0, %v3273_v20  ;;  %vm3294_vm9 = vmor %vm3292_vm7, %vm3293_vm5 }
 0x9ff   :  { %v3289_v21 = vsub.f32 1.0, %v3288_v46  ;;  %v3314_v46 = vor.u32 1.1754944e-38, %v3313_v5 }
 0xa00   :  { %v3275_v23 = vmul.f32 %v4452_v41, %v3274_v57 }
 0xa01   :  { %v3290_v59 = vmul.f32 %v4454_v28, %v3289_v21 }
 0xa02   :  { %v4456_v54 = vpop.eup %4455  ;;  %v3276_v6 = vadd.f32 %v4452_v41, %v3275_v23  ;;  %v10916_v23 = vld [vmem:[#allocation150_spill] sm:$0xff] }
 0xa03   :  { %v3303_v45 = vmul.f32 %v4456_v54, %v3271_v37  ;;  %v3291_v18 = vadd.f32 %v4454_v28, %v3290_v59  ;;  %v4458_v43 = vpop.eup %4457  ;;  %vm3308_vm12 = vweird.f32 %v4456_v54  ;;  %v10918_v59 = vld [vmem:[#allocation153_spill] sm:$0xff] }
 0xa04   :  { %v3280_v26 = vsel %vm3279_vm8, %v4452_v41, %v3276_v6  ;;  %v3311_v41 = vand.u32 2147483647, %v3271_v37  ;;  %vm3309_vm14 = vmor %vm3307_vm13, %vm3308_vm12  ;;  %v10913_v37 = vld [vmem:[#allocation147_spill] sm:$0xff]  ;;  %v10921_v6 = vld [vmem:[#allocation157_spill] sm:$0xff] }
 0xa05   :  { %v3304_v58 = vsub.f32 1.0, %v3303_v45  ;;  %v3285_v42 = vsel %vm3282_vm10, %v3284_v22, %v3280_v26  ;;  %v3295_v14 = vsel %vm3294_vm9, %v4454_v28, %v3291_v18  ;;  %v10922_v45 = vld [vmem:[#allocation158_spill] sm:$0xff]  ;;  %v10923_v22 = vld [vmem:[#allocation159_spill] sm:$0xff]  ;;  %v10924_v18 = vld [vmem:[#allocation161_spill] sm:$0xff] }
 0xa06   :  { %v3300_v3 = vsel %vm3297_vm11, %v3299_v29, %v3295_v14  ;;  %v3319_v63 = vmul.f32 %v4458_v43, %v3285_v42  ;;  %vm3312_vm15 = vcmp.eq.f32.partialorder %v3311_v41, 8.507059e+37  ;;  %v10925_v29 = vld [vmem:[#allocation162_spill] sm:$0xff]  ;;  %v10926_v26 = vld [vmem:[#allocation163_spill] sm:$0xff]  ;;  %v10927_v43 = vld [vmem:[#allocation164_spill] sm:$0xff] }
 0xa07   :  { %v3305_v30 = vmul.f32 %v4456_v54, %v3304_v58  ;;  %v3318_v51 = vmul.f32 %v3300_v3, %v8600_v39  ;;  %v10891_v39 = vld [vmem:[#allocation93_spill] sm:$0xff]  ;;  %v3731_v42 = vld [vmem:[#allocation12 + $0x78] sm:$0xff] }
 0xa08   :  { %v10928_v58 = vld [vmem:[#allocation165_spill] sm:$0xff] }
 0xa09   :  { %v8963_v52 = vadd.f32 %v3319_v63, %v3318_v51  ;;  %v3306_v34 = vadd.f32 %v4456_v54, %v3305_v30  ;;  %v3730_v63 = vld [vmem:[#allocation12 + $0x70] sm:$0xff]  ;;  %v3729_v30 = vld [vmem:[#allocation12 + $0x68] sm:$0xff]  ;;  %v10930_v51 = vld [vmem:[#allocation101_spill] sm:$0xff] }
 0xa0b   :  { %4459 = vtanh.f32 %v8963_v52  ;;  %v3310_v20 = vsel %vm3309_vm14, %v4456_v54, %v3306_v34  ;;  %v10920_v54 = vld [vmem:[#allocation156_spill] sm:$0xff] }
 0xa0c   :  { %v3315_v57 = vsel %vm3312_vm15, %v3314_v46, %v3310_v20  ;;  %v10931_v34 = vld [vmem:[#allocation160_spill] sm:$0xff]  ;;  %v3726_v46 = vld [vmem:[#allocation12 + $0x50] sm:$0xff] }
 0xa11   :  { %v4460_v28 = vpop.eup %4459 }
 0xa12   :  { %v8966_v21 = vmul.f32 %v4460_v28, %v3315_v57 }
 0xa14   :  { %3341 = vmatmul.f32.vlgmr.msra.gmra.mxu0 %v8966_v21  ;;  %3361 = vmatmul.f32.vlgmr.msrb.gmra.mxu1 %v8966_v21 }
 0xa15   :  { %3381 = vmatmul.f32.vlgmr.msra.gmra.mxu2 %v8966_v21  ;;  %3401 = vmatmul.f32.vlgmr.msra.gmra.mxu3 %v8966_v21 }
 0xa16   :  { %3559 = vmatpush.msra.mxu0 %v8609_v35  ;;  %3579 = vmatpush.msrb.mxu1 %v8612_v2  ;;  %v10892_v35 = vld [vmem:[#allocation82_spill] sm:$0xff]  ;;  %v10893_v2 = vld [vmem:[#allocation100_spill] sm:$0xff] }
 0xa17   :  { %3599 = vmatpush.msra.mxu2 %v8615_v47  ;;  %3619 = vmatpush.msra.mxu3 %v8618_v17  ;;  %v10894_v47 = vld [vmem:[#allocation95_spill] sm:$0xff]  ;;  %v10895_v17 = vld [vmem:[#allocation96_spill] sm:$0xff] }
 0xa18   :  { %3560 = vmatpush.msra.mxu0 %v8621_v7  ;;  %3580 = vmatpush.msrb.mxu1 %v8624_v53  ;;  %v10896_v7 = vld [vmem:[#allocation124_spill] sm:$0xff]  ;;  %v10897_v53 = vld [vmem:[#allocation151_spill] sm:$0xff] }
 0xa19   :  { %3600 = vmatpush.msra.mxu2 %v8627_v31  ;;  %3620 = vmatpush.msra.mxu3 %v8630_v10  ;;  %v10898_v31 = vld [vmem:[#allocation145_spill] sm:$0xff] }
 0xa1a   :  { %3561 = vmatpush.msra.mxu0 %v8633_v9  ;;  %3581 = vmatpush.msrb.mxu1 %v8636_v61  ;;  %v10899_v10 = vld [vmem:[#allocation129_spill] sm:$0xff]  ;;  %v10900_v9 = vld [vmem:[#allocation130_spill] sm:$0xff]  ;;  %v10901_v61 = vld [vmem:[#allocation131_spill] sm:$0xff] }
 0xa1b   :  { %3601 = vmatpush.msra.mxu2 %v8639_v55  ;;  %3621 = vmatpush.msra.mxu3 %v8642_v4  ;;  %v10902_v55 = vld [vmem:[#allocation132_spill] sm:$0xff]  ;;  %v10903_v4 = vld [vmem:[#allocation133_spill] sm:$0xff] }
 0xa1c   :  { %3428 = vmatmul.f32.vlgmr.msrb.gmra.mxu0 %v8884_v56  ;;  %3448 = vmatmul.f32.vlgmr.msra.gmra.mxu1 %v8884_v56 }
 0xa1d   :  { %3468 = vmatmul.f32.vlgmr.msrb.gmra.mxu2 %v8884_v56  ;;  %3488 = vmatmul.f32.vlgmr.msrb.gmra.mxu3 %v8884_v56  ;;  %v10912_v56 = vld [vmem:[#allocation146_spill] sm:$0xff] }
 0xa1e   :  { %3562 = vmatpush.msra.mxu0 %v8649_v32  ;;  %3582 = vmatpush.msrb.mxu1 %v8652_v12  ;;  %v10904_v32 = vld [vmem:[#allocation135_spill] sm:$0xff]  ;;  %v10905_v12 = vld [vmem:[#allocation136_spill] sm:$0xff] }
 0xa1f   :  { %3602 = vmatpush.msra.mxu2 %v8655_v36  ;;  %3622 = vmatpush.msra.mxu3 %v8658_v48  ;;  %v10906_v36 = vld [vmem:[#allocation137_spill] sm:$0xff]  ;;  %v10907_v48 = vld [vmem:[#allocation138_spill] sm:$0xff] }
 0xa20   :  { %3563 = vmatpush.msra.mxu0 %v8661_v15  ;;  %3583 = vmatpush.msrb.mxu1 %v8664_v13  ;;  %v10908_v15 = vld [vmem:[#allocation139_spill] sm:$0xff]  ;;  %v10909_v13 = vld [vmem:[#allocation140_spill] sm:$0xff] }
 0xa21   :  { %3603 = vmatpush.msra.mxu2 %v8667_v24  ;;  %3623 = vmatpush.msra.mxu3 %v8670_v27  ;;  %v10910_v24 = vld [vmem:[#allocation142_spill] sm:$0xff]  ;;  %v10911_v27 = vld [vmem:[#allocation144_spill] sm:$0xff] }
 0xa22   :  { %3564 = vmatpush.msra.mxu0 %v10891_v39  ;;  %3584 = vmatpush.msrb.mxu1 %v10892_v35  ;;  %v3725_v39 = vld [vmem:[#allocation12 + $0x48] sm:$0xff] }
 0xa23   :  { %3604 = vmatpush.msra.mxu2 %v10893_v2  ;;  %3624 = vmatpush.msra.mxu3 %v10894_v47  ;;  %v3724_v47 = vld [vmem:[#allocation12 + $0x40] sm:$0xff] }
 0xa24   :  { %3565 = vmatpush.msra.mxu0 %v10895_v17  ;;  %3585 = vmatpush.msrb.mxu1 %v10896_v7  ;;  %v3723_v17 = vld [vmem:[#allocation12 + $0x38] sm:$0xff]  ;;  %v10933_v7 = vld [vmem:[#allocation155_spill] sm:$0xff] }
 0xa25   :  { %3605 = vmatpush.msra.mxu2 %v10897_v53  ;;  %3625 = vmatpush.msra.mxu3 %v10898_v31  ;;  %v10934_v53 = vld [vmem:[#allocation126_spill] sm:$0xff] }
 0xa26   :  { %3566 = vmatpush.msra.mxu0 %v10899_v10  ;;  %3586 = vmatpush.msrb.mxu1 %v10900_v9  ;;  %v368_v31 = vadd.f32 %v10934_v53, %v10933_v7  ;;  %v3722_v10 = vld [vmem:[#allocation12 + $0x30] sm:$0xff] }
 0xa27   :  { %3606 = vmatpush.msra.mxu2 %v10901_v61  ;;  %3626 = vmatpush.msra.mxu3 %v10902_v55 }
 0xa28   :  { %3567 = vmatpush.msra.mxu0 %v10903_v4  ;;  %3587 = vmatpush.msrb.mxu1 %v10904_v32  ;;  %v3721_v4 = vld [vmem:[#allocation12 + $0x28] sm:$0xff] }
 0xa29   :  { %3607 = vmatpush.msra.mxu2 %v10905_v12  ;;  %3627 = vmatpush.msra.mxu3 %v10906_v36  ;;  %v3720_v12 = vld [vmem:[#allocation12 + $0x20] sm:$0xff] }
 0xa2a   :  { %3568 = vmatpush.msra.mxu0 %v10907_v48  ;;  %3588 = vmatpush.msrb.mxu1 %v10908_v15 }
 0xa2b   :  { %3608 = vmatpush.msra.mxu2 %v10909_v13  ;;  %3628 = vmatpush.msra.mxu3 %v10910_v24  ;;  %v3719_v24 = vld [vmem:[#allocation12 + $0x18] sm:$0xff] }
 0xa2c   :  { %3569 = vmatpush.msra.mxu0 %v10911_v27  ;;  %3589 = vmatpush.msrb.mxu1 %v10912_v56  ;;  %v3718_v27 = vld [vmem:[#allocation12 + $0x10] sm:$0xff]  ;;  %v3717_v56 = vld [vmem:[#allocation12 + $0x8] sm:$0xff] }
 0xa2d   :  { %3609 = vmatpush.msra.mxu2 %v10913_v37  ;;  %3629 = vmatpush.msra.mxu3 %v10914_v25 }
 0xa2e   :  { %3570 = vmatpush.msra.mxu0 %v10915_v0  ;;  %3590 = vmatpush.msrb.mxu1 %v10916_v23  ;;  %v10935_v0 = vld [vmem:[#allocation193_spill] sm:$0xff]  ;;  %v10936_v23 = vld [vmem:[#allocation166_spill] sm:$0xff] }
 0xa2f   :  { %3610 = vmatpush.msra.mxu2 %v10917_v60  ;;  %3630 = vmatpush.msra.mxu3 %v10918_v59  ;;  %v409_v60 = vadd.f32 %v10936_v23, %v10935_v0  ;;  %v3716_v59 = vld [vmem:[#allocation12] sm:$0xff]  ;;  %v10942_v23 = vld [vmem:[#allocation92_spill] sm:$0xff] }
 0xa30   :  { %3571 = vmatpush.msra.mxu0 %v10919_v49  ;;  %3591 = vmatpush.msrb.mxu1 %v10920_v54  ;;  %v10941_v0 = vld [vmem:[#allocation185_spill] sm:$0xff] }
 0xa31   :  { %3611 = vmatpush.msra.mxu2 %v10921_v6  ;;  %3631 = vmatpush.msra.mxu3 %v10922_v45 }
 0xa32   :  { %3572 = vmatpush.msra.mxu0 %v10923_v22  ;;  %3592 = vmatpush.msrb.mxu1 %v10924_v18 }
 0xa33   :  { %3612 = vmatpush.msra.mxu2 %v10925_v29  ;;  %3632 = vmatpush.msra.mxu3 %v10926_v26 }
 0xa34   :  { %3573 = vmatpush.msra.mxu0 %v10927_v43  ;;  %3593 = vmatpush.msrb.mxu1 %v10928_v58 }
 0xa35   :  { %3613 = vmatpush.msra.mxu2 %v8787_v19  ;;  %3633 = vmatpush.msra.mxu3 %v8790_v44  ;;  %v3728_v19 = vld [vmem:[#allocation12 + $0x60] sm:$0xff]  ;;  %v3727_v44 = vld [vmem:[#allocation12 + $0x58] sm:$0xff] }
 0xa36   :  { %3574 = vmatpush.msra.mxu0 %v8793_v1  ;;  %3594 = vmatpush.msrb.mxu1 %v8796_v8  ;;  %v10929_v1 = vld [vmem:[#allocation127_spill] sm:$0xff] }
 0xa37   :  { %3614 = vmatpush.msra.mxu2 %v8799_v50  ;;  %3634 = vmatpush.msra.mxu3 %v8802_v40  ;;  %v286_v8 = vadd.f32 %v10930_v51, %v10929_v1  ;;  %v10932_v50 = vld [vmem:[#allocation128_spill] sm:$0xff] }
 0xa38   :  { %3736 = vmatpush.msrb.mxu0 %v3731_v42  ;;  %v327_v5 = vadd.f32 %v10932_v50, %v10931_v34 }
 0xa3a   :  { %3737 = vmatpush.msrb.mxu0 %v3730_v63 }
 0xa3c   :  { %3738 = vmatpush.msrb.mxu0 %v3729_v30 }
 0xa3e   :  { %3739 = vmatpush.msrb.mxu0 %v3728_v19 }
 0xa40   :  { %3740 = vmatpush.msrb.mxu0 %v3727_v44 }
 0xa42   :  { %3741 = vmatpush.msrb.mxu0 %v3726_v46 }
 0xa44   :  { %3742 = vmatpush.msrb.mxu0 %v3725_v39 }
 0xa46   :  { %3743 = vmatpush.msrb.mxu0 %v3724_v47 }
 0xa48   :  { %3744 = vmatpush.msrb.mxu0 %v3723_v17 }
 0xa4a   :  { %3745 = vmatpush.msrb.mxu0 %v3722_v10 }
 0xa4c   :  { %3746 = vmatpush.msrb.mxu0 %v3721_v4 }
 0xa4e   :  { %3747 = vmatpush.msrb.mxu0 %v3720_v12  ;;  %v10939_v12 = vld [vmem:[#allocation192_spill] sm:$0xff] }
 0xa50   :  { %3748 = vmatpush.msrb.mxu0 %v3719_v24  ;;  %v3804_v24 = vld [vmem:[#allocation13 + $0x58] sm:$0xff] }
 0xa52   :  { %3749 = vmatpush.msrb.mxu0 %v3718_v27  ;;  %v10940_v27 = vld [vmem:[#allocation134_spill] sm:$0xff] }
 0xa54   :  { %3750 = vmatpush.msrb.mxu0 %v3717_v56  ;;  %v3803_v56 = vld [vmem:[#allocation13 + $0x50] sm:$0xff] }
 0xa56   :  { %3751 = vmatpush.msrb.mxu0 %v3716_v59  ;;  %v3799_v59 = vld [vmem:[#allocation13 + $0x30] sm:$0xff] }
 0xa91   :  { %v9040_v14 = vpop.f32.mrf.mxu0  ;;  %v9042_v3 = vpop.f32.mrf.mxu1 }
 0xa98   :  { %v9048_v40 = vpop.f32.mrf.mxu2  ;;  %v9052_v9 = vpop.f32.mrf.mxu3 }
 0xa99   :  { %v3429_v41 = vpop.f32.mrf.mxu0  ;;  %v3449_v20 = vpop.f32.mrf.mxu1 }
 0xa9a   :  { %v3492_v28 = vadd.f32 %v3429_v41, %v286_v8  ;;  %v3493_v57 = vadd.f32 %v3449_v20, %v327_v5 }
 0xa9c   :  { %v4195_v35 = vmul.f32 -1.442695, %v3492_v28  ;;  %v4196_v2 = vmul.f32 -1.442695, %v3493_v57 }
 0xa9e   :  { %4461 = vpow2.f32 %v4195_v35 }
 0xa9f   :  { %4463 = vpow2.f32 %v4196_v2 }
 0xaa0   :  { %v3469_v61 = vpop.f32.mrf.mxu2  ;;  %v3489_v37 = vpop.f32.mrf.mxu3 }
 0xaa1   :  { %v3494_v55 = vadd.f32 %v3469_v61, %v368_v31  ;;  %v3495_v6 = vadd.f32 %v3489_v37, %v409_v60  ;;  %v3802_v37 = vld [vmem:[#allocation13 + $0x48] sm:$0xff]  ;;  %v3800_v60 = vld [vmem:[#allocation13 + $0x38] sm:$0xff] }
 0xaa3   :  { %v4197_v32 = vmul.f32 -1.442695, %v3494_v55 }
 0xaa4   :  { %v4462_v36 = vpop.eup %4461 }
 0xaa5   :  { %v4464_v48 = vpop.eup %4463  ;;  %v3505_v15 = vadd.f32 1.0, %v4462_v36  ;;  %4465 = vpow2.f32 %v4197_v32  ;;  %v10937_v32 = vld [vmem:[#allocation26_spill] sm:$0xff]  ;;  %v3808_v36 = vld [vmem:[#allocation13 + $0x78] sm:$0xff] }
 0xaa6   :  { %v3506_v13 = vadd.f32 1.0, %v4464_v48  ;;  %v3807_v48 = vld [vmem:[#allocation13 + $0x70] sm:$0xff]  ;;  %3813 = vmatpush.msra.mxu1 %v3808_v36 }
 0xaa7   :  { %4467 = vrcp.f32 %v3505_v15  ;;  %v3519_v43 = vand.u32 2147483648, %v3505_v15  ;;  %v3517_v63 = vand.u32 2147483647, %v3505_v15  ;;  %vm3513_vm4 = vweird.f32 %v3505_v15 }
 0xaa8   :  { %4469 = vrcp.f32 %v3506_v13  ;;  %v3534_v58 = vand.u32 2147483648, %v3506_v13  ;;  %v3532_v19 = vand.u32 2147483647, %v3506_v13  ;;  %vm3528_vm5 = vweird.f32 %v3506_v13  ;;  %3814 = vmatpush.msra.mxu1 %v3807_v48 }
 0xaa9   :  { %v3520_v8 = vor.u32 1.1754944e-38, %v3519_v43  ;;  %vm3518_vm8 = vcmp.eq.f32.partialorder %v3517_v63, 8.507059e+37 }
 0xaaa   :  { %v3535_v50 = vor.u32 1.1754944e-38, %v3534_v58  ;;  %vm3533_vm9 = vcmp.eq.f32.partialorder %v3532_v19, 8.507059e+37  ;;  %v9071_v19 = vld [vmem:[%s9218_s8] ss:$0 sm:$0xff] }
 0xaab   :  { %v4466_v25 = vpop.eup %4465 }
 0xaac   :  { %v3507_v49 = vadd.f32 1.0, %v4466_v25  ;;  %v3801_v25 = vld [vmem:[#allocation13 + $0x40] sm:$0xff] }
 0xaad   :  { %v4468_v54 = vpop.eup %4467 }
 0xaae   :  { %v4470_v45 = vpop.eup %4469  ;;  %v3509_v22 = vmul.f32 %v4468_v54, %v3505_v15  ;;  %4471 = vrcp.f32 %v3507_v49  ;;  %vm3514_vm2 = vweird.f32 %v4468_v54  ;;  %v3549_v7 = vand.u32 2147483648, %v3507_v49  ;;  %v3806_v15 = vld [vmem:[#allocation13 + $0x68] sm:$0xff] }
 0xaaf   :  { %v3524_v18 = vmul.f32 %v4470_v45, %v3506_v13  ;;  %4473 = vtanh.f32 %v3495_v6  ;;  %vm3529_vm3 = vweird.f32 %v4470_v45  ;;  %vm3515_vm6 = vmor %vm3513_vm4, %vm3514_vm2  ;;  %vm3543_vm11 = vweird.f32 %v3507_v49  ;;  %v3805_v13 = vld [vmem:[#allocation13 + $0x60] sm:$0xff]  ;;  %3815 = vmatpush.msra.mxu1 %v3806_v15  ;;  %v3796_v6 = vld [vmem:[#allocation13 + $0x18] sm:$0xff] }
 0xab0   :  { %v3510_v29 = vsub.f32 1.0, %v3509_v22  ;;  %vm3530_vm7 = vmor %vm3528_vm5, %vm3529_vm3  ;;  %v3547_v53 = vand.u32 2147483647, %v3507_v49  ;;  %v3550_v10 = vor.u32 1.1754944e-38, %v3549_v7  ;;  %v3794_v22 = vld [vmem:[#allocation13 + $0x8] sm:$0xff] }
 0xab1   :  { %v3525_v26 = vsub.f32 1.0, %v3524_v18  ;;  %3816 = vmatpush.msra.mxu1 %v3805_v13  ;;  %v3793_v18 = vld [vmem:[#allocation13] sm:$0xff] }
 0xab2   :  { %v3511_v42 = vmul.f32 %v4468_v54, %v3510_v29  ;;  %vm3548_vm13 = vcmp.eq.f32.partialorder %v3547_v53, 8.507059e+37  ;;  %v3343_v29 = vadd.f32 %v9040_v14, %v10887_v38 }
 0xab3   :  { %v3526_v30 = vmul.f32 %v4470_v45, %v3525_v26  ;;  %3817 = vmatpush.msra.mxu1 %v3804_v24 }
 0xab4   :  { %v4472_v44 = vpop.eup %4471  ;;  %v3512_v1 = vadd.f32 %v4468_v54, %v3511_v42 }
 0xab5   :  { %v3539_v51 = vmul.f32 %v4472_v44, %v3507_v49  ;;  %v3527_v34 = vadd.f32 %v4470_v45, %v3526_v30  ;;  %v4474_v41 = vpop.eup %4473  ;;  %vm3544_vm10 = vweird.f32 %v4472_v44  ;;  %3818 = vmatpush.msra.mxu1 %v3803_v56  ;;  %v3798_v49 = vld [vmem:[#allocation13 + $0x28] sm:$0xff] }
 0xab6   :  { %v3516_v5 = vsel %vm3515_vm6, %v4468_v54, %v3512_v1  ;;  %vm3545_vm12 = vmor %vm3543_vm11, %vm3544_vm10  ;;  %v3797_v54 = vld [vmem:[#allocation13 + $0x20] sm:$0xff] }
 0xab7   :  { %v3540_v20 = vsub.f32 1.0, %v3539_v51  ;;  %v3521_v46 = vsel %vm3518_vm8, %v3520_v8, %v3516_v5  ;;  %v3531_v28 = vsel %vm3530_vm7, %v4470_v45, %v3527_v34  ;;  %3819 = vmatpush.msra.mxu1 %v3802_v37  ;;  %v3795_v45 = vld [vmem:[#allocation13 + $0x10] sm:$0xff] }
 0xab8   :  { %v3536_v57 = vsel %vm3533_vm9, %v3535_v50, %v3531_v28  ;;  %v3555_v39 = vmul.f32 %v4474_v41, %v3521_v46  ;;  %v3403_v28 = vadd.f32 %v9052_v9, %v10890_v62 }
 0xab9   :  { %v3541_v35 = vmul.f32 %v4472_v44, %v3540_v20  ;;  %v3554_v2 = vmul.f32 %v3536_v57, %v8881_v11  ;;  %v10938_v11 = vld [vmem:[#allocation143_spill] sm:$0xff]  ;;  %3820 = vmatpush.msra.mxu1 %v3801_v25 }
 0xabb   :  { %v3556_v47 = vadd.f32 %v3555_v39, %v3554_v2  ;;  %v3542_v17 = vadd.f32 %v4472_v44, %v3541_v35  ;;  %3821 = vmatpush.msra.mxu1 %v3800_v60 }
 0xabd   :  { %4475 = vtanh.f32 %v3556_v47  ;;  %v3546_v31 = vsel %vm3545_vm12, %v4472_v44, %v3542_v17  ;;  %3822 = vmatpush.msra.mxu1 %v3799_v59  ;;  %v3383_v44 = vadd.f32 %v9048_v40, %v10889_v33 }
 0xabe   :  { %v3551_v55 = vsel %vm3548_vm13, %v3550_v10, %v3546_v31 }
 0xabf   :  { %3823 = vmatpush.msra.mxu1 %v3798_v49 }
 0xac1   :  { %3824 = vmatpush.msra.mxu1 %v3797_v54 }
 0xac3   :  { %v4476_v61 = vpop.eup %4475  ;;  %3825 = vmatpush.msra.mxu1 %v3796_v6  ;;  %v3864_v6 = vld [vmem:[%s9222_s12 + $0x10] sm:$0x1] }
 0xac4   :  { %v3558_v4 = vmul.f32 %v4476_v61, %v3551_v55  ;;  %4214 = vmatpush.msk.msrb.mxu3 %vm234_vm0, %v3864_v6  ;;  %4213 = vmatpush.msk.msrb.mxu2 %vm234_vm0, %v3864_v6 }
 0xac5   :  { %3826 = vmatpush.msra.mxu1 %v3795_v45  ;;  %v3863_v45 = vld [vmem:[%s9222_s12 + $0x8] sm:$0xff] }
 0xac6   :  { %3575 = vmatmul.f32.vlgmr.msra.gmra.mxu0 %v3558_v4  ;;  %3595 = vmatmul.f32.vlgmr.msrb.gmra.mxu1 %v3558_v4 }
 0xac7   :  { %3615 = vmatmul.f32.vlgmr.msra.gmra.mxu2 %v3558_v4  ;;  %3635 = vmatmul.f32.vlgmr.msra.gmra.mxu3 %v3558_v4 }
 0xac8   :  { %3827 = vmatpush.msra.mxu1 %v3794_v22  ;;  %4201 = vmatpush.msk.msra.mxu0 %vm234_vm0, %v3864_v6  ;;  %v4023_v6 = vld [vmem:[#allocation16 + $0x68] sm:$0xff] }
 0xac9   :  { %4216 = vmatpush.msrb.mxu3 %v3863_v45  ;;  %4215 = vmatpush.msrb.mxu2 %v3863_v45 }
 0xaca   :  { %3828 = vmatpush.msra.mxu1 %v3793_v18  ;;  %3910 = vmatpush.msra.mxu0 %v3863_v45  ;;  %v4022_v45 = vld [vmem:[#allocation16 + $0x60] sm:$0xff] }
 0xace   :  { %3752 = vmatmul.f32.vlgmr.msrb.gmra.mxu0 %v10937_v32 }
 0xad6   :  { %3755 = vmatmul.f32.gmra.mxu0 %v10938_v11 }
 0xade   :  { %3758 = vmatmul.f32.gmra.mxu0 %v10939_v12 }
 0xae6   :  { %3761 = vmatmul.f32.gmra.mxu0 %v10940_v27 }
 0xaee   :  { %3764 = vmatmul.f32.gmra.mxu0 %v10941_v0 }
 0xaf6   :  { %3767 = vmatmul.f32.gmra.mxu0 %v10942_v23 }
 0xafe   :  { %3770 = vmatmul.f32.gmra.mxu0 %v8966_v21  ;;  %v3363_v21 = vadd.f32 %v9042_v3, %v10888_v16 }
 0xb43   :  { %v3576_v26 = vpop.f32.mrf.mxu0  ;;  %v3596_v43 = vpop.f32.mrf.mxu1 }
 0xb44   :  { %v3639_v58 = vadd.f32 %v3576_v26, %v3343_v29  ;;  %v3640_v42 = vadd.f32 %v3596_v43, %v3363_v21  ;;  %v3862_v26 = vld [vmem:[%s9222_s12] sm:$0xff] }
 0xb45   :  { %4218 = vmatpush.msrb.mxu3 %v3862_v26  ;;  %3911 = vmatpush.msra.mxu0 %v3862_v26 }
 0xb46   :  { %v4198_v63 = vmul.f32 -1.442695, %v3639_v58  ;;  %v4199_v30 = vmul.f32 -1.442695, %v3640_v42  ;;  %v3952_v58 = vld [vmem:[#allocation15 + $0x78] sm:$0xff]  ;;  %4217 = vmatpush.msrb.mxu2 %v3862_v26  ;;  %v4019_v26 = vld [vmem:[#allocation16 + $0x48] sm:$0xff] }
 0xb47   :  { %3953 = vmatpush.msra.mxu3 %v3952_v58 }
 0xb48   :  { %4477 = vpow2.f32 %v4198_v63  ;;  %v3859_v63 = vld [vmem:[%s9780_s0 + $0x28] sm:$0xff] }
 0xb49   :  { %4479 = vpow2.f32 %v4199_v30  ;;  %4207 = vmatmul.msk.f32.vlgmr.msrb.gmra.mxu3 %vm209_vm1, %v3859_v63 }
 0xb4a   :  { %v3616_v38 = vpop.f32.mrf.mxu2  ;;  %v3636_v46 = vpop.f32.mrf.mxu3 }
 0xb4b   :  { %v3641_v14 = vadd.f32 %v3616_v38, %v3383_v44  ;;  %v3753_v1 = vpop.f32.mrf.mxu0  ;;  %v3642_v2 = vadd.f32 %v3636_v46, %v3403_v28  ;;  %v3951_v44 = vld [vmem:[#allocation15 + $0x70] sm:$0xff] }
 0xb4c   :  { %v3754_v16 = vadd.f32 %v9071_v19, %v3753_v1  ;;  %v3950_v1 = vld [vmem:[#allocation15 + $0x68] sm:$0xff]  ;;  %3954 = vmatpush.msra.mxu3 %v3951_v44  ;;  %v4017_v44 = vld [vmem:[#allocation16 + $0x38] sm:$0xff] }
 0xb4d   :  { %v4200_v3 = vmul.f32 -1.442695, %v3641_v14 }
 0xb4e   :  { %v4478_v51 = vpop.eup %4477  ;;  %v3777_v8 = vmul.f32 0.2, %v3754_v16  ;;  %3955 = vmatpush.msra.mxu3 %v3950_v1  ;;  %v4015_v1 = vld [vmem:[#allocation16 + $0x28] sm:$0xff] }
 0xb4f   :  { %v4480_v34 = vpop.eup %4479  ;;  %v3652_v50 = vadd.f32 1.0, %v4478_v51  ;;  %4481 = vpow2.f32 %v4200_v3 }
 0xb50   :  { %v3653_v5 = vadd.f32 1.0, %v4480_v34  ;;  %v3785_v41 = vmax.f32 %v3754_v16, %v3777_v8  ;;  %v3949_v8 = vld [vmem:[#allocation15 + $0x60] sm:$0xff] }
 0xb51   :  { %4483 = vrcp.f32 %v3652_v50  ;;  %v3664_v61 = vand.u32 2147483647, %v3652_v50  ;;  %v3666_v55 = vand.u32 2147483648, %v3652_v50  ;;  %vm3660_vm2 = vweird.f32 %v3652_v50  ;;  %3956 = vmatpush.msra.mxu3 %v3949_v8  ;;  %v4014_v8 = vld [vmem:[#allocation16 + $0x20] sm:$0xff] }
 0xb52   :  { %4485 = vrcp.f32 %v3653_v5  ;;  %3829 = vmatmul.f32.vlgmr.msra.gmra.mxu1 %v3785_v41  ;;  %v3681_v32 = vand.u32 2147483648, %v3653_v5  ;;  %v3679_v12 = vand.u32 2147483647, %v3653_v5  ;;  %vm3675_vm3 = vweird.f32 %v3653_v5  ;;  %v3948_v41 = vld [vmem:[#allocation15 + $0x58] sm:$0xff] }
 0xb53   :  { %v3756_v20 = vpop.f32.mrf.mxu0  ;;  %v3667_v24 = vor.u32 1.1754944e-38, %v3666_v55  ;;  %vm3665_vm6 = vcmp.eq.f32.partialorder %v3664_v61, 8.507059e+37  ;;  %3957 = vmatpush.msra.mxu3 %v3948_v41  ;;  %v3941_v55 = vld [vmem:[#allocation15 + $0x20] sm:$0xff]  ;;  %v4011_v41 = vld [vmem:[#allocation16 + $0x8] sm:$0xff] }
 0xb54   :  { %v3757_v33 = vadd.f32 %v9071_v19, %v3756_v20  ;;  %v3682_v56 = vor.u32 1.1754944e-38, %v3681_v32  ;;  %vm3680_vm7 = vcmp.eq.f32.partialorder %v3679_v12, 8.507059e+37  ;;  %v3940_v32 = vld [vmem:[#allocation15 + $0x18] sm:$0xff]  ;;  %v3938_v12 = vld [vmem:[#allocation15 + $0x8] sm:$0xff] }
 0xb55   :  { %v4482_v40 = vpop.eup %4481 }
 0xb56   :  { %v9079_v57 = vadd.f32 1.0, %v4482_v40  ;;  %v3778_v39 = vmul.f32 0.2, %v3757_v33  ;;  %v3947_v40 = vld [vmem:[#allocation15 + $0x50] sm:$0xff] }
 0xb57   :  { %v4484_v35 = vpop.eup %4483  ;;  %3958 = vmatpush.msra.mxu3 %v3947_v40  ;;  %v9182_v40 = vld [vmem:[%s9223_s13] ss:$0 sm:$0xff] }
 0xb58   :  { %v4486_v47 = vpop.eup %4485  ;;  %v3656_v17 = vmul.f32 %v4484_v35, %v3652_v50  ;;  %4487 = vrcp.f32 %v9079_v57  ;;  %v3786_v7 = vmax.f32 %v3757_v33, %v3778_v39  ;;  %vm3661_vm14 = vweird.f32 %v4484_v35  ;;  %v3860_v33 = vld [vmem:[%s9780_s0 + $0x30] sm:$0xff] }
 0xb59   :  { %v3671_v53 = vmul.f32 %v4486_v47, %v3653_v5  ;;  %4489 = vtanh.f32 %v3642_v2  ;;  %vm3676_vm15 = vweird.f32 %v4486_v47  ;;  %vm3662_vm4 = vmor %vm3660_vm2, %vm3661_vm14  ;;  %v3696_v30 = vand.u32 2147483648, %v9079_v57  ;;  %4208 = vmatmul.msk.f32.gmra.mxu3 %vm209_vm1, %v3860_v33 }
 0xb5a   :  { %v3657_v31 = vsub.f32 1.0, %v3656_v17  ;;  %3832 = vmatmul.f32.gmra.mxu1 %v3786_v7  ;;  %vm3677_vm5 = vmor %vm3675_vm3, %vm3676_vm15  ;;  %vm3690_vm0 = vweird.f32 %v9079_v57  ;;  %v3694_v14 = vand.u32 2147483647, %v9079_v57  ;;  %v3861_v7 = vld [vmem:[%s9780_s0 + $0x38] sm:$0xff] }
 0xb5b   :  { %v3672_v10 = vsub.f32 1.0, %v3671_v53  ;;  %v3759_v4 = vpop.f32.mrf.mxu0  ;;  %v3697_v51 = vor.u32 1.1754944e-38, %v3696_v30  ;;  %v3943_v53 = vld [vmem:[#allocation15 + $0x30] sm:$0xff] }
 0xb5c   :  { %v3658_v62 = vmul.f32 %v4484_v35, %v3657_v31  ;;  %v3760_v9 = vadd.f32 %v9071_v19, %v3759_v4  ;;  %vm3695_vm10 = vcmp.eq.f32.partialorder %v3694_v14, 8.507059e+37  ;;  %v4016_v14 = vld [vmem:[#allocation16 + $0x30] sm:$0xff] }
 0xb5d   :  { %v3673_v11 = vmul.f32 %v4486_v47, %v3672_v10  ;;  %v3942_v10 = vld [vmem:[#allocation15 + $0x28] sm:$0xff] }
 0xb5e   :  { %v9083_v36 = vpop.eup %4487  ;;  %v3659_v48 = vadd.f32 %v4484_v35, %v3658_v62  ;;  %v3779_v15 = vmul.f32 0.2, %v3760_v9 }
 0xb5f   :  { %v3686_v13 = vmul.f32 %v9083_v36, %v9079_v57  ;;  %v3674_v27 = vadd.f32 %v4486_v47, %v3673_v11  ;;  %v4490_v0 = vpop.eup %4489  ;;  %vm3691_vm8 = vweird.f32 %v9083_v36  ;;  %v3946_v57 = vld [vmem:[#allocation15 + $0x48] sm:$0xff] }
 0xb60   :  { %v3663_v37 = vsel %vm3662_vm4, %v4484_v35, %v3659_v48  ;;  %v3787_v25 = vmax.f32 %v3760_v9, %v3779_v15  ;;  %vm3692_vm9 = vmor %vm3690_vm0, %vm3691_vm8  ;;  %v3945_v35 = vld [vmem:[#allocation15 + $0x40] sm:$0xff]  ;;  %3959 = vmatpush.msra.mxu3 %v3946_v57  ;;  %v3939_v9 = vld [vmem:[#allocation15 + $0x10] sm:$0xff] }
 0xb61   :  { %v3668_v23 = vsel %vm3665_vm6, %v3667_v24, %v3663_v37  ;;  %v3678_v60 = vsel %vm3677_vm5, %v4486_v47, %v3674_v27  ;;  %v3687_v59 = vsub.f32 1.0, %v3686_v13  ;;  %v3944_v47 = vld [vmem:[#allocation15 + $0x38] sm:$0xff]  ;;  %4209 = vmatmul.msk.f32.gmra.mxu3 %vm209_vm1, %v3861_v7  ;;  %v3854_v48 = vld [vmem:[%s9780_s0] sm:$0xff]  ;;  %v3855_v15 = vld [vmem:[%s9780_s0 + $0x8] sm:$0xff] }
 0xb62   :  { %v3683_v49 = vsel %vm3680_vm7, %v3682_v56, %v3678_v60  ;;  %v3702_v54 = vmul.f32 %v4490_v0, %v3668_v23  ;;  %3835 = vmatmul.f32.gmra.mxu1 %v3787_v25  ;;  %3960 = vmatpush.msra.mxu3 %v3945_v35  ;;  %v3856_v13 = vld [vmem:[%s9780_s0 + $0x10] sm:$0xff]  ;;  %v3857_v24 = vld [vmem:[%s9780_s0 + $0x18] sm:$0xff]  ;;  %v9142_v27 = vld [vmem:[%s9220_s10] ss:$0 sm:$0xff] }
 0xb63   :  { %v3701_v22 = vmul.f32 %v3683_v49, %v8963_v52  ;;  %v3762_v18 = vpop.f32.mrf.mxu0  ;;  %v3688_v29 = vmul.f32 %v9083_v36, %v3687_v59  ;;  %4203 = vmatmul.msk.f32.vlgmr.msrb.gmra.mxu2 %vm209_vm1, %v3855_v15  ;;  %v3858_v25 = vld [vmem:[%s9780_s0 + $0x20] sm:$0xff]  ;;  %v4025_v49 = vld [vmem:[#allocation16 + $0x78] sm:$0xff] }
 0xb64   :  { %v3763_v21 = vadd.f32 %v9071_v19, %v3762_v18  ;;  %3961 = vmatpush.msra.mxu3 %v3944_v47  ;;  %4030 = vmatpush.msra.mxu2 %v4025_v49 }
 0xb65   :  { %v3703_v43 = vadd.f32 %v3702_v54, %v3701_v22  ;;  %v3689_v42 = vadd.f32 %v9083_v36, %v3688_v29  ;;  %v4024_v54 = vld [vmem:[#allocation16 + $0x70] sm:$0xff]  ;;  %v4021_v29 = vld [vmem:[#allocation16 + $0x58] sm:$0xff] }
 0xb66   :  { %v3780_v52 = vmul.f32 0.2, %v3763_v21  ;;  %3962 = vmatpush.msra.mxu3 %v3943_v53  ;;  %4031 = vmatpush.msra.mxu2 %v4024_v54 }
 0xb67   :  { %4491 = vtanh.f32 %v3703_v43  ;;  %v3693_v16 = vsel %vm3692_vm9, %v9083_v36, %v3689_v42  ;;  %v3937_v36 = vld [vmem:[#allocation15] sm:$0xff] }
 0xb68   :  { %v3788_v38 = vmax.f32 %v3763_v21, %v3780_v52  ;;  %v3698_v5 = vsel %vm3695_vm10, %v3697_v51, %v3693_v16  ;;  %3963 = vmatpush.msra.mxu3 %v3942_v10  ;;  %4032 = vmatpush.msra.mxu2 %v4023_v6  ;;  %v4020_v21 = vld [vmem:[#allocation16 + $0x50] sm:$0xff]  ;;  %v4018_v52 = vld [vmem:[#allocation16 + $0x40] sm:$0xff] }
 0xb6a   :  { %3838 = vmatmul.f32.gmra.mxu1 %v3788_v38  ;;  %3964 = vmatpush.msra.mxu3 %v3941_v55 }
 0xb6b   :  { %v3765_v3 = vpop.f32.mrf.mxu0  ;;  %4204 = vmatmul.msk.f32.gmra.mxu2 %vm209_vm1, %v3856_v13 }
 0xb6c   :  { %v3766_v34 = vadd.f32 %v9071_v19, %v3765_v3  ;;  %3965 = vmatpush.msra.mxu3 %v3940_v32  ;;  %4033 = vmatpush.msra.mxu2 %v4022_v45 }
 0xb6d   :  { %v4492_v50 = vpop.eup %4491 }
 0xb6e   :  { %v3781_v20 = vmul.f32 0.2, %v3766_v34  ;;  %v3705_v46 = vmul.f32 %v4492_v50, %v3698_v5  ;;  %3966 = vmatpush.msra.mxu3 %v3939_v9  ;;  %4034 = vmatpush.msra.mxu2 %v4021_v29  ;;  %v4013_v50 = vld [vmem:[#allocation16 + $0x18] sm:$0xff]  ;;  %v4012_v5 = vld [vmem:[#allocation16 + $0x10] sm:$0xff] }
 0xb70   :  { %v3789_v28 = vmax.f32 %v3766_v34, %v3781_v20  ;;  %3773 = vmatmul.f32.gmra.mxu0 %v3705_v46  ;;  %3967 = vmatpush.msra.mxu3 %v3938_v12  ;;  %v4010_v20 = vld [vmem:[#allocation16] sm:$0xff] }
 0xb71   :  { %4035 = vmatpush.msra.mxu2 %v4020_v21 }
 0xb72   :  { %3841 = vmatmul.f32.gmra.mxu1 %v3789_v28  ;;  %3968 = vmatpush.msra.mxu3 %v3937_v36 }
 0xb73   :  { %v3768_v39 = vpop.f32.mrf.mxu0  ;;  %4205 = vmatmul.msk.f32.gmra.mxu2 %vm209_vm1, %v3857_v24 }
 0xb74   :  { %v3769_v2 = vadd.f32 %v9071_v19, %v3768_v39  ;;  %4036 = vmatpush.msra.mxu2 %v4019_v26 }
 0xb76   :  { %v3782_v17 = vmul.f32 0.2, %v3769_v2  ;;  %4037 = vmatpush.msra.mxu2 %v4018_v52 }
 0xb78   :  { %v3790_v31 = vmax.f32 %v3769_v2, %v3782_v17  ;;  %4202 = vmatmul.msk.f32.vlgmr.msra.gmra.mxu0 %vm209_vm1, %v3854_v48  ;;  %4038 = vmatpush.msra.mxu2 %v4017_v44  ;;  %v4236_v44 = vld [vmem:[%s9225_s15] ss:$0 sm:$0xff]  ;;  %s5315_s15 = smov [#allocation18]  }
 0xb79   :  { %s4091_s14 = sshll.u32 %s5315_s15, 4  ;;  %s4092_s14 = int_to_ptr.vmem [resolvable:$true] %s4091_s14 }
 0xb7a   :  { %3844 = vmatmul.f32.gmra.mxu1 %v3790_v31  ;;  %4039 = vmatpush.msra.mxu2 %v4016_v14 }
 0xb7b   :  { %v3771_v61 = vpop.f32.mrf.mxu0  ;;  %4206 = vmatmul.msk.f32.gmra.mxu2 %vm209_vm1, %v3858_v25 }
 0xb7c   :  { %v3772_v4 = vadd.f32 %v9071_v19, %v3771_v61  ;;  %4040 = vmatpush.msra.mxu2 %v4015_v1 }
 0xb7e   :  { %v3783_v62 = vmul.f32 0.2, %v3772_v4  ;;  %4041 = vmatpush.msra.mxu2 %v4014_v8 }
 0xb80   :  { %v3791_v11 = vmax.f32 %v3772_v4, %v3783_v62  ;;  %4042 = vmatpush.msra.mxu2 %v4013_v50 }
 0xb82   :  { %3847 = vmatmul.f32.gmra.mxu1 %v3791_v11  ;;  %4043 = vmatpush.msra.mxu2 %v4012_v5 }
 0xb84   :  { %4044 = vmatpush.msra.mxu2 %v4011_v41 }
 0xb86   :  { %4045 = vmatpush.msra.mxu2 %v4010_v20 }
 0xbcc   :  { %v3928_v34 = vpop.f32.mrf.mxu3 }
 0xbcd   :  { %v3929_v45 = vadd.f32 %v9182_v40, %v3928_v34 }
 0xbcf   :  { %v3830_v56 = vpop.f32.mrf.mxu1 }
 0xbd0   :  { %v9145_v37 = vadd.f32 %v9142_v27, %v3830_v56 }
 0xbd2   :  { %3969 = vmatmul.f32.vlgmr.msra.gmra.mxu3 %v9145_v37 }
 0xbd7   :  { %v3833_v0 = vpop.f32.mrf.mxu1 }
 0xbd8   :  { %v9153_v23 = vadd.f32 %v9142_v27, %v3833_v0 }
 0xbda   :  { %3972 = vmatmul.f32.gmra.mxu3 %v9153_v23 }
 0xbdc   :  { %v3931_v46 = vpop.f32.mrf.mxu3 }
 0xbdf   :  { %v3836_v60 = vpop.f32.mrf.mxu1 }
 0xbe0   :  { %v9157_v59 = vadd.f32 %v9142_v27, %v3836_v60 }
 0xbe2   :  { %3975 = vmatmul.f32.gmra.mxu3 %v9157_v59 }
 0xbe4   :  { %v9177_v33 = vpop.f32.mrf.mxu3 }
 0xbe5   :  { %v3935_v41 = vadd.f32 %v9182_v40, %v9177_v33 }
 0xbe6   :  { %v3916_v57 = vpop.f32.mrf.mxu2 }
 0xbe7   :  { %v3839_v22 = vpop.f32.mrf.mxu1  ;;  %v3917_v7 = vadd.f32 %v9182_v40, %v3916_v57 }
 0xbe8   :  { %v9161_v18 = vadd.f32 %v9142_v27, %v3839_v22 }
 0xbea   :  { %3978 = vmatmul.f32.gmra.mxu3 %v9161_v18 }
 0xbed   :  { %v3774_v43 = vpop.f32.mrf.mxu0 }
 0xbee   :  { %v3775_v58 = vadd.f32 %v9071_v19, %v3774_v43  ;;  %v3919_v53 = vpop.f32.mrf.mxu2  ;;  %v3932_v43 = vadd.f32 %v9182_v40, %v3931_v46 }
 0xbef   :  { %v3842_v42 = vpop.f32.mrf.mxu1  ;;  %v3920_v4 = vadd.f32 %v9182_v40, %v3919_v53 }
 0xbf0   :  { %v3784_v63 = vmul.f32 0.2, %v3775_v58  ;;  %v9166_v30 = vadd.f32 %v9142_v27, %v3842_v42 }
 0xbf2   :  { %v3792_v38 = vmax.f32 %v3775_v58, %v3784_v63  ;;  %3981 = vmatmul.f32.gmra.mxu3 %v9166_v30 }
 0xbf4   :  { %3850 = vmatmul.f32.gmra.mxu1 %v3792_v38 }
 0xbf5   :  { %v3913_v28 = vpop.f32.mrf.mxu0 }
 0xbf6   :  { %v3914_v39 = vadd.f32 %v9182_v40, %v3913_v28  ;;  %v3922_v62 = vpop.f32.mrf.mxu2 }
 0xbf7   :  { %v3845_v16 = vpop.f32.mrf.mxu1  ;;  %v3923_v36 = vadd.f32 %v9182_v40, %v3922_v62 }
 0xbf8   :  { %v9170_v19 = vadd.f32 %v9142_v27, %v3845_v16 }
 0xbfa   :  { %3984 = vmatmul.f32.gmra.mxu3 %v9170_v19 }
 0xbfe   :  { %v3925_v13 = vpop.f32.mrf.mxu2 }
 0xbff   :  { %v3848_v3 = vpop.f32.mrf.mxu1  ;;  %v3926_v60 = vadd.f32 %v9182_v40, %v3925_v13 }
 0xc00   :  { %v9174_v51 = vadd.f32 %v9142_v27, %v3848_v3 }
 0xc02   :  { %3987 = vmatmul.f32.gmra.mxu3 %v9174_v51 }
 0xc55   :  { %v3970_v35 = vpop.f32.mrf.mxu3 }
 0xc56   :  { %v3971_v2 = vadd.f32 %v3970_v35, %v3914_v39 }
 0xc58   :  { %v3994_v47 = vmul.f32 0.2, %v3971_v2 }
 0xc5a   :  { %v4002_v17 = vmax.f32 %v3971_v2, %v3994_v47 }
 0xc5c   :  { %4046 = vmatmul.f32.vlgmr.msra.gmra.mxu2 %v4002_v17 }
 0xc5d   :  { %v3973_v31 = vpop.f32.mrf.mxu3 }
 0xc5e   :  { %v3974_v10 = vadd.f32 %v3973_v31, %v3917_v7 }
 0xc60   :  { %v3995_v61 = vmul.f32 0.2, %v3974_v10 }
 0xc62   :  { %v4003_v55 = vmax.f32 %v3974_v10, %v3995_v61 }
 0xc64   :  { %4049 = vmatmul.f32.gmra.mxu2 %v4003_v55 }
 0xc65   :  { %v3976_v32 = vpop.f32.mrf.mxu3 }
 0xc66   :  { %v3977_v9 = vadd.f32 %v3976_v32, %v3920_v4 }
 0xc68   :  { %v3996_v11 = vmul.f32 0.2, %v3977_v9 }
 0xc6a   :  { %v4004_v12 = vmax.f32 %v3977_v9, %v3996_v11 }
 0xc6c   :  { %4052 = vmatmul.f32.gmra.mxu2 %v4004_v12 }
 0xc6d   :  { %v3979_v48 = vpop.f32.mrf.mxu3 }
 0xc6e   :  { %v3980_v15 = vadd.f32 %v3979_v48, %v3923_v36 }
 0xc70   :  { %v3997_v24 = vmul.f32 0.2, %v3980_v15 }
 0xc71   :  { %v3851_v56 = vpop.f32.mrf.mxu1 }
 0xc72   :  { %v4005_v25 = vmax.f32 %v3980_v15, %v3997_v24  ;;  %v3852_v0 = vadd.f32 %v9142_v27, %v3851_v56 }
 0xc74   :  { %3990 = vmatmul.f32.gmra.mxu3 %v3852_v0  ;;  %4055 = vmatmul.f32.gmra.mxu2 %v4005_v25 }
 0xc75   :  { %v3982_v49 = vpop.f32.mrf.mxu3 }
 0xc76   :  { %v3983_v54 = vadd.f32 %v3982_v49, %v3926_v60 }
 0xc78   :  { %v3998_v6 = vmul.f32 0.2, %v3983_v54 }
 0xc7a   :  { %v4006_v22 = vmax.f32 %v3983_v54, %v3998_v6 }
 0xc7c   :  { %4058 = vmatmul.f32.gmra.mxu2 %v4006_v22 }
 0xc7d   :  { %v3985_v29 = vpop.f32.mrf.mxu3 }
 0xc7e   :  { %v3986_v21 = vadd.f32 %v3985_v29, %v3929_v45 }
 0xc80   :  { %v3999_v26 = vmul.f32 0.2, %v3986_v21 }
 0xc82   :  { %v4007_v58 = vmax.f32 %v3986_v21, %v3999_v26 }
 0xc84   :  { %4061 = vmatmul.f32.gmra.mxu2 %v4007_v58 }
 0xc85   :  { %v3988_v52 = vpop.f32.mrf.mxu3 }
 0xc86   :  { %v3989_v27 = vadd.f32 %v3988_v52, %v3932_v43 }
 0xc88   :  { %v4000_v42 = vmul.f32 0.2, %v3989_v27 }
 0xc8a   :  { %v4008_v63 = vmax.f32 %v3989_v27, %v4000_v42 }
 0xc8c   :  { %4064 = vmatmul.f32.gmra.mxu2 %v4008_v63 }
 0xcdf   :  { %v4047_v38 = vpop.f32.mrf.mxu2 }
 0xce0   :  { %v4048_v14 = vadd.f32 %v4236_v44, %v4047_v38 }
 0xce2   :  { %v4071_v1 = vadd.f32 %v4048_v14, %v9145_v37 }
 0xce4   :  { %4079 = vst [vmem:[#allocation18] sm:$0xff] %v4071_v1 }
 0xce7   :  { %v4050_v16 = vpop.f32.mrf.mxu2 }
 0xce8   :  { %v4051_v3 = vadd.f32 %v4236_v44, %v4050_v16 }
 0xcea   :  { %v4072_v8 = vadd.f32 %v4051_v3, %v9153_v23 }
 0xcec   :  { %4080 = vst [vmem:[#allocation18 + $0x8] sm:$0xff] %v4072_v8 }
 0xcef   :  { %v4053_v34 = vpop.f32.mrf.mxu2 }
 0xcf0   :  { %v4054_v50 = vadd.f32 %v4236_v44, %v4053_v34 }
 0xcf2   :  { %v4073_v5 = vadd.f32 %v4054_v50, %v9157_v59 }
 0xcf4   :  { %4081 = vst [vmem:[#allocation18 + $0x10] sm:$0xff] %v4073_v5 }
 0xcf7   :  { %v3991_v20 = vpop.f32.mrf.mxu3  ;;  %v4056_v46 = vpop.f32.mrf.mxu2 }
 0xcf8   :  { %v3992_v28 = vadd.f32 %v3991_v20, %v3935_v41  ;;  %v4057_v57 = vadd.f32 %v4236_v44, %v4056_v46 }
 0xcfa   :  { %v4001_v39 = vmul.f32 0.2, %v3992_v28  ;;  %v4074_v37 = vadd.f32 %v4057_v57, %v9161_v18 }
 0xcfc   :  { %v4009_v35 = vmax.f32 %v3992_v28, %v4001_v39  ;;  %4082 = vst [vmem:[#allocation18 + $0x18] sm:$0xff] %v4074_v37 }
 0xcfe   :  { %4067 = vmatmul.f32.gmra.mxu2 %v4009_v35 }
 0xcff   :  { %v4059_v23 = vpop.f32.mrf.mxu2 }
 0xd00   :  { %v4060_v2 = vadd.f32 %v4236_v44, %v4059_v23 }
 0xd02   :  { %v4075_v47 = vadd.f32 %v4060_v2, %v9166_v30 }
 0xd04   :  { %4083 = vst [vmem:[#allocation18 + $0x20] sm:$0xff] %v4075_v47 }
 0xd07   :  { %v4062_v59 = vpop.f32.mrf.mxu2 }
 0xd08   :  { %v4063_v17 = vadd.f32 %v4236_v44, %v4062_v59 }
 0xd0a   :  { %v4076_v7 = vadd.f32 %v4063_v17, %v9170_v19 }
 0xd0c   :  { %4084 = vst [vmem:[#allocation18 + $0x28] sm:$0xff] %v4076_v7 }
 0xd0f   :  { %v4065_v33 = vpop.f32.mrf.mxu2 }
 0xd10   :  { %v4066_v40 = vadd.f32 %v4236_v44, %v4065_v33 }
 0xd12   :  { %v4077_v53 = vadd.f32 %v4066_v40, %v9174_v51 }
 0xd14   :  { %4085 = vst [vmem:[#allocation18 + $0x30] sm:$0xff] %v4077_v53 }
 0xd81   :  { %v4068_v31 = vpop.f32.mrf.mxu2 }
 0xd82   :  { %v4069_v18 = vadd.f32 %v4236_v44, %v4068_v31 }
 0xd84   :  { %v4078_v30 = vadd.f32 %v4069_v18, %v3852_v0 }
 0xd86   :  { %4086 = vst [vmem:[#allocation18 + $0x38] sm:$0xff] %v4078_v30 }
 0xd87   :  { %4099 = dma.vmem_to_hbm [thread:$0]  %s4092_s14, 1024, %s4094_s1, [#allocation6], %s5307_s24, %s5307_s24, %s5308_s25  }
 0xd88   :  { %5300 = dma.done.wait [#allocation6], 1024  }
 0xd89   :  { %5301 = vsyncadd [#allocation6], 4294966272 }
 0xd8a   :  { %4104 = vsyncpa [#allocation5], 1 }
 0xd8b   :  { %4105 = vsyncpa [#allocation8], 1 }
 0xd8c   :  { %4106 = vsyncpa [#allocation11], 1 }
 0xd8d   :  { %4107 = vsyncpa [#allocation14], 1 }
 0xd8e   :  { %4108 = vsyncpa [#allocation17], 1 }
 0xd8f   :  { %4109 = vsyncpa [#allocation6], 1 }

</bundles_post_ra>
